<compile_context>
chip_gen: v5e
topology: v5e:2x2
jax: 0.10.0
libtpu: 0.0.40
codegen_flags: <defaults>
</compile_context>

<pallas_src>
import functools

import jax
import jax.numpy as jnp
from jax.experimental import pallas as pl
from jax.experimental.pallas import tpu as pltpu


EPS = 1e-5


def _realnvp_kernel(x_ref,        # (CIN, M)      f32   input, channels-on-sublanes
                    mask_ref,     # (9, M)        f32   border masks per 3x3 tap
                    win_ref,      # (CH, 9*CIN)   bf16  conv_in
                    w1_ref,       # (CH, 9*CH)    bf16  conv_1
                    w2_ref,       # (CH, 9*CH)    bf16  conv_2
                    w3_ref,       # (CH, 9*CH)    bf16  conv_3
                    w4_ref,       # (CH, 9*CH)    bf16  conv_4
                    w1x1_ref,     # (CH, 3*CH)    bf16  [conv_1x1 | conv_1x1_a | conv_1x1_b]
                    wout_ref,     # (2*CIN, CH)   bf16  conv_out weight
                    bout_ref,     # (2*CIN, 1)    f32   conv_out bias
                    gamma_ref,    # (CH, 5)       f32   BatchReNorm gammas
                    beta_ref,     # (CH, 5)       f32   BatchReNorm betas
                    out_ref,      # (2*CIN, M)    f32   lane-dense output
                    *, ww):
    M = x_ref.shape[1]

    # Border masks are identical for all 5 convs: load the 9 (1, M) rows once and
    # reuse them (no per-conv iota/compare work).  Row k corresponds to tap
    # (dy, dx) in row-major order over dy, dx in (-1, 0, 1).
    masks = [mask_ref[k:k + 1, :] for k in range(9)]

    def im2col_bf16(t):
        """(C, M) f32 -> (9*C, M) bf16 im2col patches.

        Tap (dy, dx) of a 3x3 "same" conv reads input (y+dy, x+dx); on the flattened
        spatial index that is a lane rotation by dy*W + dx (pltpu.roll, XLU slot).
        Wrapped / cross-row / cross-image lanes are exactly the out-of-image taps and
        are zeroed by the precomputed border mask (== zero padding).  The mask
        multiply stays in f32 (v5e-safe); each masked tap is cast to bf16 so the
        patches are assembled directly in bf16.  Row blocks are ordered (dy, dx)
        row-major to match the (Cout, 3, 3, Cin) -> (Cout, 9*Cin) weight reshape.
        """
        cols = []
        k = 0
        for dy in (-1, 0, 1):
            for dx in (-1, 0, 1):
                if dy == 0 and dx == 0:
                    cols.append(t.astype(jnp.bfloat16))
                else:
                    off = dy * ww + dx
                    shifted = pltpu.roll(t, (-off) % M, axis=1)
                    cols.append((shifted * masks[k]).astype(jnp.bfloat16))
                k += 1
        return jnp.concatenate(cols, axis=0)

    def conv3x3(t, w_ref):
        # (Cout, 9*Cin) @ (9*Cin, M) -> (Cout, M) f32, result 512 lanes wide.
        return jnp.dot(w_ref[...], im2col_bf16(t),
                       preferred_element_type=jnp.float32)

    def renorm_relu(t, idx):
        # BatchReNorm2d in its warm-up regime (r=1, d=0): training-mode batch stats
        # over all M = N*H*W positions, two-pass (centered) variance in f32.
        mean = jnp.mean(t, axis=1, keepdims=True)                    # (C, 1)
        cen = t - mean
        var = jnp.mean(cen * cen, axis=1, keepdims=True)
        scale = gamma_ref[:, idx:idx + 1] * jax.lax.rsqrt(var + EPS)
        return jnp.maximum(cen * scale + beta_ref[:, idx:idx + 1], 0.0)

    h0 = conv3x3(x_ref[...], win_ref)            # conv_in                  (CH, M)

    t = renorm_relu(h0, 0)                       # norm_1 + relu
    t = conv3x3(t, w1_ref)                       # conv_1
    t = renorm_relu(t, 1)                        # norm_2 + relu
    x_a = conv3x3(t, w2_ref) + h0                # conv_2 + residual

    t = renorm_relu(x_a, 2)                      # norm_3 + relu
    t = conv3x3(t, w3_ref)                       # conv_3
    t = renorm_relu(t, 3)                        # norm_4 + relu
    x_b = conv3x3(t, w4_ref) + x_a               # conv_4 + residual

    # conv_1x1(h0) + conv_1x1_a(x_a) + conv_1x1_b(x_b) as one K = 3*CH matmul
    # (concat blocks are CH = 32 rows -> sublane-aligned).
    merged = jnp.concatenate(
        [h0.astype(jnp.bfloat16), x_a.astype(jnp.bfloat16), x_b.astype(jnp.bfloat16)],
        axis=0)                                                      # (3*CH, M)
    y = jnp.dot(w1x1_ref[...], merged, preferred_element_type=jnp.float32)
    y = renorm_relu(y, 4)                        # norm_out + relu

    # conv_out (1x1 + bias): (2*CIN, CH) @ (CH, M) -> (2*CIN, M), lane-dense store.
    out = jnp.dot(wout_ref[...], y.astype(jnp.bfloat16),
                  preferred_element_type=jnp.float32)
    out_ref[...] = out + bout_ref[...]


def pack_params(params):
    """One-time reshape/cast of module parameters into the kernel's NT matmul layout."""
    def conv3_nt(w):  # (3, 3, Cin, Cout) -> (Cout, 9*Cin) bf16, (dy, dx) row-major
        kh, kw, cin, cout = w.shape
        return (w.transpose(3, 0, 1, 2)
                 .reshape(cout, kh * kw * cin)
                 .astype(jnp.bfloat16))

    out_c = params["w_out"].shape[-1]
    return {
        "w_in": conv3_nt(params["w_in"]),
        "w1": conv3_nt(params["w1"]),
        "w2": conv3_nt(params["w2"]),
        "w3": conv3_nt(params["w3"]),
        "w4": conv3_nt(params["w4"]),
        # 1x1 weights stored (Cin, Cout) -> (Cout, Cin); fuse the three branches along K.
        "w1x1": jnp.concatenate(
            [params["w1x1"].T, params["w1x1a"].T, params["w1x1b"].T],
            axis=1).astype(jnp.bfloat16),                           # (CH, 3*CH)
        "w_out": params["w_out"].T.astype(jnp.bfloat16),            # (2*CIN, CH)
        "b_out": params["b_out"].reshape(out_c, 1).astype(jnp.float32),
        "gamma": params["gamma"].T.astype(jnp.float32),             # (CH, 5)
        "beta": params["beta"].T.astype(jnp.float32),               # (CH, 5)
    }


def _border_mask(n, h, w):
    """(9, M) f32 validity mask for the 9 taps of a 3x3 'same' conv on the flattened
    spatial index m = (img*H + y)*W + x.  Computed once host/XLA-side (constant)."""
    m = jnp.arange(n * h * w, dtype=jnp.int32)
    yy = (m // w) % h
    xx = m % w
    rows = []
    for dy in (-1, 0, 1):
        for dx in (-1, 0, 1):
            ok = ((yy + dy >= 0) & (yy + dy < h) &
                  (xx + dx >= 0) & (xx + dx < w))
            rows.append(ok.astype(jnp.float32))
    return jnp.stack(rows, axis=0)


@jax.jit
def realnvp_forward(x_nchw, packed):
    """x_nchw: (N, CIN, H, W) float32  ->  (s, t) each (N, CIN, H, W)."""
    N, CIN, H, W = x_nchw.shape
    M = N * H * W
    OUT_C = packed["w_out"].shape[0]            # 2 * CIN

    # NCHW (PyTorch) -> (CIN, N*H*W): only N<->C swap, cheaper than a full NHWC transpose.
    x = jnp.transpose(x_nchw, (1, 0, 2, 3)).astype(jnp.float32).reshape(CIN, M)
    mask = _border_mask(N, H, W)                 # constant-folded under jit

    kernel = functools.partial(_realnvp_kernel, ww=W)
    vmem = pl.BlockSpec(memory_space=pltpu.MemorySpace.VMEM)
    args = (x, mask,
            packed["w_in"],
            packed["w1"], packed["w2"], packed["w3"], packed["w4"],
            packed["w1x1"], packed["w_out"], packed["b_out"],
            packed["gamma"], packed["beta"])

    out = pl.pallas_call(
        kernel,
        out_shape=jax.ShapeDtypeStruct((OUT_C, M), jnp.float32),
        in_specs=[vmem] * len(args),
        out_specs=vmem,
    )(*args)

    # (2*CIN, M) -> (N, 2*CIN, H, W); chunk along channels like torch.chunk(x, 2, dim=1).
    out = out.reshape(OUT_C, N, H, W).transpose(1, 0, 2, 3)
    s, t = jnp.split(out, 2, axis=1)
    return s, t


def init_params(key, input_channels, hidden_channels):
    """Deterministic init mirroring RealNVPModule.__init__ (3x3 weights stored as
    (kh, kw, Cin, Cout), 1x1 weights as (Cin, Cout))."""
    keys = jax.random.split(key, 16)

    def kaiming_normal(k, shape, fan_in):
        # torch.nn.init.kaiming_normal_ default: fan_in, gain = sqrt(2)
        std = (2.0 / fan_in) ** 0.5
        return std * jax.random.normal(k, shape, dtype=jnp.float32)

    def default_conv_init(k, shape, fan_in):
        # PyTorch Conv2d default: kaiming_uniform(a=sqrt(5)) -> U(-1/sqrt(fan_in), 1/sqrt(fan_in))
        bound = 1.0 / (fan_in ** 0.5)
        return jax.random.uniform(k, shape, jnp.float32, -bound, bound)

    cin, ch = input_channels, hidden_channels
    params = {
        "w_in":  kaiming_normal(keys[0], (3, 3, cin, ch), cin * 9),
        "w1":    kaiming_normal(keys[1], (3, 3, ch, ch), ch * 9),
        "w2":    kaiming_normal(keys[2], (3, 3, ch, ch), ch * 9),
        "w3":    kaiming_normal(keys[3], (3, 3, ch, ch), ch * 9),
        "w4":    kaiming_normal(keys[4], (3, 3, ch, ch), ch * 9),
        # conv_1x1 keeps the PyTorch default init (not re-initialized in __init__)
        "w1x1":  default_conv_init(keys[5], (ch, ch), ch),
        "w1x1a": kaiming_normal(keys[6], (ch, ch), ch),
        "w1x1b": kaiming_normal(keys[7], (ch, ch), ch),
        # conv_out: zero weight and zero bias (per init.zeros_)
        "w_out": jnp.zeros((ch, 2 * cin), jnp.float32),
        "b_out": jnp.zeros((2 * cin,), jnp.float32),
        # BatchReNorm affine params: gamma=1, beta=0 for the 5 norm layers
        "gamma": jnp.ones((5, ch), jnp.float32),
        "beta":  jnp.zeros((5, ch), jnp.float32),
    }
    return params


if __name__ == "__main__":
    INPUT_CHANNELS = 4
    HIDDEN_CHANNELS = 32
    N, H, W = 2, 16, 16

    key = jax.random.PRNGKey(0)
    k_x, k_p = jax.random.split(key)
    x = jax.random.normal(k_x, (N, INPUT_CHANNELS, H, W), dtype=jnp.float32)
    params = init_params(k_p, INPUT_CHANNELS, HIDDEN_CHANNELS)
    packed = pack_params(params)

    s, t = realnvp_forward(x, packed)
    s, t = jax.block_until_ready((s, t))

    assert s.shape == (N, INPUT_CHANNELS, H, W)
    assert t.shape == (N, INPUT_CHANNELS, H, W)
    assert bool(jnp.all(jnp.isfinite(s))) and bool(jnp.all(jnp.isfinite(t)))
    print("KERNEL_OK")
</pallas_src>

<mosaic_0001>
module attributes {stable_mosaic.version = 11 : i64} {
  func.func @_realnvp_kernel(%arg0: memref<4x512xf32, #tpu.memory_space<vmem>>, %arg1: memref<9x512xf32, #tpu.memory_space<vmem>>, %arg2: memref<32x36xbf16, #tpu.memory_space<vmem>>, %arg3: memref<32x288xbf16, #tpu.memory_space<vmem>>, %arg4: memref<32x288xbf16, #tpu.memory_space<vmem>>, %arg5: memref<32x288xbf16, #tpu.memory_space<vmem>>, %arg6: memref<32x288xbf16, #tpu.memory_space<vmem>>, %arg7: memref<32x96xbf16, #tpu.memory_space<vmem>>, %arg8: memref<8x32xbf16, #tpu.memory_space<vmem>>, %arg9: memref<8x1xf32, #tpu.memory_space<vmem>>, %arg10: memref<32x5xf32, #tpu.memory_space<vmem>>, %arg11: memref<32x5xf32, #tpu.memory_space<vmem>>, %arg12: memref<8x512xf32, #tpu.memory_space<vmem>>) attributes {dimension_semantics = [], scalar_prefetch = 0 : i64, scratch_operands = 0 : i64, tpu.core_type = #tpu.core_type<tc>} {
    %c0 = arith.constant 0 : index
    %c0_0 = arith.constant 0 : index
    %0 = vector.load %arg1[%c0, %c0_0] : memref<9x512xf32, #tpu.memory_space<vmem>>, vector<1x512xf32>
    %c1 = arith.constant 1 : index
    %c0_1 = arith.constant 0 : index
    %1 = vector.load %arg1[%c1, %c0_1] : memref<9x512xf32, #tpu.memory_space<vmem>>, vector<1x512xf32>
    %c2 = arith.constant 2 : index
    %c0_2 = arith.constant 0 : index
    %2 = vector.load %arg1[%c2, %c0_2] : memref<9x512xf32, #tpu.memory_space<vmem>>, vector<1x512xf32>
    %c3 = arith.constant 3 : index
    %c0_3 = arith.constant 0 : index
    %3 = vector.load %arg1[%c3, %c0_3] : memref<9x512xf32, #tpu.memory_space<vmem>>, vector<1x512xf32>
    %c5 = arith.constant 5 : index
    %c0_4 = arith.constant 0 : index
    %4 = vector.load %arg1[%c5, %c0_4] : memref<9x512xf32, #tpu.memory_space<vmem>>, vector<1x512xf32>
    %c6 = arith.constant 6 : index
    %c0_5 = arith.constant 0 : index
    %5 = vector.load %arg1[%c6, %c0_5] : memref<9x512xf32, #tpu.memory_space<vmem>>, vector<1x512xf32>
    %c7 = arith.constant 7 : index
    %c0_6 = arith.constant 0 : index
    %6 = vector.load %arg1[%c7, %c0_6] : memref<9x512xf32, #tpu.memory_space<vmem>>, vector<1x512xf32>
    %c8 = arith.constant 8 : index
    %c0_7 = arith.constant 0 : index
    %7 = vector.load %arg1[%c8, %c0_7] : memref<9x512xf32, #tpu.memory_space<vmem>>, vector<1x512xf32>
    %c0_8 = arith.constant 0 : index
    %c0_9 = arith.constant 0 : index
    %8 = vector.load %arg0[%c0_8, %c0_9] : memref<4x512xf32, #tpu.memory_space<vmem>>, vector<4x512xf32>
    %c0_10 = arith.constant 0 : index
    %c0_11 = arith.constant 0 : index
    %9 = vector.load %arg2[%c0_10, %c0_11] : memref<32x36xbf16, #tpu.memory_space<vmem>>, vector<32x36xbf16>
    %c17_i32 = arith.constant 17 : i32
    %10 = tpu.dynamic_rotate %8 by %c17_i32 dim 1 : vector<4x512xf32>, i32 -> vector<4x512xf32>
    %11 = vector.broadcast %0 : vector<1x512xf32> to vector<4x512xf32>
    %12 = arith.mulf %10, %11 : vector<4x512xf32>
    %13 = arith.truncf %12 : vector<4x512xf32> to vector<4x512xbf16>
    %c16_i32 = arith.constant 16 : i32
    %14 = tpu.dynamic_rotate %8 by %c16_i32 dim 1 : vector<4x512xf32>, i32 -> vector<4x512xf32>
    %15 = vector.broadcast %1 : vector<1x512xf32> to vector<4x512xf32>
    %16 = arith.mulf %14, %15 : vector<4x512xf32>
    %17 = arith.truncf %16 : vector<4x512xf32> to vector<4x512xbf16>
    %c15_i32 = arith.constant 15 : i32
    %18 = tpu.dynamic_rotate %8 by %c15_i32 dim 1 : vector<4x512xf32>, i32 -> vector<4x512xf32>
    %19 = vector.broadcast %2 : vector<1x512xf32> to vector<4x512xf32>
    %20 = arith.mulf %18, %19 : vector<4x512xf32>
    %21 = arith.truncf %20 : vector<4x512xf32> to vector<4x512xbf16>
    %c1_i32 = arith.constant 1 : i32
    %22 = tpu.dynamic_rotate %8 by %c1_i32 dim 1 : vector<4x512xf32>, i32 -> vector<4x512xf32>
    %23 = vector.broadcast %3 : vector<1x512xf32> to vector<4x512xf32>
    %24 = arith.mulf %22, %23 : vector<4x512xf32>
    %25 = arith.truncf %24 : vector<4x512xf32> to vector<4x512xbf16>
    %26 = arith.truncf %8 : vector<4x512xf32> to vector<4x512xbf16>
    %c511_i32 = arith.constant 511 : i32
    %27 = tpu.dynamic_rotate %8 by %c511_i32 dim 1 : vector<4x512xf32>, i32 -> vector<4x512xf32>
    %28 = vector.broadcast %4 : vector<1x512xf32> to vector<4x512xf32>
    %29 = arith.mulf %27, %28 : vector<4x512xf32>
    %30 = arith.truncf %29 : vector<4x512xf32> to vector<4x512xbf16>
    %c497_i32 = arith.constant 497 : i32
    %31 = tpu.dynamic_rotate %8 by %c497_i32 dim 1 : vector<4x512xf32>, i32 -> vector<4x512xf32>
    %32 = vector.broadcast %5 : vector<1x512xf32> to vector<4x512xf32>
    %33 = arith.mulf %31, %32 : vector<4x512xf32>
    %34 = arith.truncf %33 : vector<4x512xf32> to vector<4x512xbf16>
    %c496_i32 = arith.constant 496 : i32
    %35 = tpu.dynamic_rotate %8 by %c496_i32 dim 1 : vector<4x512xf32>, i32 -> vector<4x512xf32>
    %36 = vector.broadcast %6 : vector<1x512xf32> to vector<4x512xf32>
    %37 = arith.mulf %35, %36 : vector<4x512xf32>
    %38 = arith.truncf %37 : vector<4x512xf32> to vector<4x512xbf16>
    %c495_i32 = arith.constant 495 : i32
    %39 = tpu.dynamic_rotate %8 by %c495_i32 dim 1 : vector<4x512xf32>, i32 -> vector<4x512xf32>
    %40 = vector.broadcast %7 : vector<1x512xf32> to vector<4x512xf32>
    %41 = arith.mulf %39, %40 : vector<4x512xf32>
    %42 = arith.truncf %41 : vector<4x512xf32> to vector<4x512xbf16>
    %43 = tpu.concatenate %13, %17, %21, %25, %26, %30, %34, %38, %42 in 0 : vector<4x512xbf16>, vector<4x512xbf16>, vector<4x512xbf16>, vector<4x512xbf16>, vector<4x512xbf16>, vector<4x512xbf16>, vector<4x512xbf16>, vector<4x512xbf16>, vector<4x512xbf16> -> vector<36x512xbf16>
    %cst = arith.constant dense<0.000000e+00> : vector<32x512xf32>
    %44 = tpu.matmul %9, %43, %cst {dimension_numbers = #tpu.dot_dimension_numbers<[1], [0], [0], [1], [0, 0, 1, 1], [], []>} : vector<32x36xbf16>, vector<36x512xbf16>, vector<32x512xf32> -> vector<32x512xf32>
    %cst_12 = arith.constant dense<0.000000e+00> : vector<32xf32>
    %45 = vector.multi_reduction <add>, %44, %cst_12 [1] : vector<32x512xf32> to vector<32xf32>
    %46 = vector.shape_cast %45 : vector<32xf32> to vector<32x1xf32>
    %cst_13 = arith.constant 5.120000e+02 : f32
    %47 = vector.broadcast %cst_13 : f32 to vector<32x1xf32>
    %48 = arith.divf %46, %47 : vector<32x1xf32>
    %49 = vector.broadcast %48 : vector<32x1xf32> to vector<32x512xf32>
    %50 = arith.subf %44, %49 : vector<32x512xf32>
    %51 = arith.mulf %50, %50 : vector<32x512xf32>
    %cst_14 = arith.constant dense<0.000000e+00> : vector<32xf32>
    %52 = vector.multi_reduction <add>, %51, %cst_14 [1] : vector<32x512xf32> to vector<32xf32>
    %53 = vector.shape_cast %52 : vector<32xf32> to vector<32x1xf32>
    %cst_15 = arith.constant 5.120000e+02 : f32
    %54 = vector.broadcast %cst_15 : f32 to vector<32x1xf32>
    %55 = arith.divf %53, %54 : vector<32x1xf32>
    %c0_16 = arith.constant 0 : index
    %c0_17 = arith.constant 0 : index
    %56 = vector.load %arg10[%c0_16, %c0_17] : memref<32x5xf32, #tpu.memory_space<vmem>>, vector<32x1xf32>
    %cst_18 = arith.constant 9.99999974E-6 : f32
    %57 = vector.broadcast %cst_18 : f32 to vector<32x1xf32>
    %58 = arith.addf %55, %57 : vector<32x1xf32>
    %59 = math.rsqrt %58 : vector<32x1xf32>
    %60 = arith.mulf %56, %59 : vector<32x1xf32>
    %61 = vector.broadcast %60 : vector<32x1xf32> to vector<32x512xf32>
    %62 = arith.mulf %50, %61 : vector<32x512xf32>
    %c0_19 = arith.constant 0 : index
    %c0_20 = arith.constant 0 : index
    %63 = vector.load %arg11[%c0_19, %c0_20] : memref<32x5xf32, #tpu.memory_space<vmem>>, vector<32x1xf32>
    %64 = vector.broadcast %63 : vector<32x1xf32> to vector<32x512xf32>
    %65 = arith.addf %62, %64 : vector<32x512xf32>
    %cst_21 = arith.constant 0.000000e+00 : f32
    %66 = vector.broadcast %cst_21 : f32 to vector<32x512xf32>
    %67 = arith.maximumf %65, %66 : vector<32x512xf32>
    %c0_22 = arith.constant 0 : index
    %c0_23 = arith.constant 0 : index
    %68 = vector.load %arg3[%c0_22, %c0_23] : memref<32x288xbf16, #tpu.memory_space<vmem>>, vector<32x288xbf16>
    %c17_i32_24 = arith.constant 17 : i32
    %69 = tpu.dynamic_rotate %67 by %c17_i32_24 dim 1 : vector<32x512xf32>, i32 -> vector<32x512xf32>
    %70 = vector.broadcast %0 : vector<1x512xf32> to vector<32x512xf32>
    %71 = arith.mulf %69, %70 : vector<32x512xf32>
    %72 = arith.truncf %71 : vector<32x512xf32> to vector<32x512xbf16>
    %c16_i32_25 = arith.constant 16 : i32
    %73 = tpu.dynamic_rotate %67 by %c16_i32_25 dim 1 : vector<32x512xf32>, i32 -> vector<32x512xf32>
    %74 = vector.broadcast %1 : vector<1x512xf32> to vector<32x512xf32>
    %75 = arith.mulf %73, %74 : vector<32x512xf32>
    %76 = arith.truncf %75 : vector<32x512xf32> to vector<32x512xbf16>
    %c15_i32_26 = arith.constant 15 : i32
    %77 = tpu.dynamic_rotate %67 by %c15_i32_26 dim 1 : vector<32x512xf32>, i32 -> vector<32x512xf32>
    %78 = vector.broadcast %2 : vector<1x512xf32> to vector<32x512xf32>
    %79 = arith.mulf %77, %78 : vector<32x512xf32>
    %80 = arith.truncf %79 : vector<32x512xf32> to vector<32x512xbf16>
    %c1_i32_27 = arith.constant 1 : i32
    %81 = tpu.dynamic_rotate %67 by %c1_i32_27 dim 1 : vector<32x512xf32>, i32 -> vector<32x512xf32>
    %82 = vector.broadcast %3 : vector<1x512xf32> to vector<32x512xf32>
    %83 = arith.mulf %81, %82 : vector<32x512xf32>
    %84 = arith.truncf %83 : vector<32x512xf32> to vector<32x512xbf16>
    %85 = arith.truncf %67 : vector<32x512xf32> to vector<32x512xbf16>
    %c511_i32_28 = arith.constant 511 : i32
    %86 = tpu.dynamic_rotate %67 by %c511_i32_28 dim 1 : vector<32x512xf32>, i32 -> vector<32x512xf32>
    %87 = vector.broadcast %4 : vector<1x512xf32> to vector<32x512xf32>
    %88 = arith.mulf %86, %87 : vector<32x512xf32>
    %89 = arith.truncf %88 : vector<32x512xf32> to vector<32x512xbf16>
    %c497_i32_29 = arith.constant 497 : i32
    %90 = tpu.dynamic_rotate %67 by %c497_i32_29 dim 1 : vector<32x512xf32>, i32 -> vector<32x512xf32>
    %91 = vector.broadcast %5 : vector<1x512xf32> to vector<32x512xf32>
    %92 = arith.mulf %90, %91 : vector<32x512xf32>
    %93 = arith.truncf %92 : vector<32x512xf32> to vector<32x512xbf16>
    %c496_i32_30 = arith.constant 496 : i32
    %94 = tpu.dynamic_rotate %67 by %c496_i32_30 dim 1 : vector<32x512xf32>, i32 -> vector<32x512xf32>
    %95 = vector.broadcast %6 : vector<1x512xf32> to vector<32x512xf32>
    %96 = arith.mulf %94, %95 : vector<32x512xf32>
    %97 = arith.truncf %96 : vector<32x512xf32> to vector<32x512xbf16>
    %c495_i32_31 = arith.constant 495 : i32
    %98 = tpu.dynamic_rotate %67 by %c495_i32_31 dim 1 : vector<32x512xf32>, i32 -> vector<32x512xf32>
    %99 = vector.broadcast %7 : vector<1x512xf32> to vector<32x512xf32>
    %100 = arith.mulf %98, %99 : vector<32x512xf32>
    %101 = arith.truncf %100 : vector<32x512xf32> to vector<32x512xbf16>
    %102 = tpu.concatenate %72, %76, %80, %84, %85, %89, %93, %97, %101 in 0 : vector<32x512xbf16>, vector<32x512xbf16>, vector<32x512xbf16>, vector<32x512xbf16>, vector<32x512xbf16>, vector<32x512xbf16>, vector<32x512xbf16>, vector<32x512xbf16>, vector<32x512xbf16> -> vector<288x512xbf16>
    %cst_32 = arith.constant dense<0.000000e+00> : vector<32x512xf32>
    %103 = tpu.matmul %68, %102, %cst_32 {dimension_numbers = #tpu.dot_dimension_numbers<[1], [0], [0], [1], [0, 0, 1, 1], [], []>} : vector<32x288xbf16>, vector<288x512xbf16>, vector<32x512xf32> -> vector<32x512xf32>
    %cst_33 = arith.constant dense<0.000000e+00> : vector<32xf32>
    %104 = vector.multi_reduction <add>, %103, %cst_33 [1] : vector<32x512xf32> to vector<32xf32>
    %105 = vector.shape_cast %104 : vector<32xf32> to vector<32x1xf32>
    %cst_34 = arith.constant 5.120000e+02 : f32
    %106 = vector.broadcast %cst_34 : f32 to vector<32x1xf32>
    %107 = arith.divf %105, %106 : vector<32x1xf32>
    %108 = vector.broadcast %107 : vector<32x1xf32> to vector<32x512xf32>
    %109 = arith.subf %103, %108 : vector<32x512xf32>
    %110 = arith.mulf %109, %109 : vector<32x512xf32>
    %cst_35 = arith.constant dense<0.000000e+00> : vector<32xf32>
    %111 = vector.multi_reduction <add>, %110, %cst_35 [1] : vector<32x512xf32> to vector<32xf32>
    %112 = vector.shape_cast %111 : vector<32xf32> to vector<32x1xf32>
    %cst_36 = arith.constant 5.120000e+02 : f32
    %113 = vector.broadcast %cst_36 : f32 to vector<32x1xf32>
    %114 = arith.divf %112, %113 : vector<32x1xf32>
    %c0_37 = arith.constant 0 : index
    %c1_38 = arith.constant 1 : index
    %115 = vector.load %arg10[%c0_37, %c1_38] : memref<32x5xf32, #tpu.memory_space<vmem>>, vector<32x1xf32>
    %cst_39 = arith.constant 9.99999974E-6 : f32
    %116 = vector.broadcast %cst_39 : f32 to vector<32x1xf32>
    %117 = arith.addf %114, %116 : vector<32x1xf32>
    %118 = math.rsqrt %117 : vector<32x1xf32>
    %119 = arith.mulf %115, %118 : vector<32x1xf32>
    %120 = vector.broadcast %119 : vector<32x1xf32> to vector<32x512xf32>
    %121 = arith.mulf %109, %120 : vector<32x512xf32>
    %c0_40 = arith.constant 0 : index
    %c1_41 = arith.constant 1 : index
    %122 = vector.load %arg11[%c0_40, %c1_41] : memref<32x5xf32, #tpu.memory_space<vmem>>, vector<32x1xf32>
    %123 = vector.broadcast %122 : vector<32x1xf32> to vector<32x512xf32>
    %124 = arith.addf %121, %123 : vector<32x512xf32>
    %cst_42 = arith.constant 0.000000e+00 : f32
    %125 = vector.broadcast %cst_42 : f32 to vector<32x512xf32>
    %126 = arith.maximumf %124, %125 : vector<32x512xf32>
    %c0_43 = arith.constant 0 : index
    %c0_44 = arith.constant 0 : index
    %127 = vector.load %arg4[%c0_43, %c0_44] : memref<32x288xbf16, #tpu.memory_space<vmem>>, vector<32x288xbf16>
    %c17_i32_45 = arith.constant 17 : i32
    %128 = tpu.dynamic_rotate %126 by %c17_i32_45 dim 1 : vector<32x512xf32>, i32 -> vector<32x512xf32>
    %129 = vector.broadcast %0 : vector<1x512xf32> to vector<32x512xf32>
    %130 = arith.mulf %128, %129 : vector<32x512xf32>
    %131 = arith.truncf %130 : vector<32x512xf32> to vector<32x512xbf16>
    %c16_i32_46 = arith.constant 16 : i32
    %132 = tpu.dynamic_rotate %126 by %c16_i32_46 dim 1 : vector<32x512xf32>, i32 -> vector<32x512xf32>
    %133 = vector.broadcast %1 : vector<1x512xf32> to vector<32x512xf32>
    %134 = arith.mulf %132, %133 : vector<32x512xf32>
    %135 = arith.truncf %134 : vector<32x512xf32> to vector<32x512xbf16>
    %c15_i32_47 = arith.constant 15 : i32
    %136 = tpu.dynamic_rotate %126 by %c15_i32_47 dim 1 : vector<32x512xf32>, i32 -> vector<32x512xf32>
    %137 = vector.broadcast %2 : vector<1x512xf32> to vector<32x512xf32>
    %138 = arith.mulf %136, %137 : vector<32x512xf32>
    %139 = arith.truncf %138 : vector<32x512xf32> to vector<32x512xbf16>
    %c1_i32_48 = arith.constant 1 : i32
    %140 = tpu.dynamic_rotate %126 by %c1_i32_48 dim 1 : vector<32x512xf32>, i32 -> vector<32x512xf32>
    %141 = vector.broadcast %3 : vector<1x512xf32> to vector<32x512xf32>
    %142 = arith.mulf %140, %141 : vector<32x512xf32>
    %143 = arith.truncf %142 : vector<32x512xf32> to vector<32x512xbf16>
    %144 = arith.truncf %126 : vector<32x512xf32> to vector<32x512xbf16>
    %c511_i32_49 = arith.constant 511 : i32
    %145 = tpu.dynamic_rotate %126 by %c511_i32_49 dim 1 : vector<32x512xf32>, i32 -> vector<32x512xf32>
    %146 = vector.broadcast %4 : vector<1x512xf32> to vector<32x512xf32>
    %147 = arith.mulf %145, %146 : vector<32x512xf32>
    %148 = arith.truncf %147 : vector<32x512xf32> to vector<32x512xbf16>
    %c497_i32_50 = arith.constant 497 : i32
    %149 = tpu.dynamic_rotate %126 by %c497_i32_50 dim 1 : vector<32x512xf32>, i32 -> vector<32x512xf32>
    %150 = vector.broadcast %5 : vector<1x512xf32> to vector<32x512xf32>
    %151 = arith.mulf %149, %150 : vector<32x512xf32>
    %152 = arith.truncf %151 : vector<32x512xf32> to vector<32x512xbf16>
    %c496_i32_51 = arith.constant 496 : i32
    %153 = tpu.dynamic_rotate %126 by %c496_i32_51 dim 1 : vector<32x512xf32>, i32 -> vector<32x512xf32>
    %154 = vector.broadcast %6 : vector<1x512xf32> to vector<32x512xf32>
    %155 = arith.mulf %153, %154 : vector<32x512xf32>
    %156 = arith.truncf %155 : vector<32x512xf32> to vector<32x512xbf16>
    %c495_i32_52 = arith.constant 495 : i32
    %157 = tpu.dynamic_rotate %126 by %c495_i32_52 dim 1 : vector<32x512xf32>, i32 -> vector<32x512xf32>
    %158 = vector.broadcast %7 : vector<1x512xf32> to vector<32x512xf32>
    %159 = arith.mulf %157, %158 : vector<32x512xf32>
    %160 = arith.truncf %159 : vector<32x512xf32> to vector<32x512xbf16>
    %161 = tpu.concatenate %131, %135, %139, %143, %144, %148, %152, %156, %160 in 0 : vector<32x512xbf16>, vector<32x512xbf16>, vector<32x512xbf16>, vector<32x512xbf16>, vector<32x512xbf16>, vector<32x512xbf16>, vector<32x512xbf16>, vector<32x512xbf16>, vector<32x512xbf16> -> vector<288x512xbf16>
    %cst_53 = arith.constant dense<0.000000e+00> : vector<32x512xf32>
    %162 = tpu.matmul %127, %161, %cst_53 {dimension_numbers = #tpu.dot_dimension_numbers<[1], [0], [0], [1], [0, 0, 1, 1], [], []>} : vector<32x288xbf16>, vector<288x512xbf16>, vector<32x512xf32> -> vector<32x512xf32>
    %163 = arith.addf %162, %44 : vector<32x512xf32>
    %cst_54 = arith.constant dense<0.000000e+00> : vector<32xf32>
    %164 = vector.multi_reduction <add>, %163, %cst_54 [1] : vector<32x512xf32> to vector<32xf32>
    %165 = vector.shape_cast %164 : vector<32xf32> to vector<32x1xf32>
    %cst_55 = arith.constant 5.120000e+02 : f32
    %166 = vector.broadcast %cst_55 : f32 to vector<32x1xf32>
    %167 = arith.divf %165, %166 : vector<32x1xf32>
    %168 = vector.broadcast %167 : vector<32x1xf32> to vector<32x512xf32>
    %169 = arith.subf %163, %168 : vector<32x512xf32>
    %170 = arith.mulf %169, %169 : vector<32x512xf32>
    %cst_56 = arith.constant dense<0.000000e+00> : vector<32xf32>
    %171 = vector.multi_reduction <add>, %170, %cst_56 [1] : vector<32x512xf32> to vector<32xf32>
    %172 = vector.shape_cast %171 : vector<32xf32> to vector<32x1xf32>
    %cst_57 = arith.constant 5.120000e+02 : f32
    %173 = vector.broadcast %cst_57 : f32 to vector<32x1xf32>
    %174 = arith.divf %172, %173 : vector<32x1xf32>
    %c0_58 = arith.constant 0 : index
    %c2_59 = arith.constant 2 : index
    %175 = vector.load %arg10[%c0_58, %c2_59] : memref<32x5xf32, #tpu.memory_space<vmem>>, vector<32x1xf32>
    %cst_60 = arith.constant 9.99999974E-6 : f32
    %176 = vector.broadcast %cst_60 : f32 to vector<32x1xf32>
    %177 = arith.addf %174, %176 : vector<32x1xf32>
    %178 = math.rsqrt %177 : vector<32x1xf32>
    %179 = arith.mulf %175, %178 : vector<32x1xf32>
    %180 = vector.broadcast %179 : vector<32x1xf32> to vector<32x512xf32>
    %181 = arith.mulf %169, %180 : vector<32x512xf32>
    %c0_61 = arith.constant 0 : index
    %c2_62 = arith.constant 2 : index
    %182 = vector.load %arg11[%c0_61, %c2_62] : memref<32x5xf32, #tpu.memory_space<vmem>>, vector<32x1xf32>
    %183 = vector.broadcast %182 : vector<32x1xf32> to vector<32x512xf32>
    %184 = arith.addf %181, %183 : vector<32x512xf32>
    %cst_63 = arith.constant 0.000000e+00 : f32
    %185 = vector.broadcast %cst_63 : f32 to vector<32x512xf32>
    %186 = arith.maximumf %184, %185 : vector<32x512xf32>
    %c0_64 = arith.constant 0 : index
    %c0_65 = arith.constant 0 : index
    %187 = vector.load %arg5[%c0_64, %c0_65] : memref<32x288xbf16, #tpu.memory_space<vmem>>, vector<32x288xbf16>
    %c17_i32_66 = arith.constant 17 : i32
    %188 = tpu.dynamic_rotate %186 by %c17_i32_66 dim 1 : vector<32x512xf32>, i32 -> vector<32x512xf32>
    %189 = vector.broadcast %0 : vector<1x512xf32> to vector<32x512xf32>
    %190 = arith.mulf %188, %189 : vector<32x512xf32>
    %191 = arith.truncf %190 : vector<32x512xf32> to vector<32x512xbf16>
    %c16_i32_67 = arith.constant 16 : i32
    %192 = tpu.dynamic_rotate %186 by %c16_i32_67 dim 1 : vector<32x512xf32>, i32 -> vector<32x512xf32>
    %193 = vector.broadcast %1 : vector<1x512xf32> to vector<32x512xf32>
    %194 = arith.mulf %192, %193 : vector<32x512xf32>
    %195 = arith.truncf %194 : vector<32x512xf32> to vector<32x512xbf16>
    %c15_i32_68 = arith.constant 15 : i32
    %196 = tpu.dynamic_rotate %186 by %c15_i32_68 dim 1 : vector<32x512xf32>, i32 -> vector<32x512xf32>
    %197 = vector.broadcast %2 : vector<1x512xf32> to vector<32x512xf32>
    %198 = arith.mulf %196, %197 : vector<32x512xf32>
    %199 = arith.truncf %198 : vector<32x512xf32> to vector<32x512xbf16>
    %c1_i32_69 = arith.constant 1 : i32
    %200 = tpu.dynamic_rotate %186 by %c1_i32_69 dim 1 : vector<32x512xf32>, i32 -> vector<32x512xf32>
    %201 = vector.broadcast %3 : vector<1x512xf32> to vector<32x512xf32>
    %202 = arith.mulf %200, %201 : vector<32x512xf32>
    %203 = arith.truncf %202 : vector<32x512xf32> to vector<32x512xbf16>
    %204 = arith.truncf %186 : vector<32x512xf32> to vector<32x512xbf16>
    %c511_i32_70 = arith.constant 511 : i32
    %205 = tpu.dynamic_rotate %186 by %c511_i32_70 dim 1 : vector<32x512xf32>, i32 -> vector<32x512xf32>
    %206 = vector.broadcast %4 : vector<1x512xf32> to vector<32x512xf32>
    %207 = arith.mulf %205, %206 : vector<32x512xf32>
    %208 = arith.truncf %207 : vector<32x512xf32> to vector<32x512xbf16>
    %c497_i32_71 = arith.constant 497 : i32
    %209 = tpu.dynamic_rotate %186 by %c497_i32_71 dim 1 : vector<32x512xf32>, i32 -> vector<32x512xf32>
    %210 = vector.broadcast %5 : vector<1x512xf32> to vector<32x512xf32>
    %211 = arith.mulf %209, %210 : vector<32x512xf32>
    %212 = arith.truncf %211 : vector<32x512xf32> to vector<32x512xbf16>
    %c496_i32_72 = arith.constant 496 : i32
    %213 = tpu.dynamic_rotate %186 by %c496_i32_72 dim 1 : vector<32x512xf32>, i32 -> vector<32x512xf32>
    %214 = vector.broadcast %6 : vector<1x512xf32> to vector<32x512xf32>
    %215 = arith.mulf %213, %214 : vector<32x512xf32>
    %216 = arith.truncf %215 : vector<32x512xf32> to vector<32x512xbf16>
    %c495_i32_73 = arith.constant 495 : i32
    %217 = tpu.dynamic_rotate %186 by %c495_i32_73 dim 1 : vector<32x512xf32>, i32 -> vector<32x512xf32>
    %218 = vector.broadcast %7 : vector<1x512xf32> to vector<32x512xf32>
    %219 = arith.mulf %217, %218 : vector<32x512xf32>
    %220 = arith.truncf %219 : vector<32x512xf32> to vector<32x512xbf16>
    %221 = tpu.concatenate %191, %195, %199, %203, %204, %208, %212, %216, %220 in 0 : vector<32x512xbf16>, vector<32x512xbf16>, vector<32x512xbf16>, vector<32x512xbf16>, vector<32x512xbf16>, vector<32x512xbf16>, vector<32x512xbf16>, vector<32x512xbf16>, vector<32x512xbf16> -> vector<288x512xbf16>
    %cst_74 = arith.constant dense<0.000000e+00> : vector<32x512xf32>
    %222 = tpu.matmul %187, %221, %cst_74 {dimension_numbers = #tpu.dot_dimension_numbers<[1], [0], [0], [1], [0, 0, 1, 1], [], []>} : vector<32x288xbf16>, vector<288x512xbf16>, vector<32x512xf32> -> vector<32x512xf32>
    %cst_75 = arith.constant dense<0.000000e+00> : vector<32xf32>
    %223 = vector.multi_reduction <add>, %222, %cst_75 [1] : vector<32x512xf32> to vector<32xf32>
    %224 = vector.shape_cast %223 : vector<32xf32> to vector<32x1xf32>
    %cst_76 = arith.constant 5.120000e+02 : f32
    %225 = vector.broadcast %cst_76 : f32 to vector<32x1xf32>
    %226 = arith.divf %224, %225 : vector<32x1xf32>
    %227 = vector.broadcast %226 : vector<32x1xf32> to vector<32x512xf32>
    %228 = arith.subf %222, %227 : vector<32x512xf32>
    %229 = arith.mulf %228, %228 : vector<32x512xf32>
    %cst_77 = arith.constant dense<0.000000e+00> : vector<32xf32>
    %230 = vector.multi_reduction <add>, %229, %cst_77 [1] : vector<32x512xf32> to vector<32xf32>
    %231 = vector.shape_cast %230 : vector<32xf32> to vector<32x1xf32>
    %cst_78 = arith.constant 5.120000e+02 : f32
    %232 = vector.broadcast %cst_78 : f32 to vector<32x1xf32>
    %233 = arith.divf %231, %232 : vector<32x1xf32>
    %c0_79 = arith.constant 0 : index
    %c3_80 = arith.constant 3 : index
    %234 = vector.load %arg10[%c0_79, %c3_80] : memref<32x5xf32, #tpu.memory_space<vmem>>, vector<32x1xf32>
    %cst_81 = arith.constant 9.99999974E-6 : f32
    %235 = vector.broadcast %cst_81 : f32 to vector<32x1xf32>
    %236 = arith.addf %233, %235 : vector<32x1xf32>
    %237 = math.rsqrt %236 : vector<32x1xf32>
    %238 = arith.mulf %234, %237 : vector<32x1xf32>
    %239 = vector.broadcast %238 : vector<32x1xf32> to vector<32x512xf32>
    %240 = arith.mulf %228, %239 : vector<32x512xf32>
    %c0_82 = arith.constant 0 : index
    %c3_83 = arith.constant 3 : index
    %241 = vector.load %arg11[%c0_82, %c3_83] : memref<32x5xf32, #tpu.memory_space<vmem>>, vector<32x1xf32>
    %242 = vector.broadcast %241 : vector<32x1xf32> to vector<32x512xf32>
    %243 = arith.addf %240, %242 : vector<32x512xf32>
    %cst_84 = arith.constant 0.000000e+00 : f32
    %244 = vector.broadcast %cst_84 : f32 to vector<32x512xf32>
    %245 = arith.maximumf %243, %244 : vector<32x512xf32>
    %c0_85 = arith.constant 0 : index
    %c0_86 = arith.constant 0 : index
    %246 = vector.load %arg6[%c0_85, %c0_86] : memref<32x288xbf16, #tpu.memory_space<vmem>>, vector<32x288xbf16>
    %c17_i32_87 = arith.constant 17 : i32
    %247 = tpu.dynamic_rotate %245 by %c17_i32_87 dim 1 : vector<32x512xf32>, i32 -> vector<32x512xf32>
    %248 = vector.broadcast %0 : vector<1x512xf32> to vector<32x512xf32>
    %249 = arith.mulf %247, %248 : vector<32x512xf32>
    %250 = arith.truncf %249 : vector<32x512xf32> to vector<32x512xbf16>
    %c16_i32_88 = arith.constant 16 : i32
    %251 = tpu.dynamic_rotate %245 by %c16_i32_88 dim 1 : vector<32x512xf32>, i32 -> vector<32x512xf32>
    %252 = vector.broadcast %1 : vector<1x512xf32> to vector<32x512xf32>
    %253 = arith.mulf %251, %252 : vector<32x512xf32>
    %254 = arith.truncf %253 : vector<32x512xf32> to vector<32x512xbf16>
    %c15_i32_89 = arith.constant 15 : i32
    %255 = tpu.dynamic_rotate %245 by %c15_i32_89 dim 1 : vector<32x512xf32>, i32 -> vector<32x512xf32>
    %256 = vector.broadcast %2 : vector<1x512xf32> to vector<32x512xf32>
    %257 = arith.mulf %255, %256 : vector<32x512xf32>
    %258 = arith.truncf %257 : vector<32x512xf32> to vector<32x512xbf16>
    %c1_i32_90 = arith.constant 1 : i32
    %259 = tpu.dynamic_rotate %245 by %c1_i32_90 dim 1 : vector<32x512xf32>, i32 -> vector<32x512xf32>
    %260 = vector.broadcast %3 : vector<1x512xf32> to vector<32x512xf32>
    %261 = arith.mulf %259, %260 : vector<32x512xf32>
    %262 = arith.truncf %261 : vector<32x512xf32> to vector<32x512xbf16>
    %263 = arith.truncf %245 : vector<32x512xf32> to vector<32x512xbf16>
    %c511_i32_91 = arith.constant 511 : i32
    %264 = tpu.dynamic_rotate %245 by %c511_i32_91 dim 1 : vector<32x512xf32>, i32 -> vector<32x512xf32>
    %265 = vector.broadcast %4 : vector<1x512xf32> to vector<32x512xf32>
    %266 = arith.mulf %264, %265 : vector<32x512xf32>
    %267 = arith.truncf %266 : vector<32x512xf32> to vector<32x512xbf16>
    %c497_i32_92 = arith.constant 497 : i32
    %268 = tpu.dynamic_rotate %245 by %c497_i32_92 dim 1 : vector<32x512xf32>, i32 -> vector<32x512xf32>
    %269 = vector.broadcast %5 : vector<1x512xf32> to vector<32x512xf32>
    %270 = arith.mulf %268, %269 : vector<32x512xf32>
    %271 = arith.truncf %270 : vector<32x512xf32> to vector<32x512xbf16>
    %c496_i32_93 = arith.constant 496 : i32
    %272 = tpu.dynamic_rotate %245 by %c496_i32_93 dim 1 : vector<32x512xf32>, i32 -> vector<32x512xf32>
    %273 = vector.broadcast %6 : vector<1x512xf32> to vector<32x512xf32>
    %274 = arith.mulf %272, %273 : vector<32x512xf32>
    %275 = arith.truncf %274 : vector<32x512xf32> to vector<32x512xbf16>
    %c495_i32_94 = arith.constant 495 : i32
    %276 = tpu.dynamic_rotate %245 by %c495_i32_94 dim 1 : vector<32x512xf32>, i32 -> vector<32x512xf32>
    %277 = vector.broadcast %7 : vector<1x512xf32> to vector<32x512xf32>
    %278 = arith.mulf %276, %277 : vector<32x512xf32>
    %279 = arith.truncf %278 : vector<32x512xf32> to vector<32x512xbf16>
    %280 = tpu.concatenate %250, %254, %258, %262, %263, %267, %271, %275, %279 in 0 : vector<32x512xbf16>, vector<32x512xbf16>, vector<32x512xbf16>, vector<32x512xbf16>, vector<32x512xbf16>, vector<32x512xbf16>, vector<32x512xbf16>, vector<32x512xbf16>, vector<32x512xbf16> -> vector<288x512xbf16>
    %cst_95 = arith.constant dense<0.000000e+00> : vector<32x512xf32>
    %281 = tpu.matmul %246, %280, %cst_95 {dimension_numbers = #tpu.dot_dimension_numbers<[1], [0], [0], [1], [0, 0, 1, 1], [], []>} : vector<32x288xbf16>, vector<288x512xbf16>, vector<32x512xf32> -> vector<32x512xf32>
    %282 = arith.addf %281, %163 : vector<32x512xf32>
    %283 = arith.truncf %44 : vector<32x512xf32> to vector<32x512xbf16>
    %284 = arith.truncf %163 : vector<32x512xf32> to vector<32x512xbf16>
    %285 = arith.truncf %282 : vector<32x512xf32> to vector<32x512xbf16>
    %286 = tpu.concatenate %283, %284, %285 in 0 : vector<32x512xbf16>, vector<32x512xbf16>, vector<32x512xbf16> -> vector<96x512xbf16>
    %c0_96 = arith.constant 0 : index
    %c0_97 = arith.constant 0 : index
    %287 = vector.load %arg7[%c0_96, %c0_97] : memref<32x96xbf16, #tpu.memory_space<vmem>>, vector<32x96xbf16>
    %cst_98 = arith.constant dense<0.000000e+00> : vector<32x512xf32>
    %288 = tpu.matmul %287, %286, %cst_98 {dimension_numbers = #tpu.dot_dimension_numbers<[1], [0], [0], [1], [0, 0, 1, 1], [], []>} : vector<32x96xbf16>, vector<96x512xbf16>, vector<32x512xf32> -> vector<32x512xf32>
    %cst_99 = arith.constant dense<0.000000e+00> : vector<32xf32>
    %289 = vector.multi_reduction <add>, %288, %cst_99 [1] : vector<32x512xf32> to vector<32xf32>
    %290 = vector.shape_cast %289 : vector<32xf32> to vector<32x1xf32>
    %cst_100 = arith.constant 5.120000e+02 : f32
    %291 = vector.broadcast %cst_100 : f32 to vector<32x1xf32>
    %292 = arith.divf %290, %291 : vector<32x1xf32>
    %293 = vector.broadcast %292 : vector<32x1xf32> to vector<32x512xf32>
    %294 = arith.subf %288, %293 : vector<32x512xf32>
    %295 = arith.mulf %294, %294 : vector<32x512xf32>
    %cst_101 = arith.constant dense<0.000000e+00> : vector<32xf32>
    %296 = vector.multi_reduction <add>, %295, %cst_101 [1] : vector<32x512xf32> to vector<32xf32>
    %297 = vector.shape_cast %296 : vector<32xf32> to vector<32x1xf32>
    %cst_102 = arith.constant 5.120000e+02 : f32
    %298 = vector.broadcast %cst_102 : f32 to vector<32x1xf32>
    %299 = arith.divf %297, %298 : vector<32x1xf32>
    %c0_103 = arith.constant 0 : index
    %c4 = arith.constant 4 : index
    %300 = vector.load %arg10[%c0_103, %c4] : memref<32x5xf32, #tpu.memory_space<vmem>>, vector<32x1xf32>
    %cst_104 = arith.constant 9.99999974E-6 : f32
    %301 = vector.broadcast %cst_104 : f32 to vector<32x1xf32>
    %302 = arith.addf %299, %301 : vector<32x1xf32>
    %303 = math.rsqrt %302 : vector<32x1xf32>
    %304 = arith.mulf %300, %303 : vector<32x1xf32>
    %305 = vector.broadcast %304 : vector<32x1xf32> to vector<32x512xf32>
    %306 = arith.mulf %294, %305 : vector<32x512xf32>
    %c0_105 = arith.constant 0 : index
    %c4_106 = arith.constant 4 : index
    %307 = vector.load %arg11[%c0_105, %c4_106] : memref<32x5xf32, #tpu.memory_space<vmem>>, vector<32x1xf32>
    %308 = vector.broadcast %307 : vector<32x1xf32> to vector<32x512xf32>
    %309 = arith.addf %306, %308 : vector<32x512xf32>
    %cst_107 = arith.constant 0.000000e+00 : f32
    %310 = vector.broadcast %cst_107 : f32 to vector<32x512xf32>
    %311 = arith.maximumf %309, %310 : vector<32x512xf32>
    %c0_108 = arith.constant 0 : index
    %c0_109 = arith.constant 0 : index
    %312 = vector.load %arg8[%c0_108, %c0_109] : memref<8x32xbf16, #tpu.memory_space<vmem>>, vector<8x32xbf16>
    %313 = arith.truncf %311 : vector<32x512xf32> to vector<32x512xbf16>
    %cst_110 = arith.constant dense<0.000000e+00> : vector<8x512xf32>
    %314 = tpu.matmul %312, %313, %cst_110 {dimension_numbers = #tpu.dot_dimension_numbers<[1], [0], [0], [1], [0, 0, 1, 1], [], []>} : vector<8x32xbf16>, vector<32x512xbf16>, vector<8x512xf32> -> vector<8x512xf32>
    %c0_111 = arith.constant 0 : index
    %c0_112 = arith.constant 0 : index
    %315 = vector.load %arg9[%c0_111, %c0_112] : memref<8x1xf32, #tpu.memory_space<vmem>>, vector<8x1xf32>
    %316 = vector.broadcast %315 : vector<8x1xf32> to vector<8x512xf32>
    %317 = arith.addf %314, %316 : vector<8x512xf32>
    %c0_113 = arith.constant 0 : index
    %c0_114 = arith.constant 0 : index
    %318 = vector.load %arg12[%c0_113, %c0_114] : memref<8x512xf32, #tpu.memory_space<vmem>>, vector<8x512xf32>
    tpu.vector_store %arg12[%c0_113, %c0_114], %317 {strides = array<i32>} : memref<8x512xf32, #tpu.memory_space<vmem>>, vector<8x512xf32>,
    return
  }
}

</mosaic_0001>

<bundles_post_ra>
// kernel: realnvp_forward.1
= control target key start
LH: loop header
LB: loop body
LE: loop exit
PB: predicated region body
PF: predicated region fallthrough
CT: control target
= control target key end

     0   :  { %s7236_s25 = smov 17   ;;  %s7238_s26 = smov 15   ;;  %v84_v46 = vlaneseq  ;;  %vm498_vm4 = vcmask 1041408   ;;  %vm511_vm6 = vcmask 1043456   ;;  %vm520_vm7 = vcmask 1045504   ;;  %s14411_s0 = inlined_call_operand.vmem [shape: f32[4,512], index: 0, kind: input, shape index: {}]   ;;  %s14412_s1 = inlined_call_operand.vmem [shape: f32[9,512], index: 1, kind: input, shape index: {}]   ;;  %s14413_s2 = inlined_call_operand.vmem [shape: bf16[32,36], index: 2, kind: input, shape index: {}]   ;;  %s14414_s11 = inlined_call_operand.vmem [shape: f32[32,5], index: 11, kind: input, shape index: {}]   ;;  %s14415_s10 = inlined_call_operand.vmem [shape: f32[32,5], index: 10, kind: input, shape index: {}]   ;;  %s14416_s3 = inlined_call_operand.vmem [shape: bf16[32,288], index: 3, kind: input, shape index: {}]   ;;  %s14417_s4 = inlined_call_operand.vmem [shape: bf16[32,288], index: 4, kind: input, shape index: {}]   ;;  %s14418_s5 = inlined_call_operand.vmem [shape: bf16[32,288], index: 5, kind: input, shape index: {}]   ;;  %s14419_s6 = inlined_call_operand.vmem [shape: bf16[32,288], index: 6, kind: input, shape index: {}]   ;;  %s14420_s7 = inlined_call_operand.vmem [shape: bf16[32,96], index: 7, kind: input, shape index: {}]   ;;  %s14421_s9 = inlined_call_operand.vmem [shape: f32[8,1], index: 9, kind: input, shape index: {}]   ;;  %s14422_s8 = inlined_call_operand.vmem [shape: bf16[8,32], index: 8, kind: input, shape index: {}]   ;;  %s14423_s12 = inlined_call_operand.vmem [shape: f32[8,512], index: 12, kind: output, shape index: {}]  }
   0x1   :  { %v7318_v0 = vld [vmem:[%s14411_s0 + $0x8] sm:$0xff]  ;;  %v7323_v1 = vld [vmem:[%s14411_s0] sm:$0xff]  ;;  %s7237_s0 = smov 16   ;;  %s7239_s27 = smov 1   ;;  %vm575_vm11 = vcmask 293888  }
   0x2   :  { %67 = vst [vmem:[#allocation1 + $0x10] ss:$2 sm:$0xff] %v7318_v0  ;;  %s7240_s28 = smov 127   ;;  %s7241_s29 = smov 113   ;;  %v7401_v48 = vand.u32 127, %v84_v46 }
   0x3   :  { %65 = vst [vmem:[#allocation1] ss:$2 sm:$0xff] %v7323_v1  ;;  %s7242_s30 = smov 112   ;;  %s7243_s13 = smov 111  }
   0x4   :  { %v7410_v51 = vld [vmem:[%s14412_s1 + $0x1] ss:$8 sm:$0xf]  ;;  %vm125_vm0 = vcmp.lt.s32.totalorder %v7401_v48, 16  ;;  %vm86_vm1 = vcmp.lt.s32.totalorder %v7401_v48, 17  ;;  %vm164_vm2 = vcmp.lt.s32.totalorder %v7401_v48, 15 }
   0x5   :  { %v7414_v52 = vperm.slane %v7410_v51, 3  ;;  %v7417_v53 = vperm.slane %v7410_v51, 2  ;;  %v7432_v58 = vld [vmem:[%s14412_s1] ss:$8 sm:$0xf]  ;;  %vm203_vm3 = vcmp.lt.s32.totalorder %v7401_v48, 1 }
   0x6   :  { %v7440_v62 = vld [vmem:[%s14412_s1 + $0x2] ss:$8 sm:$0xf]  ;;  %v7443_v63 = vperm.slane %v7432_v58, 2  ;;  %vm255_vm5 = vcmp.lt.s32.totalorder %v7401_v48, 127  ;;  %vm294_vm8 = vcmp.lt.s32.totalorder %v7401_v48, 113 }
   0x7   :  { %14984 = vst [vmem:[#allocation2_spill] sm:$0xff] %v7414_v52  ;;  %vm372_vm9 = vcmp.lt.s32.totalorder %v7401_v48, 111  ;;  %vm333_vm10 = vcmp.lt.s32.totalorder %v7401_v48, 112 }
   0x8   :  { %14985 = vst [vmem:[#allocation3_spill] sm:$0xff] %v7417_v53 }
   0x9   :  { %v71_v2 = vld.sshfl [vmem:[#allocation1 + $0x18] sm:$0xff pattern:$0x75316420]  ;;  %v70_v3 = vld.sshfl [vmem:[#allocation1 + $0x10] sm:$0xff pattern:$0x75316420] }
   0xa   :  { %82 = vrot.lane.b32.xlu1 %v71_v2, %s7236_s25  ;;  %80 = vrot.lane.b32.xlu0 %v70_v3, %s7236_s25  ;;  %108 = vst [vmem:[#allocation1 + $0x10] ss:$2 sm:$0xff] %v7318_v0  ;;  %v7330_v4 = vld.sshfl [vmem:[#allocation1] sm:$0xff pattern:$0x75316420] }
   0xb   :  { %v69_v5 = vld.sshfl [vmem:[#allocation1 + $0x8] sm:$0xff pattern:$0x75316420]  ;;  %14986 = vst [vmem:[#allocation4_spill] sm:$0xff] %v7443_v63 }
   0xc   :  { %106 = vst [vmem:[#allocation1] ss:$2 sm:$0xff] %v7323_v1  ;;  %78 = vrot.lane.b32.xlu2 %v69_v5, %s7236_s25  ;;  %v7462_v5 = vperm.slane %v7440_v62, 3 }
   0xe   :  { %14988 = vst [vmem:[#allocation6_spill] sm:$0xff] %v7462_v5 }
  0x11   :  { %v111_v6 = vld.sshfl [vmem:[#allocation1 + $0x10] sm:$0xff pattern:$0x75316420]  ;;  %v112_v7 = vld.sshfl [vmem:[#allocation1 + $0x18] sm:$0xff pattern:$0x75316420] }
  0x12   :  { %121 = vrot.lane.b32.xlu1 %v111_v6, %s7237_s0  ;;  %147 = vst [vmem:[#allocation1 + $0x10] ss:$2 sm:$0xff] %v7318_v0  ;;  %v7465_v6 = vperm.slane %v7440_v62, 2 }
  0x13   :  { %v110_v8 = vld.sshfl [vmem:[#allocation1 + $0x8] sm:$0xff pattern:$0x75316420]  ;;  %v109_v9 = vld.sshfl [vmem:[#allocation1] sm:$0xff pattern:$0x75316420] }
  0x14   :  { %119 = vrot.lane.b32.xlu0 %v110_v8, %s7237_s0  ;;  %145 = vst [vmem:[#allocation1] ss:$2 sm:$0xff] %v7323_v1  ;;  %123 = vrot.lane.b32.xlu2 %v112_v7, %s7237_s0 }
  0x15   :  { %14989 = vst [vmem:[#allocation7_spill] sm:$0xff] %v7465_v6 }
  0x19   :  { %v150_v10 = vld.sshfl [vmem:[#allocation1 + $0x10] sm:$0xff pattern:$0x75316420]  ;;  %v151_v11 = vld.sshfl [vmem:[#allocation1 + $0x18] sm:$0xff pattern:$0x75316420] }
  0x1a   :  { %160 = vrot.lane.b32.xlu1 %v150_v10, %s7238_s26  ;;  %186 = vst [vmem:[#allocation1 + $0x10] ss:$2 sm:$0xff] %v7318_v0 }
  0x1b   :  { %v149_v12 = vld.sshfl [vmem:[#allocation1 + $0x8] sm:$0xff pattern:$0x75316420]  ;;  %v7341_v13 = vld.sshfl [vmem:[#allocation1] sm:$0xff pattern:$0x75316420] }
  0x1c   :  { %158 = vrot.lane.b32.xlu0 %v149_v12, %s7238_s26  ;;  %184 = vst [vmem:[#allocation1] ss:$2 sm:$0xff] %v7323_v1  ;;  %162 = vrot.lane.b32.xlu2 %v151_v11, %s7238_s26 }
  0x21   :  { %v190_v14 = vld.sshfl [vmem:[#allocation1 + $0x18] sm:$0xff pattern:$0x75316420]  ;;  %v189_v15 = vld.sshfl [vmem:[#allocation1 + $0x10] sm:$0xff pattern:$0x75316420] }
  0x22   :  { %201 = vrot.lane.b32.xlu1 %v190_v14, %s7239_s27  ;;  %225 = vst [vmem:[#allocation1 + $0x10] ss:$2 sm:$0xff] %v7318_v0 }
  0x23   :  { %v188_v16 = vld.sshfl [vmem:[#allocation1 + $0x8] sm:$0xff pattern:$0x75316420]  ;;  %v187_v17 = vld.sshfl [vmem:[#allocation1] sm:$0xff pattern:$0x75316420] }
  0x24   :  { %199 = vrot.lane.b32.xlu0 %v189_v15, %s7239_s27  ;;  %197 = vrot.lane.b32.xlu2 %v188_v16, %s7239_s27  ;;  %223 = vst [vmem:[#allocation1] ss:$2 sm:$0xff] %v7323_v1 }
  0x29   :  { %v7351_v18 = vld.sshfl [vmem:[#allocation1 + $0x10] sm:$0xff pattern:$0x75316420]  ;;  %v7353_v19 = vld.sshfl [vmem:[#allocation1 + $0x18] sm:$0xff pattern:$0x75316420] }
  0x2a   :  { %238 = vst [vmem:[#allocation1 + $0x10] ss:$2 sm:$0xff] %v7318_v0 }
  0x2b   :  { %v7356_v20 = vld.sshfl [vmem:[#allocation1] sm:$0xff pattern:$0x75316420]  ;;  %v7358_v21 = vld.sshfl [vmem:[#allocation1 + $0x8] sm:$0xff pattern:$0x75316420] }
  0x2c   :  { %236 = vst [vmem:[#allocation1] ss:$2 sm:$0xff] %v7323_v1 }
  0x31   :  { %v242_v22 = vld.sshfl [vmem:[#allocation1 + $0x18] sm:$0xff pattern:$0x75316420]  ;;  %v241_v23 = vld.sshfl [vmem:[#allocation1 + $0x10] sm:$0xff pattern:$0x75316420] }
  0x32   :  { %253 = vrot.lane.b32.xlu1 %v242_v22, %s7240_s28  ;;  %277 = vst [vmem:[#allocation1 + $0x10] ss:$2 sm:$0xff] %v7318_v0 }
  0x33   :  { %v239_v24 = vld.sshfl [vmem:[#allocation1] sm:$0xff pattern:$0x75316420]  ;;  %v240_v25 = vld.sshfl [vmem:[#allocation1 + $0x8] sm:$0xff pattern:$0x75316420] }
  0x34   :  { %247 = vrot.lane.b32.xlu0 %v239_v24, %s7240_s28  ;;  %275 = vst [vmem:[#allocation1] ss:$2 sm:$0xff] %v7323_v1 }
  0x39   :  { %v280_v26 = vld.sshfl [vmem:[#allocation1 + $0x10] sm:$0xff pattern:$0x75316420]  ;;  %v281_v27 = vld.sshfl [vmem:[#allocation1 + $0x18] sm:$0xff pattern:$0x75316420] }
  0x3a   :  { %290 = vrot.lane.b32.xlu1 %v280_v26, %s7241_s29  ;;  %292 = vrot.lane.b32.xlu2 %v281_v27, %s7241_s29  ;;  %316 = vst [vmem:[#allocation1 + $0x10] ss:$2 sm:$0xff] %v7318_v0 }
  0x3b   :  { %v278_v28 = vld.sshfl [vmem:[#allocation1] sm:$0xff pattern:$0x75316420]  ;;  %v279_v29 = vld.sshfl [vmem:[#allocation1 + $0x8] sm:$0xff pattern:$0x75316420] }
  0x3c   :  { %251 = vrot.lane.b32.xlu0 %v241_v23, %s7240_s28  ;;  %314 = vst [vmem:[#allocation1] ss:$2 sm:$0xff] %v7323_v1 }
  0x41   :  { %v320_v30 = vld.sshfl [vmem:[#allocation1 + $0x18] sm:$0xff pattern:$0x75316420]  ;;  %v319_v31 = vld.sshfl [vmem:[#allocation1 + $0x10] sm:$0xff pattern:$0x75316420] }
  0x42   :  { %117 = vrot.lane.b32.xlu1 %v109_v9, %s7237_s0  ;;  %331 = vrot.lane.b32.xlu2 %v320_v30, %s7242_s30  ;;  %355 = vst [vmem:[#allocation1 + $0x10] ss:$2 sm:$0xff] %v7318_v0  ;;  %v7446_v0 = vperm.slane %v7432_v58, 3 }
  0x43   :  { %v318_v32 = vld.sshfl [vmem:[#allocation1 + $0x8] sm:$0xff pattern:$0x75316420]  ;;  %v317_v33 = vld.sshfl [vmem:[#allocation1] sm:$0xff pattern:$0x75316420] }
  0x44   :  { %249 = vrot.lane.b32.xlu0 %v240_v25, %s7240_s28  ;;  %353 = vst [vmem:[#allocation1] ss:$2 sm:$0xff] %v7323_v1  ;;  %v7452_v1 = vld [vmem:[%s14412_s1 + $0x3] ss:$8 sm:$0xf] }
  0x45   :  { %14987 = vst [vmem:[#allocation5_spill] sm:$0xff] %v7446_v0  ;;  %v7474_v9 = vperm.slane %v7452_v1, 2  ;;  %v7477_v10 = vperm.slane %v7452_v1, 3 }
  0x47   :  { %14990 = vst [vmem:[#allocation8_spill] sm:$0xff] %v7474_v9 }
  0x48   :  { %14991 = vst [vmem:[#allocation9_spill] sm:$0xff] %v7477_v10 }
  0x49   :  { %v358_v34 = vld.sshfl [vmem:[#allocation1 + $0x10] sm:$0xff pattern:$0x75316420]  ;;  %v359_v36 = vld.sshfl [vmem:[#allocation1 + $0x18] sm:$0xff pattern:$0x75316420] }
  0x4a   :  { %329 = vrot.lane.b32.xlu1 %v319_v31, %s7242_s30  ;;  %327 = vrot.lane.b32.xlu2 %v318_v32, %s7242_s30 }
  0x4b   :  { %v356_v35 = vld.sshfl [vmem:[#allocation1] sm:$0xff pattern:$0x75316420]  ;;  %v357_v37 = vld.sshfl [vmem:[#allocation1 + $0x8] sm:$0xff pattern:$0x75316420] }
  0x4c   :  { %286 = vrot.lane.b32.xlu0 %v278_v28, %s7241_s29 }
  0x52   :  { %368 = vrot.lane.b32.xlu2 %v358_v34, %s7243_s13  ;;  %364 = vrot.lane.b32.xlu1 %v356_v35, %s7243_s13 }
  0x54   :  { %325 = vrot.lane.b32.xlu0 %v317_v33, %s7242_s30  ;;  %v6936_v33 = vld [vmem:[%s14412_s1 + $0x5] ss:$8 sm:$0xf] }
  0x55   :  { %v7507_v46 = vperm.slane %v6936_v33, 3 }
  0x57   :  { %14993 = vst [vmem:[#allocation11_spill] sm:$0xff] %v7507_v46 }
  0x5a   :  { %370 = vrot.lane.b32.xlu2 %v359_v36, %s7243_s13  ;;  %366 = vrot.lane.b32.xlu1 %v357_v37, %s7243_s13 }
  0x5c   :  { %288 = vrot.lane.b32.xlu0 %v279_v29, %s7241_s29 }
  0x62   :  { %76 = vrot.lane.b32.xlu2 %v7330_v4, %s7236_s25  ;;  %156 = vrot.lane.b32.xlu1 %v7341_v13, %s7238_s26 }
  0x64   :  { %195 = vrot.lane.b32.xlu0 %v187_v17, %s7239_s27 }
  0x66   :  { %v7389_v38 = vpop.permute.xlu2 %78 }
  0x6e   :  { %v7391_v39 = vpop.permute.xlu2 %123 }
  0x76   :  { %v7395_v42 = vpop.permute.xlu2 %162 }
  0x7c   :  { %v7393_v40 = vpop.permute.xlu1 %82  ;;  %v81_v41 = vpop.permute.xlu0 %80 }
  0x7d   :  { %v87_v2 = vsel %vm86_vm1, %v81_v41, %v7393_v40  ;;  %v88_v3 = vsel %vm86_vm1, %v7389_v38, %v81_v41  ;;  %v7503_v41 = vperm.slane %v6936_v33, 2 }
  0x7e   :  { %v7399_v45 = vpop.permute.xlu2 %197  ;;  %v102_v11 = vmul.f32 %v7443_v63, %v88_v3  ;;  %v103_v12 = vmul.f32 %v7446_v0, %v87_v2 }
  0x7f   :  { %14992 = vst [vmem:[#allocation10_spill] sm:$0xff] %v7503_v41 }
  0x80   :  { %v105_v28 = vpack.c.bf16 %v103_v12, %v102_v11 }
  0x82   :  { %v396_v34 = vunpack.c.l.b16 %v105_v28  ;;  %v397_v37 = vunpack.c.h.b16 %v105_v28  ;;  %v7531_v28 = vperm.slane %v7410_v51, 0 }
  0x84   :  { %v122_v43 = vpop.permute.xlu1 %121  ;;  %14995 = vst [vmem:[#allocation13_spill] sm:$0xff] %v7531_v28 }
  0x85   :  { %v126_v54 = vsel %vm125_vm0, %v122_v43, %v7391_v39 }
  0x86   :  { %v7397_v44 = vpop.permute.xlu0 %119  ;;  %v142_v59 = vmul.f32 %v7414_v52, %v126_v54 }
  0x87   :  { %v127_v55 = vsel %vm125_vm0, %v7397_v44, %v122_v43  ;;  %v235_v43 = vpack.c.bf16 %v7353_v19, %v7351_v18  ;;  %v401_v19 = vpack.c.b16 %v397_v37, %v397_v37  ;;  %v7540_v37 = vperm.slane %v7410_v51, 1 }
  0x88   :  { %v141_v60 = vmul.f32 %v7417_v53, %v127_v55  ;;  %v7644_v53 = vperm.slane %v7440_v62, 0 }
  0x89   :  { %v444_v11 = vunpack.c.l.b16 %v235_v43  ;;  %v445_v12 = vunpack.c.h.b16 %v235_v43  ;;  %14998 = vst [vmem:[#allocation16_spill] sm:$0xff] %v7540_v37 }
  0x8a   :  { %v144_v4 = vpack.c.bf16 %v142_v59, %v141_v60  ;;  %v7512_v60 = vld [vmem:[%s14412_s1 + $0x6] ss:$8 sm:$0xf]  ;;  %15014 = vst [vmem:[#allocation32_spill] sm:$0xff] %v7644_v53 }
  0x8b   :  { %v7542_v43 = vpack.c.b16 %v444_v11, %v444_v11 }
  0x8c   :  { %v161_v47 = vpop.permute.xlu1 %160  ;;  %v406_v17 = vunpack.c.l.b16 %v144_v4  ;;  %v407_v25 = vunpack.c.h.b16 %v144_v4 }
  0x8d   :  { %v165_v7 = vsel %vm164_vm2, %v161_v47, %v7395_v42 }
  0x8e   :  { %v7403_v49 = vpop.permute.xlu0 %158  ;;  %v181_v22 = vmul.f32 %v7462_v5, %v165_v7  ;;  %v410_v29 = vpack.c.b16 %v406_v17, %v406_v17  ;;  %v411_v31 = vpack.c.b16 %v407_v25, %v407_v25  ;;  %v400_v7 = vpack.c.b16 %v396_v34, %v396_v34 }
  0x8f   :  { %v166_v8 = vsel %vm164_vm2, %v7403_v49, %v161_v47 }
  0x90   :  { %v180_v23 = vmul.f32 %v7465_v6, %v166_v8  ;;  %v414_v54 = vrot.slane %v410_v29, 6  ;;  %v415_v3 = vrot.slane %v411_v31, 6  ;;  %v7535_v31 = vperm.slane %v6936_v33, 1 }
  0x92   :  { %v183_v30 = vpack.c.bf16 %v181_v22, %v180_v23  ;;  %v507_v17 = vsel %vm498_vm4, %v400_v7, %v414_v54  ;;  %14997 = vst [vmem:[#allocation15_spill] sm:$0xff] %v7535_v31  ;;  %v7544_v54 = vpack.c.b16 %v445_v12, %v445_v12 }
  0x94   :  { %v7405_v50 = vpop.permute.xlu2 %292  ;;  %v7425_v56 = vpop.permute.xlu1 %201  ;;  %v420_v55 = vunpack.c.l.b16 %v183_v30  ;;  %v421_v59 = vunpack.c.h.b16 %v183_v30  ;;  %v7533_v30 = vperm.slane %v6936_v33, 0 }
  0x96   :  { %v200_v61 = vpop.permute.xlu0 %199  ;;  %v425_v22 = vpack.c.b16 %v421_v59, %v421_v59  ;;  %14996 = vst [vmem:[#allocation14_spill] sm:$0xff] %v7533_v30  ;;  %v6939_v59 = vld [vmem:[%s14412_s1 + $0x20] ss:$8 sm:$0xf] }
  0x97   :  { %v204_v13 = vsel %vm203_vm3, %v200_v61, %v7425_v56  ;;  %v205_v14 = vsel %vm203_vm3, %v7399_v45, %v200_v61  ;;  %v7623_v63 = vperm.slane %v6939_v59, 0 }
  0x98   :  { %v219_v26 = vmul.f32 %v7474_v9, %v205_v14  ;;  %v220_v27 = vmul.f32 %v7477_v10, %v204_v13  ;;  %v7522_v13 = vperm.slane %v7512_v60, 2  ;;  %v424_v14 = vpack.c.b16 %v420_v55, %v420_v55 }
  0x99   :  { %15010 = vst [vmem:[#allocation28_spill] sm:$0xff] %v7623_v63 }
  0x9a   :  { %v222_v32 = vpack.c.bf16 %v220_v27, %v219_v26  ;;  %14994 = vst [vmem:[#allocation12_spill] sm:$0xff] %v7522_v13  ;;  %v510_v27 = vsel %vm498_vm4, %v401_v19, %v415_v3 }
  0x9c   :  { %v7427_v57 = vpop.permute.xlu2 %331  ;;  %v430_v2 = vunpack.c.l.b16 %v222_v32  ;;  %v431_v4 = vunpack.c.h.b16 %v222_v32  ;;  %v234_v32 = vpack.c.bf16 %v7358_v21, %v7356_v20  ;;  %v517_v20 = vsel %vm511_vm6, %v507_v17, %v424_v14 }
  0x9d   :  { %v519_v21 = vsel %vm511_vm6, %v510_v27, %v425_v22 }
  0x9e   :  { %v434_v25 = vpack.c.b16 %v430_v2, %v430_v2  ;;  %v435_v26 = vpack.c.b16 %v431_v4, %v431_v4  ;;  %v442_v19 = vunpack.c.l.b16 %v234_v32 }
  0xa0   :  { %v438_v3 = vrot.slane %v434_v25, 2  ;;  %v439_v4 = vrot.slane %v435_v26, 2  ;;  %v7578_v25 = vperm.slane %v7432_v58, 0  ;;  %v7581_v26 = vperm.slane %v7432_v58, 1 }
  0xa2   :  { %15003 = vst [vmem:[#allocation21_spill] sm:$0xff] %v7578_v25 }
  0xa3   :  { %15004 = vst [vmem:[#allocation22_spill] sm:$0xff] %v7581_v26 }
  0xa4   :  { %v254_v15 = vpop.permute.xlu1 %253  ;;  %v7487_v16 = vpop.permute.xlu2 %327 }
  0xa6   :  { %v7491_v24 = vpop.permute.xlu0 %247 }
  0xa7   :  { %v259_v18 = vsel %vm255_vm5, %v254_v15, %v7491_v24 }
  0xa8   :  { %v272_v23 = vmul.f32 %v7507_v46, %v259_v18  ;;  %v7626_v46 = vperm.slane %v6939_v59, 1 }
  0xaa   :  { %15011 = vst [vmem:[#allocation29_spill] sm:$0xff] %v7626_v46 }
  0xac   :  { %v7498_v35 = vpop.permute.xlu1 %290  ;;  %v7500_v36 = vpop.permute.xlu2 %368 }
  0xad   :  { %v295_v58 = vsel %vm294_vm8, %v7498_v35, %v7405_v50 }
  0xae   :  { %v252_v47 = vpop.permute.xlu0 %251 }
  0xaf   :  { %v256_v61 = vsel %vm255_vm5, %v252_v47, %v254_v15  ;;  %v6938_v15 = vld [vmem:[%s14412_s1 + $0x7] ss:$8 sm:$0xf] }
  0xb0   :  { %v271_v8 = vmul.f32 %v7503_v41, %v256_v61  ;;  %v7552_v61 = vperm.slane %v6938_v15, 1  ;;  %v7572_v22 = vperm.slane %v6938_v15, 2 }
  0xb2   :  { %v274_v34 = vpack.c.bf16 %v272_v23, %v271_v8  ;;  %14999 = vst [vmem:[#allocation17_spill] sm:$0xff] %v7552_v61  ;;  %v443_v8 = vunpack.c.h.b16 %v234_v32  ;;  %v7575_v23 = vperm.slane %v7512_v60, 3 }
  0xb3   :  { %15001 = vst [vmem:[#allocation19_spill] sm:$0xff] %v7572_v22 }
  0xb4   :  { %v118_v29 = vpop.permute.xlu1 %117  ;;  %v7550_v33 = vpop.permute.xlu2 %370  ;;  %v454_v11 = vunpack.c.l.b16 %v274_v34  ;;  %v455_v14 = vunpack.c.h.b16 %v274_v34  ;;  %15002 = vst [vmem:[#allocation20_spill] sm:$0xff] %v7575_v23  ;;  %v7591_v34 = vpack.c.b16 %v442_v19, %v442_v19 }
  0xb5   :  { %v128_v12 = vsel %vm125_vm0, %v118_v29, %v7397_v44  ;;  %v7584_v44 = vsel %vm520_vm7, %v517_v20, %v438_v3  ;;  %v7599_v20 = vperm.slane %v6938_v15, 0 }
  0xb6   :  { %v250_v55 = vpop.permute.xlu0 %249 }
  0xb7   :  { %v257_v51 = vsel %vm255_vm5, %v250_v55, %v252_v47  ;;  %v258_v2 = vsel %vm255_vm5, %v7491_v24, %v250_v55  ;;  %v129_v47 = vsel %vm125_vm0, %v7391_v39, %v118_v29  ;;  %v7570_v24 = vperm.slane %v6939_v59, 2  ;;  %15005 = vst [vmem:[#allocation23_spill] sm:$0xff] %v7599_v20 }
  0xb8   :  { %v269_v7 = vmul.f32 %v7533_v30, %v258_v2  ;;  %v270_v18 = vmul.f32 %v7535_v31, %v257_v51  ;;  %v7587_v39 = vsel %vm520_vm7, %v519_v21, %v439_v4  ;;  %v139_v27 = vmul.f32 %v7531_v28, %v129_v47 }
  0xb9   :  { %15000 = vst [vmem:[#allocation18_spill] sm:$0xff] %v7570_v24  ;;  %v140_v29 = vmul.f32 %v7540_v37, %v128_v12  ;;  %v7593_v55 = vpack.c.b16 %v443_v8, %v443_v8  ;;  %v458_v51 = vpack.c.b16 %v454_v11, %v454_v11  ;;  %v7601_v2 = vperm.slane %v6938_v15, 3 }
  0xba   :  { %v273_v17 = vpack.c.bf16 %v270_v18, %v269_v7  ;;  %v459_v21 = vpack.c.b16 %v455_v14, %v455_v14  ;;  %v373_v4 = vsel %vm372_vm9, %v7500_v36, %v7550_v33  ;;  %v7609_v18 = vperm.slane %v6939_v59, 3 }
  0xbb   :  { %15006 = vst [vmem:[#allocation24_spill] sm:$0xff] %v7601_v2  ;;  %v7616_v15 = vperm.slane %v7512_v60, 0  ;;  %v7619_v11 = vperm.slane %v7512_v60, 1  ;;  %v310_v12 = vmul.f32 %v7522_v13, %v295_v58  ;;  %v143_v47 = vpack.c.bf16 %v140_v29, %v139_v27 }
  0xbc   :  { %v330_v32 = vpop.permute.xlu1 %329  ;;  %v452_v3 = vunpack.c.l.b16 %v273_v17  ;;  %15007 = vst [vmem:[#allocation25_spill] sm:$0xff] %v7609_v18  ;;  %v453_v19 = vunpack.c.h.b16 %v273_v17  ;;  %v77_v0 = vpop.permute.xlu2 %76  ;;  %v388_v17 = vmul.f32 %v7570_v24, %v373_v4  ;;  %v462_v41 = vrot.slane %v458_v51, 6 }
  0xbd   :  { %15008 = vst [vmem:[#allocation26_spill] sm:$0xff] %v7616_v15  ;;  %v335_v60 = vsel %vm333_vm10, %v7487_v16, %v330_v32  ;;  %v463_v58 = vrot.slane %v459_v21, 6  ;;  %v7635_v27 = vperm.slane %v7452_v1, 1  ;;  %v89_v59 = vsel %vm86_vm1, %v77_v0, %v7389_v38 }
  0xbe   :  { %v7607_v7 = vpop.permute.xlu0 %286  ;;  %15009 = vst [vmem:[#allocation27_spill] sm:$0xff] %v7619_v11  ;;  %v456_v52 = vpack.c.b16 %v452_v3, %v452_v3  ;;  %v457_v29 = vpack.c.b16 %v453_v19, %v453_v19  ;;  %v90_v51 = vsel %vm86_vm1, %v7393_v40, %v77_v0  ;;  %v404_v4 = vunpack.c.l.b16 %v143_v47 }
  0xbf   :  { %v298_v8 = vsel %vm294_vm8, %v7405_v50, %v7607_v7  ;;  %v7629_v50 = vperm.slane %v7452_v1, 0  ;;  %15013 = vst [vmem:[#allocation31_spill] sm:$0xff] %v7635_v27  ;;  %v405_v3 = vunpack.c.h.b16 %v143_v47  ;;  %v7647_v21 = vperm.slane %v7440_v62, 1 }
  0xc0   :  { %v311_v14 = vmul.f32 %v7575_v23, %v298_v8  ;;  %v334_v1 = vsel %vm333_vm10, %v330_v32, %v7427_v57  ;;  %v348_v19 = vmul.f32 %v7552_v61, %v335_v60  ;;  %v541_v40 = vsel %vm498_vm4, %v7542_v43, %v462_v41 }
  0xc1   :  { %15012 = vst [vmem:[#allocation30_spill] sm:$0xff] %v7629_v50  ;;  %v100_v0 = vmul.f32 %v7578_v25, %v90_v51  ;;  %v461_v5 = vrot.slane %v457_v29, 6  ;;  %v349_v41 = vmul.f32 %v7572_v22, %v334_v1  ;;  %v7670_v6 = vpack.c.b16 %v404_v4, %v404_v4 }
  0xc2   :  { %v313_v8 = vpack.c.bf16 %v311_v14, %v310_v12  ;;  %15015 = vst [vmem:[#allocation33_spill] sm:$0xff] %v7647_v21  ;;  %v101_v12 = vmul.f32 %v7581_v26, %v89_v59  ;;  %v460_v14 = vrot.slane %v456_v52, 6  ;;  %v7672_v52 = vpack.c.b16 %v405_v3, %v405_v3 }
  0xc4   :  { %v365_v24 = vpop.permute.xlu1 %364  ;;  %v7676_v29 = vpack.c.bf16 %v101_v12, %v100_v0 }
  0xc5   :  { %v376_v38 = vsel %vm372_vm9, %v7550_v33, %v365_v24  ;;  %v468_v33 = vunpack.c.l.b16 %v313_v8 }
  0xc6   :  { %v326_v47 = vpop.permute.xlu0 %325  ;;  %v389_v62 = vmul.f32 %v7609_v18, %v376_v38  ;;  %v469_v38 = vunpack.c.h.b16 %v313_v8 }
  0xc7   :  { %v336_v32 = vsel %vm333_vm10, %v326_v47, %v7487_v16  ;;  %v337_v60 = vsel %vm333_vm10, %v7427_v57, %v326_v47  ;;  %v544_v16 = vsel %vm498_vm4, %v7544_v54, %v463_v58  ;;  %v472_v1 = vpack.c.b16 %v468_v33, %v468_v33 }
  0xc8   :  { %v347_v43 = vmul.f32 %v7599_v20, %v336_v32  ;;  %v350_v59 = vmul.f32 %v7601_v2, %v337_v60  ;;  %v391_v51 = vpack.c.bf16 %v389_v62, %v388_v17  ;;  %v7680_v32 = vsel %vm498_vm4, %v7591_v34, %v460_v14 }
  0xc9   :  { %v7684_v17 = vsel %vm498_vm4, %v7593_v55, %v461_v5  ;;  %v473_v0 = vpack.c.b16 %v469_v38, %v469_v38  ;;  %v394_v38 = vunpack.c.l.b16 %v7676_v29 }
  0xca   :  { %v351_v18 = vpack.c.bf16 %v348_v19, %v347_v43  ;;  %v352_v23 = vpack.c.bf16 %v350_v59, %v349_v41  ;;  %v492_v57 = vunpack.c.l.b16 %v391_v51  ;;  %v493_v47 = vunpack.c.h.b16 %v391_v51 }
  0xcc   :  { %v367_v4 = vpop.permute.xlu1 %366  ;;  %v496_v8 = vpack.c.b16 %v492_v57, %v492_v57  ;;  %v497_v3 = vpack.c.b16 %v493_v47, %v493_v47  ;;  %v478_v62 = vunpack.c.l.b16 %v352_v23  ;;  %v479_v54 = vunpack.c.h.b16 %v352_v23 }
  0xcd   :  { %v374_v58 = vsel %vm372_vm9, %v367_v4, %v7500_v36  ;;  %v375_v19 = vsel %vm372_vm9, %v365_v24, %v367_v4  ;;  %v476_v12 = vunpack.c.l.b16 %v351_v18  ;;  %v477_v33 = vunpack.c.h.b16 %v351_v18 }
  0xce   :  { %v289_v34 = vpop.permute.xlu0 %288  ;;  %v386_v14 = vmul.f32 %v7623_v63, %v375_v19  ;;  %v387_v5 = vmul.f32 %v7626_v46, %v374_v58  ;;  %v589_v55 = vsel %vm498_vm4, %v496_v8, 0  ;;  %v592_v60 = vsel %vm498_vm4, %v497_v3, 0 }
  0xcf   :  { %v296_v23 = vsel %vm294_vm8, %v289_v34, %v7498_v35  ;;  %v297_v36 = vsel %vm294_vm8, %v7607_v7, %v289_v34  ;;  %637 = vmatpush.bf16.msra.mxu2 %v589_v55  ;;  %656 = vmatpush.bf16.msra.mxu3 %v592_v60  ;;  %v482_v24 = vpack.c.b16 %v478_v62, %v478_v62  ;;  %v395_v62 = vunpack.c.h.b16 %v7676_v29 }
  0xd0   :  { %v308_v41 = vmul.f32 %v7616_v15, %v297_v36  ;;  %v309_v43 = vmul.f32 %v7619_v11, %v296_v23  ;;  %v483_v59 = vpack.c.b16 %v479_v54, %v479_v54  ;;  %v390_v51 = vpack.c.bf16 %v387_v5, %v386_v14 }
  0xd1   :  { %v486_v57 = vrot.slane %v482_v24, 2  ;;  %v550_v35 = vsel %vm511_vm6, %v541_v40, %v472_v1  ;;  %v480_v47 = vpack.c.b16 %v476_v12, %v476_v12  ;;  %v552_v58 = vsel %vm511_vm6, %v544_v16, %v473_v0 }
  0xd2   :  { %v312_v4 = vpack.c.bf16 %v309_v43, %v308_v41  ;;  %v487_v8 = vrot.slane %v483_v59, 2  ;;  %v490_v7 = vunpack.c.l.b16 %v390_v51  ;;  %v491_v3 = vunpack.c.h.b16 %v390_v51  ;;  %v848_v41 = vld [vmem:[%s14414_s11 + $0x18] sm:$0xff] }
  0xd3   :  { %v560_v18 = vsel %vm520_vm7, %v550_v35, %v486_v57  ;;  %v481_v19 = vpack.c.b16 %v477_v33, %v477_v33  ;;  %v484_v1 = vrot.slane %v480_v47, 2  ;;  %v399_v57 = vpack.c.b16 %v395_v62, %v395_v62 }
  0xd4   :  { %638 = vmatpush.bf16.msra.mxu2 %v560_v18  ;;  %v563_v54 = vsel %vm520_vm7, %v552_v58, %v487_v8  ;;  %v157_v34 = vpop.permute.xlu1 %156  ;;  %v494_v14 = vpack.c.b16 %v490_v7, %v490_v7  ;;  %v495_v5 = vpack.c.b16 %v491_v3, %v491_v3  ;;  %v466_v55 = vunpack.c.l.b16 %v312_v4 }
  0xd5   :  { %657 = vmatpush.bf16.msra.mxu3 %v563_v54  ;;  %v167_v40 = vsel %vm164_vm2, %v157_v34, %v7403_v49  ;;  %v168_v29 = vsel %vm164_vm2, %v7395_v42, %v157_v34  ;;  %v467_v12 = vunpack.c.h.b16 %v312_v4  ;;  %v7104_v42 = vld [vmem:[%s14413_s2] sm:$0xff]  ;;  %v485_v47 = vrot.slane %v481_v19, 2 }
  0xd6   :  { %v196_v16 = vpop.permute.xlu0 %195  ;;  %v178_v0 = vmul.f32 %v7644_v53, %v168_v29  ;;  %v179_v60 = vmul.f32 %v7647_v21, %v167_v40  ;;  %v583_v23 = vsel %vm498_vm4, %v494_v14, 0  ;;  %v586_v36 = vsel %vm498_vm4, %v495_v5, 0 }
  0xd7   :  { %v206_v24 = vsel %vm203_vm3, %v196_v16, %v7399_v45  ;;  %v207_v49 = vsel %vm203_vm3, %v7425_v56, %v196_v16  ;;  %599 = vmatpush.bf16.msra.mxu0 %v583_v23  ;;  %618 = vmatpush.bf16.msra.mxu1 %v586_v36  ;;  %v470_v33 = vpack.c.b16 %v466_v55, %v466_v55  ;;  %v14446_v4 = vmov 0  }
  0xd8   :  { %v217_v43 = vmul.f32 %v7629_v50, %v207_v49  ;;  %v218_v59 = vmul.f32 %v7635_v27, %v206_v24  ;;  %v182_v45 = vpack.c.bf16 %v179_v60, %v178_v0  ;;  %639 = vmatpush.bf16.msra.mxu2 %v7584_v44  ;;  %v471_v51 = vpack.c.b16 %v467_v12, %v467_v12  ;;  %v847_v44 = vld [vmem:[%s14414_s11 + $0x10] sm:$0xff]  ;;  %v845_v0 = vld [vmem:[%s14414_s11] sm:$0xff]  ;;  %v7105_v60 = vld [vmem:[%s14413_s2 + $0x8] sm:$0xff] }
  0xd9   :  { %v398_v56 = vpack.c.b16 %v394_v38, %v394_v38  ;;  %658 = vmatpush.bf16.msra.mxu3 %v7587_v39  ;;  %v546_v35 = vsel %vm511_vm6, %v7680_v32, %v470_v33  ;;  %7147 = vset.pattern.permute.xlu1 %v14446_v4  ;;  %v412_v32 = vrot.slane %v7670_v6, 6  ;;  %v413_v19 = vrot.slane %v7672_v52, 6 }
  0xda   :  { %v221_v8 = vpack.c.bf16 %v218_v59, %v217_v43  ;;  %v554_v7 = vsel %vm520_vm7, %v546_v35, %v484_v1  ;;  %v548_v3 = vsel %vm511_vm6, %v7684_v17, %v471_v51  ;;  %v418_v18 = vunpack.c.l.b16 %v182_v45  ;;  %7146 = vset.pattern.permute.xlu2 %v14446_v4  ;;  %866 = vperm.xlu1 %7147, %v848_v41   ;;  %v846_v17 = vld [vmem:[%s14414_s11 + $0x8] sm:$0xff] }
  0xdb   :  { %6952 = vmatmul.msk.bf16.vlgmr.msra.gmra.mxu2 %vm575_vm11, %v7104_v42  ;;  %600 = vmatpush.bf16.msra.mxu0 %v554_v7  ;;  %v557_v39 = vsel %vm520_vm7, %v548_v3, %v485_v47  ;;  %v419_v38 = vunpack.c.h.b16 %v182_v45  ;;  %v501_v6 = vsel %vm498_vm4, %v398_v56, %v412_v32  ;;  %v504_v55 = vsel %vm498_vm4, %v399_v57, %v413_v19 }
  0xdc   :  { %6954 = vmatmul.msk.bf16.vlgmr.msra.gmra.mxu3 %vm575_vm11, %v7104_v42  ;;  %619 = vmatpush.bf16.msra.mxu1 %v557_v39  ;;  %v422_v62 = vpack.c.b16 %v418_v18, %v418_v18  ;;  %v428_v58 = vunpack.c.l.b16 %v221_v8  ;;  %v429_v54 = vunpack.c.h.b16 %v221_v8 }
  0xdd   :  { %v423_v34 = vpack.c.b16 %v419_v38, %v419_v38  ;;  %861 = vperm.xlu2 %7146, %v847_v44   ;;  %7148 = vset.pattern.permute.xlu0 %v14446_v4 }
  0xde   :  { %v432_v14 = vpack.c.b16 %v428_v58, %v428_v58  ;;  %v433_v5 = vpack.c.b16 %v429_v54, %v429_v54  ;;  %856 = vperm.xlu0 %7148, %v846_v17   ;;  %v513_v40 = vsel %vm511_vm6, %v501_v6, %v422_v62 }
  0xdf   :  { %v515_v29 = vsel %vm511_vm6, %v504_v55, %v423_v34  ;;  %v7245_v34 = vmov 512.0  }
  0xe0   :  { %v436_v1 = vrot.slane %v432_v14, 2  ;;  %v437_v12 = vrot.slane %v433_v5, 2  ;;  %7162 = vrcp.f32 %v7245_v34 }
  0xe2   :  { %v522_v52 = vsel %vm520_vm7, %v513_v40, %v436_v1  ;;  %v525_v16 = vsel %vm520_vm7, %v515_v29, %v437_v12 }
  0xe3   :  { %601 = vmatpush.bf16.msra.mxu0 %v522_v52  ;;  %620 = vmatpush.bf16.msra.mxu1 %v525_v16 }
  0xe5   :  { %851 = vperm.xlu2 %7146, %v845_v0  }
  0xe6   :  { %6948 = vmatmul.msk.bf16.vlgmr.msra.gmra.mxu0 %vm575_vm11, %v7104_v42  ;;  %6950 = vmatmul.msk.bf16.vlgmr.msra.gmra.mxu1 %vm575_vm11, %v7104_v42  ;;  %v7163_v14 = vpop.eup %7162 }
  0xe7   :  { %v691_v6 = vmul.f32 512.0, %v7163_v14  ;;  %vm695_vm12 = vweird.f32 %v7163_v14 }
  0xe9   :  { %v692_v5 = vsub.f32 1.0, %v691_v6 }
  0xeb   :  { %6953 = vmatmul.msk.bf16.gmra.mxu2 %vm575_vm11, %v7105_v60  ;;  %v693_v40 = vmul.f32 %v7163_v14, %v692_v5 }
  0xec   :  { %6955 = vmatmul.msk.bf16.gmra.mxu3 %vm575_vm11, %v7105_v60 }
  0xed   :  { %v694_v1 = vadd.f32 %v7163_v14, %v693_v40 }
  0xef   :  { %v7824_v12 = vsel %vm695_vm12, %v7163_v14, %v694_v1 }
  0xf0   :  { %15032 = vst [vmem:[#allocation50_spill] sm:$0xff] %v7824_v12 }
  0xf6   :  { %6949 = vmatmul.msk.bf16.gmra.mxu0 %vm575_vm11, %v7105_v60  ;;  %6951 = vmatmul.msk.bf16.gmra.mxu1 %vm575_vm11, %v7105_v60 }
 0x137   :  { %v7820_v55 = vpop.permute.xlu2 %861 }
 0x13f   :  { %v7826_v52 = vpop.permute.xlu2 %851 }
 0x14c   :  { %v7822_v29 = vpop.permute.xlu1 %866 }
 0x15e   :  { %v7772_v23 = vpop.f32.mrf.mxu2 }
 0x15f   :  { %15016 = vst [vmem:[#allocation34_spill] sm:$0xff] %v7772_v23  ;;  %v7774_v36 = vpop.f32.mrf.mxu3 }
 0x160   :  { %15017 = vst [vmem:[#allocation35_spill] sm:$0xff] %v7774_v36 }
 0x163   :  { %v7776_v24 = vpop.f32.mrf.mxu0  ;;  %v7778_v49 = vpop.f32.mrf.mxu1 }
 0x164   :  { %15018 = vst [vmem:[#allocation36_spill] sm:$0xff] %v7776_v24  ;;  %v670_v42 = vadd.f32 %v7778_v49, %v7776_v24 }
 0x165   :  { %15019 = vst [vmem:[#allocation37_spill] sm:$0xff] %v7778_v49 }
 0x166   :  { %v671_v33 = vadd.f32 %v670_v42, %v7772_v23  ;;  %v7783_v41 = vpop.f32.mrf.mxu2 }
 0x167   :  { %15020 = vst [vmem:[#allocation38_spill] sm:$0xff] %v7783_v41  ;;  %v7786_v59 = vpop.f32.mrf.mxu3 }
 0x168   :  { %v672_v43 = vadd.f32 %v671_v33, %v7774_v36  ;;  %15021 = vst [vmem:[#allocation39_spill] sm:$0xff] %v7786_v59 }
 0x16a   :  { %673 = vadd.xlane.f32.xlu1 %v672_v43 }
 0x16b   :  { %v7788_v45 = vpop.f32.mrf.mxu0  ;;  %v7790_v51 = vpop.f32.mrf.mxu1 }
 0x16c   :  { %15022 = vst [vmem:[#allocation40_spill] sm:$0xff] %v7788_v45  ;;  %v675_v56 = vadd.f32 %v7790_v51, %v7788_v45 }
 0x16d   :  { %15023 = vst [vmem:[#allocation41_spill] sm:$0xff] %v7790_v51 }
 0x16e   :  { %v676_v57 = vadd.f32 %v675_v56, %v7783_v41  ;;  %v7796_v47 = vpop.f32.mrf.mxu2 }
 0x16f   :  { %15024 = vst [vmem:[#allocation42_spill] sm:$0xff] %v7796_v47  ;;  %v7798_v8 = vpop.f32.mrf.mxu3 }
 0x170   :  { %v677_v35 = vadd.f32 %v676_v57, %v7786_v59  ;;  %15025 = vst [vmem:[#allocation43_spill] sm:$0xff] %v7798_v8 }
 0x172   :  { %678 = vadd.xlane.f32.xlu2 %v677_v35 }
 0x173   :  { %v7800_v7 = vpop.f32.mrf.mxu0  ;;  %v7802_v3 = vpop.f32.mrf.mxu1 }
 0x174   :  { %15026 = vst [vmem:[#allocation44_spill] sm:$0xff] %v7800_v7  ;;  %v680_v18 = vadd.f32 %v7802_v3, %v7800_v7 }
 0x175   :  { %15027 = vst [vmem:[#allocation45_spill] sm:$0xff] %v7802_v3 }
 0x176   :  { %v681_v44 = vadd.f32 %v680_v18, %v7796_v47  ;;  %v7808_v32 = vpop.f32.mrf.mxu2 }
 0x177   :  { %15028 = vst [vmem:[#allocation46_spill] sm:$0xff] %v7808_v32  ;;  %v7816_v58 = vpop.f32.mrf.mxu3 }
 0x178   :  { %v682_v39 = vadd.f32 %v681_v44, %v7798_v8  ;;  %15031 = vst [vmem:[#allocation49_spill] sm:$0xff] %v7816_v58 }
 0x17a   :  { %683 = vadd.xlane.f32.xlu2 %v682_v39 }
 0x17b   :  { %v7810_v38 = vpop.f32.mrf.mxu0  ;;  %v7812_v17 = vpop.f32.mrf.mxu1 }
 0x17c   :  { %15029 = vst [vmem:[#allocation47_spill] sm:$0xff] %v7810_v38  ;;  %v685_v62 = vadd.f32 %v7812_v17, %v7810_v38 }
 0x17d   :  { %15030 = vst [vmem:[#allocation48_spill] sm:$0xff] %v7812_v17 }
 0x17e   :  { %v686_v19 = vadd.f32 %v685_v62, %v7808_v32 }
 0x180   :  { %v687_v54 = vadd.f32 %v686_v19, %v7816_v58 }
 0x182   :  { %688 = vadd.xlane.f32.xlu0 %v687_v54 }
 0x1dd   :  { %v674_v16 = vpop.xlane.xlu1 %673 }
 0x1de   :  { %v697_v0 = vmul.f32 %v7824_v12, %v674_v16  ;;  %v7866_v16 = vpop.permute.xlu0 %856 }
 0x1e0   :  { %v7830_v60 = vsub.f32 %v7776_v24, %v697_v0  ;;  %v7833_v42 = vsub.f32 %v7778_v49, %v697_v0  ;;  %v7836_v33 = vsub.f32 %v7772_v23, %v697_v0  ;;  %v7839_v43 = vsub.f32 %v7774_v36, %v697_v0 }
 0x1e2   :  { %v717_v56 = vmul.f32 %v7830_v60, %v7830_v60  ;;  %v718_v57 = vmul.f32 %v7833_v42, %v7833_v42  ;;  %v719_v35 = vmul.f32 %v7836_v33, %v7836_v33  ;;  %v720_v62 = vmul.f32 %v7839_v43, %v7839_v43 }
 0x1e4   :  { %v733_v18 = vadd.f32 %v718_v57, %v717_v56 }
 0x1e5   :  { %v679_v44 = vpop.xlane.xlu2 %678 }
 0x1e6   :  { %v698_v39 = vmul.f32 %v7824_v12, %v679_v44  ;;  %v734_v19 = vadd.f32 %v733_v18, %v719_v35 }
 0x1e8   :  { %v735_v54 = vadd.f32 %v734_v19, %v720_v62  ;;  %v7851_v34 = vsub.f32 %v7788_v45, %v698_v39  ;;  %v7854_v14 = vsub.f32 %v7790_v51, %v698_v39  ;;  %v7857_v6 = vsub.f32 %v7783_v41, %v698_v39 }
 0x1e9   :  { %v7860_v5 = vsub.f32 %v7786_v59, %v698_v39 }
 0x1ea   :  { %736 = vadd.xlane.f32.xlu1 %v735_v54  ;;  %v721_v40 = vmul.f32 %v7851_v34, %v7851_v34  ;;  %v722_v1 = vmul.f32 %v7854_v14, %v7854_v14  ;;  %v723_v0 = vmul.f32 %v7857_v6, %v7857_v6 }
 0x1eb   :  { %v724_v18 = vmul.f32 %v7860_v5, %v7860_v5 }
 0x1ec   :  { %v738_v56 = vadd.f32 %v722_v1, %v721_v40 }
 0x1ed   :  { %v684_v57 = vpop.xlane.xlu2 %683 }
 0x1ee   :  { %v699_v35 = vmul.f32 %v7824_v12, %v684_v57  ;;  %v739_v44 = vadd.f32 %v738_v56, %v723_v0 }
 0x1f0   :  { %v740_v39 = vadd.f32 %v739_v44, %v724_v18  ;;  %v7874_v62 = vsub.f32 %v7800_v7, %v699_v35  ;;  %v7877_v19 = vsub.f32 %v7802_v3, %v699_v35  ;;  %v7880_v54 = vsub.f32 %v7796_v47, %v699_v35 }
 0x1f1   :  { %v7883_v40 = vsub.f32 %v7798_v8, %v699_v35 }
 0x1f2   :  { %741 = vadd.xlane.f32.xlu2 %v740_v39  ;;  %v725_v1 = vmul.f32 %v7874_v62, %v7874_v62  ;;  %v726_v0 = vmul.f32 %v7877_v19, %v7877_v19  ;;  %v727_v56 = vmul.f32 %v7880_v54, %v7880_v54 }
 0x1f3   :  { %v728_v4 = vmul.f32 %v7883_v40, %v7883_v40 }
 0x1f4   :  { %v743_v57 = vadd.f32 %v726_v0, %v725_v1 }
 0x1f5   :  { %v689_v18 = vpop.xlane.xlu0 %688 }
 0x1f6   :  { %v700_v44 = vmul.f32 %v7824_v12, %v689_v18  ;;  %v744_v39 = vadd.f32 %v743_v57, %v727_v56 }
 0x1f8   :  { %v745_v47 = vadd.f32 %v744_v39, %v728_v4  ;;  %v7895_v35 = vsub.f32 %v7810_v38, %v700_v44  ;;  %v7898_v8 = vsub.f32 %v7812_v17, %v700_v44  ;;  %v7901_v59 = vsub.f32 %v7808_v32, %v700_v44 }
 0x1f9   :  { %v7904_v1 = vsub.f32 %v7816_v58, %v700_v44 }
 0x1fa   :  { %746 = vadd.xlane.f32.xlu2 %v745_v47  ;;  %v729_v0 = vmul.f32 %v7895_v35, %v7895_v35  ;;  %v730_v56 = vmul.f32 %v7898_v8, %v7898_v8  ;;  %v731_v4 = vmul.f32 %v7901_v59, %v7901_v59 }
 0x1fb   :  { %v732_v18 = vmul.f32 %v7904_v1, %v7904_v1 }
 0x1fc   :  { %v748_v57 = vadd.f32 %v730_v56, %v729_v0 }
 0x1fe   :  { %v749_v39 = vadd.f32 %v748_v57, %v731_v4 }
 0x200   :  { %v750_v32 = vadd.f32 %v749_v39, %v732_v18  ;;  %v757_v39 = vld [vmem:[%s14415_s10] sm:$0xff] }
 0x202   :  { %751 = vadd.xlane.f32.xlu0 %v750_v32 }
 0x25d   :  { %v737_v47 = vpop.xlane.xlu1 %736 }
 0x25e   :  { %v753_v44 = vmul.f32 %v737_v47, %v7824_v12 }
 0x260   :  { %v761_v58 = vadd.f32 1e-05, %v753_v44 }
 0x262   :  { %7164 = vrsqrt.f32 %v761_v58  ;;  %vm771_vm14 = vweird.f32 %v761_v58 }
 0x265   :  { %v742_v17 = vpop.xlane.xlu2 %741 }
 0x266   :  { %v754_v38 = vmul.f32 %v742_v17, %v7824_v12 }
 0x268   :  { %v7165_v3 = vpop.eup %7164  ;;  %v762_v7 = vadd.f32 1e-05, %v754_v38 }
 0x269   :  { %v766_v41 = vmul.f32 %v7165_v3, %v761_v58  ;;  %vm772_vm13 = vweird.f32 %v7165_v3 }
 0x26a   :  { %7166 = vrsqrt.f32 %v762_v7  ;;  %vm773_vm15 = vmor %vm771_vm14, %vm772_vm13  ;;  %vm781_vm6 = vweird.f32 %v762_v7 }
 0x26b   :  { %v767_v36 = vmul.f32 %v7165_v3, %v766_v41 }
 0x26d   :  { %v768_v0 = vmul.f32 0.5, %v767_v36  ;;  %v747_v56 = vpop.xlane.xlu2 %746 }
 0x26e   :  { %v755_v51 = vmul.f32 %v747_v56, %v7824_v12 }
 0x26f   :  { %v769_v4 = vsub.f32 1.5, %v768_v0 }
 0x270   :  { %v7167_v32 = vpop.eup %7166  ;;  %v763_v57 = vadd.f32 1e-05, %v755_v51 }
 0x271   :  { %v776_v18 = vmul.f32 %v7167_v32, %v762_v7  ;;  %v770_v17 = vmul.f32 %v7165_v3, %v769_v4  ;;  %vm782_vm4 = vweird.f32 %v7167_v32  ;;  %v758_v4 = vld [vmem:[%s14415_s10 + $0x8] sm:$0xff]  ;;  %v759_v7 = vld [vmem:[%s14415_s10 + $0x10] sm:$0xff] }
 0x272   :  { %7168 = vrsqrt.f32 %v763_v57  ;;  %vm783_vm7 = vmor %vm781_vm6, %vm782_vm4  ;;  %vm791_vm12 = vweird.f32 %v763_v57  ;;  %vm1883_vm6 = vcmask 261120  }
 0x273   :  { %v777_v38 = vmul.f32 %v7167_v32, %v776_v18  ;;  %v774_v47 = vsel %vm773_vm15, %v7165_v3, %v770_v17 }
 0x274   :  { %v805_v41 = vmul.f32 %v774_v47, %v757_v39 }
 0x275   :  { %v778_v36 = vmul.f32 0.5, %v777_v38  ;;  %v752_v44 = vpop.xlane.xlu0 %751 }
 0x276   :  { %v756_v56 = vmul.f32 %v752_v44, %v7824_v12  ;;  %811 = vperm.xlu2 %7146, %v805_v41  }
 0x277   :  { %v779_v0 = vsub.f32 1.5, %v778_v36 }
 0x278   :  { %v7169_v51 = vpop.eup %7168  ;;  %v764_v58 = vadd.f32 1e-05, %v756_v56 }
 0x279   :  { %v786_v45 = vmul.f32 %v7169_v51, %v763_v57  ;;  %v780_v23 = vmul.f32 %v7167_v32, %v779_v0  ;;  %vm792_vm11 = vweird.f32 %v7169_v51 }
 0x27a   :  { %7170 = vrsqrt.f32 %v764_v58  ;;  %vm793_vm13 = vmor %vm791_vm12, %vm792_vm11  ;;  %vm801_vm15 = vweird.f32 %v764_v58 }
 0x27b   :  { %v787_v3 = vmul.f32 %v7169_v51, %v786_v45  ;;  %v784_v18 = vsel %vm783_vm7, %v7167_v32, %v780_v23  ;;  %v760_v45 = vld [vmem:[%s14415_s10 + $0x18] sm:$0xff] }
 0x27c   :  { %v806_v39 = vmul.f32 %v784_v18, %v758_v4 }
 0x27d   :  { %v788_v17 = vmul.f32 0.5, %v787_v3 }
 0x27e   :  { %816 = vperm.xlu1 %7147, %v806_v39  }
 0x27f   :  { %v789_v38 = vsub.f32 1.5, %v788_v17 }
 0x280   :  { %v7171_v47 = vpop.eup %7170 }
 0x281   :  { %v796_v41 = vmul.f32 %v7171_v47, %v764_v58  ;;  %v790_v36 = vmul.f32 %v7169_v51, %v789_v38  ;;  %vm802_vm14 = vweird.f32 %v7171_v47 }
 0x282   :  { %vm803_vm4 = vmor %vm801_vm15, %vm802_vm14 }
 0x283   :  { %v797_v44 = vmul.f32 %v7171_v47, %v796_v41  ;;  %v794_v56 = vsel %vm793_vm13, %v7169_v51, %v790_v36 }
 0x284   :  { %v807_v0 = vmul.f32 %v794_v56, %v759_v7 }
 0x285   :  { %v798_v49 = vmul.f32 0.5, %v797_v44 }
 0x286   :  { %821 = vperm.xlu0 %7148, %v807_v0  }
 0x287   :  { %v799_v23 = vsub.f32 1.5, %v798_v49 }
 0x289   :  { %v800_v32 = vmul.f32 %v7171_v47, %v799_v23 }
 0x28b   :  { %v804_v57 = vsel %vm803_vm4, %v7171_v47, %v800_v32 }
 0x28c   :  { %v808_v4 = vmul.f32 %v804_v57, %v760_v45 }
 0x28e   :  { %826 = vperm.xlu1 %7147, %v808_v4  }
 0x2d0   :  { %v812_v3 = vpop.permute.xlu2 %811 }
 0x2d1   :  { %v829_v18 = vmul.f32 %v812_v3, %v7830_v60  ;;  %v830_v51 = vmul.f32 %v812_v3, %v7833_v42  ;;  %v832_v39 = vmul.f32 %v812_v3, %v7839_v43  ;;  %v831_v38 = vmul.f32 %v812_v3, %v7836_v33 }
 0x2d3   :  { %v869_v49 = vadd.f32 %v7826_v52, %v829_v18  ;;  %v870_v58 = vadd.f32 %v7826_v52, %v830_v51  ;;  %v872_v17 = vadd.f32 %v7826_v52, %v832_v39  ;;  %v871_v42 = vadd.f32 %v7826_v52, %v831_v38 }
 0x2d5   :  { %v885_v41 = vmax.f32 %v869_v49, 0.0  ;;  %v886_v7 = vmax.f32 %v870_v58, 0.0  ;;  %v7937_v47 = vmax.f32 %v872_v17, 0.0  ;;  %v7946_v43 = vmax.f32 %v871_v42, 0.0 }
 0x2d7   :  { %1149 = vrot.lane.b32.xlu2 %v7937_v47, %s7239_s27  ;;  %1133 = vrot.lane.b32.xlu0 %v886_v7, %s7239_s27  ;;  %v7942_v60 = vpack.c.bf16 %v886_v7, %v885_v41 }
 0x2d8   :  { %1125 = vrot.lane.b32.xlu1 %v885_v41, %s7239_s27 }
 0x2d9   :  { %15033 = vst [vmem:[#allocation51_spill] sm:$0xff] %v7942_v60 }
 0x2df   :  { %1365 = vrot.lane.b32.xlu2 %v7946_v43, %s7242_s30  ;;  %1357 = vrot.lane.b32.xlu0 %v886_v7, %s7242_s30 }
 0x2e0   :  { %1349 = vrot.lane.b32.xlu1 %v885_v41, %s7242_s30 }
 0x2e7   :  { %1077 = vrot.lane.b32.xlu2 %v7937_v47, %s7238_s26  ;;  %1061 = vrot.lane.b32.xlu0 %v886_v7, %s7238_s26 }
 0x2e8   :  { %1053 = vrot.lane.b32.xlu1 %v885_v41, %s7238_s26 }
 0x2ef   :  { %1293 = vrot.lane.b32.xlu2 %v7946_v43, %s7241_s29  ;;  %1285 = vrot.lane.b32.xlu0 %v886_v7, %s7241_s29 }
 0x2f0   :  { %1277 = vrot.lane.b32.xlu1 %v885_v41, %s7241_s29  ;;  %v817_v52 = vpop.permute.xlu1 %816 }
 0x2f1   :  { %v833_v33 = vmul.f32 %v817_v52, %v7851_v34  ;;  %v836_v36 = vmul.f32 %v817_v52, %v7860_v5  ;;  %v835_v0 = vmul.f32 %v817_v52, %v7857_v6  ;;  %v834_v5 = vmul.f32 %v817_v52, %v7854_v14 }
 0x2f3   :  { %v873_v44 = vadd.f32 %v7866_v16, %v833_v33  ;;  %v876_v56 = vadd.f32 %v7866_v16, %v836_v36  ;;  %v875_v45 = vadd.f32 %v7866_v16, %v835_v0  ;;  %v874_v32 = vadd.f32 %v7866_v16, %v834_v5 }
 0x2f5   :  { %v7987_v23 = vmax.f32 %v873_v44, 0.0  ;;  %v7989_v34 = vmax.f32 %v876_v56, 0.0  ;;  %v8000_v6 = vmax.f32 %v875_v45, 0.0  ;;  %v8002_v57 = vmax.f32 %v874_v32, 0.0 }
 0x2f7   :  { %1005 = vrot.lane.b32.xlu2 %v7937_v47, %s7237_s0  ;;  %989 = vrot.lane.b32.xlu0 %v886_v7, %s7237_s0 }
 0x2f8   :  { %981 = vrot.lane.b32.xlu1 %v885_v41, %s7237_s0  ;;  %v822_v4 = vpop.permute.xlu0 %821 }
 0x2f9   :  { %v838_v52 = vmul.f32 %v822_v4, %v7877_v19  ;;  %v840_v0 = vmul.f32 %v822_v4, %v7883_v40  ;;  %v837_v5 = vmul.f32 %v822_v4, %v7874_v62  ;;  %v839_v62 = vmul.f32 %v822_v4, %v7880_v54 }
 0x2fb   :  { %v878_v33 = vadd.f32 %v7820_v55, %v838_v52  ;;  %v880_v45 = vadd.f32 %v7820_v55, %v840_v0  ;;  %v877_v40 = vadd.f32 %v7820_v55, %v837_v5  ;;  %v879_v0 = vadd.f32 %v7820_v55, %v839_v62 }
 0x2fd   :  { %v8087_v19 = vmax.f32 %v878_v33, 0.0  ;;  %v8105_v24 = vmax.f32 %v880_v45, 0.0  ;;  %v8107_v12 = vmax.f32 %v877_v40, 0.0  ;;  %v8122_v4 = vmax.f32 %v879_v0, 0.0 }
 0x2ff   :  { %1221 = vrot.lane.b32.xlu2 %v7946_v43, %s7240_s28  ;;  %1213 = vrot.lane.b32.xlu0 %v886_v7, %s7240_s28 }
 0x300   :  { %1205 = vrot.lane.b32.xlu1 %v885_v41, %s7240_s28  ;;  %v8034_v18 = vpop.permute.xlu1 %826 }
 0x307   :  { %1437 = vrot.lane.b32.xlu2 %v7946_v43, %s7243_s13  ;;  %1429 = vrot.lane.b32.xlu0 %v886_v7, %s7243_s13 }
 0x308   :  { %1421 = vrot.lane.b32.xlu1 %v885_v41, %s7243_s13 }
 0x30f   :  { %933 = vrot.lane.b32.xlu2 %v7937_v47, %s7236_s25  ;;  %917 = vrot.lane.b32.xlu0 %v886_v7, %s7236_s25 }
 0x310   :  { %909 = vrot.lane.b32.xlu1 %v885_v41, %s7236_s25 }
 0x317   :  { %1141 = vrot.lane.b32.xlu2 %v7946_v43, %s7239_s27  ;;  %1301 = vrot.lane.b32.xlu0 %v7937_v47, %s7241_s29 }
 0x318   :  { %1373 = vrot.lane.b32.xlu1 %v7937_v47, %s7242_s30 }
 0x31f   :  { %1127 = vrot.lane.b32.xlu2 %v7987_v23, %s7239_s27  ;;  %1151 = vrot.lane.b32.xlu0 %v7989_v34, %s7239_s27 }
 0x320   :  { %1069 = vrot.lane.b32.xlu1 %v7946_v43, %s7238_s26 }
 0x327   :  { %1351 = vrot.lane.b32.xlu2 %v7987_v23, %s7242_s30  ;;  %1367 = vrot.lane.b32.xlu0 %v8000_v6, %s7242_s30 }
 0x328   :  { %1135 = vrot.lane.b32.xlu1 %v8002_v57, %s7239_s27 }
 0x32f   :  { %1055 = vrot.lane.b32.xlu2 %v7987_v23, %s7238_s26  ;;  %1079 = vrot.lane.b32.xlu0 %v7989_v34, %s7238_s26 }
 0x330   :  { %1359 = vrot.lane.b32.xlu1 %v8002_v57, %s7242_s30 }
 0x331   :  { %v8016_v14 = vpop.permute.xlu2 %1149 }
 0x337   :  { %1279 = vrot.lane.b32.xlu2 %v7987_v23, %s7241_s29  ;;  %1295 = vrot.lane.b32.xlu0 %v8000_v6, %s7241_s29 }
 0x338   :  { %1063 = vrot.lane.b32.xlu1 %v8002_v57, %s7238_s26 }
 0x339   :  { %v8024_v16 = vpop.permute.xlu2 %1365 }
 0x33a   :  { %15034 = vst [vmem:[#allocation52_spill] sm:$0xff] %v8024_v16 }
 0x33f   :  { %983 = vrot.lane.b32.xlu2 %v7987_v23, %s7237_s0  ;;  %1007 = vrot.lane.b32.xlu0 %v7989_v34, %s7237_s0 }
 0x340   :  { %1287 = vrot.lane.b32.xlu1 %v8002_v57, %s7241_s29 }
 0x341   :  { %v8032_v3 = vpop.permute.xlu2 %1077 }
 0x347   :  { %1207 = vrot.lane.b32.xlu2 %v7987_v23, %s7240_s28  ;;  %1223 = vrot.lane.b32.xlu0 %v8000_v6, %s7240_s28 }
 0x348   :  { %991 = vrot.lane.b32.xlu1 %v8002_v57, %s7237_s0 }
 0x349   :  { %v8042_v51 = vpop.permute.xlu2 %1293  ;;  %v8044_v39 = vpop.permute.xlu0 %1133 }
 0x34a   :  { %v8046_v49 = vpop.permute.xlu1 %1125 }
 0x34f   :  { %1423 = vrot.lane.b32.xlu2 %v7987_v23, %s7243_s13  ;;  %1439 = vrot.lane.b32.xlu0 %v8000_v6, %s7243_s13 }
 0x350   :  { %1215 = vrot.lane.b32.xlu1 %v8002_v57, %s7240_s28 }
 0x351   :  { %v8054_v58 = vpop.permute.xlu2 %1005  ;;  %v8056_v17 = vpop.permute.xlu0 %1357 }
 0x352   :  { %15035 = vst [vmem:[#allocation53_spill] sm:$0xff] %v8054_v58  ;;  %v8058_v38 = vpop.permute.xlu1 %1349 }
 0x357   :  { %911 = vrot.lane.b32.xlu2 %v7987_v23, %s7236_s25  ;;  %935 = vrot.lane.b32.xlu0 %v7989_v34, %s7236_s25 }
 0x358   :  { %1431 = vrot.lane.b32.xlu1 %v8002_v57, %s7243_s13 }
 0x359   :  { %v8066_v41 = vpop.permute.xlu2 %1221  ;;  %v8068_v7 = vpop.permute.xlu0 %1061 }
 0x35a   :  { %15036 = vst [vmem:[#allocation54_spill] sm:$0xff] %v8066_v41  ;;  %v8070_v42 = vpop.permute.xlu1 %1053 }
 0x35f   :  { %1375 = vrot.lane.b32.xlu2 %v7989_v34, %s7242_s30  ;;  %1143 = vrot.lane.b32.xlu0 %v8000_v6, %s7239_s27 }
 0x360   :  { %919 = vrot.lane.b32.xlu1 %v8002_v57, %s7236_s25 }
 0x361   :  { %v8080_v36 = vpop.permute.xlu2 %1437  ;;  %v8082_v44 = vpop.permute.xlu0 %1285 }
 0x362   :  { %15037 = vst [vmem:[#allocation55_spill] sm:$0xff] %v8080_v36  ;;  %v8084_v56 = vpop.permute.xlu1 %1277 }
 0x367   :  { %1071 = vrot.lane.b32.xlu2 %v8000_v6, %s7238_s26  ;;  %1137 = vrot.lane.b32.xlu0 %v8087_v19, %s7239_s27 }
 0x368   :  { %1303 = vrot.lane.b32.xlu1 %v7989_v34, %s7241_s29 }
 0x369   :  { %v8097_v32 = vpop.permute.xlu2 %933  ;;  %v8099_v52 = vpop.permute.xlu0 %989 }
 0x36a   :  { %15038 = vst [vmem:[#allocation56_spill] sm:$0xff] %v8097_v32  ;;  %v8102_v33 = vpop.permute.xlu1 %981 }
 0x36b   :  { %15039 = vst [vmem:[#allocation57_spill] sm:$0xff] %v8099_v52 }
 0x36f   :  { %1153 = vrot.lane.b32.xlu2 %v8105_v24, %s7239_s27  ;;  %1361 = vrot.lane.b32.xlu0 %v8087_v19, %s7242_s30 }
 0x370   :  { %1129 = vrot.lane.b32.xlu1 %v8107_v12, %s7239_s27 }
 0x371   :  { %v8116_v5 = vpop.permute.xlu2 %1141  ;;  %v8118_v2 = vpop.permute.xlu0 %1213 }
 0x372   :  { %v8120_v54 = vpop.permute.xlu1 %1205 }
 0x373   :  { %15040 = vst [vmem:[#allocation58_spill] sm:$0xff] %v8120_v54 }
 0x377   :  { %1369 = vrot.lane.b32.xlu2 %v8122_v4, %s7242_s30  ;;  %1065 = vrot.lane.b32.xlu0 %v8087_v19, %s7238_s26 }
 0x378   :  { %1353 = vrot.lane.b32.xlu1 %v8107_v12, %s7242_s30 }
 0x379   :  { %v8130_v45 = vpop.permute.xlu2 %1127  ;;  %v8132_v55 = vpop.permute.xlu0 %1429 }
 0x37a   :  { %15041 = vst [vmem:[#allocation59_spill] sm:$0xff] %v8130_v45  ;;  %v8134_v40 = vpop.permute.xlu1 %1421 }
 0x37b   :  { %15042 = vst [vmem:[#allocation60_spill] sm:$0xff] %v8134_v40 }
 0x37f   :  { %1081 = vrot.lane.b32.xlu2 %v8105_v24, %s7238_s26  ;;  %1289 = vrot.lane.b32.xlu0 %v8087_v19, %s7241_s29 }
 0x380   :  { %1057 = vrot.lane.b32.xlu1 %v8107_v12, %s7238_s26 }
 0x381   :  { %v8142_v62 = vpop.permute.xlu2 %1351  ;;  %v8144_v0 = vpop.permute.xlu0 %917 }
 0x382   :  { %15043 = vst [vmem:[#allocation61_spill] sm:$0xff] %v8142_v62  ;;  %v8146_v22 = vpop.permute.xlu1 %909 }
 0x383   :  { %15044 = vst [vmem:[#allocation62_spill] sm:$0xff] %v8144_v0  ;;  %v842_v0 = vmul.f32 %v8034_v18, %v7898_v8 }
 0x387   :  { %1297 = vrot.lane.b32.xlu2 %v8122_v4, %s7241_s29  ;;  %993 = vrot.lane.b32.xlu0 %v8087_v19, %s7237_s0 }
 0x388   :  { %1281 = vrot.lane.b32.xlu1 %v8107_v12, %s7241_s29 }
 0x389   :  { %v8154_v45 = vpop.permute.xlu2 %1055  ;;  %v8156_v13 = vpop.permute.xlu0 %1301 }
 0x38a   :  { %15045 = vst [vmem:[#allocation63_spill] sm:$0xff] %v8154_v45  ;;  %v8158_v26 = vpop.permute.xlu1 %1373 }
 0x38b   :  { %15046 = vst [vmem:[#allocation64_spill] sm:$0xff] %v8156_v13 }
 0x38c   :  { %15047 = vst [vmem:[#allocation65_spill] sm:$0xff] %v8158_v26 }
 0x38f   :  { %1009 = vrot.lane.b32.xlu2 %v8105_v24, %s7237_s0  ;;  %1217 = vrot.lane.b32.xlu0 %v8087_v19, %s7240_s28 }
 0x390   :  { %985 = vrot.lane.b32.xlu1 %v8107_v12, %s7237_s0 }
 0x391   :  { %v8166_v62 = vpop.permute.xlu2 %1279  ;;  %v8168_v25 = vpop.permute.xlu0 %1151 }
 0x392   :  { %15048 = vst [vmem:[#allocation66_spill] sm:$0xff] %v8166_v62  ;;  %v8170_v46 = vpop.permute.xlu1 %1069 }
 0x393   :  { %15049 = vst [vmem:[#allocation67_spill] sm:$0xff] %v8168_v25 }
 0x394   :  { %15050 = vst [vmem:[#allocation68_spill] sm:$0xff] %v8170_v46 }
 0x397   :  { %1225 = vrot.lane.b32.xlu2 %v8122_v4, %s7240_s28  ;;  %1433 = vrot.lane.b32.xlu0 %v8087_v19, %s7243_s13 }
 0x398   :  { %1209 = vrot.lane.b32.xlu1 %v8107_v12, %s7240_s28 }
 0x399   :  { %v8178_v45 = vpop.permute.xlu2 %983  ;;  %v8180_v26 = vpop.permute.xlu0 %1367 }
 0x39a   :  { %15051 = vst [vmem:[#allocation69_spill] sm:$0xff] %v8178_v45  ;;  %v8182_v13 = vpop.permute.xlu1 %1135 }
 0x39b   :  { %15052 = vst [vmem:[#allocation70_spill] sm:$0xff] %v8180_v26 }
 0x39c   :  { %15053 = vst [vmem:[#allocation71_spill] sm:$0xff] %v8182_v13 }
 0x39f   :  { %1441 = vrot.lane.b32.xlu2 %v8122_v4, %s7243_s13  ;;  %921 = vrot.lane.b32.xlu0 %v8087_v19, %s7236_s25 }
 0x3a0   :  { %1425 = vrot.lane.b32.xlu1 %v8107_v12, %s7243_s13 }
 0x3a1   :  { %v8190_v62 = vpop.permute.xlu2 %1207  ;;  %v8192_v25 = vpop.permute.xlu0 %1079 }
 0x3a2   :  { %15054 = vst [vmem:[#allocation72_spill] sm:$0xff] %v8190_v62  ;;  %v8194_v46 = vpop.permute.xlu1 %1359  ;;  %v844_v62 = vmul.f32 %v8034_v18, %v7904_v1  ;;  %v841_v1 = vmul.f32 %v8034_v18, %v7895_v35 }
 0x3a3   :  { %15055 = vst [vmem:[#allocation73_spill] sm:$0xff] %v8192_v25 }
 0x3a4   :  { %15056 = vst [vmem:[#allocation74_spill] sm:$0xff] %v8194_v46  ;;  %v884_v25 = vadd.f32 %v7822_v29, %v844_v62  ;;  %v881_v62 = vadd.f32 %v7822_v29, %v841_v1 }
 0x3a6   :  { %v8227_v63 = vmax.f32 %v884_v25, 0.0 }
 0x3a7   :  { %937 = vrot.lane.b32.xlu2 %v8105_v24, %s7236_s25  ;;  %1377 = vrot.lane.b32.xlu0 %v8105_v24, %s7242_s30 }
 0x3a8   :  { %913 = vrot.lane.b32.xlu1 %v8107_v12, %s7236_s25 }
 0x3a9   :  { %v8202_v45 = vpop.permute.xlu2 %1423  ;;  %v8204_v26 = vpop.permute.xlu0 %1295 }
 0x3aa   :  { %15057 = vst [vmem:[#allocation75_spill] sm:$0xff] %v8202_v45  ;;  %v8206_v13 = vpop.permute.xlu1 %1063 }
 0x3ab   :  { %15058 = vst [vmem:[#allocation76_spill] sm:$0xff] %v8204_v26 }
 0x3ac   :  { %15059 = vst [vmem:[#allocation77_spill] sm:$0xff] %v8206_v13  ;;  %v843_v13 = vmul.f32 %v8034_v18, %v7901_v59  ;;  %v882_v59 = vadd.f32 %v7822_v29, %v842_v0  ;;  %v8246_v18 = vmax.f32 %v881_v62, 0.0 }
 0x3ae   :  { %v883_v35 = vadd.f32 %v7822_v29, %v843_v13 }
 0x3af   :  { %1305 = vrot.lane.b32.xlu2 %v8105_v24, %s7241_s29  ;;  %1073 = vrot.lane.b32.xlu0 %v8122_v4, %s7238_s26 }
 0x3b0   :  { %1145 = vrot.lane.b32.xlu1 %v8122_v4, %s7239_s27 }
 0x3b1   :  { %v8217_v46 = vpop.permute.xlu2 %911  ;;  %v8219_v45 = vpop.permute.xlu0 %1007 }
 0x3b2   :  { %15060 = vst [vmem:[#allocation78_spill] sm:$0xff] %v8217_v46  ;;  %v8221_v26 = vpop.permute.xlu1 %1287 }
 0x3b3   :  { %15061 = vst [vmem:[#allocation79_spill] sm:$0xff] %v8219_v45  ;;  %v8248_v45 = vmax.f32 %v883_v35, 0.0 }
 0x3b4   :  { %15062 = vst [vmem:[#allocation80_spill] sm:$0xff] %v8221_v26  ;;  %v8250_v26 = vmax.f32 %v882_v59, 0.0 }
 0x3b7   :  { %1001 = vrot.lane.b32.xlu2 %v8122_v4, %s7237_s0  ;;  %1155 = vrot.lane.b32.xlu0 %v8227_v63, %s7239_s27 }
 0x3b8   :  { %1233 = vrot.lane.b32.xlu1 %v8105_v24, %s7240_s28 }
 0x3b9   :  { %v8239_v46 = vpop.permute.xlu2 %1375  ;;  %v8241_v25 = vpop.permute.xlu0 %1223 }
 0x3ba   :  { %15063 = vst [vmem:[#allocation81_spill] sm:$0xff] %v8239_v46  ;;  %v8244_v8 = vpop.permute.xlu1 %991 }
 0x3bb   :  { %15064 = vst [vmem:[#allocation82_spill] sm:$0xff] %v8241_v25 }
 0x3bc   :  { %15065 = vst [vmem:[#allocation83_spill] sm:$0xff] %v8244_v8 }
 0x3bf   :  { %1131 = vrot.lane.b32.xlu2 %v8246_v18, %s7239_s27  ;;  %1371 = vrot.lane.b32.xlu0 %v8248_v45, %s7242_s30 }
 0x3c0   :  { %1139 = vrot.lane.b32.xlu1 %v8250_v26, %s7239_s27 }
 0x3c1   :  { %v8258_v13 = vpop.permute.xlu2 %1071  ;;  %v8260_v29 = vpop.permute.xlu0 %1439 }
 0x3c2   :  { %15066 = vst [vmem:[#allocation84_spill] sm:$0xff] %v8258_v13  ;;  %v8262_v0 = vpop.permute.xlu1 %1215 }
 0x3c3   :  { %15067 = vst [vmem:[#allocation85_spill] sm:$0xff] %v8260_v29 }
 0x3c4   :  { %15068 = vst [vmem:[#allocation86_spill] sm:$0xff] %v8262_v0 }
 0x3c7   :  { %1355 = vrot.lane.b32.xlu2 %v8246_v18, %s7242_s30  ;;  %1083 = vrot.lane.b32.xlu0 %v8227_v63, %s7238_s26 }
 0x3c8   :  { %1363 = vrot.lane.b32.xlu1 %v8250_v26, %s7242_s30 }
 0x3c9   :  { %v8270_v1 = vpop.permute.xlu2 %1153  ;;  %v8272_v62 = vpop.permute.xlu0 %935 }
 0x3ca   :  { %15069 = vst [vmem:[#allocation87_spill] sm:$0xff] %v8270_v1  ;;  %v8274_v35 = vpop.permute.xlu1 %1431 }
 0x3cb   :  { %15070 = vst [vmem:[#allocation88_spill] sm:$0xff] %v8272_v62 }
 0x3cc   :  { %15071 = vst [vmem:[#allocation89_spill] sm:$0xff] %v8274_v35 }
 0x3cf   :  { %1059 = vrot.lane.b32.xlu2 %v8246_v18, %s7238_s26  ;;  %1299 = vrot.lane.b32.xlu0 %v8248_v45, %s7241_s29 }
 0x3d0   :  { %1067 = vrot.lane.b32.xlu1 %v8250_v26, %s7238_s26 }
 0x3d1   :  { %v8282_v59 = vpop.permute.xlu2 %1369  ;;  %v8284_v29 = vpop.permute.xlu0 %1143 }
 0x3d2   :  { %15072 = vst [vmem:[#allocation90_spill] sm:$0xff] %v8282_v59  ;;  %v8286_v25 = vpop.permute.xlu1 %919 }
 0x3d3   :  { %15073 = vst [vmem:[#allocation91_spill] sm:$0xff] %v8284_v29 }
 0x3d4   :  { %15074 = vst [vmem:[#allocation92_spill] sm:$0xff] %v8286_v25 }
 0x3d7   :  { %1283 = vrot.lane.b32.xlu2 %v8246_v18, %s7241_s29  ;;  %1011 = vrot.lane.b32.xlu0 %v8227_v63, %s7237_s0 }
 0x3d8   :  { %1291 = vrot.lane.b32.xlu1 %v8250_v26, %s7241_s29 }
 0x3d9   :  { %v8294_v62 = vpop.permute.xlu2 %1081  ;;  %v8296_v35 = vpop.permute.xlu0 %1137 }
 0x3da   :  { %15075 = vst [vmem:[#allocation93_spill] sm:$0xff] %v8294_v62  ;;  %v8298_v0 = vpop.permute.xlu1 %1303 }
 0x3db   :  { %15076 = vst [vmem:[#allocation94_spill] sm:$0xff] %v8296_v35 }
 0x3dc   :  { %15077 = vst [vmem:[#allocation95_spill] sm:$0xff] %v8298_v0 }
 0x3df   :  { %987 = vrot.lane.b32.xlu2 %v8246_v18, %s7237_s0  ;;  %1227 = vrot.lane.b32.xlu0 %v8248_v45, %s7240_s28 }
 0x3e0   :  { %995 = vrot.lane.b32.xlu1 %v8250_v26, %s7237_s0 }
 0x3e1   :  { %v8306_v25 = vpop.permute.xlu2 %1297  ;;  %v8308_v29 = vpop.permute.xlu0 %1361 }
 0x3e2   :  { %15078 = vst [vmem:[#allocation96_spill] sm:$0xff] %v8306_v25  ;;  %v8310_v13 = vpop.permute.xlu1 %1129 }
 0x3e3   :  { %15079 = vst [vmem:[#allocation97_spill] sm:$0xff] %v8308_v29  ;;  %v1661_v29 = vunpack.c.l.b16 %v7942_v60 }
 0x3e7   :  { %1211 = vrot.lane.b32.xlu2 %v8246_v18, %s7240_s28  ;;  %1443 = vrot.lane.b32.xlu0 %v8248_v45, %s7243_s13 }
 0x3e8   :  { %1219 = vrot.lane.b32.xlu1 %v8250_v26, %s7240_s28 }
 0x3e9   :  { %v8318_v0 = vpop.permute.xlu2 %1009  ;;  %v8320_v8 = vpop.permute.xlu0 %1065 }
 0x3ea   :  { %15080 = vst [vmem:[#allocation98_spill] sm:$0xff] %v8318_v0  ;;  %v8322_v46 = vpop.permute.xlu1 %1353 }
 0x3eb   :  { %15081 = vst [vmem:[#allocation99_spill] sm:$0xff] %v8320_v8 }
 0x3ec   :  { %15082 = vst [vmem:[#allocation100_spill] sm:$0xff] %v8322_v46 }
 0x3ef   :  { %1427 = vrot.lane.b32.xlu2 %v8246_v18, %s7243_s13  ;;  %939 = vrot.lane.b32.xlu0 %v8227_v63, %s7236_s25 }
 0x3f0   :  { %1435 = vrot.lane.b32.xlu1 %v8250_v26, %s7243_s13 }
 0x3f1   :  { %v8330_v25 = vpop.permute.xlu2 %1225  ;;  %v8332_v62 = vpop.permute.xlu0 %1289 }
 0x3f2   :  { %15083 = vst [vmem:[#allocation101_spill] sm:$0xff] %v8330_v25  ;;  %v8334_v59 = vpop.permute.xlu1 %1057 }
 0x3f3   :  { %15084 = vst [vmem:[#allocation102_spill] sm:$0xff] %v8332_v62 }
 0x3f4   :  { %15085 = vst [vmem:[#allocation103_spill] sm:$0xff] %v8334_v59 }
 0x3f7   :  { %915 = vrot.lane.b32.xlu2 %v8246_v18, %s7236_s25  ;;  %997 = vrot.lane.b32.xlu0 %v7946_v43, %s7237_s0 }
 0x3f8   :  { %923 = vrot.lane.b32.xlu1 %v8250_v26, %s7236_s25 }
 0x3f9   :  { %v8342_v0 = vpop.permute.xlu2 %1441  ;;  %v8344_v8 = vpop.permute.xlu0 %993 }
 0x3fa   :  { %15086 = vst [vmem:[#allocation104_spill] sm:$0xff] %v8342_v0  ;;  %v8346_v46 = vpop.permute.xlu1 %1281 }
 0x3fb   :  { %15087 = vst [vmem:[#allocation105_spill] sm:$0xff] %v8344_v8 }
 0x3fc   :  { %15088 = vst [vmem:[#allocation106_spill] sm:$0xff] %v8346_v46 }
 0x3ff   :  { %1147 = vrot.lane.b32.xlu2 %v8248_v45, %s7239_s27  ;;  %1307 = vrot.lane.b32.xlu0 %v8227_v63, %s7241_s29 }
 0x400   :  { %1379 = vrot.lane.b32.xlu1 %v8227_v63, %s7242_s30 }
 0x401   :  { %v8354_v25 = vpop.permute.xlu2 %937  ;;  %v8356_v62 = vpop.permute.xlu0 %1217 }
 0x402   :  { %15089 = vst [vmem:[#allocation107_spill] sm:$0xff] %v8354_v25  ;;  %v8358_v59 = vpop.permute.xlu1 %985 }
 0x403   :  { %15090 = vst [vmem:[#allocation108_spill] sm:$0xff] %v8356_v62 }
 0x404   :  { %15091 = vst [vmem:[#allocation109_spill] sm:$0xff] %v8358_v59 }
 0x407   :  { %1229 = vrot.lane.b32.xlu2 %v7937_v47, %s7240_s28  ;;  %1003 = vrot.lane.b32.xlu0 %v8248_v45, %s7237_s0 }
 0x408   :  { %1075 = vrot.lane.b32.xlu1 %v8248_v45, %s7238_s26 }
 0x409   :  { %v8366_v0 = vpop.permute.xlu2 %1305  ;;  %v8368_v8 = vpop.permute.xlu0 %1433 }
 0x40a   :  { %15092 = vst [vmem:[#allocation110_spill] sm:$0xff] %v8366_v0  ;;  %v8370_v46 = vpop.permute.xlu1 %1209 }
 0x40b   :  { %15093 = vst [vmem:[#allocation111_spill] sm:$0xff] %v8368_v8  ;;  %v8386_v8 = vpack.c.bf16 %v8002_v57, %v7987_v23  ;;  %v1203_v23 = vpack.c.bf16 %v8250_v26, %v8246_v18  ;;  %v1169_v57 = vsel %vm203_vm3, %v8016_v14, %v8046_v49  ;;  %v1389_v18 = vsel %vm333_vm10, %v8058_v38, %v8056_v17 }
 0x40c   :  { %15094 = vst [vmem:[#allocation112_spill] sm:$0xff] %v8370_v46 }
 0x40d   :  { %15098 = vst [vmem:[#allocation116_spill] sm:$0xff] %v8386_v8  ;;  %v1665_v0 = vunpack.c.l.b16 %v8386_v8  ;;  %v1673_v60 = vunpack.c.l.b16 %v1203_v23 }
 0x40f   :  { %1235 = vrot.lane.b32.xlu2 %v8227_v63, %s7240_s28  ;;  %1231 = vrot.lane.b32.xlu0 %v7989_v34, %s7240_s28 }
 0x410   :  { %999 = vrot.lane.b32.xlu1 %v8000_v6, %s7237_s0 }
 0x411   :  { %v8378_v25 = vpop.permute.xlu2 %1001  ;;  %v8380_v62 = vpop.permute.xlu0 %921 }
 0x412   :  { %15095 = vst [vmem:[#allocation113_spill] sm:$0xff] %v8378_v25  ;;  %v8382_v59 = vpop.permute.xlu1 %1425 }
 0x413   :  { %15096 = vst [vmem:[#allocation114_spill] sm:$0xff] %v8380_v62 }
 0x414   :  { %15097 = vst [vmem:[#allocation115_spill] sm:$0xff] %v8382_v59  ;;  %v1201_v59 = vpack.c.bf16 %v8087_v19, %v8107_v12  ;;  %v1385_v12 = vsel %vm333_vm10, %v8056_v17, %v8024_v16  ;;  %v8421_v19 = vpack.c.bf16 %v7937_v47, %v7946_v43  ;;  %v1173_v16 = vmul.f32 %v1169_v57, %v7629_v50 }
 0x415   :  { %v1398_v17 = vmul.f32 %v1385_v12, %v7552_v61  ;;  %v1397_v57 = vmul.f32 %v1389_v18, %v7599_v20  ;;  %v1674_v12 = vunpack.c.h.b16 %v1203_v23  ;;  %v1021_v18 = vsel %vm125_vm0, %v8102_v33, %v8099_v52 }
 0x416   :  { %15102 = vst [vmem:[#allocation120_spill] sm:$0xff] %v8421_v19  ;;  %v1669_v26 = vunpack.c.l.b16 %v1201_v59  ;;  %v1670_v8 = vunpack.c.h.b16 %v1201_v59  ;;  %v1030_v52 = vmul.f32 %v1021_v18, %v7540_v37  ;;  %v1457_v18 = vsel %vm372_vm9, %v8132_v55, %v8080_v36 }
 0x417   :  { %931 = vrot.lane.b32.xlu2 %v8248_v45, %s7236_s25  ;;  %925 = vrot.lane.b32.xlu0 %v7946_v43, %s7236_s25  ;;  %v8437_v43 = vpack.c.bf16 %v8227_v63, %v8248_v45  ;;  %v1313_v45 = vsel %vm294_vm8, %v8082_v44, %v8042_v51 }
 0x418   :  { %929 = vrot.lane.b32.xlu1 %v8122_v4, %s7236_s25  ;;  %v8514_v59 = vpack.c.b16 %v1673_v60, %v1669_v26  ;;  %v15112_v26 = vld [vmem:[#allocation62_spill] sm:$0xff] }
 0x419   :  { %v8395_v25 = vpop.permute.xlu2 %1131  ;;  %v8397_v62 = vpop.permute.xlu0 %1377  ;;  %15105 = vst [vmem:[#allocation123_spill] sm:$0xff] %v8437_v43  ;;  %v15131_v43 = vld [vmem:[#allocation20_spill] sm:$0xff] }
 0x41a   :  { %15099 = vst [vmem:[#allocation117_spill] sm:$0xff] %v8395_v25  ;;  %v8407_v46 = vpop.permute.xlu1 %913  ;;  %v8432_v25 = vpack.c.bf16 %v7989_v34, %v8000_v6 }
 0x41b   :  { %15100 = vst [vmem:[#allocation118_spill] sm:$0xff] %v8397_v62  ;;  %v1165_v62 = vsel %vm203_vm3, %v8046_v49, %v8044_v39 }
 0x41c   :  { %15101 = vst [vmem:[#allocation119_spill] sm:$0xff] %v8407_v46  ;;  %v8427_v46 = vpack.c.b16 %v1665_v0, %v1661_v29  ;;  %v1174_v19 = vmul.f32 %v1165_v62, %v7635_v27  ;;  %v1097_v29 = vsel %vm164_vm2, %v8032_v3, %v8070_v42  ;;  %v1093_v0 = vsel %vm164_vm2, %v8070_v42, %v8068_v7 }
 0x41d   :  { %15104 = vst [vmem:[#allocation122_spill] sm:$0xff] %v8432_v25  ;;  %v1317_v62 = vsel %vm294_vm8, %v8084_v56, %v8082_v44  ;;  %v1025_v42 = vsel %vm125_vm0, %v8054_v58, %v8102_v33  ;;  %v1157_v44 = vsel %vm203_vm3, %v8116_v5, %v8016_v14  ;;  %v1101_v23 = vmul.f32 %v1097_v29, %v7644_v53 }
 0x41e   :  { %15103 = vst [vmem:[#allocation121_spill] sm:$0xff] %v8427_v46  ;;  %v1102_v49 = vmul.f32 %v1093_v0, %v7647_v21  ;;  %v1241_v33 = vsel %vm255_vm5, %v8118_v2, %v8066_v41  ;;  %v1245_v14 = vsel %vm255_vm5, %v8120_v54, %v8118_v2  ;;  %v8498_v0 = vpack.c.bf16 %v1174_v19, %v1173_v16 }
 0x41f   :  { %1449 = vrot.lane.b32.xlu2 %v8105_v24, %s7243_s13  ;;  %1451 = vrot.lane.b32.xlu0 %v8227_v63, %s7243_s13  ;;  %v1161_v63 = vsel %vm203_vm3, %v8044_v39, %v8116_v5  ;;  %v1326_v5 = vmul.f32 %v1313_v45, %v7619_v11  ;;  %v1029_v58 = vmul.f32 %v1025_v42, %v7531_v28  ;;  %v15121_v42 = vld [vmem:[#allocation64_spill] sm:$0xff] }
 0x420   :  { %927 = vrot.lane.b32.xlu1 %v8000_v6, %s7236_s25  ;;  %v1325_v6 = vmul.f32 %v1317_v62, %v7616_v15  ;;  %v1175_v41 = vmul.f32 %v1161_v63, %v7474_v9  ;;  %v1176_v2 = vmul.f32 %v1157_v44, %v7477_v10  ;;  %v1253_v54 = vmul.f32 %v1245_v14, %v7533_v30  ;;  %v15115_v63 = vld [vmem:[#allocation28_spill] sm:$0xff] }
 0x421   :  { %v8490_v25 = vpop.permute.xlu2 %1355  ;;  %v8492_v39 = vpop.permute.xlu0 %1073  ;;  %v1254_v46 = vmul.f32 %v1241_v33, %v7535_v31  ;;  %v8506_v62 = vpack.c.bf16 %v1398_v17, %v1397_v57  ;;  %v8510_v45 = vpack.c.bf16 %v8105_v24, %v8122_v4  ;;  %v8512_v16 = vpack.c.bf16 %v1102_v49, %v1101_v23  ;;  %15109 = vst [vmem:[#allocation127_spill] sm:$0xff] %v8514_v59  ;;  %v15116_v33 = vld [vmem:[#allocation29_spill] sm:$0xff]  ;;  %v15123_v44 = vld [vmem:[#allocation52_spill] sm:$0xff]  ;;  %v15127_v24 = vld [vmem:[#allocation59_spill] sm:$0xff] }
 0x422   :  { %15106 = vst [vmem:[#allocation124_spill] sm:$0xff] %v8492_v39  ;;  %v8496_v29 = vpop.permute.xlu1 %1145  ;;  %v8516_v19 = vpack.c.b16 %v1674_v12, %v1670_v8  ;;  %v1461_v17 = vsel %vm372_vm9, %v8134_v40, %v8132_v55  ;;  %v8528_v4 = vpack.c.bf16 %v1326_v5, %v1325_v6  ;;  %v8530_v60 = vpack.c.bf16 %v1176_v2, %v1175_v41  ;;  %v15119_v5 = vld [vmem:[#allocation22_spill] sm:$0xff]  ;;  %v15138_v39 = vld [vmem:[#allocation61_spill] sm:$0xff] }
 0x423   :  { %15107 = vst [vmem:[#allocation125_spill] sm:$0xff] %v8496_v29  ;;  %v953_v8 = vsel %vm86_vm1, %v8097_v32, %v8146_v22  ;;  %v949_v49 = vsel %vm86_vm1, %v8146_v22, %v15112_v26  ;;  %v8542_v55 = vpack.c.bf16 %v1030_v52, %v1029_v58  ;;  %v8548_v12 = vpack.c.bf16 %v1254_v46, %v1253_v54  ;;  %v15118_v52 = vld [vmem:[#allocation21_spill] sm:$0xff]  ;;  %v15135_v32 = vld [vmem:[#allocation6_spill] sm:$0xff] }
 0x424   :  { %15108 = vst [vmem:[#allocation126_spill] sm:$0xff] %v8510_v45  ;;  %v1469_v23 = vmul.f32 %v1461_v17, %v15115_v63  ;;  %v1470_v22 = vmul.f32 %v1457_v18, %v15116_v33  ;;  %v957_v6 = vmul.f32 %v953_v8, %v15118_v52  ;;  %v958_v2 = vmul.f32 %v949_v49, %v15119_v5  ;;  %v15122_v54 = vld [vmem:[#allocation65_spill] sm:$0xff]  ;;  %v15125_v17 = vld [vmem:[#allocation12_spill] sm:$0xff]  ;;  %v15137_v59 = vld [vmem:[#allocation74_spill] sm:$0xff] }
 0x425   :  { %15110 = vst [vmem:[#allocation128_spill] sm:$0xff] %v8516_v19  ;;  %v1309_v18 = vsel %vm294_vm8, %v8042_v51, %v15121_v42  ;;  %v1167_v8 = vsel %vm203_vm3, %v8310_v13, %v8296_v35  ;;  %v1171_v49 = vsel %vm203_vm3, %v8270_v1, %v8310_v13  ;;  %v1381_v58 = vsel %vm333_vm10, %v15123_v44, %v15122_v54  ;;  %v15126_v51 = vld [vmem:[#allocation71_spill] sm:$0xff]  ;;  %v15133_v26 = vld [vmem:[#allocation117_spill] sm:$0xff] }
 0x426   :  { %15111 = vst [vmem:[#allocation129_spill] sm:$0xff] %v8530_v60  ;;  %v1321_v57 = vsel %vm294_vm8, %v15121_v42, %v8084_v56  ;;  %v8594_v13 = vpack.c.bf16 %v1470_v22, %v1469_v23  ;;  %v1327_v41 = vmul.f32 %v1309_v18, %v15125_v17  ;;  %v1166_v40 = vsel %vm203_vm3, %v15127_v24, %v15126_v51  ;;  %v15129_v22 = vld [vmem:[#allocation19_spill] sm:$0xff]  ;;  %v15142_v60 = vld [vmem:[#allocation97_spill] sm:$0xff] }
 0x427   :  { %1447 = vrot.lane.b32.xlu2 %v7989_v34, %s7243_s13  ;;  %15113 = vst [vmem:[#allocation130_spill] sm:$0xff] %v8542_v55  ;;  %v8601_v44 = vpack.c.bf16 %v958_v2, %v957_v6  ;;  %v1181_v42 = vmul.f32 %v1171_v49, %v7629_v50  ;;  %v1182_v23 = vmul.f32 %v1167_v8, %v7635_v27  ;;  %v15130_v6 = vld [vmem:[#allocation24_spill] sm:$0xff]  ;;  %v15132_v19 = vld [vmem:[#allocation67_spill] sm:$0xff] }
 0x428   :  { %1445 = vrot.lane.b32.xlu1 %v7937_v47, %s7243_s13  ;;  %15114 = vst [vmem:[#allocation131_spill] sm:$0xff] %v8548_v12  ;;  %v1393_v47 = vsel %vm333_vm10, %v15122_v54, %v8058_v38  ;;  %v15128_v38 = vld [vmem:[#allocation68_spill] sm:$0xff]  ;;  %v1399_v18 = vmul.f32 %v1381_v58, %v15129_v22  ;;  %v1328_v36 = vmul.f32 %v1321_v57, %v15131_v43 }
 0x429   :  { %v8553_v14 = vpop.permute.xlu2 %1059  ;;  %v8555_v34 = vpop.permute.xlu0 %1155  ;;  %15124 = vst [vmem:[#allocation64_spill] sm:$0xff] %v8594_v13  ;;  %v1085_v54 = vsel %vm164_vm2, %v15128_v38, %v8032_v3  ;;  %v1089_v56 = vsel %vm164_vm2, %v8068_v7, %v15128_v38  ;;  %v1400_v2 = vmul.f32 %v1393_v47, %v15130_v6  ;;  %v1170_v3 = vsel %vm203_vm3, %v15132_v19, %v15127_v24  ;;  %v15134_v47 = vld [vmem:[#allocation7_spill] sm:$0xff]  ;;  %v15136_v24 = vld [vmem:[#allocation70_spill] sm:$0xff]  ;;  %v15143_v13 = vld [vmem:[#allocation100_spill] sm:$0xff] }
 0x42a   :  { %15117 = vst [vmem:[#allocation132_spill] sm:$0xff] %v8555_v34  ;;  %v8561_v46 = vpop.permute.xlu1 %1233  ;;  %v1178_v45 = vmul.f32 %v1166_v40, %v7635_v27  ;;  %v1172_v7 = vsel %vm203_vm3, %v8555_v34, %v15133_v26  ;;  %v1103_v38 = vmul.f32 %v1089_v56, %v15134_v47  ;;  %v1386_v40 = vsel %vm333_vm10, %v15137_v59, %v15136_v24 }
 0x42b   :  { %15120 = vst [vmem:[#allocation133_spill] sm:$0xff] %v8561_v46  ;;  %v1104_v46 = vmul.f32 %v1085_v54, %v15135_v32  ;;  %v1390_v35 = vsel %vm333_vm10, %v15138_v39, %v15137_v59  ;;  %v1177_v58 = vmul.f32 %v1170_v3, %v7629_v50  ;;  %v1193_v54 = vpack.c.bf16 %v1182_v23, %v1181_v42 }
 0x42c   :  { %v8650_v1 = vpack.c.bf16 %v1400_v2, %v1399_v18  ;;  %v8652_v34 = vpack.c.bf16 %v1328_v36, %v1327_v41  ;;  %v1185_v43 = vmul.f32 %v1172_v7, %v7629_v50  ;;  %v1401_v17 = vmul.f32 %v1390_v35, %v7599_v20  ;;  %v15145_v18 = vld [vmem:[#allocation63_spill] sm:$0xff]  ;;  %v15146_v2 = vld [vmem:[#allocation73_spill] sm:$0xff] }
 0x42d   :  { %v1402_v3 = vmul.f32 %v1386_v40, %v7552_v61  ;;  %v1191_v42 = vpack.c.bf16 %v1178_v45, %v1177_v58  ;;  %v8662_v23 = vpack.c.bf16 %v1104_v46, %v1103_v38  ;;  %v1098_v36 = vsel %vm164_vm2, %v15146_v2, %v15145_v18  ;;  %v15147_v41 = vld [vmem:[#allocation77_spill] sm:$0xff]  ;;  %v15148_v40 = vld [vmem:[#allocation76_spill] sm:$0xff]  ;;  %v15150_v45 = vld [vmem:[#allocation66_spill] sm:$0xff] }
 0x42e   :  { %15140 = vst [vmem:[#allocation52_spill] sm:$0xff] %v8650_v1  ;;  %v1094_v35 = vsel %vm164_vm2, %v15145_v18, %v15147_v41  ;;  %v15151_v58 = vld [vmem:[#allocation90_spill] sm:$0xff] }
 0x42f   :  { %15141 = vst [vmem:[#allocation71_spill] sm:$0xff] %v8652_v34  ;;  %v1387_v38 = vsel %vm333_vm10, %v15142_v60, %v15151_v58  ;;  %v1625_v12 = vunpack.c.l.b16 %v1191_v42  ;;  %v1626_v52 = vunpack.c.h.b16 %v1191_v42 }
 0x430   :  { %15144 = vst [vmem:[#allocation59_spill] sm:$0xff] %v8662_v23  ;;  %v1406_v5 = vmul.f32 %v1387_v38, %v7552_v61  ;;  %v15156_v38 = vld [vmem:[#allocation93_spill] sm:$0xff] }
 0x431   :  { %v8626_v49 = vpop.permute.xlu2 %1283  ;;  %v8628_v8 = vpop.permute.xlu0 %1371 }
 0x432   :  { %v8642_v29 = vpop.permute.xlu1 %1139 }
 0x433   :  { %15139 = vst [vmem:[#allocation65_spill] sm:$0xff] %v8642_v29  ;;  %v1168_v56 = vsel %vm203_vm3, %v15133_v26, %v8642_v29  ;;  %v1391_v26 = vsel %vm333_vm10, %v15143_v13, %v15142_v60  ;;  %v1106_v13 = vmul.f32 %v1094_v35, %v7647_v21 }
 0x434   :  { %v1186_v59 = vmul.f32 %v1168_v56, %v7635_v27  ;;  %v15149_v56 = vld [vmem:[#allocation80_spill] sm:$0xff]  ;;  %v1629_v27 = vunpack.c.l.b16 %v1193_v54  ;;  %v1405_v50 = vmul.f32 %v1391_v26, %v7599_v20 }
 0x435   :  { %v1314_v57 = vsel %vm294_vm8, %v15149_v56, %v15148_v40  ;;  %v1318_v46 = vsel %vm294_vm8, %v15150_v45, %v15149_v56  ;;  %v1415_v56 = vpack.c.bf16 %v1402_v3, %v1401_v17  ;;  %v1105_v45 = vmul.f32 %v1098_v36, %v7644_v53 }
 0x436   :  { %v1195_v7 = vpack.c.bf16 %v1186_v59, %v1185_v43  ;;  %v1630_v43 = vunpack.c.h.b16 %v1193_v54  ;;  %v1329_v26 = vmul.f32 %v1318_v46, %v7616_v15  ;;  %v1330_v54 = vmul.f32 %v1314_v57, %v7619_v11  ;;  %v15155_v57 = vld [vmem:[#allocation103_spill] sm:$0xff] }
 0x437   :  { %v1786_v36 = vunpack.c.h.b16 %v1415_v56 }
 0x438   :  { %v1633_v18 = vunpack.c.l.b16 %v1195_v7  ;;  %v1634_v59 = vunpack.c.h.b16 %v1195_v7  ;;  %v15154_v7 = vld [vmem:[#allocation99_spill] sm:$0xff] }
 0x439   :  { %v8686_v29 = vpop.permute.xlu2 %987  ;;  %v8688_v40 = vpop.permute.xlu0 %1083  ;;  %v1095_v46 = vsel %vm164_vm2, %v15155_v57, %v15154_v7 }
 0x43a   :  { %15152 = vst [vmem:[#allocation68_spill] sm:$0xff] %v8688_v40  ;;  %v1364_v60 = vpop.permute.xlu1 %1363  ;;  %v1641_v58 = vpack.c.b16 %v1633_v18, %v1629_v27  ;;  %v1642_v55 = vpack.c.b16 %v1634_v59, %v1630_v43  ;;  %v8702_v27 = vpack.c.bf16 %v1406_v5, %v1405_v50  ;;  %v1099_v18 = vsel %vm164_vm2, %v15156_v38, %v15155_v57 }
 0x43b   :  { %v1388_v35 = vsel %vm333_vm10, %v1364_v60, %v8628_v8  ;;  %v1392_v42 = vsel %vm333_vm10, %v8490_v25, %v1364_v60  ;;  %v1785_v43 = vunpack.c.l.b16 %v1415_v56  ;;  %v1119_v59 = vpack.c.bf16 %v1106_v13, %v1105_v45 }
 0x43c   :  { %v1409_v17 = vmul.f32 %v1392_v42, %v7599_v20  ;;  %v1410_v3 = vmul.f32 %v1388_v35, %v7552_v61  ;;  %1890 = vmatpush.bf16.msrb.mxu0 %v1641_v58  ;;  %1947 = vmatpush.bf16.msrb.mxu3 %v1642_v55  ;;  %15153 = vst [vmem:[#allocation67_spill] sm:$0xff] %v8702_v27  ;;  %v15157_v60 = vunpack.c.l.b16 %v8498_v0  ;;  %v15158_v50 = vunpack.c.h.b16 %v8498_v0  ;;  %v15166_v20 = vld [vmem:[#allocation106_spill] sm:$0xff] }
 0x43d   :  { %v1343_v42 = vpack.c.bf16 %v1330_v54, %v1329_v26  ;;  %v1109_v57 = vmul.f32 %v1099_v18, %v7644_v53  ;;  %v1110_v13 = vmul.f32 %v1095_v46, %v7647_v21  ;;  %v15159_v26 = vunpack.c.l.b16 %v8506_v62  ;;  %v15160_v46 = vld [vmem:[#allocation81_spill] sm:$0xff] }
 0x43e   :  { %v1637_v58 = vpack.c.b16 %v1625_v12, %v15157_v60  ;;  %v1638_v55 = vpack.c.b16 %v1626_v52, %v15158_v50  ;;  %v8717_v5 = vpack.c.bf16 %v1410_v3, %v1409_v17  ;;  %v1789_v12 = vunpack.c.l.b16 %v8702_v27  ;;  %v15162_v50 = vld [vmem:[#allocation69_spill] sm:$0xff] }
 0x43f   :  { %v1100_v52 = vsel %vm164_vm2, %v8688_v40, %v8553_v14  ;;  %v1797_v54 = vpack.c.b16 %v1785_v43, %v15159_v26  ;;  %v1585_v17 = vunpack.c.l.b16 %v1119_v59  ;;  %v1586_v3 = vunpack.c.h.b16 %v1119_v59  ;;  %v15164_v59 = vld [vmem:[#allocation79_spill] sm:$0xff] }
 0x440   :  { %1891 = vmatpush.bf16.msrb.mxu0 %v1637_v58  ;;  %1948 = vmatpush.bf16.msrb.mxu3 %v1638_v55  ;;  %v1793_v0 = vunpack.c.l.b16 %v8717_v5  ;;  %v1382_v18 = vsel %vm333_vm10, %v15136_v24, %v15160_v46  ;;  %v1394_v60 = vsel %vm333_vm10, %v15160_v46, %v15138_v39  ;;  %v15161_v58 = vld [vmem:[#allocation83_spill] sm:$0xff]  ;;  %v1026_v26 = vsel %vm125_vm0, %v15164_v59, %v15162_v50  ;;  %v15165_v46 = vld [vmem:[#allocation102_spill] sm:$0xff] }
 0x441   :  { %v8730_v45 = vpop.permute.xlu2 %1211  ;;  %v8732_v56 = vpop.permute.xlu0 %1299  ;;  %v1022_v55 = vsel %vm125_vm0, %v15162_v50, %v15161_v58  ;;  %v1745_v61 = vunpack.c.l.b16 %v1343_v42  ;;  %v1746_v39 = vunpack.c.h.b16 %v1343_v42  ;;  %v1319_v34 = vsel %vm294_vm8, %v15166_v20, %v15165_v46 }
 0x442   :  { %v8748_v35 = vpop.permute.xlu1 %1067  ;;  %v1801_v43 = vpack.c.b16 %v1793_v0, %v1789_v12  ;;  %v1113_v58 = vmul.f32 %v1100_v52, %v7644_v53  ;;  %v1121_v0 = vpack.c.bf16 %v1110_v13, %v1109_v57  ;;  %v1403_v50 = vmul.f32 %v1382_v18, %v15129_v22  ;;  %v15185_v53 = vld [vmem:[#allocation85_spill] sm:$0xff] }
 0x443   :  { %15163 = vst [vmem:[#allocation117_spill] sm:$0xff] %v8748_v35  ;;  %v1096_v24 = vsel %vm164_vm2, %v8553_v14, %v8748_v35  ;;  %v1404_v59 = vmul.f32 %v1394_v60, %v15130_v6  ;;  %v1034_v40 = vmul.f32 %v1022_v55, %v7540_v37  ;;  %v15167_v14 = vunpack.c.h.b16 %v8506_v62  ;;  %v15169_v35 = vld [vmem:[#allocation96_spill] sm:$0xff] }
 0x444   :  { %v1114_v12 = vmul.f32 %v1096_v24, %v7647_v21  ;;  %1909 = vmatpush.bf16.msrb.mxu1 %v1801_v43  ;;  %v1315_v27 = vsel %vm294_vm8, %v15165_v46, %v15169_v35  ;;  %v15170_v24 = vunpack.c.l.b16 %v8512_v16  ;;  %v15171_v57 = vunpack.c.h.b16 %v8512_v16  ;;  %v15176_v16 = vld [vmem:[#allocation84_spill] sm:$0xff] }
 0x445   :  { %v8769_v42 = vpack.c.b16 %v1786_v36, %v15167_v14  ;;  %v1033_v18 = vmul.f32 %v1026_v26, %v7531_v28  ;;  %v1333_v60 = vmul.f32 %v1319_v34, %v7616_v15  ;;  %v15172_v62 = vunpack.c.l.b16 %v8528_v4 }
 0x446   :  { %v1123_v52 = vpack.c.bf16 %v1114_v12, %v1113_v58  ;;  %v1597_v43 = vpack.c.b16 %v1585_v17, %v15170_v24  ;;  %v1598_v13 = vpack.c.b16 %v1586_v3, %v15171_v57  ;;  %v15173_v55 = vunpack.c.h.b16 %v8528_v4  ;;  %v15181_v57 = vld [vmem:[#allocation105_spill] sm:$0xff] }
 0x447   :  { %15168 = vst [vmem:[#allocation70_spill] sm:$0xff] %v8769_v42  ;;  %v8783_v36 = vpack.c.b16 %v1745_v61, %v15172_v62  ;;  %v1589_v58 = vunpack.c.l.b16 %v1121_v0  ;;  %v1590_v12 = vunpack.c.h.b16 %v1121_v0  ;;  %v8789_v24 = vpack.c.bf16 %v1404_v59, %v1403_v50  ;;  %v15180_v59 = vld [vmem:[#allocation72_spill] sm:$0xff] }
 0x448   :  { %v8787_v14 = vpack.c.b16 %v1746_v39, %v15173_v55  ;;  %1910 = vmatpush.bf16.msrb.mxu1 %v1797_v54  ;;  %v1593_v46 = vunpack.c.l.b16 %v1123_v52  ;;  %v1594_v17 = vunpack.c.h.b16 %v1123_v52  ;;  %v1086_v34 = vsel %vm164_vm2, %v15176_v16, %v15146_v2  ;;  %v15179_v39 = vld [vmem:[#allocation86_spill] sm:$0xff]  ;;  %v15200_v42 = vld [vmem:[#allocation112_spill] sm:$0xff] }
 0x449   :  { %15175 = vst [vmem:[#allocation61_spill] sm:$0xff] %v8789_v24  ;;  %v1334_v3 = vmul.f32 %v1315_v27, %v7619_v11  ;;  %v8796_v61 = vpop.permute.xlu2 %1427  ;;  %v8798_v26 = vpop.permute.xlu0 %1011  ;;  %v1047_v4 = vpack.c.bf16 %v1034_v40, %v1033_v18  ;;  %v1090_v54 = vsel %vm164_vm2, %v15147_v41, %v15176_v16  ;;  %v1246_v0 = vsel %vm255_vm5, %v15180_v59, %v15179_v39  ;;  %v15182_v27 = vld [vmem:[#allocation109_spill] sm:$0xff]  ;;  %v15183_v55 = vld [vmem:[#allocation98_spill] sm:$0xff] }
 0x44a   :  { %15174 = vst [vmem:[#allocation74_spill] sm:$0xff] %v8787_v14  ;;  %v1292_v50 = vpop.permute.xlu1 %1291  ;;  %v1601_v52 = vpack.c.b16 %v1593_v46, %v1589_v58  ;;  %v1602_v2 = vpack.c.b16 %v1594_v17, %v1590_v12  ;;  %v1023_v62 = vsel %vm125_vm0, %v15182_v27, %v15181_v57  ;;  %v1027_v58 = vsel %vm125_vm0, %v15183_v55, %v15182_v27 }
 0x44b   :  { %15177 = vst [vmem:[#allocation97_spill] sm:$0xff] %v8796_v61  ;;  %v1316_v40 = vsel %vm294_vm8, %v1292_v50, %v8732_v56  ;;  %v1320_v41 = vsel %vm294_vm8, %v8626_v49, %v1292_v50  ;;  %v8818_v18 = vpack.c.bf16 %v1334_v3, %v1333_v60  ;;  %v1107_v16 = vmul.f32 %v1090_v54, %v15134_v47  ;;  %v15184_v3 = vld [vmem:[#allocation82_spill] sm:$0xff] }
 0x44c   :  { %15178 = vst [vmem:[#allocation63_spill] sm:$0xff] %v8798_v26  ;;  %v1337_v46 = vmul.f32 %v1320_v41, %v7616_v15  ;;  %v1338_v12 = vmul.f32 %v1316_v40, %v7619_v11  ;;  %1892 = vmatpush.bf16.msrb.mxu0 %v1601_v52  ;;  %1949 = vmatpush.bf16.msrb.mxu3 %v1602_v2  ;;  %v1545_v50 = vunpack.c.l.b16 %v1047_v4  ;;  %v1787_v60 = vunpack.c.l.b16 %v8789_v24  ;;  %v15186_v41 = vld [vmem:[#allocation89_spill] sm:$0xff]  ;;  %v15187_v2 = vld [vmem:[#allocation75_spill] sm:$0xff] }
 0x44d   :  { %v1108_v21 = vmul.f32 %v1086_v34, %v15135_v32  ;;  %v1242_v27 = vsel %vm255_vm5, %v15179_v39, %v15184_v3  ;;  %v1458_v52 = vsel %vm372_vm9, %v15186_v41, %v15185_v53  ;;  %v1462_v54 = vsel %vm372_vm9, %v15187_v2, %v15186_v41  ;;  %v15188_v39 = vld [vmem:[#allocation91_spill] sm:$0xff]  ;;  %v15191_v41 = vld [vmem:[#allocation78_spill] sm:$0xff]  ;;  %v15195_v3 = vld [vmem:[#allocation88_spill] sm:$0xff] }
 0x44e   :  { %v8842_v40 = vpack.c.bf16 %v1338_v12, %v1337_v46  ;;  %v1257_v34 = vmul.f32 %v1246_v0, %v7533_v30  ;;  %v1037_v17 = vmul.f32 %v1027_v58, %v7531_v28  ;;  %v1038_v15 = vmul.f32 %v1023_v62, %v7540_v37 }
 0x44f   :  { %v1546_v11 = vunpack.c.h.b16 %v1047_v4  ;;  %v1158_v24 = vsel %vm203_vm3, %v15188_v39, %v15132_v19  ;;  %v1162_v53 = vsel %vm203_vm3, %v15126_v51, %v15188_v39  ;;  %v1749_v46 = vunpack.c.l.b16 %v8818_v18 }
 0x450   :  { %1893 = vmatpush.bf16.msrb.mxu0 %v1597_v43  ;;  %1950 = vmatpush.bf16.msrb.mxu3 %v1598_v13  ;;  %v1753_v0 = vunpack.c.l.b16 %v8842_v40  ;;  %v1258_v58 = vmul.f32 %v1242_v27, %v7535_v31  ;;  %v1473_v4 = vmul.f32 %v1462_v54, %v15115_v63  ;;  %v1474_v62 = vmul.f32 %v1458_v52, %v15116_v33  ;;  %v15190_v13 = vld [vmem:[#allocation92_spill] sm:$0xff] }
 0x451   :  { %v1028_v19 = vsel %vm125_vm0, %v8798_v26, %v8686_v29  ;;  %v8864_v12 = vpop.permute.xlu2 %915  ;;  %v8866_v51 = vpop.permute.xlu0 %1227  ;;  %v8868_v43 = vpack.c.bf16 %v1108_v21, %v1107_v16  ;;  %v950_v27 = vsel %vm86_vm1, %v15191_v41, %v15190_v13  ;;  %v15193_v52 = vunpack.c.l.b16 %v8650_v1 }
 0x452   :  { %v8874_v39 = vpop.permute.xlu1 %995  ;;  %v1761_v54 = vpack.c.b16 %v1753_v0, %v1749_v46  ;;  %v1179_v14 = vmul.f32 %v1162_v53, %v7474_v9  ;;  %v1180_v59 = vmul.f32 %v1158_v24, %v7477_v10  ;;  %v1049_v16 = vpack.c.bf16 %v1038_v15, %v1037_v17  ;;  %v15196_v0 = vld [vmem:[#allocation130_spill] sm:$0xff] }
 0x453   :  { %15189 = vst [vmem:[#allocation73_spill] sm:$0xff] %v8868_v43  ;;  %v8878_v2 = vpack.c.b16 %v1787_v60, %v15193_v52  ;;  %v1024_v21 = vsel %vm125_vm0, %v8686_v29, %v8874_v39  ;;  %v954_v13 = vsel %vm86_vm1, %v15195_v3, %v15191_v41  ;;  %v1041_v46 = vmul.f32 %v1028_v19, %v7531_v28  ;;  %v15198_v24 = vld [vmem:[#allocation22_spill] sm:$0xff] }
 0x454   :  { %15192 = vst [vmem:[#allocation77_spill] sm:$0xff] %v8874_v39  ;;  %v1042_v60 = vmul.f32 %v1024_v21, %v7540_v37  ;;  %1911 = vmatpush.bf16.msrb.mxu1 %v1761_v54  ;;  %v15197_v53 = vunpack.c.l.b16 %v15196_v0  ;;  %v962_v1 = vmul.f32 %v950_v27, %v15198_v24  ;;  %v8899_v29 = vpack.c.bf16 %v1258_v58, %v1257_v34  ;;  %v15203_v37 = vld [vmem:[#allocation21_spill] sm:$0xff] }
 0x455   :  { %15194 = vst [vmem:[#allocation80_spill] sm:$0xff] %v8878_v2  ;;  %v15199_v2 = vld [vmem:[#allocation108_spill] sm:$0xff]  ;;  %v1487_v17 = vpack.c.bf16 %v1474_v62, %v1473_v4  ;;  %v15202_v41 = vunpack.c.h.b16 %v15196_v0  ;;  %v1587_v21 = vunpack.c.l.b16 %v8868_v43  ;;  %v15204_v27 = vld [vmem:[#allocation101_spill] sm:$0xff]  ;;  %v1549_v3 = vunpack.c.l.b16 %v1049_v16 }
 0x456   :  { %v1557_v52 = vpack.c.b16 %v1545_v50, %v15197_v53  ;;  %v1247_v15 = vsel %vm255_vm5, %v15200_v42, %v15199_v2  ;;  %15201 = vst [vmem:[#allocation99_spill] sm:$0xff] %v8899_v29  ;;  %v1051_v39 = vpack.c.bf16 %v1042_v60, %v1041_v46  ;;  %v961_v50 = vmul.f32 %v954_v13, %v15203_v37 }
 0x457   :  { %v1558_v19 = vpack.c.b16 %v1546_v11, %v15202_v41  ;;  %v1192_v53 = vpack.c.bf16 %v1180_v59, %v1179_v14  ;;  %v1243_v28 = vsel %vm255_vm5, %v15199_v2, %v15204_v27  ;;  %v1261_v34 = vmul.f32 %v1247_v15, %v7533_v30 }
 0x458   :  { %1912 = vmatpush.bf16.msrb.mxu1 %v8783_v36  ;;  %v1553_v58 = vunpack.c.l.b16 %v1051_v39  ;;  %v1550_v4 = vunpack.c.h.b16 %v1049_v16  ;;  %v1554_v11 = vunpack.c.h.b16 %v1051_v39  ;;  %v1705_v46 = vunpack.c.l.b16 %v8899_v29 }
 0x459   :  { %v8912_v62 = vpop.permute.xlu0 %1443  ;;  %v1825_v60 = vunpack.c.l.b16 %v1487_v17  ;;  %v1826_v13 = vunpack.c.h.b16 %v1487_v17  ;;  %v8915_v14 = vpack.c.bf16 %v962_v1, %v961_v50  ;;  %v1262_v59 = vmul.f32 %v1243_v28, %v7535_v31  ;;  %v1148_v36 = vpop.permute.xlu2 %1147 }
 0x45a   :  { %15205 = vst [vmem:[#allocation103_spill] sm:$0xff] %v8912_v62  ;;  %v1220_v0 = vpop.permute.xlu1 %1219  ;;  %v1561_v2 = vpack.c.b16 %v1553_v58, %v1549_v3  ;;  %v1562_v41 = vpack.c.b16 %v1554_v11, %v1550_v4  ;;  %v15206_v15 = vunpack.c.l.b16 %v8662_v23  ;;  %v1627_v1 = vunpack.c.l.b16 %v1192_v53  ;;  %v15208_v58 = vld [vmem:[#allocation131_spill] sm:$0xff] }
 0x45b   :  { %v1244_v39 = vsel %vm255_vm5, %v1220_v0, %v8866_v51  ;;  %v1248_v16 = vsel %vm255_vm5, %v8730_v45, %v1220_v0  ;;  %v1628_v17 = vunpack.c.h.b16 %v1192_v53  ;;  %v8930_v50 = vpack.c.bf16 %v1262_v59, %v1261_v34  ;;  %v15215_v59 = vld [vmem:[#allocation66_spill] sm:$0xff] }
 0x45c   :  { %v8920_v54 = vpack.c.b16 %v1587_v21, %v15206_v15  ;;  %v1265_v28 = vmul.f32 %v1248_v16, %v7533_v30  ;;  %v1266_v3 = vmul.f32 %v1244_v39, %v7535_v31  ;;  %1894 = vmatpush.bf16.msrb.mxu0 %v1561_v2  ;;  %1951 = vmatpush.bf16.msrb.mxu3 %v1562_v41  ;;  %v15209_v4 = vunpack.c.l.b16 %v15208_v58  ;;  %v15210_v15 = vld [vmem:[#allocation64_spill] sm:$0xff]  ;;  %v15213_v39 = vld [vmem:[#allocation95_spill] sm:$0xff]  ;;  %v15216_v41 = vld [vmem:[#allocation110_spill] sm:$0xff] }
 0x45d   :  { %v15212_v0 = vunpack.c.h.b16 %v15210_v15  ;;  %v1505_v16 = vunpack.c.l.b16 %v8915_v14  ;;  %v15214_v2 = vld [vmem:[#allocation76_spill] sm:$0xff]  ;;  %v1506_v30 = vunpack.c.h.b16 %v8915_v14 }
 0x45e   :  { %15207 = vst [vmem:[#allocation93_spill] sm:$0xff] %v8920_v54  ;;  %v1717_v11 = vpack.c.b16 %v1705_v46, %v15209_v4  ;;  %v15211_v54 = vunpack.c.l.b16 %v15210_v15  ;;  %v1310_v34 = vsel %vm294_vm8, %v15214_v2, %v15213_v39  ;;  %v1322_v46 = vsel %vm294_vm8, %v15213_v39, %v15215_v59  ;;  %v15219_v4 = vld [vmem:[#allocation115_spill] sm:$0xff] }
 0x45f   :  { %v8941_v53 = vpack.c.b16 %v1826_v13, %v15212_v0  ;;  %v15218_v13 = vld [vmem:[#allocation111_spill] sm:$0xff]  ;;  %v15220_v0 = vld [vmem:[#allocation129_spill] sm:$0xff] }
 0x460   :  { %v8937_v43 = vpack.c.b16 %v1825_v60, %v15211_v54  ;;  %v1311_v54 = vsel %vm294_vm8, %v15169_v35, %v15216_v41  ;;  %v8956_v60 = vpack.c.bf16 %v1266_v3, %v1265_v28  ;;  %v1463_v15 = vsel %vm372_vm9, %v15219_v4, %v15218_v13  ;;  %v15223_v28 = vld [vmem:[#allocation104_spill] sm:$0xff]  ;;  %1895 = vmatpush.bf16.msrb.mxu0 %v1557_v52 }
 0x461   :  { %v15221_v21 = vunpack.c.l.b16 %v15220_v0  ;;  %v15222_v39 = vunpack.c.h.b16 %v15220_v0  ;;  %v1323_v35 = vsel %vm294_vm8, %v15216_v41, %v15166_v20  ;;  %v1459_v3 = vsel %vm372_vm9, %v15218_v13, %v15223_v28  ;;  %1952 = vmatpush.bf16.msrb.mxu3 %v1558_v19  ;;  %v8984_v4 = vpop.permute.xlu0 %939  ;;  %v15227_v52 = vld [vmem:[#allocation132_spill] sm:$0xff]  ;;  %v15228_v28 = vld [vmem:[#allocation65_spill] sm:$0xff] }
 0x462   :  { %15217 = vst [vmem:[#allocation81_spill] sm:$0xff] %v8956_v60  ;;  %v1713_v14 = vunpack.c.l.b16 %v8956_v60  ;;  %v15226_v20 = vunpack.c.l.b16 %v8601_v44  ;;  %v1477_v13 = vmul.f32 %v1463_v15, %v15115_v63  ;;  %v1160_v19 = vsel %vm203_vm3, %v1148_v36, %v15227_v52  ;;  %v1436_v29 = vpop.permute.xlu1 %1435  ;;  %v15230_v52 = vld [vmem:[#allocation125_spill] sm:$0xff] }
 0x463   :  { %v8964_v2 = vpack.c.b16 %v1627_v1, %v15221_v21  ;;  %v8969_v59 = vpack.c.b16 %v1628_v17, %v15222_v39  ;;  %v1709_v1 = vunpack.c.l.b16 %v8930_v50  ;;  %v15224_v21 = vld [vmem:[#allocation12_spill] sm:$0xff]  ;;  %v1478_v58 = vmul.f32 %v1459_v3, %v15116_v33 }
 0x464   :  { %v1331_v0 = vmul.f32 %v1310_v34, %v15224_v21  ;;  %v15225_v17 = vld [vmem:[#allocation20_spill] sm:$0xff]  ;;  %v1335_v31 = vmul.f32 %v1311_v54, %v15224_v21  ;;  %v8988_v41 = vpack.c.b16 %v1505_v16, %v15226_v20  ;;  %v1164_v34 = vsel %vm203_vm3, %v15228_v28, %v1148_v36  ;;  %v15229_v20 = vld [vmem:[#allocation87_spill] sm:$0xff]  ;;  %v15231_v36 = vld [vmem:[#allocation94_spill] sm:$0xff] }
 0x465   :  { %v1332_v39 = vmul.f32 %v1322_v46, %v15225_v17  ;;  %v1721_v46 = vpack.c.b16 %v1713_v14, %v1709_v1  ;;  %v1336_v54 = vmul.f32 %v1323_v35, %v15225_v17  ;;  %v1460_v16 = vsel %vm372_vm9, %v1436_v29, %v8912_v62  ;;  %v15232_v1 = vld [vmem:[#allocation114_spill] sm:$0xff]  ;;  %v15233_v14 = vld [vmem:[#allocation119_spill] sm:$0xff] }
 0x466   :  { %v1464_v15 = vsel %vm372_vm9, %v8796_v61, %v1436_v29  ;;  %v1159_v23 = vsel %vm203_vm3, %v15230_v52, %v15229_v20  ;;  %v1163_v35 = vsel %vm203_vm3, %v15231_v36, %v15230_v52  ;;  %v1482_v3 = vmul.f32 %v1460_v16, %v15116_v33  ;;  %v15234_v61 = vld [vmem:[#allocation107_spill] sm:$0xff]  ;;  %v9025_v52 = vpop.permute.xlu2 %1229  ;;  %v15236_v33 = vld [vmem:[#allocation118_spill] sm:$0xff] }
 0x467   :  { %v1481_v28 = vmul.f32 %v1464_v15, %v15115_v63  ;;  %1913 = vmatpush.bf16.msrb.mxu1 %v1721_v46  ;;  %v951_v29 = vsel %vm86_vm1, %v15233_v14, %v15232_v1  ;;  %v955_v20 = vsel %vm86_vm1, %v15234_v61, %v15233_v14  ;;  %v1187_v62 = vmul.f32 %v1164_v34, %v7474_v9  ;;  %v15237_v1 = vld [vmem:[#allocation90_spill] sm:$0xff]  ;;  %v15238_v14 = vld [vmem:[#allocation100_spill] sm:$0xff] }
 0x468   :  { %v1188_v60 = vmul.f32 %v1160_v19, %v7477_v10  ;;  %v9027_v15 = vpack.c.bf16 %v1332_v39, %v1331_v0  ;;  %v1489_v16 = vpack.c.bf16 %v1478_v58, %v1477_v13  ;;  %v15235_v36 = vunpack.c.h.b16 %v8601_v44  ;;  %v15239_v13 = vld [vmem:[#allocation113_spill] sm:$0xff] }
 0x469   :  { %v1491_v46 = vpack.c.bf16 %v1482_v3, %v1481_v28  ;;  %v1383_v26 = vsel %vm333_vm10, %v15237_v1, %v15236_v33  ;;  %v1395_v19 = vsel %vm333_vm10, %v15236_v33, %v15238_v14  ;;  %v1183_v34 = vmul.f32 %v1163_v35, %v7474_v9  ;;  %v15240_v3 = vld [vmem:[#allocation124_spill] sm:$0xff] }
 0x46a   :  { %v9031_v63 = vpack.c.b16 %v1506_v30, %v15235_v36  ;;  %v1184_v0 = vmul.f32 %v1159_v23, %v7477_v10  ;;  %v9043_v58 = vpack.c.bf16 %v1336_v54, %v1335_v31  ;;  %v965_v44 = vmul.f32 %v955_v20, %v15203_v37  ;;  %v9059_v23 = vpop.permute.xlu0 %997  ;;  %v9067_v1 = vpop.permute.xlu1 %923 }
 0x46b   :  { %v966_v30 = vmul.f32 %v951_v29, %v15198_v24  ;;  %1914 = vmatpush.bf16.msrb.mxu1 %v1717_v11  ;;  %v1833_v39 = vunpack.c.l.b16 %v1491_v46  ;;  %v1015_v28 = vsel %vm125_vm0, %v15239_v13, %v15183_v55  ;;  %v1019_v33 = vsel %vm125_vm0, %v15181_v57, %v15239_v13  ;;  %v15243_v13 = vld [vmem:[#allocation2_spill] sm:$0xff] }
 0x46c   :  { %v1196_v35 = vpack.c.bf16 %v1188_v60, %v1187_v62  ;;  %v956_v31 = vsel %vm86_vm1, %v8984_v4, %v8864_v12  ;;  %v1407_v11 = vmul.f32 %v1383_v26, %v15129_v22  ;;  %v1408_v54 = vmul.f32 %v1395_v19, %v15130_v6 }
 0x46d   :  { %v1087_v55 = vsel %vm164_vm2, %v15240_v3, %v15156_v38  ;;  %v1829_v57 = vunpack.c.l.b16 %v1489_v16  ;;  %v1194_v62 = vpack.c.bf16 %v1184_v0, %v1183_v34  ;;  %v1091_v60 = vsel %vm164_vm2, %v15154_v7, %v15240_v3  ;;  %v15241_v38 = vld [vmem:[#allocation127_spill] sm:$0xff] }
 0x46e   :  { %v952_v26 = vsel %vm86_vm1, %v8864_v12, %v9067_v1  ;;  %v1834_v29 = vunpack.c.h.b16 %v1491_v46  ;;  %v969_v20 = vmul.f32 %v956_v31, %v15203_v37  ;;  %v977_v19 = vpack.c.bf16 %v966_v30, %v965_v44  ;;  %v15242_v34 = vld [vmem:[#allocation3_spill] sm:$0xff]  ;;  %v7106_v12 = vld [vmem:[%s14416_s3 + $0x4] sm:$0xf] }
 0x46f   :  { %v970_v36 = vmul.f32 %v952_v26, %v15198_v24  ;;  %1915 = vmatpush.bf16.msrb.mxu1 %v15241_v38  ;;  %v1841_v14 = vpack.c.b16 %v1833_v39, %v1829_v57  ;;  %v9081_v0 = vmul.f32 %v1019_v33, %v15242_v34  ;;  %v9084_v10 = vmul.f32 %v1015_v28, %v15243_v13  ;;  %v6960_v46 = vld [vmem:[%s14416_s3 + $0xc] sm:$0xf0]  ;;  %v7108_v28 = vld [vmem:[%s14416_s3 + $0x10] sm:$0xf0]  ;;  %v15244_v57 = vld [vmem:[#allocation133_spill] sm:$0xff] }
 0x470   :  { %v1635_v7 = vunpack.c.l.b16 %v1196_v35  ;;  %v1830_v3 = vunpack.c.h.b16 %v1489_v16  ;;  %v9092_v31 = vpack.c.bf16 %v1408_v54, %v1407_v11  ;;  %v1111_v44 = vmul.f32 %v1091_v60, %v15134_v47  ;;  %v6966_v16 = vld [vmem:[%s14416_s3 + $0x8] sm:$0xf]  ;;  %v1236_v60 = vpop.permute.xlu2 %1235 }
 0x471   :  { %v1112_v30 = vmul.f32 %v1087_v55, %v15135_v32  ;;  %1934 = vmatpush.bf16.msrb.mxu2 %v1841_v14  ;;  %v979_v39 = vpack.c.bf16 %v970_v36, %v969_v20  ;;  %v1631_v33 = vunpack.c.l.b16 %v1194_v62  ;;  %v1239_v11 = vsel %vm255_vm5, %v15204_v27, %v15244_v57  ;;  %v15245_v36 = vld [vmem:[#allocation121_spill] sm:$0xff] }
 0x472   :  { %v1636_v54 = vunpack.c.h.b16 %v1196_v35  ;;  %v1842_v26 = vpack.c.b16 %v1834_v29, %v1830_v3  ;;  %v1632_v55 = vunpack.c.h.b16 %v1194_v62  ;;  %v1251_v20 = vsel %vm255_vm5, %v15244_v57, %v15200_v42  ;;  %v1308_v24 = vpop.permute.xlu0 %1307  ;;  %v15246_v62 = vld [vmem:[#allocation10_spill] sm:$0xff]  ;;  %v1380_v3 = vpop.permute.xlu1 %1379  ;;  %v15247_v57 = vld [vmem:[#allocation11_spill] sm:$0xff] }
 0x473   :  { %1916 = vmatpush.bf16.msrb.mxu1 %v15245_v36  ;;  %v1509_v38 = vunpack.c.l.b16 %v977_v19  ;;  %v9111_v14 = vor.u32 %v7106_v12, %v6960_v46  ;;  %v1643_v9 = vpack.c.b16 %v1635_v7, %v1631_v33  ;;  %v1513_v37 = vunpack.c.l.b16 %v979_v39 }
 0x474   :  { %v1514_v61 = vunpack.c.h.b16 %v979_v39  ;;  %v9113_v27 = vor.u32 %v7108_v28, %v6966_v16  ;;  %v9115_v35 = vpack.c.bf16 %v1112_v30, %v1111_v44  ;;  %v1263_v29 = vmul.f32 %v1239_v11, %v15246_v62  ;;  %v15248_v16 = vld [vmem:[#allocation67_spill] sm:$0xff] }
 0x475   :  { %1935 = vmatpush.bf16.msrb.mxu2 %v8937_v43  ;;  %v1510_v42 = vunpack.c.h.b16 %v977_v19  ;;  %v1264_v36 = vmul.f32 %v1251_v20, %v15247_v57  ;;  %v1384_v7 = vsel %vm333_vm10, %v8628_v8, %v1380_v3  ;;  %v1396_v12 = vsel %vm333_vm10, %v1380_v3, %v8490_v25 }
 0x476   :  { %v1644_v46 = vpack.c.b16 %v1636_v54, %v1632_v55  ;;  %v1411_v44 = vmul.f32 %v1384_v7, %v15129_v22  ;;  %v1412_v30 = vmul.f32 %v1396_v12, %v15130_v6  ;;  %v1312_v43 = vsel %vm294_vm8, %v8732_v56, %v1308_v24  ;;  %1917 = vmatmul.bf16.vlgmr.msrb.gmra.mxu1 %v9111_v14 }
 0x477   :  { %1991 = vmatpush.bf16.msra.mxu1 %v1842_v26  ;;  %v1794_v8 = vunpack.c.h.b16 %v8717_v5  ;;  %v1521_v19 = vpack.c.b16 %v1513_v37, %v1509_v38  ;;  %v1522_v39 = vpack.c.b16 %v1514_v61, %v1510_v42  ;;  %v1747_v25 = vunpack.c.l.b16 %v9027_v15  ;;  %v6958_v61 = vld [vmem:[%s14416_s3] sm:$0xf]  ;;  %v15250_v42 = vld [vmem:[#allocation58_spill] sm:$0xff] }
 0x478   :  { %6980 = vmatmul.msk.bf16.vlgmr.msrb.gmra.mxu2 %vm1883_vm6, %v9113_v27  ;;  %v1790_v28 = vunpack.c.h.b16 %v15248_v16  ;;  %v9141_v56 = vpack.c.bf16 %v1412_v30, %v1411_v44  ;;  %v1339_v5 = vmul.f32 %v1312_v43, %v15224_v21  ;;  %v1751_v33 = vunpack.c.l.b16 %v9043_v58  ;;  %v932_v38 = vpop.permute.xlu2 %931  ;;  %v15252_v44 = vld [vmem:[#allocation68_spill] sm:$0xff]  ;;  %v6978_v30 = vld [vmem:[%s14416_s3 + $0x20] sm:$0xf]  ;;  %v7111_v43 = vld [vmem:[%s14416_s3 + $0x28] sm:$0xf0] }
 0x479   :  { %2004 = vmatpush.bf16.msra.mxu2 %v1643_v9  ;;  %v1324_v9 = vsel %vm294_vm8, %v1308_v24, %v8626_v49  ;;  %v1750_v49 = vunpack.c.h.b16 %v8818_v18  ;;  %v1754_v24 = vunpack.c.h.b16 %v8842_v40  ;;  %1896 = vmatpush.bf16.msrb.mxu0 %v1521_v19  ;;  %v9157_v40 = vpack.c.bf16 %v9084_v10, %v9081_v0  ;;  %v15254_v16 = vld [vmem:[#allocation63_spill] sm:$0xff] }
 0x47a   :  { %v1340_v37 = vmul.f32 %v1324_v9, %v15225_v17  ;;  %1953 = vmatpush.bf16.msrb.mxu3 %v1522_v39  ;;  %v1791_v11 = vunpack.c.l.b16 %v9092_v31  ;;  %v9160_v54 = vpack.c.bf16 %v1264_v36, %v1263_v29  ;;  %v1591_v26 = vunpack.c.l.b16 %v9115_v35  ;;  %v1004_v3 = vpop.permute.xlu0 %1003  ;;  %v15249_v29 = vld [vmem:[#allocation54_spill] sm:$0xff] }
 0x47b   :  { %1992 = vmatpush.bf16.msra.mxu1 %v8941_v53  ;;  %v7107_v53 = vld [vmem:[%s14416_s3 + $0x8] sm:$0xf0]  ;;  %v1240_v55 = vsel %vm255_vm5, %v8866_v51, %v1236_v60  ;;  %v1252_v20 = vsel %vm255_vm5, %v1236_v60, %v8730_v45  ;;  %v1795_v10 = vunpack.c.l.b16 %v9141_v56  ;;  %v1802_v0 = vpack.c.b16 %v1794_v8, %v1790_v28  ;;  %v1076_v51 = vpop.permute.xlu1 %1075  ;;  %v15251_v60 = vld [vmem:[#allocation57_spill] sm:$0xff] }
 0x47c   :  { %v1249_v36 = vsel %vm255_vm5, %v9025_v52, %v15250_v42  ;;  %v9180_v7 = vor.u32 %v7107_v53, %v6958_v61  ;;  %v1762_v45 = vpack.c.b16 %v1754_v24, %v1750_v49  ;;  %v1017_v12 = vsel %vm125_vm0, %v15251_v60, %v9059_v23  ;;  %v15255_v49 = vld [vmem:[#allocation77_spill] sm:$0xff] }
 0x47d   :  { %2005 = vmatpush.bf16.msra.mxu2 %v8964_v2  ;;  %v1237_v2 = vsel %vm255_vm5, %v15249_v29, %v9025_v52  ;;  %1897 = vmatpush.bf16.msrb.mxu0 %v8988_v41  ;;  %v1088_v52 = vsel %vm164_vm2, %v1076_v51, %v15252_v44  ;;  %v1267_v9 = vmul.f32 %v1240_v55, %v15246_v62  ;;  %v15256_v55 = vld [vmem:[#allocation81_spill] sm:$0xff] }
 0x47e   :  { %1954 = vmatpush.bf16.msrb.mxu3 %v9031_v63  ;;  %v1268_v41 = vmul.f32 %v1252_v20, %v15247_v57  ;;  %v15253_v63 = vld [vmem:[#allocation117_spill] sm:$0xff]  ;;  %v1116_v19 = vmul.f32 %v1088_v52, %v15135_v32  ;;  %v1016_v28 = vsel %vm125_vm0, %v1004_v3, %v15254_v16  ;;  %v1020_v24 = vsel %vm125_vm0, %v15255_v49, %v1004_v3  ;;  %v15258_v52 = vld [vmem:[#allocation70_spill] sm:$0xff] }
 0x47f   :  { %2061 = vmatpush.bf16.msrb.mxu1 %v1644_v46  ;;  %v9186_v46 = vpack.c.bf16 %v1340_v37, %v1339_v5  ;;  %v1092_v8 = vsel %vm164_vm2, %v15253_v63, %v1076_v51  ;;  %v1803_v5 = vpack.c.b16 %v1795_v10, %v1791_v11  ;;  %v1255_v37 = vmul.f32 %v1237_v2, %v15246_v62  ;;  %v6972_v11 = vld [vmem:[%s14416_s3 + $0x24] sm:$0xf0]  ;;  %v15257_v10 = vld [vmem:[#allocation53_spill] sm:$0xff] }
 0x480   :  { %v1115_v39 = vmul.f32 %v1092_v8, %v15134_v47  ;;  %v1256_v61 = vmul.f32 %v1249_v36, %v15247_v57  ;;  %1898 = vmatmul.bf16.vlgmr.msrb.gmra.mxu0 %v9180_v7  ;;  %v9217_v53 = vor.u32 %v7111_v43, %v6978_v30  ;;  %v1714_v20 = vunpack.c.h.b16 %v15256_v55  ;;  %v15260_v16 = vld [vmem:[#allocation82_spill] sm:$0xff]  ;;  %v1450_v49 = vpop.permute.xlu2 %1449 }
 0x481   :  { %1966 = vmatpush.bf16.msra.mxu0 %v1802_v0  ;;  %1955 = vmatmul.bf16.vlgmr.msrb.gmra.mxu3 %v9180_v7  ;;  %v7109_v0 = vld [vmem:[%s14416_s3 + $0x1c] sm:$0xf]  ;;  %v1013_v3 = vsel %vm125_vm0, %v9059_v23, %v15257_v10  ;;  %v948_v29 = vsel %vm86_vm1, %v9067_v1, %v932_v38  ;;  %v1755_v42 = vunpack.c.l.b16 %v9186_v46  ;;  %v1031_v36 = vmul.f32 %v1017_v12, %v15242_v34 }
 0x482   :  { %v1124_v2 = vpack.c.bf16 %v1116_v19, %v1115_v39  ;;  %2023 = vmatpush.bf16.msra.mxu3 %v1803_v5  ;;  %v944_v51 = vsel %vm86_vm1, %v932_v38, %v8984_v4  ;;  %v1043_v60 = vmul.f32 %v1020_v24, %v15242_v34  ;;  %v1044_v44 = vmul.f32 %v1016_v28, %v15243_v13  ;;  %v1232_v30 = vpop.permute.xlu0 %1231  ;;  %v15259_v12 = vld [vmem:[#allocation4_spill] sm:$0xff]  ;;  %v15264_v5 = vld [vmem:[#allocation79_spill] sm:$0xff] }
 0x483   :  { %2062 = vmatpush.bf16.msrb.mxu1 %v8969_v59  ;;  %v1592_v59 = vunpack.c.h.b16 %v9115_v35  ;;  %v9241_v23 = vpack.c.bf16 %v1268_v41, %v1267_v9  ;;  %v9243_v63 = vor.u32 %v7109_v0, %v6972_v11  ;;  %v1032_v8 = vmul.f32 %v1013_v3, %v15243_v13  ;;  %v1000_v39 = vpop.permute.xlu1 %999  ;;  %v15261_v38 = vld [vmem:[#allocation72_spill] sm:$0xff]  ;;  %v15262_v9 = vld [vmem:[#allocation5_spill] sm:$0xff]  ;;  %v15265_v0 = vld [vmem:[#allocation83_spill] sm:$0xff] }
 0x484   :  { %v1595_v1 = vunpack.c.l.b16 %v1124_v2  ;;  %v1596_v43 = vunpack.c.h.b16 %v1124_v2  ;;  %v971_v19 = vmul.f32 %v948_v29, %v15259_v12  ;;  %v1238_v4 = vsel %vm255_vm5, %v15260_v16, %v1232_v30  ;;  %v15263_v24 = vld [vmem:[#allocation80_spill] sm:$0xff] }
 0x485   :  { %1967 = vmatpush.bf16.msra.mxu0 %v15258_v52  ;;  %v1250_v28 = vsel %vm255_vm5, %v1232_v30, %v15261_v38  ;;  %v972_v41 = vmul.f32 %v944_v51, %v15262_v9  ;;  %v1014_v55 = vsel %vm125_vm0, %v1000_v39, %v15264_v5  ;;  %v1018_v11 = vsel %vm125_vm0, %v15265_v0, %v1000_v39  ;;  %v15272_v38 = vld [vmem:[#allocation131_spill] sm:$0xff] }
 0x486   :  { %2024 = vmatpush.bf16.msra.mxu3 %v15263_v24  ;;  %v1763_v10 = vpack.c.b16 %v1755_v42, %v1751_v33  ;;  %v1052_v3 = vpack.c.bf16 %v1044_v44, %v1043_v60  ;;  %v1035_v29 = vmul.f32 %v1018_v11, %v15242_v34  ;;  %v1036_v2 = vmul.f32 %v1014_v55, %v15243_v13  ;;  %v6970_v33 = vld [vmem:[%s14416_s3 + $0x18] sm:$0xf]  ;;  %v15266_v60 = vld [vmem:[#allocation71_spill] sm:$0xff] }
 0x487   :  { %v1259_v51 = vmul.f32 %v1238_v4, %v15246_v62  ;;  %v1260_v52 = vmul.f32 %v1250_v28, %v15247_v57  ;;  %v1603_v30 = vpack.c.b16 %v1595_v1, %v1591_v26  ;;  %v1604_v16 = vpack.c.b16 %v1596_v43, %v1592_v59  ;;  %1922 = vmatmul.bf16.gmra.mxu1 %v9243_v63  ;;  %v15268_v26 = vld [vmem:[#allocation59_spill] sm:$0xff]  ;;  %v15270_v1 = vld [vmem:[#allocation73_spill] sm:$0xff]  ;;  %v15276_v11 = vld [vmem:[#allocation104_spill] sm:$0xff] }
 0x488   :  { %6981 = vmatmul.msk.bf16.gmra.mxu2 %vm1883_vm6, %v9217_v53  ;;  %v1715_v42 = vunpack.c.l.b16 %v9241_v23  ;;  %v15267_v44 = vunpack.c.l.b16 %v15266_v60  ;;  %v15269_v59 = vunpack.c.h.b16 %v15268_v26  ;;  %v15271_v43 = vunpack.c.h.b16 %v15270_v1  ;;  %v15274_v24 = vld [vmem:[#allocation99_spill] sm:$0xff] }
 0x489   :  { %1968 = vmatpush.bf16.msra.mxu0 %v1762_v45  ;;  %v7110_v45 = vld [vmem:[%s14416_s3 + $0x20] sm:$0xf0]  ;;  %v1551_v4 = vunpack.c.l.b16 %v9157_v40  ;;  %v15273_v28 = vunpack.c.h.b16 %v15272_v38  ;;  %v15275_v5 = vunpack.c.h.b16 %v15274_v24  ;;  %v9292_v0 = vpack.c.bf16 %v1256_v61, %v1255_v37  ;;  %2006 = vmatpush.bf16.msra.mxu2 %v1603_v30  ;;  %v15279_v38 = vld [vmem:[#allocation74_spill] sm:$0xff] }
 0x48a   :  { %v1759_v35 = vpack.c.b16 %v1747_v25, %v15267_v44  ;;  %v1600_v39 = vpack.c.b16 %v15271_v43, %v15269_v59  ;;  %v1455_v18 = vsel %vm372_vm9, %v15276_v11, %v1450_v49  ;;  %2025 = vmatpush.bf16.msra.mxu3 %v1763_v10  ;;  %v15277_v25 = vunpack.c.h.b16 %v8930_v50  ;;  %v15278_v59 = vld [vmem:[#allocation115_spill] sm:$0xff]  ;;  %2063 = vmatpush.bf16.msrb.mxu1 %v1604_v16  ;;  %v926_v10 = vpop.permute.xlu0 %925 }
 0x48b   :  { %v1718_v55 = vpack.c.b16 %v15275_v5, %v15273_v28  ;;  %v1711_v26 = vunpack.c.l.b16 %v9160_v54  ;;  %v1467_v1 = vsel %vm372_vm9, %v1450_v49, %v15278_v59  ;;  %v1048_v43 = vpack.c.bf16 %v1036_v2, %v1035_v29  ;;  %v930_v11 = vpop.permute.xlu1 %929  ;;  %v15282_v29 = vld [vmem:[#allocation62_spill] sm:$0xff]  ;;  %v1448_v59 = vpop.permute.xlu2 %1447 }
 0x48c   :  { %v1722_v44 = vpack.c.b16 %v1714_v20, %v15277_v25  ;;  %v9304_v37 = vor.u32 %v7110_v45, %v6970_v33  ;;  %v1555_v61 = vunpack.c.l.b16 %v1052_v3  ;;  %v1046_v28 = vpack.c.bf16 %v1032_v8, %v1031_v36  ;;  %v15280_v20 = vld [vmem:[#allocation18_spill] sm:$0xff]  ;;  %v15281_v25 = vld [vmem:[#allocation56_spill] sm:$0xff]  ;;  %v15283_v33 = vld [vmem:[#allocation25_spill] sm:$0xff] }
 0x48d   :  { %1969 = vmatpush.bf16.msra.mxu0 %v15279_v38  ;;  %v980_v24 = vpack.c.bf16 %v972_v41, %v971_v19  ;;  %v9306_v30 = vpack.c.bf16 %v1260_v52, %v1259_v51  ;;  %v1723_v50 = vpack.c.b16 %v1715_v42, %v1711_v26  ;;  %v1479_v5 = vmul.f32 %v1455_v18, %v15280_v20  ;;  %v15284_v36 = vld [vmem:[#allocation93_spill] sm:$0xff]  ;;  %v15285_v8 = vld [vmem:[#allocation107_spill] sm:$0xff]  ;;  %v15286_v18 = vld [vmem:[#allocation114_spill] sm:$0xff] }
 0x48e   :  { %v941_v49 = vsel %vm86_vm1, %v926_v10, %v15281_v25  ;;  %v945_v2 = vsel %vm86_vm1, %v15282_v29, %v926_v10  ;;  %v1556_v16 = vunpack.c.h.b16 %v1052_v3  ;;  %v1480_v45 = vmul.f32 %v1467_v1, %v15283_v33  ;;  %2007 = vmatpush.bf16.msra.mxu2 %v15284_v36  ;;  %2026 = vmatpush.bf16.msra.mxu3 %v1759_v35 }
 0x48f   :  { %v943_v19 = vsel %vm86_vm1, %v930_v11, %v15285_v8  ;;  %v947_v41 = vsel %vm86_vm1, %v15286_v18, %v930_v11  ;;  %v1552_v51 = vunpack.c.h.b16 %v9157_v40  ;;  %2064 = vmatpush.bf16.msrb.mxu1 %v1600_v39  ;;  %v1563_v42 = vpack.c.b16 %v1555_v61, %v1551_v4 }
 0x490   :  { %v967_v52 = vmul.f32 %v947_v41, %v15259_v12  ;;  %v968_v3 = vmul.f32 %v943_v19, %v15262_v9  ;;  %v1547_v26 = vunpack.c.l.b16 %v1048_v43  ;;  %v959_v35 = vmul.f32 %v945_v2, %v15259_v12  ;;  %1903 = vmatmul.bf16.gmra.mxu0 %v9304_v37  ;;  %v15287_v2 = vld [vmem:[#allocation85_spill] sm:$0xff]  ;;  %v15289_v41 = vld [vmem:[#allocation103_spill] sm:$0xff] }
 0x491   :  { %1970 = vmatpush.bf16.msra.mxu0 %v1722_v44  ;;  %v960_v1 = vmul.f32 %v941_v49, %v15262_v9  ;;  %v1707_v38 = vunpack.c.l.b16 %v9306_v30  ;;  %v1548_v10 = vunpack.c.h.b16 %v1048_v43  ;;  %1960 = vmatmul.bf16.gmra.mxu3 %v9304_v37  ;;  %v1564_v40 = vpack.c.b16 %v1556_v16, %v1552_v51  ;;  %v15288_v43 = vld [vmem:[#allocation75_spill] sm:$0xff]  ;;  %v15290_v51 = vld [vmem:[#allocation97_spill] sm:$0xff] }
 0x492   :  { %v978_v25 = vpack.c.bf16 %v968_v3, %v967_v52  ;;  %v1543_v39 = vunpack.c.l.b16 %v1046_v28  ;;  %v1703_v44 = vunpack.c.l.b16 %v9292_v0  ;;  %v1490_v11 = vpack.c.bf16 %v1480_v45, %v1479_v5  ;;  %2008 = vmatpush.bf16.msra.mxu2 %v1563_v42  ;;  %2027 = vmatpush.bf16.msra.mxu3 %v1723_v50  ;;  %v1452_v50 = vpop.permute.xlu0 %1451 }
 0x493   :  { %v1544_v4 = vunpack.c.h.b16 %v1046_v28  ;;  %v1515_v61 = vunpack.c.l.b16 %v980_v24  ;;  %v1516_v29 = vunpack.c.h.b16 %v980_v24  ;;  %v1454_v49 = vsel %vm372_vm9, %v15287_v2, %v1448_v59  ;;  %2065 = vmatpush.bf16.msrb.mxu1 %v1564_v40  ;;  %v928_v28 = vpop.permute.xlu1 %927  ;;  %v15297_v2 = vld [vmem:[#allocation51_spill] sm:$0xff] }
 0x494   :  { %v1466_v36 = vsel %vm372_vm9, %v1448_v59, %v15288_v43  ;;  %v1511_v16 = vunpack.c.l.b16 %v978_v25  ;;  %v1512_v8 = vunpack.c.h.b16 %v978_v25  ;;  %v974_v19 = vpack.c.bf16 %v960_v1, %v959_v35  ;;  %v15292_v59 = vld [vmem:[#allocation92_spill] sm:$0xff] }
 0x495   :  { %1971 = vmatpush.bf16.msra.mxu0 %v1718_v55  ;;  %v1559_v18 = vpack.c.b16 %v1547_v26, %v1543_v39  ;;  %v1719_v5 = vpack.c.b16 %v1707_v38, %v1703_v44  ;;  %v1560_v45 = vpack.c.b16 %v1548_v10, %v1544_v4  ;;  %v1456_v24 = vsel %vm372_vm9, %v15289_v41, %v1452_v50  ;;  %v15291_v55 = vld [vmem:[#allocation88_spill] sm:$0xff]  ;;  %v15293_v38 = vld [vmem:[#allocation126_spill] sm:$0xff]  ;;  %v15295_v4 = vld [vmem:[#allocation123_spill] sm:$0xff] }
 0x496   :  { %v1468_v52 = vsel %vm372_vm9, %v1452_v50, %v15290_v51  ;;  %v1523_v3 = vpack.c.b16 %v1515_v61, %v1511_v16  ;;  %v1524_v42 = vpack.c.b16 %v1516_v29, %v1512_v8  ;;  %v942_v26 = vsel %vm86_vm1, %v928_v28, %v15291_v55  ;;  %v15294_v25 = vld [vmem:[#allocation128_spill] sm:$0xff] }
 0x497   :  { %2009 = vmatpush.bf16.msra.mxu2 %v1559_v18  ;;  %2028 = vmatpush.bf16.msra.mxu3 %v1719_v5  ;;  %v946_v35 = vsel %vm86_vm1, %v15292_v59, %v928_v28  ;;  %v1483_v1 = vmul.f32 %v1456_v24, %v15280_v20  ;;  %v1671_v10 = vunpack.c.l.b16 %v15293_v38  ;;  %v964_v39 = vmul.f32 %v942_v26, %v15262_v9  ;;  %v15299_v16 = vld [vmem:[#allocation116_spill] sm:$0xff]  ;;  %v15302_v28 = vld [vmem:[#allocation122_spill] sm:$0xff] }
 0x498   :  { %2066 = vmatpush.bf16.msrb.mxu1 %v1560_v45  ;;  %v963_v40 = vmul.f32 %v946_v35, %v15259_v12  ;;  %v1484_v44 = vmul.f32 %v1468_v52, %v15283_v33  ;;  %v15296_v61 = vunpack.c.l.b16 %v15295_v4  ;;  %v15298_v43 = vunpack.c.h.b16 %v15297_v2  ;;  %v15301_v5 = vld [vmem:[#allocation120_spill] sm:$0xff] }
 0x499   :  { %1972 = vmatpush.bf16.msra.mxu0 %v15294_v25  ;;  %v15300_v8 = vunpack.c.h.b16 %v15299_v16  ;;  %v1663_v50 = vunpack.c.l.b16 %v15301_v5  ;;  %v1667_v45 = vunpack.c.l.b16 %v15302_v28  ;;  %6982 = vmatmul.msk.bf16.vlgmr.msra.gmra.mxu1 %vm1883_vm6, %v9113_v27  ;;  %v1831_v41 = vunpack.c.l.b16 %v1490_v11 }
 0x49a   :  { %v1683_v29 = vpack.c.b16 %v15296_v61, %v1671_v10  ;;  %v1832_v24 = vunpack.c.h.b16 %v1490_v11  ;;  %v976_v51 = vpack.c.bf16 %v964_v39, %v963_v40  ;;  %v1492_v55 = vpack.c.bf16 %v1484_v44, %v1483_v1  ;;  %v15304_v44 = vld [vmem:[#allocation60_spill] sm:$0xff] }
 0x49b   :  { %v1678_v18 = vpack.c.b16 %v15300_v8, %v15298_v43  ;;  %v1475_v52 = vmul.f32 %v1454_v49, %v15280_v20  ;;  %v1476_v26 = vmul.f32 %v1466_v36, %v15283_v33  ;;  %2010 = vmatpush.bf16.msra.mxu2 %v1523_v3  ;;  %v1503_v59 = vunpack.c.l.b16 %v974_v19  ;;  %v1446_v11 = vpop.permute.xlu1 %1445  ;;  %v15303_v3 = vld [vmem:[#allocation55_spill] sm:$0xff] }
 0x49c   :  { %2029 = vmatpush.bf16.msra.mxu3 %v1683_v29  ;;  %v1504_v35 = vunpack.c.h.b16 %v974_v19  ;;  %v1835_v10 = vunpack.c.l.b16 %v1492_v55  ;;  %v1836_v25 = vunpack.c.h.b16 %v1492_v55  ;;  %2067 = vmatpush.bf16.msrb.mxu1 %v1524_v42  ;;  %v1507_v61 = vunpack.c.l.b16 %v976_v51 }
 0x49d   :  { %1973 = vmatpush.bf16.msra.mxu0 %v1678_v18  ;;  %v1508_v2 = vunpack.c.h.b16 %v976_v51  ;;  %v1796_v43 = vunpack.c.h.b16 %v9141_v56  ;;  %v1679_v16 = vpack.c.b16 %v1667_v45, %v1663_v50  ;;  %v1792_v36 = vunpack.c.h.b16 %v9092_v31  ;;  %v15305_v31 = vld [vmem:[#allocation61_spill] sm:$0xff] }
 0x49e   :  { %v1519_v40 = vpack.c.b16 %v1507_v61, %v1503_v59  ;;  %v1843_v1 = vpack.c.b16 %v1835_v10, %v1831_v41  ;;  %v1844_v49 = vpack.c.b16 %v1836_v25, %v1832_v24  ;;  %v1453_v19 = vsel %vm372_vm9, %v15303_v3, %v1446_v11  ;;  %v15306_v41 = vld [vmem:[#allocation52_spill] sm:$0xff] }
 0x49f   :  { %v1520_v39 = vpack.c.b16 %v1508_v2, %v1504_v35  ;;  %v1465_v42 = vsel %vm372_vm9, %v1446_v11, %v15304_v44  ;;  %v1488_v29 = vpack.c.bf16 %v1476_v26, %v1475_v52  ;;  %v1471_v56 = vmul.f32 %v1453_v19, %v15280_v20 }
 0x4a0   :  { %2030 = vmatpush.bf16.msra.mxu3 %v1679_v16  ;;  %v1472_v8 = vmul.f32 %v1465_v42, %v15283_v33  ;;  %2011 = vmatpush.bf16.msra.mxu2 %v1519_v40  ;;  %v1804_v18 = vpack.c.b16 %v1796_v43, %v1792_v36  ;;  %v1788_v50 = vunpack.c.h.b16 %v15305_v31  ;;  %v1784_v24 = vunpack.c.h.b16 %v15306_v41 }
 0x4a1   :  { %2048 = vmatpush.bf16.msrb.mxu0 %v1843_v1  ;;  %2068 = vmatpush.bf16.msrb.mxu1 %v1520_v39  ;;  %v1827_v55 = vunpack.c.l.b16 %v1488_v29  ;;  %v1828_v26 = vunpack.c.h.b16 %v1488_v29  ;;  %v1756_v35 = vunpack.c.h.b16 %v9186_v46  ;;  %v1752_v61 = vunpack.c.h.b16 %v9043_v58 }
 0x4a2   :  { %v1486_v45 = vpack.c.bf16 %v1472_v8, %v1471_v56  ;;  %1974 = vmatmul.bf16.vlgmr.msra.gmra.mxu0 %v9111_v14  ;;  %v1800_v59 = vpack.c.b16 %v1788_v50, %v1784_v24  ;;  %v1748_v43 = vunpack.c.h.b16 %v9027_v15  ;;  %v1744_v16 = vunpack.c.h.b16 %v15266_v60 }
 0x4a3   :  { %2031 = vmatmul.bf16.vlgmr.msra.gmra.mxu3 %v9111_v14  ;;  %2012 = vmatmul.bf16.vlgmr.msra.gmra.mxu2 %v9180_v7  ;;  %v1764_v2 = vpack.c.b16 %v1756_v35, %v1752_v61  ;;  %v1716_v40 = vunpack.c.h.b16 %v9241_v23  ;;  %v1712_v46 = vunpack.c.h.b16 %v9160_v54  ;;  %v1708_v58 = vunpack.c.h.b16 %v9306_v30 }
 0x4a4   :  { %2105 = vmatpush.bf16.msrb.mxu3 %v1844_v49  ;;  %2080 = vmatpush.bf16.msrb.mxu2 %v1804_v18  ;;  %v1823_v51 = vunpack.c.l.b16 %v1486_v45  ;;  %v1824_v52 = vunpack.c.h.b16 %v1486_v45  ;;  %v1760_v11 = vpack.c.b16 %v1748_v43, %v1744_v16  ;;  %v1704_v15 = vunpack.c.h.b16 %v9292_v0 }
 0x4a5   :  { %v1724_v1 = vpack.c.b16 %v1716_v40, %v1712_v46  ;;  %v1676_v60 = vunpack.c.h.b16 %v15295_v4  ;;  %v1672_v23 = vunpack.c.h.b16 %v15293_v38  ;;  %v1668_v54 = vunpack.c.h.b16 %v15302_v28 }
 0x4a6   :  { %v1839_v10 = vpack.c.b16 %v1827_v55, %v1823_v51  ;;  %v1840_v25 = vpack.c.b16 %v1828_v26, %v1824_v52  ;;  %v1720_v39 = vpack.c.b16 %v1708_v58, %v1704_v15  ;;  %v1664_v30 = vunpack.c.h.b16 %v15301_v5 }
 0x4a7   :  { %v1684_v49 = vpack.c.b16 %v1676_v60, %v1672_v23  ;;  %v7246_v0 = vmov 1  }
 0x4a8   :  { %2081 = vmatpush.bf16.msrb.mxu2 %v1800_v59  ;;  %2049 = vmatpush.bf16.msrb.mxu0 %v1839_v10  ;;  %v1680_v36 = vpack.c.b16 %v1668_v54, %v1664_v30 }
 0x4a9   :  { %2106 = vmatpush.bf16.msrb.mxu3 %v1840_v25  ;;  %6983 = vmatmul.msk.bf16.gmra.mxu1 %vm1883_vm6, %v9217_v53 }
 0x4aa   :  { %7150 = vset.pattern.permute.xlu2 %v7246_v0  ;;  %7149 = vset.pattern.permute.xlu1 %v7246_v0 }
 0x4ab   :  { %7151 = vset.pattern.permute.xlu0 %v7246_v0 }
 0x4ac   :  { %2082 = vmatpush.bf16.msrb.mxu2 %v1764_v2 }
 0x4b0   :  { %2083 = vmatpush.bf16.msrb.mxu2 %v1760_v11 }
 0x4b2   :  { %1979 = vmatmul.bf16.gmra.mxu0 %v9243_v63 }
 0x4b3   :  { %2036 = vmatmul.bf16.gmra.mxu3 %v9243_v63  ;;  %2017 = vmatmul.bf16.gmra.mxu2 %v9304_v37 }
 0x4b4   :  { %2084 = vmatpush.bf16.msrb.mxu2 %v1724_v1 }
 0x4b8   :  { %2085 = vmatpush.bf16.msrb.mxu2 %v1720_v39 }
 0x4b9   :  { %2069 = vmatmul.bf16.vlgmr.msrb.gmra.mxu1 %v9180_v7 }
 0x4bc   :  { %2086 = vmatpush.bf16.msrb.mxu2 %v1684_v49 }
 0x4c0   :  { %2087 = vmatpush.bf16.msrb.mxu2 %v1680_v36 }
 0x4c2   :  { %6984 = vmatmul.msk.bf16.vlgmr.msrb.gmra.mxu0 %vm1883_vm6, %v9113_v27 }
 0x4c3   :  { %6986 = vmatmul.msk.bf16.vlgmr.msrb.gmra.mxu3 %vm1883_vm6, %v9113_v27  ;;  %2088 = vmatmul.bf16.vlgmr.msrb.gmra.mxu2 %v9111_v14  ;;  %v7204_v27 = vld [vmem:[%s14414_s11 + $0x18] sm:$0xff]  ;;  %v7205_v14 = vld [vmem:[%s14414_s11 + $0x10] sm:$0xff] }
 0x4c4   :  { %2295 = vperm.xlu2 %7150, %v7204_v27   ;;  %2291 = vperm.xlu1 %7149, %v7205_v14  }
 0x4c9   :  { %2074 = vmatmul.bf16.gmra.mxu1 %v9304_v37 }
 0x4d2   :  { %6985 = vmatmul.msk.bf16.gmra.mxu0 %vm1883_vm6, %v9217_v53 }
 0x4d3   :  { %6987 = vmatmul.msk.bf16.gmra.mxu3 %vm1883_vm6, %v9217_v53  ;;  %2093 = vmatmul.bf16.gmra.mxu2 %v9243_v63  ;;  %v7206_v53 = vld [vmem:[%s14414_s11 + $0x8] sm:$0xff]  ;;  %v7207_v63 = vld [vmem:[%s14414_s11] sm:$0xff] }
 0x4d4   :  { %2287 = vperm.xlu2 %7150, %v7206_v53   ;;  %2283 = vperm.xlu1 %7149, %v7207_v63  }
 0x4f3   :  { %v1918_v7 = vpop.f32.mrf.mxu1 }
 0x4fb   :  { %v1920_v37 = vpop.f32.mrf.mxu1  ;;  %v1937_v4 = vpop.f32.mrf.mxu2 }
 0x4fd   :  { %v1899_v38 = vpop.f32.mrf.mxu0 }
 0x4fe   :  { %v1919_v58 = vadd.f32 %v1918_v7, %v1899_v38 }
 0x500   :  { %v1938_v23 = vadd.f32 %v1937_v4, %v1919_v58 }
 0x503   :  { %v1939_v19 = vpop.f32.mrf.mxu2 }
 0x504   :  { %v1956_v5 = vpop.f32.mrf.mxu3  ;;  %v1923_v28 = vpop.f32.mrf.mxu1 }
 0x505   :  { %v1901_v3 = vpop.f32.mrf.mxu0 }
 0x506   :  { %v1921_v14 = vadd.f32 %v1920_v37, %v1901_v3 }
 0x50b   :  { %v1942_v56 = vpop.f32.mrf.mxu2 }
 0x50c   :  { %v1958_v44 = vpop.f32.mrf.mxu3  ;;  %v9424_v29 = vpop.f32.mrf.mxu1 }
 0x50d   :  { %v1904_v42 = vpop.f32.mrf.mxu0 }
 0x513   :  { %v9428_v45 = vpop.f32.mrf.mxu2 }
 0x514   :  { %v1961_v8 = vpop.f32.mrf.mxu3 }
 0x515   :  { %v9426_v18 = vpop.f32.mrf.mxu0 }
 0x516   :  { %v1994_v31 = vpop.f32.mrf.mxu1 }
 0x51c   :  { %v1963_v50 = vpop.f32.mrf.mxu3 }
 0x51e   :  { %v1996_v24 = vpop.f32.mrf.mxu1 }
 0x51f   :  { %v1975_v41 = vpop.f32.mrf.mxu0 }
 0x520   :  { %v1976_v46 = vadd.f32 %v1975_v41, %v1956_v5 }
 0x522   :  { %v9430_v15 = vadd.f32 %v1994_v31, %v1976_v46  ;;  %v1940_v31 = vadd.f32 %v1939_v19, %v1921_v14 }
 0x524   :  { %v2118_v36 = vadd.f32 %v9430_v15, %v1938_v23 }
 0x526   :  { %v2032_v51 = vpop.f32.mrf.mxu3  ;;  %v2013_v52 = vpop.f32.mrf.mxu2 }
 0x527   :  { %v1977_v55 = vpop.f32.mrf.mxu0  ;;  %v1999_v26 = vpop.f32.mrf.mxu1  ;;  %v2033_v39 = vadd.f32 %v2032_v51, %v2013_v52 }
 0x528   :  { %v1978_v0 = vadd.f32 %v1977_v55, %v1958_v44  ;;  %v1924_v44 = vadd.f32 %v1923_v28, %v1904_v42 }
 0x52a   :  { %v9433_v20 = vadd.f32 %v1996_v24, %v1978_v0 }
 0x52c   :  { %v2123_v51 = vadd.f32 %v9433_v20, %v1940_v31 }
 0x52e   :  { %v2034_v59 = vpop.f32.mrf.mxu3  ;;  %v2015_v10 = vpop.f32.mrf.mxu2 }
 0x52f   :  { %v1980_v35 = vpop.f32.mrf.mxu0  ;;  %v2001_v61 = vpop.f32.mrf.mxu1  ;;  %v2035_v5 = vadd.f32 %v2034_v59, %v2015_v10  ;;  %v1943_v10 = vadd.f32 %v1942_v56, %v1924_v44 }
 0x530   :  { %v1981_v52 = vadd.f32 %v1980_v35, %v1961_v8 }
 0x536   :  { %v2037_v25 = vpop.f32.mrf.mxu3  ;;  %v2018_v43 = vpop.f32.mrf.mxu2 }
 0x537   :  { %v1982_v2 = vpop.f32.mrf.mxu0  ;;  %v2070_v1 = vpop.f32.mrf.mxu1  ;;  %v2038_v24 = vadd.f32 %v2037_v25, %v2018_v43 }
 0x53e   :  { %v2039_v16 = vpop.f32.mrf.mxu3  ;;  %v2020_v40 = vpop.f32.mrf.mxu2 }
 0x53f   :  { %v2051_v11 = vpop.f32.mrf.mxu0  ;;  %v2072_v33 = vpop.f32.mrf.mxu1 }
 0x540   :  { %v2052_v49 = vadd.f32 %v2051_v11, %v2033_v39 }
 0x542   :  { %v2119_v53 = vadd.f32 %v2118_v36, %v2052_v49 }
 0x546   :  { %v2108_v60 = vpop.f32.mrf.mxu3  ;;  %v2089_v30 = vpop.f32.mrf.mxu2 }
 0x547   :  { %v2053_v54 = vpop.f32.mrf.mxu0  ;;  %v2090_v27 = vadd.f32 %v2089_v30, %v2070_v1  ;;  %v2075_v3 = vpop.f32.mrf.mxu1  ;;  %v9436_v1 = vadd.f32 %v1999_v26, %v1981_v52  ;;  %v2040_v26 = vadd.f32 %v2039_v16, %v2020_v40  ;;  %v15307_v16 = vld [vmem:[#allocation50_spill] sm:$0xff] }
 0x548   :  { %v2054_v41 = vadd.f32 %v2053_v54, %v2035_v5  ;;  %v1983_v54 = vadd.f32 %v1982_v2, %v1963_v50 }
 0x549   :  { %v2109_v63 = vadd.f32 %v2108_v60, %v2090_v27  ;;  %v2128_v60 = vadd.f32 %v9436_v1, %v1943_v10 }
 0x54a   :  { %v2124_v55 = vadd.f32 %v2123_v51, %v2054_v41  ;;  %v2002_v35 = vadd.f32 %v2001_v61, %v1983_v54 }
 0x54b   :  { %v2120_v7 = vadd.f32 %v2119_v53, %v2109_v63 }
 0x54d   :  { %2121 = vadd.xlane.f32.xlu2 %v2120_v7 }
 0x54e   :  { %v2110_v38 = vpop.f32.mrf.mxu3  ;;  %v2091_v4 = vpop.f32.mrf.mxu2 }
 0x54f   :  { %v2092_v11 = vadd.f32 %v2091_v4, %v2072_v33  ;;  %v2056_v46 = vpop.f32.mrf.mxu0  ;;  %v1926_v33 = vadd.f32 %v9424_v29, %v9426_v18  ;;  %v2077_v25 = vpop.f32.mrf.mxu1 }
 0x550   :  { %v2057_v39 = vadd.f32 %v2056_v46, %v2038_v24  ;;  %v9442_v29 = vpop.permute.xlu2 %2295  ;;  %v9454_v4 = vpop.permute.xlu1 %2291 }
 0x551   :  { %v2111_v37 = vadd.f32 %v2110_v38, %v2092_v11  ;;  %v1945_v43 = vadd.f32 %v9428_v45, %v1926_v33 }
 0x552   :  { %v2129_v28 = vadd.f32 %v2128_v60, %v2057_v39 }
 0x553   :  { %v2125_v58 = vadd.f32 %v2124_v55, %v2111_v37  ;;  %v2133_v14 = vadd.f32 %v2002_v35, %v1945_v43 }
 0x555   :  { %2126 = vadd.xlane.f32.xlu0 %v2125_v58 }
 0x556   :  { %v2113_v59 = vpop.f32.mrf.mxu3  ;;  %v2094_v19 = vpop.f32.mrf.mxu2 }
 0x557   :  { %v2095_v30 = vadd.f32 %v2094_v19, %v2075_v3  ;;  %v2058_v8 = vpop.f32.mrf.mxu0 }
 0x558   :  { %v2059_v56 = vadd.f32 %v2058_v8, %v2040_v26  ;;  %v9444_v18 = vpop.permute.xlu2 %2287  ;;  %v9480_v54 = vpop.permute.xlu1 %2283 }
 0x559   :  { %v2114_v42 = vadd.f32 %v2113_v59, %v2095_v30 }
 0x55a   :  { %v2134_v50 = vadd.f32 %v2133_v14, %v2059_v56 }
 0x55b   :  { %v2130_v36 = vadd.f32 %v2129_v28, %v2114_v42 }
 0x55d   :  { %2131 = vadd.xlane.f32.xlu0 %v2130_v36 }
 0x55e   :  { %v2096_v0 = vpop.f32.mrf.mxu2  ;;  %v2115_v27 = vpop.f32.mrf.mxu3 }
 0x55f   :  { %v2097_v53 = vadd.f32 %v2096_v0, %v2077_v25 }
 0x561   :  { %v2116_v2 = vadd.f32 %v2115_v27, %v2097_v53 }
 0x563   :  { %v2135_v5 = vadd.f32 %v2134_v50, %v2116_v2 }
 0x565   :  { %2136 = vadd.xlane.f32.xlu1 %v2135_v5 }
 0x5c0   :  { %v2122_v61 = vpop.xlane.xlu2 %2121 }
 0x5c1   :  { %v2138_v40 = vmul.f32 %v2122_v61, %v15307_v16 }
 0x5c3   :  { %v9447_v7 = vsub.f32 %v1938_v23, %v2138_v40  ;;  %v9450_v45 = vsub.f32 %v9430_v15, %v2138_v40  ;;  %v9452_v38 = vsub.f32 %v2052_v49, %v2138_v40  ;;  %v9456_v51 = vsub.f32 %v2109_v63, %v2138_v40 }
 0x5c5   :  { %v2158_v52 = vmul.f32 %v9447_v7, %v9447_v7  ;;  %v2159_v11 = vmul.f32 %v9450_v45, %v9450_v45  ;;  %v2160_v46 = vmul.f32 %v9452_v38, %v9452_v38  ;;  %v2161_v49 = vmul.f32 %v9456_v51, %v9456_v51 }
 0x5c7   :  { %v2174_v23 = vadd.f32 %v2159_v11, %v2158_v52 }
 0x5c8   :  { %v2127_v44 = vpop.xlane.xlu0 %2126 }
 0x5c9   :  { %v2139_v15 = vmul.f32 %v2127_v44, %v15307_v16  ;;  %v2175_v55 = vadd.f32 %v2174_v23, %v2160_v46 }
 0x5cb   :  { %v9467_v3 = vsub.f32 %v1940_v31, %v2139_v15  ;;  %v9470_v63 = vsub.f32 %v9433_v20, %v2139_v15  ;;  %v9472_v24 = vsub.f32 %v2054_v41, %v2139_v15  ;;  %v2176_v58 = vadd.f32 %v2175_v55, %v2161_v49 }
 0x5cc   :  { %v9474_v59 = vsub.f32 %v2111_v37, %v2139_v15 }
 0x5cd   :  { %2177 = vadd.xlane.f32.xlu0 %v2176_v58  ;;  %v2162_v19 = vmul.f32 %v9467_v3, %v9467_v3  ;;  %v2163_v60 = vmul.f32 %v9470_v63, %v9470_v63  ;;  %v2164_v31 = vmul.f32 %v9472_v24, %v9472_v24 }
 0x5ce   :  { %v2165_v33 = vmul.f32 %v9474_v59, %v9474_v59 }
 0x5cf   :  { %v2179_v30 = vadd.f32 %v2163_v60, %v2162_v19 }
 0x5d0   :  { %v2132_v20 = vpop.xlane.xlu0 %2131 }
 0x5d1   :  { %v2140_v41 = vmul.f32 %v2132_v20, %v15307_v16  ;;  %v2180_v37 = vadd.f32 %v2179_v30, %v2164_v31 }
 0x5d3   :  { %v9487_v28 = vsub.f32 %v1943_v10, %v2140_v41  ;;  %v9490_v8 = vsub.f32 %v9436_v1, %v2140_v41  ;;  %v9492_v26 = vsub.f32 %v2057_v39, %v2140_v41  ;;  %v2181_v36 = vadd.f32 %v2180_v37, %v2165_v33 }
 0x5d4   :  { %v9494_v25 = vsub.f32 %v2114_v42, %v2140_v41 }
 0x5d5   :  { %2182 = vadd.xlane.f32.xlu1 %v2181_v36  ;;  %v2166_v0 = vmul.f32 %v9487_v28, %v9487_v28  ;;  %v2167_v27 = vmul.f32 %v9490_v8, %v9490_v8  ;;  %v2168_v14 = vmul.f32 %v9492_v26, %v9492_v26 }
 0x5d6   :  { %v2169_v39 = vmul.f32 %v9494_v25, %v9494_v25 }
 0x5d7   :  { %v2184_v10 = vadd.f32 %v2167_v27, %v2166_v0 }
 0x5d8   :  { %v2137_v53 = vpop.xlane.xlu1 %2136 }
 0x5d9   :  { %v2141_v1 = vmul.f32 %v2137_v53, %v15307_v16  ;;  %v2185_v50 = vadd.f32 %v2184_v10, %v2168_v14 }
 0x5db   :  { %v9505_v5 = vsub.f32 %v1945_v43, %v2141_v1  ;;  %v9507_v42 = vsub.f32 %v2002_v35, %v2141_v1  ;;  %v9509_v61 = vsub.f32 %v2059_v56, %v2141_v1  ;;  %v2186_v40 = vadd.f32 %v2185_v50, %v2169_v39 }
 0x5dc   :  { %v9511_v52 = vsub.f32 %v2116_v2, %v2141_v1  ;;  %v7208_v1 = vld [vmem:[%s14415_s10] sm:$0xff] }
 0x5dd   :  { %2187 = vadd.xlane.f32.xlu1 %v2186_v40  ;;  %v2170_v11 = vmul.f32 %v9505_v5, %v9505_v5  ;;  %v2171_v46 = vmul.f32 %v9507_v42, %v9507_v42  ;;  %v2172_v23 = vmul.f32 %v9509_v61, %v9509_v61 }
 0x5de   :  { %v2173_v35 = vmul.f32 %v9511_v52, %v9511_v52 }
 0x5df   :  { %v2189_v44 = vadd.f32 %v2171_v46, %v2170_v11 }
 0x5e1   :  { %v2190_v43 = vadd.f32 %v2189_v44, %v2172_v23 }
 0x5e3   :  { %v2191_v56 = vadd.f32 %v2190_v43, %v2173_v35 }
 0x5e5   :  { %2192 = vadd.xlane.f32.xlu2 %v2191_v56 }
 0x640   :  { %v2178_v15 = vpop.xlane.xlu0 %2177 }
 0x641   :  { %v2194_v2 = vmul.f32 %v2178_v15, %v15307_v16 }
 0x643   :  { %v2198_v49 = vadd.f32 1e-05, %v2194_v2  ;;  %v7209_v2 = vld [vmem:[%s14415_s10 + $0x8] sm:$0xff] }
 0x645   :  { %7172 = vrsqrt.f32 %v2198_v49  ;;  %vm2208_vm11 = vweird.f32 %v2198_v49 }
 0x648   :  { %v2183_v55 = vpop.xlane.xlu1 %2182 }
 0x649   :  { %v2195_v58 = vmul.f32 %v2183_v55, %v15307_v16 }
 0x64b   :  { %v7173_v19 = vpop.eup %7172  ;;  %v2199_v60 = vadd.f32 1e-05, %v2195_v58 }
 0x64c   :  { %v2203_v31 = vmul.f32 %v7173_v19, %v2198_v49  ;;  %vm2209_vm7 = vweird.f32 %v7173_v19 }
 0x64d   :  { %7174 = vrsqrt.f32 %v2199_v60  ;;  %vm2210_vm12 = vmor %vm2208_vm11, %vm2209_vm7  ;;  %vm2218_vm14 = vweird.f32 %v2199_v60 }
 0x64e   :  { %v2204_v30 = vmul.f32 %v7173_v19, %v2203_v31 }
 0x650   :  { %v2205_v20 = vmul.f32 0.5, %v2204_v30  ;;  %v2188_v41 = vpop.xlane.xlu1 %2187 }
 0x651   :  { %v2196_v33 = vmul.f32 %v2188_v41, %v15307_v16  ;;  %v7210_v41 = vld [vmem:[%s14415_s10 + $0x10] sm:$0xff] }
 0x652   :  { %v2206_v37 = vsub.f32 1.5, %v2205_v20 }
 0x653   :  { %v7175_v36 = vpop.eup %7174  ;;  %v2200_v0 = vadd.f32 1e-05, %v2196_v33 }
 0x654   :  { %v2207_v27 = vmul.f32 %v7173_v19, %v2206_v37  ;;  %v2213_v14 = vmul.f32 %v7175_v36, %v2199_v60  ;;  %vm2219_vm13 = vweird.f32 %v7175_v36 }
 0x655   :  { %7176 = vrsqrt.f32 %v2200_v0  ;;  %vm2220_vm15 = vmor %vm2218_vm14, %vm2219_vm13  ;;  %vm2228_vm7 = vweird.f32 %v2200_v0 }
 0x656   :  { %v2214_v10 = vmul.f32 %v7175_v36, %v2213_v14  ;;  %v2211_v53 = vsel %vm2210_vm12, %v7173_v19, %v2207_v27 }
 0x657   :  { %v2242_v39 = vmul.f32 %v7208_v1, %v2211_v53 }
 0x658   :  { %v2215_v50 = vmul.f32 0.5, %v2214_v10  ;;  %v2193_v40 = vpop.xlane.xlu2 %2192 }
 0x659   :  { %v2197_v11 = vmul.f32 %v2193_v40, %v15307_v16  ;;  %2248 = vperm.xlu1 %7149, %v2242_v39  }
 0x65a   :  { %v2216_v46 = vsub.f32 1.5, %v2215_v50 }
 0x65b   :  { %v7177_v23 = vpop.eup %7176  ;;  %v2201_v44 = vadd.f32 1e-05, %v2197_v11 }
 0x65c   :  { %v2217_v35 = vmul.f32 %v7175_v36, %v2216_v46  ;;  %v2223_v43 = vmul.f32 %v7177_v23, %v2200_v0  ;;  %vm2229_vm4 = vweird.f32 %v7177_v23  ;;  %v7211_v0 = vld [vmem:[%s14415_s10 + $0x18] sm:$0xff] }
 0x65d   :  { %7178 = vrsqrt.f32 %v2201_v44  ;;  %vm2230_vm11 = vmor %vm2228_vm7, %vm2229_vm4  ;;  %vm2238_vm13 = vweird.f32 %v2201_v44 }
 0x65e   :  { %v2224_v56 = vmul.f32 %v7177_v23, %v2223_v43  ;;  %v2221_v15 = vsel %vm2220_vm15, %v7175_v36, %v2217_v35 }
 0x65f   :  { %v2243_v49 = vmul.f32 %v7209_v2, %v2221_v15 }
 0x660   :  { %v2225_v55 = vmul.f32 0.5, %v2224_v56 }
 0x661   :  { %2253 = vperm.xlu2 %7150, %v2243_v49  }
 0x662   :  { %v2226_v58 = vsub.f32 1.5, %v2225_v55 }
 0x663   :  { %v7179_v19 = vpop.eup %7178 }
 0x664   :  { %v2227_v31 = vmul.f32 %v7177_v23, %v2226_v58  ;;  %v2233_v30 = vmul.f32 %v7179_v19, %v2201_v44  ;;  %vm2239_vm12 = vweird.f32 %v7179_v19 }
 0x665   :  { %vm2240_vm14 = vmor %vm2238_vm13, %vm2239_vm12 }
 0x666   :  { %v2234_v60 = vmul.f32 %v7179_v19, %v2233_v30  ;;  %v2231_v20 = vsel %vm2230_vm11, %v7177_v23, %v2227_v31 }
 0x667   :  { %v2244_v33 = vmul.f32 %v7210_v41, %v2231_v20 }
 0x668   :  { %v2235_v37 = vmul.f32 0.5, %v2234_v60 }
 0x669   :  { %2258 = vperm.xlu2 %7150, %v2244_v33  }
 0x66a   :  { %v2236_v36 = vsub.f32 1.5, %v2235_v37 }
 0x66c   :  { %v2237_v27 = vmul.f32 %v7179_v19, %v2236_v36 }
 0x66e   :  { %v2241_v14 = vsel %vm2240_vm14, %v7179_v19, %v2237_v27 }
 0x66f   :  { %v2245_v10 = vmul.f32 %v7211_v0, %v2241_v14 }
 0x671   :  { %2263 = vperm.xlu0 %7151, %v2245_v10  }
 0x6cb   :  { %v2249_v53 = vpop.permute.xlu1 %2248 }
 0x6cc   :  { %v2266_v1 = vmul.f32 %v2249_v53, %v9447_v7  ;;  %v2267_v39 = vmul.f32 %v2249_v53, %v9450_v45  ;;  %v2269_v50 = vmul.f32 %v2249_v53, %v9456_v51  ;;  %v2268_v23 = vmul.f32 %v2249_v53, %v9452_v38  ;;  %v2254_v38 = vpop.permute.xlu2 %2253 }
 0x6cd   :  { %v2273_v56 = vmul.f32 %v2254_v38, %v9474_v59  ;;  %v2272_v49 = vmul.f32 %v2254_v38, %v9472_v24  ;;  %v2271_v59 = vmul.f32 %v2254_v38, %v9470_v63 }
 0x6ce   :  { %v2298_v40 = vadd.f32 %v9480_v54, %v2266_v1  ;;  %v2299_v11 = vadd.f32 %v9480_v54, %v2267_v39  ;;  %v2301_v46 = vadd.f32 %v9480_v54, %v2269_v50  ;;  %v2300_v45 = vadd.f32 %v9480_v54, %v2268_v23 }
 0x6cf   :  { %v2270_v54 = vmul.f32 %v2254_v38, %v9467_v3  ;;  %v2305_v2 = vadd.f32 %v9444_v18, %v2273_v56  ;;  %v2304_v58 = vadd.f32 %v9444_v18, %v2272_v49  ;;  %v2303_v19 = vadd.f32 %v9444_v18, %v2271_v59 }
 0x6d0   :  { %v2314_v44 = vmax.f32 %v2298_v40, 0.0  ;;  %v2315_v35 = vmax.f32 %v2299_v11, 0.0  ;;  %v9544_v43 = vmax.f32 %v2301_v46, 0.0  ;;  %v9553_v51 = vmax.f32 %v2300_v45, 0.0 }
 0x6d1   :  { %v2302_v15 = vadd.f32 %v9444_v18, %v2270_v54  ;;  %v9596_v3 = vmax.f32 %v2305_v2, 0.0  ;;  %v9607_v24 = vmax.f32 %v2304_v58, 0.0  ;;  %v9609_v31 = vmax.f32 %v2303_v19, 0.0 }
 0x6d2   :  { %2578 = vrot.lane.b32.xlu1 %v9544_v43, %s7239_s27  ;;  %2562 = vrot.lane.b32.xlu2 %v2315_v35, %s7239_s27  ;;  %v9549_v7 = vpack.c.bf16 %v2315_v35, %v2314_v44 }
 0x6d3   :  { %2554 = vrot.lane.b32.xlu0 %v2314_v44, %s7239_s27  ;;  %v9594_v55 = vmax.f32 %v2302_v15, 0.0 }
 0x6d4   :  { %15308 = vst [vmem:[#allocation69_spill] sm:$0xff] %v9549_v7  ;;  %v2259_v63 = vpop.permute.xlu2 %2258 }
 0x6d5   :  { %v2275_v1 = vmul.f32 %v2259_v63, %v9490_v8  ;;  %v2277_v46 = vmul.f32 %v2259_v63, %v9494_v25  ;;  %v2274_v23 = vmul.f32 %v2259_v63, %v9487_v28  ;;  %v2276_v28 = vmul.f32 %v2259_v63, %v9492_v26 }
 0x6d7   :  { %v2307_v39 = vadd.f32 %v9454_v4, %v2275_v1  ;;  %v2306_v25 = vadd.f32 %v9454_v4, %v2274_v23  ;;  %v2308_v15 = vadd.f32 %v9454_v4, %v2276_v28 }
 0x6d9   :  { %v9694_v8 = vmax.f32 %v2307_v39, 0.0  ;;  %v9714_v56 = vmax.f32 %v2306_v25, 0.0  ;;  %v9729_v59 = vmax.f32 %v2308_v15, 0.0 }
 0x6da   :  { %2794 = vrot.lane.b32.xlu1 %v9553_v51, %s7242_s30  ;;  %2786 = vrot.lane.b32.xlu2 %v2315_v35, %s7242_s30 }
 0x6db   :  { %2778 = vrot.lane.b32.xlu0 %v2314_v44, %s7242_s30 }
 0x6e2   :  { %2506 = vrot.lane.b32.xlu1 %v9544_v43, %s7238_s26  ;;  %2490 = vrot.lane.b32.xlu2 %v2315_v35, %s7238_s26 }
 0x6e3   :  { %2482 = vrot.lane.b32.xlu0 %v2314_v44, %s7238_s26  ;;  %v9641_v20 = vpop.permute.xlu0 %2263 }
 0x6e4   :  { %v2279_v47 = vmul.f32 %v9641_v20, %v9507_v42 }
 0x6ea   :  { %2722 = vrot.lane.b32.xlu1 %v9553_v51, %s7241_s29  ;;  %2714 = vrot.lane.b32.xlu2 %v2315_v35, %s7241_s29 }
 0x6eb   :  { %2706 = vrot.lane.b32.xlu0 %v2314_v44, %s7241_s29 }
 0x6f2   :  { %2434 = vrot.lane.b32.xlu1 %v9544_v43, %s7237_s0  ;;  %2418 = vrot.lane.b32.xlu2 %v2315_v35, %s7237_s0 }
 0x6f3   :  { %2410 = vrot.lane.b32.xlu0 %v2314_v44, %s7237_s0 }
 0x6fa   :  { %2650 = vrot.lane.b32.xlu1 %v9553_v51, %s7240_s28  ;;  %2642 = vrot.lane.b32.xlu2 %v2315_v35, %s7240_s28 }
 0x6fb   :  { %2634 = vrot.lane.b32.xlu0 %v2314_v44, %s7240_s28 }
 0x702   :  { %2866 = vrot.lane.b32.xlu1 %v9553_v51, %s7243_s13  ;;  %2858 = vrot.lane.b32.xlu2 %v2315_v35, %s7243_s13 }
 0x703   :  { %2850 = vrot.lane.b32.xlu0 %v2314_v44, %s7243_s13 }
 0x70a   :  { %2362 = vrot.lane.b32.xlu1 %v9544_v43, %s7236_s25  ;;  %2346 = vrot.lane.b32.xlu2 %v2315_v35, %s7236_s25 }
 0x70b   :  { %2338 = vrot.lane.b32.xlu0 %v2314_v44, %s7236_s25  ;;  %v2309_v44 = vadd.f32 %v9454_v4, %v2277_v46 }
 0x70d   :  { %v9712_v54 = vmax.f32 %v2309_v44, 0.0 }
 0x712   :  { %2570 = vrot.lane.b32.xlu1 %v9553_v51, %s7239_s27  ;;  %2730 = vrot.lane.b32.xlu2 %v9544_v43, %s7241_s29 }
 0x713   :  { %2802 = vrot.lane.b32.xlu0 %v9544_v43, %s7242_s30 }
 0x71a   :  { %2580 = vrot.lane.b32.xlu2 %v9596_v3, %s7239_s27  ;;  %2556 = vrot.lane.b32.xlu1 %v9594_v55, %s7239_s27 }
 0x71b   :  { %2498 = vrot.lane.b32.xlu0 %v9553_v51, %s7238_s26 }
 0x722   :  { %2796 = vrot.lane.b32.xlu2 %v9607_v24, %s7242_s30  ;;  %2780 = vrot.lane.b32.xlu1 %v9594_v55, %s7242_s30 }
 0x723   :  { %2564 = vrot.lane.b32.xlu0 %v9609_v31, %s7239_s27 }
 0x72a   :  { %2508 = vrot.lane.b32.xlu2 %v9596_v3, %s7238_s26  ;;  %2484 = vrot.lane.b32.xlu1 %v9594_v55, %s7238_s26 }
 0x72b   :  { %2788 = vrot.lane.b32.xlu0 %v9609_v31, %s7242_s30 }
 0x72c   :  { %v9623_v18 = vpop.permute.xlu2 %2562 }
 0x732   :  { %2724 = vrot.lane.b32.xlu2 %v9607_v24, %s7241_s29  ;;  %2708 = vrot.lane.b32.xlu1 %v9594_v55, %s7241_s29 }
 0x733   :  { %2492 = vrot.lane.b32.xlu0 %v9609_v31, %s7238_s26 }
 0x734   :  { %v9631_v30 = vpop.permute.xlu2 %2786 }
 0x73a   :  { %2436 = vrot.lane.b32.xlu2 %v9596_v3, %s7237_s0  ;;  %2412 = vrot.lane.b32.xlu1 %v9594_v55, %s7237_s0 }
 0x73b   :  { %2716 = vrot.lane.b32.xlu0 %v9609_v31, %s7241_s29 }
 0x73c   :  { %v9639_v60 = vpop.permute.xlu2 %2490 }
 0x73d   :  { %15309 = vst [vmem:[#allocation102_spill] sm:$0xff] %v9639_v60 }
 0x742   :  { %2652 = vrot.lane.b32.xlu2 %v9607_v24, %s7240_s28  ;;  %2636 = vrot.lane.b32.xlu1 %v9594_v55, %s7240_s28 }
 0x743   :  { %2420 = vrot.lane.b32.xlu0 %v9609_v31, %s7237_s0 }
 0x744   :  { %v9649_v41 = vpop.permute.xlu1 %2578  ;;  %v9651_v33 = vpop.permute.xlu2 %2714 }
 0x745   :  { %v9653_v37 = vpop.permute.xlu0 %2554 }
 0x74a   :  { %2868 = vrot.lane.b32.xlu2 %v9607_v24, %s7243_s13  ;;  %2852 = vrot.lane.b32.xlu1 %v9594_v55, %s7243_s13 }
 0x74b   :  { %2644 = vrot.lane.b32.xlu0 %v9609_v31, %s7240_s28 }
 0x74c   :  { %v9661_v36 = vpop.permute.xlu1 %2794  ;;  %v9663_v27 = vpop.permute.xlu2 %2418 }
 0x74d   :  { %15310 = vst [vmem:[#allocation106_spill] sm:$0xff] %v9663_v27  ;;  %v9665_v14 = vpop.permute.xlu0 %2778 }
 0x752   :  { %2364 = vrot.lane.b32.xlu2 %v9596_v3, %s7236_s25  ;;  %2340 = vrot.lane.b32.xlu1 %v9594_v55, %s7236_s25 }
 0x753   :  { %2860 = vrot.lane.b32.xlu0 %v9609_v31, %s7243_s13 }
 0x754   :  { %v9673_v0 = vpop.permute.xlu1 %2506  ;;  %v9675_v10 = vpop.permute.xlu2 %2642 }
 0x755   :  { %15311 = vst [vmem:[#allocation96_spill] sm:$0xff] %v9673_v0  ;;  %v9677_v53 = vpop.permute.xlu0 %2482 }
 0x756   :  { %v2522_v6 = vsel %vm164_vm2, %v9677_v53, %v9639_v60  ;;  %v15379_v60 = vld [vmem:[#allocation23_spill] sm:$0xff] }
 0x75a   :  { %2572 = vrot.lane.b32.xlu2 %v9607_v24, %s7239_s27  ;;  %2804 = vrot.lane.b32.xlu1 %v9596_v3, %s7242_s30 }
 0x75b   :  { %2348 = vrot.lane.b32.xlu0 %v9609_v31, %s7236_s25 }
 0x75c   :  { %v9687_v50 = vpop.permute.xlu1 %2722  ;;  %v9689_v40 = vpop.permute.xlu2 %2858 }
 0x75d   :  { %v9691_v11 = vpop.permute.xlu0 %2706 }
 0x762   :  { %2500 = vrot.lane.b32.xlu1 %v9607_v24, %s7238_s26  ;;  %2566 = vrot.lane.b32.xlu2 %v9694_v8, %s7239_s27 }
 0x763   :  { %2732 = vrot.lane.b32.xlu0 %v9596_v3, %s7241_s29 }
 0x764   :  { %v9704_v35 = vpop.permute.xlu1 %2434  ;;  %v9706_v45 = vpop.permute.xlu2 %2346 }
 0x765   :  { %15312 = vst [vmem:[#allocation84_spill] sm:$0xff] %v9704_v35  ;;  %v9709_v38 = vpop.permute.xlu0 %2410 }
 0x766   :  { %15313 = vst [vmem:[#allocation86_spill] sm:$0xff] %v9706_v45 }
 0x76a   :  { %2582 = vrot.lane.b32.xlu1 %v9712_v54, %s7239_s27  ;;  %2790 = vrot.lane.b32.xlu2 %v9694_v8, %s7242_s30 }
 0x76b   :  { %2558 = vrot.lane.b32.xlu0 %v9714_v56, %s7239_s27 }
 0x76c   :  { %v9723_v2 = vpop.permute.xlu1 %2650  ;;  %v9725_v49 = vpop.permute.xlu2 %2730 }
 0x76d   :  { %15314 = vst [vmem:[#allocation105_spill] sm:$0xff] %v9723_v2  ;;  %v9727_v26 = vpop.permute.xlu0 %2634 }
 0x76e   :  { %15315 = vst [vmem:[#allocation109_spill] sm:$0xff] %v9727_v26 }
 0x772   :  { %2798 = vrot.lane.b32.xlu1 %v9729_v59, %s7242_s30  ;;  %2494 = vrot.lane.b32.xlu2 %v9694_v8, %s7238_s26 }
 0x773   :  { %2782 = vrot.lane.b32.xlu0 %v9714_v56, %s7242_s30 }
 0x774   :  { %v9737_v58 = vpop.permute.xlu1 %2866  ;;  %v9739_v4 = vpop.permute.xlu2 %2580 }
 0x775   :  { %15316 = vst [vmem:[#allocation98_spill] sm:$0xff] %v9737_v58  ;;  %v9741_v19 = vpop.permute.xlu0 %2850 }
 0x776   :  { %15317 = vst [vmem:[#allocation89_spill] sm:$0xff] %v9741_v19 }
 0x77a   :  { %2510 = vrot.lane.b32.xlu1 %v9712_v54, %s7238_s26  ;;  %2718 = vrot.lane.b32.xlu2 %v9694_v8, %s7241_s29 }
 0x77b   :  { %2486 = vrot.lane.b32.xlu0 %v9714_v56, %s7238_s26 }
 0x77c   :  { %v9749_v63 = vpop.permute.xlu1 %2362  ;;  %v9751_v1 = vpop.permute.xlu2 %2796 }
 0x77d   :  { %15318 = vst [vmem:[#allocation91_spill] sm:$0xff] %v9749_v63  ;;  %v9753_v39 = vpop.permute.xlu0 %2338 }
 0x77e   :  { %15319 = vst [vmem:[#allocation78_spill] sm:$0xff] %v9751_v1 }
 0x782   :  { %2726 = vrot.lane.b32.xlu1 %v9729_v59, %s7241_s29  ;;  %2422 = vrot.lane.b32.xlu2 %v9694_v8, %s7237_s0 }
 0x783   :  { %2710 = vrot.lane.b32.xlu0 %v9714_v56, %s7241_s29 }
 0x784   :  { %v9761_v46 = vpop.permute.xlu1 %2570  ;;  %v9763_v23 = vpop.permute.xlu2 %2508 }
 0x785   :  { %15320 = vst [vmem:[#allocation130_spill] sm:$0xff] %v9763_v23  ;;  %v9765_v44 = vpop.permute.xlu0 %2802 }
 0x78a   :  { %2438 = vrot.lane.b32.xlu1 %v9712_v54, %s7237_s0  ;;  %2646 = vrot.lane.b32.xlu2 %v9694_v8, %s7240_s28 }
 0x78b   :  { %2414 = vrot.lane.b32.xlu0 %v9714_v56, %s7237_s0 }
 0x78c   :  { %v9773_v25 = vpop.permute.xlu1 %2556  ;;  %v9775_v28 = vpop.permute.xlu2 %2724 }
 0x78d   :  { %15321 = vst [vmem:[#allocation108_spill] sm:$0xff] %v9775_v28  ;;  %v9777_v15 = vpop.permute.xlu0 %2498 }
 0x78e   :  { %15322 = vst [vmem:[#allocation112_spill] sm:$0xff] %v9777_v15 }
 0x792   :  { %2654 = vrot.lane.b32.xlu1 %v9729_v59, %s7240_s28  ;;  %2862 = vrot.lane.b32.xlu2 %v9694_v8, %s7243_s13 }
 0x793   :  { %2638 = vrot.lane.b32.xlu0 %v9714_v56, %s7240_s28 }
 0x794   :  { %v9785_v16 = vpop.permute.xlu1 %2780  ;;  %v9787_v9 = vpop.permute.xlu2 %2436 }
 0x795   :  { %15323 = vst [vmem:[#allocation101_spill] sm:$0xff] %v9785_v16  ;;  %v9789_v12 = vpop.permute.xlu0 %2564 }
 0x796   :  { %15324 = vst [vmem:[#allocation64_spill] sm:$0xff] %v9787_v9 }
 0x79a   :  { %2870 = vrot.lane.b32.xlu1 %v9729_v59, %s7243_s13  ;;  %2350 = vrot.lane.b32.xlu2 %v9694_v8, %s7236_s25 }
 0x79b   :  { %2854 = vrot.lane.b32.xlu0 %v9714_v56, %s7243_s13 }
 0x79c   :  { %v9797_v57 = vpop.permute.xlu1 %2484  ;;  %v9799_v62 = vpop.permute.xlu2 %2652 }
 0x79d   :  { %15325 = vst [vmem:[#allocation95_spill] sm:$0xff] %v9797_v57  ;;  %v9801_v13 = vpop.permute.xlu0 %2788 }
 0x79e   :  { %15326 = vst [vmem:[#allocation76_spill] sm:$0xff] %v9799_v62  ;;  %v2281_v62 = vmul.f32 %v9641_v20, %v9511_v52  ;;  %v2278_v52 = vmul.f32 %v9641_v20, %v9505_v5 }
 0x79f   :  { %15327 = vst [vmem:[#allocation66_spill] sm:$0xff] %v9801_v13 }
 0x7a0   :  { %v2313_v23 = vadd.f32 %v9442_v29, %v2281_v62  ;;  %v2310_v62 = vadd.f32 %v9442_v29, %v2278_v52 }
 0x7a2   :  { %2366 = vrot.lane.b32.xlu1 %v9712_v54, %s7236_s25  ;;  %2806 = vrot.lane.b32.xlu2 %v9712_v54, %s7242_s30  ;;  %v9834_v32 = vmax.f32 %v2313_v23, 0.0  ;;  %v2311_v23 = vadd.f32 %v9442_v29, %v2279_v47 }
 0x7a3   :  { %2342 = vrot.lane.b32.xlu0 %v9714_v56, %s7236_s25 }
 0x7a4   :  { %v9809_v34 = vpop.permute.xlu1 %2708  ;;  %v9811_v9 = vpop.permute.xlu2 %2868 }
 0x7a5   :  { %15328 = vst [vmem:[#allocation110_spill] sm:$0xff] %v9809_v34  ;;  %v9813_v28 = vpop.permute.xlu0 %2492 }
 0x7a6   :  { %15329 = vst [vmem:[#allocation111_spill] sm:$0xff] %v9811_v9 }
 0x7a7   :  { %15330 = vst [vmem:[#allocation129_spill] sm:$0xff] %v9813_v28  ;;  %v2280_v28 = vmul.f32 %v9641_v20, %v9509_v61  ;;  %v9853_v20 = vmax.f32 %v2310_v62, 0.0 }
 0x7a9   :  { %v2312_v5 = vadd.f32 %v9442_v29, %v2280_v28 }
 0x7aa   :  { %2734 = vrot.lane.b32.xlu1 %v9712_v54, %s7241_s29  ;;  %2502 = vrot.lane.b32.xlu2 %v9729_v59, %s7238_s26 }
 0x7ab   :  { %2574 = vrot.lane.b32.xlu0 %v9729_v59, %s7239_s27 }
 0x7ac   :  { %v9824_v57 = vpop.permute.xlu1 %2412  ;;  %v9826_v34 = vpop.permute.xlu2 %2364 }
 0x7ad   :  { %15331 = vst [vmem:[#allocation132_spill] sm:$0xff] %v9824_v57  ;;  %v9828_v9 = vpop.permute.xlu0 %2716  ;;  %v9855_v57 = vmax.f32 %v2312_v5, 0.0 }
 0x7ae   :  { %15332 = vst [vmem:[#allocation65_spill] sm:$0xff] %v9826_v34 }
 0x7af   :  { %15333 = vst [vmem:[#allocation87_spill] sm:$0xff] %v9828_v9  ;;  %v9857_v9 = vmax.f32 %v2311_v23, 0.0 }
 0x7b2   :  { %2430 = vrot.lane.b32.xlu1 %v9729_v59, %s7237_s0  ;;  %2584 = vrot.lane.b32.xlu2 %v9834_v32, %s7239_s27 }
 0x7b3   :  { %2662 = vrot.lane.b32.xlu0 %v9712_v54, %s7240_s28 }
 0x7b4   :  { %v9846_v34 = vpop.permute.xlu1 %2636  ;;  %v9848_v61 = vpop.permute.xlu2 %2572 }
 0x7b5   :  { %15334 = vst [vmem:[#allocation125_spill] sm:$0xff] %v9846_v34  ;;  %v9851_v42 = vpop.permute.xlu0 %2420 }
 0x7b6   :  { %15335 = vst [vmem:[#allocation94_spill] sm:$0xff] %v9848_v61 }
 0x7b7   :  { %15336 = vst [vmem:[#allocation119_spill] sm:$0xff] %v9851_v42 }
 0x7ba   :  { %2560 = vrot.lane.b32.xlu1 %v9853_v20, %s7239_s27  ;;  %2800 = vrot.lane.b32.xlu2 %v9855_v57, %s7242_s30 }
 0x7bb   :  { %2568 = vrot.lane.b32.xlu0 %v9857_v9, %s7239_s27 }
 0x7bc   :  { %v9865_v28 = vpop.permute.xlu1 %2852  ;;  %v9867_v47 = vpop.permute.xlu2 %2566 }
 0x7bd   :  { %15337 = vst [vmem:[#allocation118_spill] sm:$0xff] %v9865_v28  ;;  %v9869_v29 = vpop.permute.xlu0 %2644 }
 0x7be   :  { %15338 = vst [vmem:[#allocation90_spill] sm:$0xff] %v9867_v47 }
 0x7bf   :  { %15339 = vst [vmem:[#allocation100_spill] sm:$0xff] %v9869_v29 }
 0x7c2   :  { %2784 = vrot.lane.b32.xlu1 %v9853_v20, %s7242_s30  ;;  %2512 = vrot.lane.b32.xlu2 %v9834_v32, %s7238_s26 }
 0x7c3   :  { %2792 = vrot.lane.b32.xlu0 %v9857_v9, %s7242_s30 }
 0x7c4   :  { %v9877_v52 = vpop.permute.xlu1 %2340  ;;  %v9879_v62 = vpop.permute.xlu2 %2790 }
 0x7c5   :  { %15340 = vst [vmem:[#allocation113_spill] sm:$0xff] %v9877_v52  ;;  %v9881_v5 = vpop.permute.xlu0 %2860 }
 0x7c6   :  { %15341 = vst [vmem:[#allocation124_spill] sm:$0xff] %v9879_v62  ;;  %v10013_v62 = vpack.c.bf16 %v9609_v31, %v9594_v55  ;;  %v10033_v55 = vpack.c.bf16 %v9857_v9, %v9853_v20  ;;  %v15376_v31 = vld [vmem:[#allocation30_spill] sm:$0xff] }
 0x7c7   :  { %15342 = vst [vmem:[#allocation127_spill] sm:$0xff] %v9881_v5 }
 0x7c8   :  { %15372 = vst [vmem:[#allocation107_spill] sm:$0xff] %v10013_v62 }
 0x7c9   :  { %15375 = vst [vmem:[#allocation75_spill] sm:$0xff] %v10033_v55 }
 0x7ca   :  { %2488 = vrot.lane.b32.xlu1 %v9853_v20, %s7238_s26  ;;  %2728 = vrot.lane.b32.xlu2 %v9855_v57, %s7241_s29 }
 0x7cb   :  { %2496 = vrot.lane.b32.xlu0 %v9857_v9, %s7238_s26 }
 0x7cc   :  { %v9889_v23 = vpop.permute.xlu1 %2804  ;;  %v9891_v28 = vpop.permute.xlu2 %2494 }
 0x7cd   :  { %15343 = vst [vmem:[#allocation133_spill] sm:$0xff] %v9889_v23  ;;  %v9893_v34 = vpop.permute.xlu0 %2348 }
 0x7ce   :  { %15344 = vst [vmem:[#allocation121_spill] sm:$0xff] %v9891_v28 }
 0x7cf   :  { %15345 = vst [vmem:[#allocation67_spill] sm:$0xff] %v9893_v34 }
 0x7d2   :  { %2712 = vrot.lane.b32.xlu1 %v9853_v20, %s7241_s29  ;;  %2440 = vrot.lane.b32.xlu2 %v9834_v32, %s7237_s0 }
 0x7d3   :  { %2720 = vrot.lane.b32.xlu0 %v9857_v9, %s7241_s29 }
 0x7d4   :  { %v9901_v52 = vpop.permute.xlu1 %2500  ;;  %v9903_v5 = vpop.permute.xlu2 %2718 }
 0x7d5   :  { %15346 = vst [vmem:[#allocation54_spill] sm:$0xff] %v9901_v52  ;;  %v9905_v29 = vpop.permute.xlu0 %2732 }
 0x7d6   :  { %15347 = vst [vmem:[#allocation58_spill] sm:$0xff] %v9903_v5 }
 0x7d7   :  { %15348 = vst [vmem:[#allocation57_spill] sm:$0xff] %v9905_v29 }
 0x7da   :  { %2416 = vrot.lane.b32.xlu1 %v9853_v20, %s7237_s0  ;;  %2656 = vrot.lane.b32.xlu2 %v9855_v57, %s7240_s28 }
 0x7db   :  { %2424 = vrot.lane.b32.xlu0 %v9857_v9, %s7237_s0 }
 0x7dc   :  { %v9913_v34 = vpop.permute.xlu1 %2582  ;;  %v9915_v23 = vpop.permute.xlu2 %2422 }
 0x7dd   :  { %15349 = vst [vmem:[#allocation68_spill] sm:$0xff] %v9913_v34  ;;  %v9917_v42 = vpop.permute.xlu0 %2558 }
 0x7de   :  { %15350 = vst [vmem:[#allocation117_spill] sm:$0xff] %v9915_v23 }
 0x7e2   :  { %2640 = vrot.lane.b32.xlu1 %v9853_v20, %s7240_s28  ;;  %2872 = vrot.lane.b32.xlu2 %v9855_v57, %s7243_s13 }
 0x7e3   :  { %2648 = vrot.lane.b32.xlu0 %v9857_v9, %s7240_s28 }
 0x7e4   :  { %v9925_v29 = vpop.permute.xlu1 %2798  ;;  %v9927_v52 = vpop.permute.xlu2 %2646 }
 0x7e5   :  { %15351 = vst [vmem:[#allocation63_spill] sm:$0xff] %v9925_v29  ;;  %v9929_v5 = vpop.permute.xlu0 %2782  ;;  %v15377_v29 = vld [vmem:[#allocation31_spill] sm:$0xff] }
 0x7e6   :  { %15352 = vst [vmem:[#allocation77_spill] sm:$0xff] %v9927_v52 }
 0x7e7   :  { %15353 = vst [vmem:[#allocation81_spill] sm:$0xff] %v9929_v5 }
 0x7ea   :  { %2856 = vrot.lane.b32.xlu1 %v9853_v20, %s7243_s13  ;;  %2368 = vrot.lane.b32.xlu2 %v9834_v32, %s7236_s25 }
 0x7eb   :  { %2864 = vrot.lane.b32.xlu0 %v9857_v9, %s7243_s13 }
 0x7ec   :  { %v9937_v23 = vpop.permute.xlu1 %2510  ;;  %v9939_v61 = vpop.permute.xlu2 %2862 }
 0x7ed   :  { %15354 = vst [vmem:[#allocation53_spill] sm:$0xff] %v9937_v23  ;;  %v9941_v28 = vpop.permute.xlu0 %2486 }
 0x7ee   :  { %15355 = vst [vmem:[#allocation70_spill] sm:$0xff] %v9939_v61 }
 0x7ef   :  { %15356 = vst [vmem:[#allocation82_spill] sm:$0xff] %v9941_v28 }
 0x7f2   :  { %2344 = vrot.lane.b32.xlu1 %v9853_v20, %s7236_s25  ;;  %2426 = vrot.lane.b32.xlu2 %v9553_v51, %s7237_s0 }
 0x7f3   :  { %2352 = vrot.lane.b32.xlu0 %v9857_v9, %s7236_s25  ;;  %v2742_v9 = vsel %vm294_vm8, %v9651_v33, %v9687_v50 }
 0x7f4   :  { %v9949_v52 = vpop.permute.xlu1 %2726  ;;  %v9951_v15 = vpop.permute.xlu2 %2350 }
 0x7f5   :  { %15357 = vst [vmem:[#allocation72_spill] sm:$0xff] %v9949_v52  ;;  %v9953_v5 = vpop.permute.xlu0 %2710 }
 0x7f6   :  { %15358 = vst [vmem:[#allocation80_spill] sm:$0xff] %v9951_v15 }
 0x7f7   :  { %15359 = vst [vmem:[#allocation79_spill] sm:$0xff] %v9953_v5 }
 0x7fa   :  { %2576 = vrot.lane.b32.xlu1 %v9855_v57, %s7239_s27  ;;  %2736 = vrot.lane.b32.xlu2 %v9834_v32, %s7241_s29 }
 0x7fb   :  { %2808 = vrot.lane.b32.xlu0 %v9834_v32, %s7242_s30 }
 0x7fc   :  { %v9961_v61 = vpop.permute.xlu1 %2438  ;;  %v9963_v23 = vpop.permute.xlu2 %2806 }
 0x7fd   :  { %15360 = vst [vmem:[#allocation83_spill] sm:$0xff] %v9961_v61  ;;  %v9965_v28 = vpop.permute.xlu0 %2414 }
 0x7fe   :  { %15361 = vst [vmem:[#allocation71_spill] sm:$0xff] %v9963_v23 }
 0x7ff   :  { %15362 = vst [vmem:[#allocation59_spill] sm:$0xff] %v9965_v28 }
 0x802   :  { %2658 = vrot.lane.b32.xlu1 %v9544_v43, %s7240_s28  ;;  %2432 = vrot.lane.b32.xlu2 %v9855_v57, %s7237_s0 }
 0x803   :  { %2504 = vrot.lane.b32.xlu0 %v9855_v57, %s7238_s26 }
 0x804   :  { %v9973_v15 = vpop.permute.xlu1 %2654  ;;  %v9975_v5 = vpop.permute.xlu2 %2502 }
 0x805   :  { %15363 = vst [vmem:[#allocation73_spill] sm:$0xff] %v9973_v15  ;;  %v9977_v52 = vpop.permute.xlu0 %2638 }
 0x806   :  { %15364 = vst [vmem:[#allocation131_spill] sm:$0xff] %v9975_v5 }
 0x807   :  { %15365 = vst [vmem:[#allocation99_spill] sm:$0xff] %v9977_v52 }
 0x80a   :  { %2664 = vrot.lane.b32.xlu1 %v9834_v32, %s7240_s28  ;;  %2660 = vrot.lane.b32.xlu2 %v9596_v3, %s7240_s28 }
 0x80b   :  { %2428 = vrot.lane.b32.xlu0 %v9607_v24, %s7237_s0 }
 0x80c   :  { %v9985_v23 = vpop.permute.xlu1 %2870  ;;  %v9987_v61 = vpop.permute.xlu2 %2584 }
 0x80d   :  { %15366 = vst [vmem:[#allocation104_spill] sm:$0xff] %v9985_v23  ;;  %v9989_v28 = vpop.permute.xlu0 %2854  ;;  %v2594_v23 = vsel %vm203_vm3, %v9653_v37, %v9623_v18 }
 0x80e   :  { %15367 = vst [vmem:[#allocation115_spill] sm:$0xff] %v9987_v61  ;;  %v2603_v61 = vmul.f32 %v2594_v23, %v15377_v29  ;;  %v15382_v29 = vld [vmem:[#allocation33_spill] sm:$0xff] }
 0x80f   :  { %15368 = vst [vmem:[#allocation74_spill] sm:$0xff] %v9989_v28  ;;  %v2598_v28 = vsel %vm203_vm3, %v9649_v41, %v9653_v37  ;;  %v2818_v37 = vsel %vm333_vm10, %v9665_v14, %v9631_v30  ;;  %v2531_v20 = vmul.f32 %v2522_v6, %v15382_v29  ;;  %v2450_v6 = vsel %vm125_vm0, %v9709_v38, %v9663_v27 }
 0x810   :  { %v2826_v22 = vmul.f32 %v2818_v37, %v15379_v60 }
 0x812   :  { %2360 = vrot.lane.b32.xlu1 %v9855_v57, %s7236_s25  ;;  %2354 = vrot.lane.b32.xlu2 %v9553_v51, %s7236_s25 }
 0x813   :  { %2358 = vrot.lane.b32.xlu0 %v9729_v59, %s7236_s25 }
 0x814   :  { %v9997_v5 = vpop.permute.xlu1 %2366  ;;  %v9999_v52 = vpop.permute.xlu2 %2800 }
 0x815   :  { %15369 = vst [vmem:[#allocation56_spill] sm:$0xff] %v9997_v5  ;;  %v10009_v15 = vpop.permute.xlu0 %2342  ;;  %v10017_v5 = vpack.c.bf16 %v9596_v3, %v9607_v24 }
 0x816   :  { %15370 = vst [vmem:[#allocation62_spill] sm:$0xff] %v9999_v52  ;;  %v2814_v52 = vsel %vm333_vm10, %v9631_v30, %v9661_v36  ;;  %v2526_v30 = vsel %vm164_vm2, %v9673_v0, %v9677_v53  ;;  %v3090_v53 = vunpack.c.l.b16 %v9549_v7  ;;  %v10064_v0 = vpack.c.bf16 %v9712_v54, %v9729_v59 }
 0x817   :  { %15371 = vst [vmem:[#allocation93_spill] sm:$0xff] %v10009_v15  ;;  %v10029_v15 = vpack.c.bf16 %v9694_v8, %v9714_v56  ;;  %v2746_v8 = vsel %vm294_vm8, %v9691_v11, %v9651_v33  ;;  %v3094_v56 = vunpack.c.l.b16 %v10013_v62  ;;  %v15381_v33 = vld [vmem:[#allocation32_spill] sm:$0xff]  ;;  %v3102_v59 = vunpack.c.l.b16 %v10033_v55  ;;  %v15408_v55 = vld [vmem:[#allocation31_spill] sm:$0xff] }
 0x818   :  { %15373 = vst [vmem:[#allocation114_spill] sm:$0xff] %v10017_v5  ;;  %v2602_v5 = vmul.f32 %v2598_v28, %v15376_v31  ;;  %v15378_v28 = vld [vmem:[#allocation17_spill] sm:$0xff]  ;;  %v2530_v1 = vmul.f32 %v2526_v30, %v15381_v33  ;;  %v15384_v31 = vld [vmem:[#allocation26_spill] sm:$0xff] }
 0x819   :  { %15374 = vst [vmem:[#allocation85_spill] sm:$0xff] %v10029_v15  ;;  %v2827_v23 = vmul.f32 %v2814_v52, %v15378_v28  ;;  %v3098_v52 = vunpack.c.l.b16 %v10029_v15  ;;  %v15383_v28 = vld [vmem:[#allocation27_spill] sm:$0xff]  ;;  %v2754_v16 = vmul.f32 %v2746_v8, %v15384_v31  ;;  %v10101_v8 = vpack.c.b16 %v3094_v56, %v3090_v53 }
 0x81a   :  { %2878 = vrot.lane.b32.xlu1 %v9712_v54, %s7243_s13  ;;  %2880 = vrot.lane.b32.xlu2 %v9834_v32, %s7243_s13  ;;  %15380 = vst [vmem:[#allocation103_spill] sm:$0xff] %v10064_v0  ;;  %v10072_v62 = vpack.c.bf16 %v2603_v61, %v2602_v5  ;;  %v2755_v60 = vmul.f32 %v2742_v9, %v15383_v28 }
 0x81b   :  { %2356 = vrot.lane.b32.xlu0 %v9607_v24, %s7236_s25  ;;  %v2454_v24 = vsel %vm125_vm0, %v9704_v35, %v9709_v38  ;;  %v2738_v61 = vsel %vm294_vm8, %v9687_v50, %v9725_v49  ;;  %v2750_v5 = vsel %vm294_vm8, %v9725_v49, %v9691_v11  ;;  %v10099_v9 = vpack.c.bf16 %v2827_v23, %v2826_v22  ;;  %v15391_v49 = vld [vmem:[#allocation13_spill] sm:$0xff] }
 0x81c   :  { %v10076_v13 = vpop.permute.xlu1 %2734  ;;  %v10078_v54 = vpop.permute.xlu2 %2512  ;;  %15388 = vst [vmem:[#allocation126_spill] sm:$0xff] %v10101_v8  ;;  %v10106_v38 = vpack.c.bf16 %v9544_v43, %v9553_v51  ;;  %v10108_v0 = vpack.c.bf16 %v2531_v20, %v2530_v1  ;;  %v2670_v50 = vsel %vm255_vm5, %v9675_v10, %v9723_v2  ;;  %v2674_v22 = vsel %vm255_vm5, %v9727_v26, %v9675_v10  ;;  %v15392_v51 = vld [vmem:[#allocation16_spill] sm:$0xff] }
 0x81d   :  { %15385 = vst [vmem:[#allocation97_spill] sm:$0xff] %v10076_v13  ;;  %v10097_v30 = vpop.permute.xlu0 %2574  ;;  %v10120_v11 = vpack.c.bf16 %v9834_v32, %v9855_v57  ;;  %v2458_v56 = vmul.f32 %v2454_v24, %v15391_v49  ;;  %v2459_v23 = vmul.f32 %v2450_v6, %v15392_v51  ;;  %v2756_v1 = vmul.f32 %v2738_v61, %v15224_v21  ;;  %v15395_v32 = vld [vmem:[#allocation14_spill] sm:$0xff]  ;;  %v15413_v2 = vld [vmem:[#allocation24_spill] sm:$0xff] }
 0x81e   :  { %15386 = vst [vmem:[#allocation88_spill] sm:$0xff] %v10078_v54  ;;  %v2757_v20 = vmul.f32 %v2750_v5, %v15225_v17  ;;  %v10126_v53 = vpack.c.bf16 %v2755_v60, %v2754_v16  ;;  %v10129_v7 = vpack.c.b16 %v3102_v59, %v3098_v52  ;;  %v2682_v57 = vmul.f32 %v2674_v22, %v15395_v32 }
 0x81f   :  { %15387 = vst [vmem:[#allocation92_spill] sm:$0xff] %v10097_v30  ;;  %v2886_v16 = vsel %vm372_vm9, %v9689_v40, %v9737_v58  ;;  %v2890_v60 = vsel %vm372_vm9, %v9741_v19, %v9689_v40  ;;  %v10150_v59 = vpack.c.bf16 %v2459_v23, %v2458_v56  ;;  %v2378_v5 = vsel %vm86_vm1, %v9753_v39, %v9706_v45  ;;  %v15402_v19 = vld [vmem:[#allocation22_spill] sm:$0xff] }
 0x820   :  { %15389 = vst [vmem:[#allocation128_spill] sm:$0xff] %v10106_v38  ;;  %v15394_v38 = vld [vmem:[#allocation15_spill] sm:$0xff]  ;;  %v10152_v61 = vpack.c.bf16 %v2757_v20, %v2756_v1  ;;  %v2382_v40 = vsel %vm86_vm1, %v9749_v63, %v9753_v39  ;;  %v2590_v22 = vsel %vm203_vm3, %v9623_v18, %v9761_v46  ;;  %v15399_v39 = vld [vmem:[#allocation29_spill] sm:$0xff]  ;;  %v2586_v6 = vsel %vm203_vm3, %v9761_v46, %v9649_v41  ;;  %v15405_v46 = vld [vmem:[#allocation66_spill] sm:$0xff] }
 0x821   :  { %15390 = vst [vmem:[#allocation123_spill] sm:$0xff] %v10120_v11  ;;  %v2683_v15 = vmul.f32 %v2670_v50, %v15394_v38  ;;  %v2899_v52 = vmul.f32 %v2886_v16, %v15399_v39  ;;  %v15401_v18 = vld [vmem:[#allocation21_spill] sm:$0xff]  ;;  %v2387_v58 = vmul.f32 %v2378_v5, %v15402_v19  ;;  %v2596_v20 = vsel %vm203_vm3, %v9917_v42, %v9867_v47  ;;  %v15411_v63 = vld [vmem:[#allocation78_spill] sm:$0xff]  ;;  %v15419_v47 = vld [vmem:[#allocation124_spill] sm:$0xff] }
 0x822   :  { %15393 = vst [vmem:[#allocation51_spill] sm:$0xff] %v10129_v7  ;;  %2876 = vrot.lane.b32.xlu1 %v9596_v3, %s7243_s13  ;;  %v15400_v3 = vld [vmem:[#allocation28_spill] sm:$0xff]  ;;  %v2386_v37 = vmul.f32 %v2382_v40, %v15401_v18  ;;  %v15404_v40 = vld [vmem:[#allocation9_spill] sm:$0xff]  ;;  %v2810_v1 = vsel %vm333_vm10, %v9661_v36, %v9765_v44  ;;  %v2611_v45 = vmul.f32 %v2596_v20, %v15408_v55  ;;  %v15418_v7 = vld [vmem:[#allocation63_spill] sm:$0xff] }
 0x823   :  { %2874 = vrot.lane.b32.xlu0 %v9544_v43, %s7243_s13  ;;  %15396 = vst [vmem:[#allocation116_spill] sm:$0xff] %v10152_v61  ;;  %v10175_v10 = vpack.c.bf16 %v2683_v15, %v2682_v57  ;;  %v2898_v24 = vmul.f32 %v2890_v60, %v15400_v3  ;;  %v2600_v15 = vsel %vm203_vm3, %v9913_v34, %v9917_v42  ;;  %v15403_v57 = vld [vmem:[#allocation8_spill] sm:$0xff]  ;;  %v15406_v41 = vld [vmem:[#allocation101_spill] sm:$0xff]  ;;  %v15407_v60 = vld [vmem:[#allocation30_spill] sm:$0xff] }
 0x824   :  { %v10162_v50 = vpop.permute.xlu1 %2430  ;;  %v10164_v43 = vpop.permute.xlu2 %2728  ;;  %v2604_v16 = vmul.f32 %v2590_v22, %v15403_v57  ;;  %v2605_v5 = vmul.f32 %v2586_v6, %v15404_v40  ;;  %v2822_v42 = vsel %vm333_vm10, %v9765_v44, %v9665_v14  ;;  %v2595_v22 = vsel %vm203_vm3, %v9773_v25, %v9789_v12  ;;  %v15412_v61 = vld [vmem:[#allocation19_spill] sm:$0xff] }
 0x825   :  { %15397 = vst [vmem:[#allocation120_spill] sm:$0xff] %v10162_v50  ;;  %v10170_v56 = vpop.permute.xlu0 %2662  ;;  %v2599_v6 = vsel %vm203_vm3, %v9739_v4, %v9773_v25  ;;  %v2819_v36 = vsel %vm333_vm10, %v15406_v41, %v15405_v46  ;;  %v2610_v23 = vmul.f32 %v2600_v15, %v15407_v60  ;;  %v10220_v14 = vpack.c.bf16 %v2899_v52, %v2898_v24  ;;  %v15414_v52 = vld [vmem:[#allocation23_spill] sm:$0xff] }
 0x826   :  { %15398 = vst [vmem:[#allocation122_spill] sm:$0xff] %v10170_v56  ;;  %v10222_v44 = vpack.c.bf16 %v2387_v58, %v2386_v37  ;;  %v2815_v11 = vsel %vm333_vm10, %v15405_v46, %v15411_v63  ;;  %v2828_v26 = vmul.f32 %v2810_v1, %v15412_v61  ;;  %v2829_v27 = vmul.f32 %v2822_v42, %v15413_v2  ;;  %v15415_v46 = vld [vmem:[#allocation115_spill] sm:$0xff]  ;;  %v15417_v42 = vld [vmem:[#allocation17_spill] sm:$0xff] }
 0x827   :  { %15409 = vst [vmem:[#allocation55_spill] sm:$0xff] %v10220_v14  ;;  %v2607_v35 = vmul.f32 %v2595_v22, %v15408_v55  ;;  %v10235_v58 = vpack.c.bf16 %v2605_v5, %v2604_v16  ;;  %v2606_v37 = vmul.f32 %v2599_v6, %v15407_v60  ;;  %v2830_v20 = vmul.f32 %v2819_v36, %v15414_v52  ;;  %v15423_v6 = vld [vmem:[#allocation112_spill] sm:$0xff]  ;;  %v15425_v34 = vld [vmem:[#allocation7_spill] sm:$0xff] }
 0x828   :  { %15410 = vst [vmem:[#allocation60_spill] sm:$0xff] %v10222_v44  ;;  %v2831_v8 = vmul.f32 %v2815_v11, %v15417_v42  ;;  %v2622_v22 = vpack.c.bf16 %v2611_v45, %v2610_v23  ;;  %v2816_v45 = vsel %vm333_vm10, %v15419_v47, %v15418_v7  ;;  %v15420_v11 = vld [vmem:[#allocation81_spill] sm:$0xff] }
 0x829   :  { %v2820_v23 = vsel %vm333_vm10, %v15420_v11, %v15419_v47 }
 0x82c   :  { %v2561_v15 = vpop.permute.xlu1 %2560  ;;  %v10232_v56 = vpop.permute.xlu2 %2440 }
 0x82d   :  { %v2601_v25 = vsel %vm203_vm3, %v15415_v46, %v2561_v15  ;;  %v10242_v1 = vpop.permute.xlu0 %2568  ;;  %v2620_v46 = vpack.c.bf16 %v2607_v35, %v2606_v37  ;;  %v15424_v35 = vld [vmem:[#allocation102_spill] sm:$0xff] }
 0x82e   :  { %15416 = vst [vmem:[#allocation61_spill] sm:$0xff] %v10242_v1  ;;  %v2614_v50 = vmul.f32 %v2601_v25, %v15407_v60  ;;  %v2597_v16 = vsel %vm203_vm3, %v2561_v15, %v10242_v1  ;;  %v10262_v15 = vpack.c.bf16 %v2829_v27, %v2828_v26  ;;  %v2518_v37 = vsel %vm164_vm2, %v15424_v35, %v15423_v6  ;;  %v15430_v35 = vld [vmem:[#allocation130_spill] sm:$0xff] }
 0x82f   :  { %v2615_v5 = vmul.f32 %v2597_v16, %v15408_v55  ;;  %v15422_v16 = vld [vmem:[#allocation96_spill] sm:$0xff]  ;;  %v2844_v55 = vpack.c.bf16 %v2831_v8, %v2830_v20  ;;  %v3058_v60 = vunpack.c.l.b16 %v2622_v22  ;;  %v3059_v1 = vunpack.c.h.b16 %v2622_v22  ;;  %v15428_v20 = vld [vmem:[#allocation129_spill] sm:$0xff]  ;;  %v15429_v22 = vld [vmem:[#allocation95_spill] sm:$0xff] }
 0x830   :  { %15421 = vst [vmem:[#allocation52_spill] sm:$0xff] %v10262_v15  ;;  %v2514_v24 = vsel %vm164_vm2, %v15423_v6, %v15422_v16  ;;  %v2835_v25 = vmul.f32 %v2816_v45, %v15417_v42  ;;  %v2834_v27 = vmul.f32 %v2820_v23, %v15414_v52  ;;  %v2532_v13 = vmul.f32 %v2518_v37, %v15425_v34  ;;  %v15426_v16 = vld [vmem:[#allocation6_spill] sm:$0xff] }
 0x831   :  { %v2624_v36 = vpack.c.bf16 %v2615_v5, %v2614_v50  ;;  %v2533_v44 = vmul.f32 %v2514_v24, %v15426_v16  ;;  %v3054_v50 = vunpack.c.l.b16 %v2620_v46  ;;  %v2523_v5 = vsel %vm164_vm2, %v15429_v22, %v15428_v20  ;;  %v15431_v37 = vld [vmem:[#allocation62_spill] sm:$0xff] }
 0x832   :  { %v2527_v24 = vsel %vm164_vm2, %v15430_v35, %v15429_v22  ;;  %v3214_v21 = vunpack.c.l.b16 %v2844_v55  ;;  %v10296_v7 = vpack.c.bf16 %v2835_v25, %v2834_v27  ;;  %v15434_v22 = vld [vmem:[#allocation82_spill] sm:$0xff]  ;;  %v15436_v27 = vunpack.c.l.b16 %v10072_v62 }
 0x833   :  { %v3062_v26 = vunpack.c.l.b16 %v2624_v36  ;;  %v3063_v30 = vunpack.c.h.b16 %v2624_v36  ;;  %v3055_v36 = vunpack.c.h.b16 %v2620_v46  ;;  %v3215_v15 = vunpack.c.h.b16 %v2844_v55 }
 0x834   :  { %v10277_v17 = vpop.permute.xlu1 %2784  ;;  %v10279_v11 = vpop.permute.xlu2 %2656  ;;  %15432 = vst [vmem:[#allocation101_spill] sm:$0xff] %v10296_v7 }
 0x835   :  { %15427 = vst [vmem:[#allocation66_spill] sm:$0xff] %v10277_v17  ;;  %v2793_v6 = vpop.permute.xlu0 %2792  ;;  %v3070_v45 = vpack.c.b16 %v3062_v26, %v3058_v60  ;;  %v3071_v23 = vpack.c.b16 %v3063_v30, %v3059_v1  ;;  %v2535_v1 = vmul.f32 %v2523_v5, %v15382_v29  ;;  %v15433_v26 = vld [vmem:[#allocation121_spill] sm:$0xff]  ;;  %v15439_v5 = vld [vmem:[#allocation110_spill] sm:$0xff] }
 0x836   :  { %v2817_v47 = vsel %vm333_vm10, %v2793_v6, %v15431_v37  ;;  %v2821_v8 = vsel %vm333_vm10, %v10277_v17, %v2793_v6  ;;  %v2524_v37 = vsel %vm164_vm2, %v15434_v22, %v15433_v26  ;;  %v15435_v6 = vld [vmem:[#allocation53_spill] sm:$0xff]  ;;  %v10324_v26 = vpack.c.bf16 %v2533_v44, %v2532_v13 }
 0x837   :  { %v2838_v60 = vmul.f32 %v2821_v8, %v15414_v52  ;;  %v2839_v30 = vmul.f32 %v2817_v47, %v15417_v42  ;;  %3318 = vmatpush.bf16.msra.mxu0 %v3070_v45  ;;  %3375 = vmatpush.bf16.msra.mxu3 %v3071_v23  ;;  %v2528_v25 = vsel %vm164_vm2, %v15435_v6, %v15434_v22  ;;  %v15437_v47 = vld [vmem:[#allocation108_spill] sm:$0xff]  ;;  %v15438_v45 = vld [vmem:[#allocation87_spill] sm:$0xff]  ;;  %v15441_v52 = vunpack.c.h.b16 %v10072_v62 }
 0x838   :  { %v3066_v8 = vpack.c.b16 %v3054_v50, %v15436_v27  ;;  %v2743_v23 = vsel %vm294_vm8, %v15438_v45, %v15437_v47  ;;  %v2747_v46 = vsel %vm294_vm8, %v15439_v5, %v15438_v45  ;;  %v2534_v22 = vmul.f32 %v2527_v24, %v15381_v33  ;;  %v15445_v24 = vld [vmem:[#allocation119_spill] sm:$0xff] }
 0x839   :  { %v10320_v42 = vpack.c.bf16 %v2839_v30, %v2838_v60  ;;  %v3067_v17 = vpack.c.b16 %v3055_v36, %v15441_v52  ;;  %v15442_v50 = vunpack.c.l.b16 %v10099_v9  ;;  %v3218_v6 = vunpack.c.l.b16 %v10296_v7  ;;  %v15443_v52 = vld [vmem:[#allocation94_spill] sm:$0xff]  ;;  %v15446_v30 = vld [vmem:[#allocation132_spill] sm:$0xff]  ;;  %v15458_v7 = vld [vmem:[#allocation117_spill] sm:$0xff] }
 0x83a   :  { %v2538_v14 = vmul.f32 %v2528_v25, %v15381_v33  ;;  %v2539_v47 = vmul.f32 %v2524_v37, %v15382_v29  ;;  %v2548_v62 = vpack.c.bf16 %v2535_v1, %v2534_v22  ;;  %v2758_v13 = vmul.f32 %v2747_v46, %v15384_v31  ;;  %v15448_v25 = vld [vmem:[#allocation64_spill] sm:$0xff] }
 0x83b   :  { %15440 = vst [vmem:[#allocation78_spill] sm:$0xff] %v10320_v42  ;;  %v3226_v27 = vpack.c.b16 %v3214_v21, %v15442_v50  ;;  %v3222_v60 = vunpack.c.l.b16 %v10320_v42  ;;  %3319 = vmatpush.bf16.msra.mxu0 %v3066_v8  ;;  %3376 = vmatpush.bf16.msra.mxu3 %v3067_v17  ;;  %v2759_v44 = vmul.f32 %v2743_v23, %v15383_v28 }
 0x83c   :  { %v2587_v21 = vsel %vm203_vm3, %v15443_v52, %v9739_v4  ;;  %v2489_v55 = vpop.permute.xlu1 %2488  ;;  %v10339_v36 = vpop.permute.xlu2 %2872  ;;  %v2451_v37 = vsel %vm125_vm0, %v15446_v30, %v15445_v24  ;;  %v2591_v17 = vsel %vm203_vm3, %v9789_v12, %v15443_v52  ;;  %v2455_v8 = vsel %vm125_vm0, %v15448_v25, %v15446_v30  ;;  %v15451_v52 = vld [vmem:[#allocation72_spill] sm:$0xff]  ;;  %v15452_v24 = vld [vmem:[#allocation58_spill] sm:$0xff] }
 0x83d   :  { %15444 = vst [vmem:[#allocation124_spill] sm:$0xff] %v10339_v36  ;;  %v2529_v46 = vsel %vm164_vm2, %v10078_v54, %v2489_v55  ;;  %v10352_v1 = vpop.permute.xlu0 %2496  ;;  %v3230_v4 = vpack.c.b16 %v3222_v60, %v3218_v6  ;;  %v15449_v12 = vunpack.c.h.b16 %v10099_v9  ;;  %v2550_v50 = vpack.c.bf16 %v2539_v47, %v2538_v14  ;;  %v15453_v60 = vld [vmem:[#allocation79_spill] sm:$0xff] }
 0x83e   :  { %15447 = vst [vmem:[#allocation96_spill] sm:$0xff] %v10352_v1  ;;  %v2542_v45 = vmul.f32 %v2529_v46, %v15381_v33  ;;  %v2525_v23 = vsel %vm164_vm2, %v2489_v55, %v10352_v1  ;;  %v2744_v6 = vsel %vm294_vm8, %v15452_v24, %v15451_v52  ;;  %v2748_v30 = vsel %vm294_vm8, %v15453_v60, %v15452_v24  ;;  %v15455_v1 = vld [vmem:[#allocation100_spill] sm:$0xff] }
 0x83f   :  { %v10364_v22 = vpack.c.b16 %v3215_v15, %v15449_v12  ;;  %v2543_v46 = vmul.f32 %v2525_v23, %v15382_v29  ;;  %3337 = vmatpush.bf16.msra.mxu1 %v3230_v4  ;;  %v2772_v33 = vpack.c.bf16 %v2759_v44, %v2758_v13  ;;  %v2463_v55 = vmul.f32 %v2451_v37, %v15392_v51  ;;  %v15456_v23 = vld [vmem:[#allocation125_spill] sm:$0xff] }
 0x840   :  { %v2608_v9 = vmul.f32 %v2591_v17, %v15403_v57  ;;  %v2609_v14 = vmul.f32 %v2587_v21, %v15404_v40  ;;  %v2462_v15 = vmul.f32 %v2455_v8, %v15391_v49  ;;  %v3014_v12 = vunpack.c.l.b16 %v2548_v62 }
 0x841   :  { %15450 = vst [vmem:[#allocation112_spill] sm:$0xff] %v10364_v22  ;;  %v2552_v47 = vpack.c.bf16 %v2543_v46, %v2542_v45  ;;  %v3015_v25 = vunpack.c.h.b16 %v2548_v62  ;;  %v15454_v22 = vld [vmem:[#allocation76_spill] sm:$0xff]  ;;  %v2675_v13 = vsel %vm255_vm5, %v15456_v23, %v15455_v1  ;;  %v2763_v44 = vmul.f32 %v2744_v6, %v15383_v28 }
 0x842   :  { %v2671_v24 = vsel %vm255_vm5, %v15455_v1, %v15454_v22  ;;  %v2762_v37 = vmul.f32 %v2748_v30, %v15384_v31  ;;  %v3018_v21 = vunpack.c.l.b16 %v2550_v50  ;;  %v3019_v4 = vunpack.c.h.b16 %v2550_v50  ;;  %v15459_v50 = vld [vmem:[#allocation59_spill] sm:$0xff] }
 0x843   :  { %3338 = vmatpush.bf16.msra.mxu1 %v3226_v27  ;;  %v3022_v17 = vunpack.c.l.b16 %v2552_v47  ;;  %v3023_v8 = vunpack.c.h.b16 %v2552_v47  ;;  %v2476_v62 = vpack.c.bf16 %v2463_v55, %v2462_v15  ;;  %v2621_v45 = vpack.c.bf16 %v2609_v14, %v2608_v9  ;;  %v15460_v14 = vld [vmem:[#allocation83_spill] sm:$0xff] }
 0x844   :  { %v10389_v46 = vpop.permute.xlu1 %2712  ;;  %v3174_v29 = vunpack.c.l.b16 %v2772_v33  ;;  %v3175_v22 = vunpack.c.h.b16 %v2772_v33  ;;  %v2686_v54 = vmul.f32 %v2675_v13, %v15395_v32  ;;  %v2687_v42 = vmul.f32 %v2671_v24, %v15394_v38  ;;  %v10393_v23 = vpop.permute.xlu2 %2368 }
 0x845   :  { %15457 = vst [vmem:[#allocation102_spill] sm:$0xff] %v10389_v46  ;;  %v2721_v1 = vpop.permute.xlu0 %2720  ;;  %v3030_v6 = vpack.c.b16 %v3022_v17, %v3018_v21  ;;  %v3031_v30 = vpack.c.b16 %v3023_v8, %v3019_v4  ;;  %v10395_v27 = vpack.c.bf16 %v2763_v44, %v2762_v37  ;;  %v2452_v55 = vsel %vm125_vm0, %v15459_v50, %v15458_v7 }
 0x846   :  { %v2745_v33 = vsel %vm294_vm8, %v2721_v1, %v10164_v43  ;;  %v2749_v9 = vsel %vm294_vm8, %v10389_v46, %v2721_v1  ;;  %v2456_v15 = vsel %vm125_vm0, %v15460_v14, %v15459_v50  ;;  %v15461_v44 = vunpack.c.l.b16 %v10108_v0  ;;  %v15463_v1 = vld [vmem:[#allocation111_spill] sm:$0xff] }
 0x847   :  { %v2766_v47 = vmul.f32 %v2749_v9, %v15384_v31  ;;  %v2767_v24 = vmul.f32 %v2745_v33, %v15383_v28  ;;  %3320 = vmatpush.bf16.msra.mxu0 %v3030_v6  ;;  %3377 = vmatpush.bf16.msra.mxu3 %v3031_v30  ;;  %v15462_v21 = vunpack.c.h.b16 %v10108_v0  ;;  %v3056_v4 = vunpack.c.l.b16 %v2621_v45  ;;  %v15464_v46 = vld [vmem:[#allocation127_spill] sm:$0xff]  ;;  %v15465_v9 = vld [vmem:[#allocation118_spill] sm:$0xff] }
 0x848   :  { %v3026_v37 = vpack.c.b16 %v3014_v12, %v15461_v44  ;;  %v3057_v8 = vunpack.c.h.b16 %v2621_v45  ;;  %v2887_v50 = vsel %vm372_vm9, %v15464_v46, %v15463_v1  ;;  %v2891_v6 = vsel %vm372_vm9, %v15465_v9, %v15464_v46 }
 0x849   :  { %v3027_v17 = vpack.c.b16 %v3015_v25, %v15462_v21  ;;  %v10426_v30 = vpack.c.bf16 %v2767_v24, %v2766_v47  ;;  %v2974_v33 = vunpack.c.l.b16 %v2476_v62  ;;  %v2466_v12 = vmul.f32 %v2456_v15, %v15391_v49 }
 0x84a   :  { %v2467_v0 = vmul.f32 %v2452_v55, %v15392_v51  ;;  %v15466_v25 = vunpack.c.l.b16 %v10126_v53  ;;  %v15467_v44 = vunpack.c.h.b16 %v10126_v53  ;;  %v10436_v13 = vpack.c.bf16 %v2687_v42, %v2686_v54  ;;  %v15471_v42 = vld [vmem:[#allocation133_spill] sm:$0xff] }
 0x84b   :  { %3321 = vmatpush.bf16.msra.mxu0 %v3026_v37  ;;  %3378 = vmatpush.bf16.msra.mxu3 %v3027_v17  ;;  %v3178_v46 = vunpack.c.l.b16 %v10395_v27  ;;  %v3182_v47 = vunpack.c.l.b16 %v10426_v30  ;;  %v2975_v24 = vunpack.c.h.b16 %v2476_v62  ;;  %v2902_v15 = vmul.f32 %v2891_v6, %v15400_v3 }
 0x84c   :  { %v3186_v45 = vpack.c.b16 %v3174_v29, %v15466_v25  ;;  %v10434_v21 = vpack.c.b16 %v3175_v22, %v15467_v44  ;;  %v2903_v55 = vmul.f32 %v2887_v50, %v15399_v39  ;;  %v2417_v28 = vpop.permute.xlu1 %2416  ;;  %v15469_v29 = vunpack.c.l.b16 %v10235_v58 }
 0x84d   :  { %v15470_v53 = vunpack.c.h.b16 %v10235_v58  ;;  %v2811_v22 = vsel %vm333_vm10, %v15411_v63, %v15471_v42  ;;  %v2457_v62 = vsel %vm125_vm0, %v10232_v56, %v2417_v28  ;;  %v10457_v37 = vpop.permute.xlu0 %2424  ;;  %v3190_v17 = vpack.c.b16 %v3182_v47, %v3178_v46 }
 0x84e   :  { %15468 = vst [vmem:[#allocation129_spill] sm:$0xff] %v10434_v21  ;;  %v10444_v25 = vpack.c.b16 %v3056_v4, %v15469_v29  ;;  %v15472_v50 = vunpack.c.l.b16 %v10150_v59  ;;  %v2823_v58 = vsel %vm333_vm10, %v15471_v42, %v15406_v41  ;;  %v2470_v6 = vmul.f32 %v2457_v62, %v15391_v49  ;;  %v10472_v29 = vpop.permute.xlu2 %2426  ;;  %v15476_v62 = vld [vmem:[#allocation73_spill] sm:$0xff]  ;;  %v15504_v21 = vld [vmem:[#allocation131_spill] sm:$0xff] }
 0x84f   :  { %v10448_v54 = vpack.c.b16 %v3057_v8, %v15470_v53  ;;  %v2478_v8 = vpack.c.bf16 %v2467_v0, %v2466_v12  ;;  %v2453_v63 = vsel %vm125_vm0, %v2417_v28, %v10457_v37  ;;  %3339 = vmatpush.bf16.msra.mxu1 %v3190_v17  ;;  %v3134_v47 = vunpack.c.l.b16 %v10436_v13  ;;  %v15474_v12 = vld [vmem:[#allocation113_spill] sm:$0xff]  ;;  %v15478_v17 = vld [vmem:[#allocation99_spill] sm:$0xff] }
 0x850   :  { %v10461_v4 = vpack.c.b16 %v2974_v33, %v15472_v50  ;;  %v2471_v44 = vmul.f32 %v2453_v63, %v15392_v51  ;;  %v15473_v33 = vunpack.c.h.b16 %v10150_v59  ;;  %v3135_v53 = vunpack.c.h.b16 %v10436_v13  ;;  %v15475_v0 = vld [vmem:[#allocation65_spill] sm:$0xff] }
 0x851   :  { %v2916_v41 = vpack.c.bf16 %v2903_v55, %v2902_v15  ;;  %v2383_v42 = vsel %vm86_vm1, %v15475_v0, %v15474_v12  ;;  %v15477_v28 = vld [vmem:[#allocation77_spill] sm:$0xff]  ;;  %v2832_v15 = vmul.f32 %v2811_v22, %v15412_v61  ;;  %v2833_v55 = vmul.f32 %v2823_v58, %v15413_v2 }
 0x852   :  { %v2987_v46 = vpack.c.b16 %v2975_v24, %v15473_v33  ;;  %v2672_v50 = vsel %vm255_vm5, %v15477_v28, %v15476_v62  ;;  %v2676_v59 = vsel %vm255_vm5, %v15478_v17, %v15477_v28  ;;  %v15479_v24 = vld [vmem:[#allocation67_spill] sm:$0xff]  ;;  %v2480_v63 = vpack.c.bf16 %v2471_v44, %v2470_v6  ;;  %v15480_v33 = vld [vmem:[#allocation54_spill] sm:$0xff] }
 0x853   :  { %v2379_v13 = vsel %vm86_vm1, %v15474_v12, %v15479_v24  ;;  %v2515_v51 = vsel %vm164_vm2, %v15480_v33, %v15430_v35  ;;  %v2519_v28 = vsel %vm164_vm2, %v15428_v20, %v15480_v33  ;;  %v2978_v49 = vunpack.c.l.b16 %v2478_v8  ;;  %3340 = vmatpush.bf16.msra.mxu1 %v3186_v45 }
 0x854   :  { %v2979_v31 = vunpack.c.h.b16 %v2478_v8  ;;  %v2691_v9 = vmul.f32 %v2672_v50, %v15394_v38  ;;  %v2690_v12 = vmul.f32 %v2676_v59, %v15395_v32  ;;  %v2982_v22 = vunpack.c.l.b16 %v2480_v63  ;;  %v10508_v1 = vpop.permute.xlu1 %2640 }
 0x855   :  { %v2983_v58 = vunpack.c.h.b16 %v2480_v63  ;;  %v2390_v6 = vmul.f32 %v2383_v42, %v15401_v18  ;;  %v2391_v44 = vmul.f32 %v2379_v13, %v15402_v19  ;;  %15481 = vst [vmem:[#allocation95_spill] sm:$0xff] %v10508_v1  ;;  %v15482_v35 = vunpack.c.l.b16 %v10175_v10  ;;  %v2649_v33 = vpop.permute.xlu0 %2648 }
 0x856   :  { %v3254_v20 = vunpack.c.l.b16 %v2916_v41  ;;  %v2536_v8 = vmul.f32 %v2519_v28, %v15425_v34  ;;  %v2537_v50 = vmul.f32 %v2515_v51, %v15426_v16  ;;  %v2990_v59 = vpack.c.b16 %v2982_v22, %v2978_v49 }
 0x857   :  { %v10512_v24 = vpack.c.b16 %v3134_v47, %v15482_v35  ;;  %v2991_v45 = vpack.c.b16 %v2983_v58, %v2979_v31  ;;  %v10516_v0 = vpack.c.bf16 %v2833_v55, %v2832_v15  ;;  %v2673_v42 = vsel %vm255_vm5, %v2649_v33, %v10279_v11  ;;  %v15485_v15 = vld [vmem:[#allocation104_spill] sm:$0xff]  ;;  %v15486_v55 = vld [vmem:[#allocation70_spill] sm:$0xff]  ;;  %v15490_v35 = vld [vmem:[#allocation57_spill] sm:$0xff] }
 0x858   :  { %v2677_v13 = vsel %vm255_vm5, %v10508_v1, %v2649_v33  ;;  %v3255_v47 = vunpack.c.h.b16 %v2916_v41  ;;  %v10524_v63 = vpack.c.bf16 %v2691_v9, %v2690_v12  ;;  %v2695_v51 = vmul.f32 %v2673_v42, %v15394_v38  ;;  %3322 = vmatpush.bf16.msra.mxu0 %v2990_v59  ;;  %v15487_v58 = vld [vmem:[#allocation74_spill] sm:$0xff]  ;;  %v15491_v33 = vld [vmem:[#allocation108_spill] sm:$0xff]  ;;  %v15492_v42 = vld [vmem:[#allocation55_spill] sm:$0xff] }
 0x859   :  { %15483 = vst [vmem:[#allocation130_spill] sm:$0xff] %v10516_v0  ;;  %v2694_v28 = vmul.f32 %v2677_v13, %v15395_v32  ;;  %3379 = vmatpush.bf16.msra.mxu3 %v2991_v45  ;;  %v2404_v49 = vpack.c.bf16 %v2391_v44, %v2390_v6  ;;  %v2888_v22 = vsel %vm372_vm9, %v15486_v55, %v15485_v15  ;;  %v15488_v41 = vunpack.c.h.b16 %v10175_v10  ;;  %v10549_v45 = vpop.permute.xlu2 %2736  ;;  %v15499_v38 = vld [vmem:[#allocation20_spill] sm:$0xff]  ;;  %v15501_v15 = vld [vmem:[#allocation93_spill] sm:$0xff] }
 0x85a   :  { %15484 = vst [vmem:[#allocation82_spill] sm:$0xff] %v10524_v63  ;;  %v2892_v9 = vsel %vm372_vm9, %v15487_v58, %v15486_v55  ;;  %v2739_v59 = vsel %vm294_vm8, %v15491_v33, %v15490_v35  ;;  %v10545_v6 = vpack.c.bf16 %v2537_v50, %v2536_v8  ;;  %v15493_v13 = vunpack.c.l.b16 %v15492_v42  ;;  %v15495_v55 = vld [vmem:[#allocation63_spill] sm:$0xff]  ;;  %v15497_v33 = vld [vmem:[#allocation12_spill] sm:$0xff] }
 0x85b   :  { %v10539_v12 = vpack.c.b16 %v3135_v53, %v15488_v41  ;;  %v10547_v44 = vpack.c.bf16 %v2695_v51, %v2694_v28  ;;  %v2751_v10 = vsel %vm294_vm8, %v15490_v35, %v15439_v5  ;;  %v15494_v53 = vld [vmem:[#allocation71_spill] sm:$0xff]  ;;  %v15496_v8 = vunpack.c.h.b16 %v15492_v42  ;;  %v15500_v58 = vld [vmem:[#allocation80_spill] sm:$0xff] }
 0x85c   :  { %v10553_v31 = vpack.c.b16 %v3254_v20, %v15493_v13  ;;  %v2812_v41 = vsel %vm333_vm10, %v15495_v55, %v15494_v53  ;;  %v3216_v28 = vunpack.c.l.b16 %v10516_v0  ;;  %v2907_v51 = vmul.f32 %v2888_v22, %v15399_v39  ;;  %3323 = vmatpush.bf16.msra.mxu0 %v10461_v4  ;;  %v15498_v55 = vld [vmem:[#allocation81_spill] sm:$0xff]  ;;  %v10578_v42 = vpop.permute.xlu1 %2856 }
 0x85d   :  { %15489 = vst [vmem:[#allocation87_spill] sm:$0xff] %v10539_v12  ;;  %v10565_v50 = vpack.c.b16 %v3255_v47, %v15496_v8  ;;  %v2906_v20 = vmul.f32 %v2892_v9, %v15400_v3  ;;  %3380 = vmatpush.bf16.msra.mxu3 %v2987_v46  ;;  %v3138_v5 = vunpack.c.l.b16 %v10524_v63  ;;  %v3142_v35 = vunpack.c.l.b16 %v10547_v44  ;;  %v2865_v46 = vpop.permute.xlu0 %2864  ;;  %v15502_v12 = vld [vmem:[#allocation56_spill] sm:$0xff] }
 0x85e   :  { %v2760_v13 = vmul.f32 %v2739_v59, %v15497_v33  ;;  %v2824_v47 = vsel %vm333_vm10, %v15494_v53, %v15498_v55  ;;  %v2934_v8 = vunpack.c.l.b16 %v2404_v49  ;;  %v2935_v22 = vunpack.c.h.b16 %v2404_v49 }
 0x85f   :  { %v2761_v9 = vmul.f32 %v2751_v10, %v15499_v38  ;;  %v2836_v4 = vmul.f32 %v2812_v41, %v15412_v61  ;;  %v3150_v32 = vpack.c.b16 %v3142_v35, %v3138_v5  ;;  %v3016_v0 = vunpack.c.l.b16 %v10545_v6 }
 0x860   :  { %v2380_v59 = vsel %vm86_vm1, %v15501_v15, %v15500_v58  ;;  %v2384_v53 = vsel %vm86_vm1, %v15502_v12, %v15501_v15  ;;  %v2889_v49 = vsel %vm372_vm9, %v2865_v46, %v10339_v36  ;;  %v2893_v10 = vsel %vm372_vm9, %v10578_v42, %v2865_v46  ;;  %v15503_v58 = vld [vmem:[#allocation53_spill] sm:$0xff]  ;;  %v15505_v12 = vld [vmem:[#allocation60_spill] sm:$0xff] }
 0x861   :  { %v2837_v41 = vmul.f32 %v2824_v47, %v15413_v2  ;;  %v2918_v5 = vpack.c.bf16 %v2907_v51, %v2906_v20  ;;  %v2910_v35 = vmul.f32 %v2893_v10, %v15400_v3  ;;  %v2911_v55 = vmul.f32 %v2889_v49, %v15399_v39  ;;  %3341 = vmatpush.bf16.msra.mxu1 %v3150_v32  ;;  %v15508_v47 = vld [vmem:[#allocation52_spill] sm:$0xff]  ;;  %v15510_v49 = vld [vmem:[#allocation121_spill] sm:$0xff] }
 0x862   :  { %v2516_v15 = vsel %vm164_vm2, %v15504_v21, %v15503_v58  ;;  %v15506_v63 = vunpack.c.l.b16 %v15505_v12  ;;  %v15507_v1 = vunpack.c.h.b16 %v15505_v12  ;;  %v15509_v51 = vunpack.c.l.b16 %v15508_v47 }
 0x863   :  { %v2520_v32 = vsel %vm164_vm2, %v15510_v49, %v15504_v21  ;;  %v2394_v10 = vmul.f32 %v2384_v53, %v15401_v18  ;;  %v2395_v58 = vmul.f32 %v2380_v59, %v15402_v19  ;;  %v2920_v39 = vpack.c.bf16 %v2911_v55, %v2910_v35  ;;  %v10639_v59 = vpop.permute.xlu2 %2432  ;;  %v15513_v53 = vld [vmem:[#allocation68_spill] sm:$0xff] }
 0x864   :  { %v10606_v36 = vpack.c.b16 %v2934_v8, %v15506_v63  ;;  %v10610_v46 = vpack.c.b16 %v2935_v22, %v15507_v1  ;;  %v10614_v20 = vpack.c.b16 %v3216_v28, %v15509_v51  ;;  %v10622_v63 = vpack.c.bf16 %v2761_v9, %v2760_v13  ;;  %v15511_v8 = vld [vmem:[#allocation97_spill] sm:$0xff]  ;;  %v15514_v35 = vld [vmem:[#allocation92_spill] sm:$0xff] }
 0x865   :  { %v2740_v1 = vsel %vm294_vm8, %v15451_v52, %v15511_v8  ;;  %v15512_v12 = vunpack.c.l.b16 %v10324_v26  ;;  %v10633_v51 = vpack.c.bf16 %v2837_v41, %v2836_v4  ;;  %v3258_v21 = vunpack.c.l.b16 %v2918_v5  ;;  %3342 = vmatpush.bf16.msra.mxu1 %v10512_v24  ;;  %v15515_v41 = vld [vmem:[#allocation90_spill] sm:$0xff] }
 0x866   :  { %v2752_v13 = vsel %vm294_vm8, %v15511_v8, %v15453_v60  ;;  %v3262_v9 = vunpack.c.l.b16 %v2920_v39  ;;  %v2540_v52 = vmul.f32 %v2520_v32, %v15425_v34  ;;  %v2588_v4 = vsel %vm203_vm3, %v15514_v35, %v15513_v53  ;;  %v2345_v60 = vpop.permute.xlu1 %2344 }
 0x867   :  { %v10630_v28 = vpack.c.b16 %v3016_v0, %v15512_v12  ;;  %v2541_v0 = vmul.f32 %v2516_v15, %v15426_v16  ;;  %v2592_v55 = vsel %vm203_vm3, %v15515_v41, %v15514_v35  ;;  %v10652_v49 = vpack.c.bf16 %v2395_v58, %v2394_v10  ;;  %v10658_v15 = vpop.permute.xlu0 %2352  ;;  %v15516_v41 = vld [vmem:[#allocation51_spill] sm:$0xff] }
 0x868   :  { %v2764_v8 = vmul.f32 %v2740_v1, %v15497_v33  ;;  %v2385_v24 = vsel %vm86_vm1, %v10393_v23, %v2345_v60  ;;  %v3270_v32 = vpack.c.b16 %v3262_v9, %v3258_v21  ;;  %v2765_v12 = vmul.f32 %v2752_v13, %v15499_v38  ;;  %v7112_v21 = vld [vmem:[%s14417_s4 + $0x4] sm:$0xf] }
 0x869   :  { %v3263_v53 = vunpack.c.h.b16 %v2920_v39  ;;  %v2398_v22 = vmul.f32 %v2385_v24, %v15401_v18  ;;  %v2381_v35 = vsel %vm86_vm1, %v2345_v60, %v10658_v15  ;;  %v2612_v10 = vmul.f32 %v2592_v55, %v15403_v57  ;;  %3343 = vmatpush.bf16.msra.mxu1 %v15516_v41  ;;  %v6992_v39 = vld [vmem:[%s14417_s4 + $0xc] sm:$0xf0]  ;;  %v15517_v9 = vld [vmem:[#allocation101_spill] sm:$0xff]  ;;  %v6998_v24 = vld [vmem:[%s14417_s4 + $0x8] sm:$0xf] }
 0x86a   :  { %v2613_v58 = vmul.f32 %v2588_v4, %v15404_v40  ;;  %v2399_v1 = vmul.f32 %v2381_v35, %v15402_v19  ;;  %3362 = vmatpush.bf16.msra.mxu2 %v3270_v32  ;;  %v3259_v4 = vunpack.c.h.b16 %v2918_v5  ;;  %v7114_v32 = vld [vmem:[%s14417_s4 + $0x10] sm:$0xf0]  ;;  %v10685_v41 = vpack.c.bf16 %v2541_v0, %v2540_v52  ;;  %v15518_v19 = vld [vmem:[#allocation120_spill] sm:$0xff] }
 0x86b   :  { %v2448_v13 = vsel %vm125_vm0, %v15458_v7, %v15518_v19  ;;  %v2938_v5 = vunpack.c.l.b16 %v10652_v49  ;;  %v10692_v55 = vpack.c.bf16 %v2765_v12, %v2764_v8  ;;  %v2741_v18 = vsel %vm294_vm8, %v10164_v43, %v10549_v45  ;;  %v15519_v7 = vld [vmem:[#allocation126_spill] sm:$0xff]  ;;  %v15520_v12 = vld [vmem:[#allocation3_spill] sm:$0xff] }
 0x86c   :  { %v2408_v60 = vpack.c.bf16 %v2399_v1, %v2398_v22  ;;  %v3271_v3 = vpack.c.b16 %v3263_v53, %v3259_v4  ;;  %v10698_v47 = vor.u32 %v7112_v21, %v6992_v39  ;;  %v2623_v52 = vpack.c.bf16 %v2613_v58, %v2612_v10  ;;  %v15521_v43 = vld [vmem:[#allocation102_spill] sm:$0xff]  ;;  %v15523_v39 = vld [vmem:[#allocation115_spill] sm:$0xff]  ;;  %v15524_v4 = vld [vmem:[#allocation61_spill] sm:$0xff] }
 0x86d   :  { %v2444_v0 = vsel %vm125_vm0, %v15518_v19, %v15460_v14  ;;  %3344 = vmatpush.bf16.msra.mxu1 %v15519_v7  ;;  %v2939_v22 = vunpack.c.h.b16 %v10652_v49  ;;  %v10707_v8 = vor.u32 %v7114_v32, %v6998_v24  ;;  %v2468_v1 = vmul.f32 %v2448_v13, %v15520_v12  ;;  %v15522_v19 = vld [vmem:[#allocation122_spill] sm:$0xff]  ;;  %v10719_v49 = vpop.permute.xlu2 %2660 }
 0x86e   :  { %3363 = vmatpush.bf16.msra.mxu2 %v10553_v31  ;;  %v2753_v53 = vsel %vm294_vm8, %v10549_v45, %v15521_v43  ;;  %v2577_v10 = vpop.permute.xlu1 %2576  ;;  %v2942_v58 = vunpack.c.l.b16 %v2408_v60  ;;  %v2943_v21 = vunpack.c.h.b16 %v2408_v60  ;;  %v2668_v14 = vsel %vm255_vm5, %v15476_v62, %v15522_v19  ;;  %v15525_v32 = vld [vmem:[#allocation62_spill] sm:$0xff] }
 0x86f   :  { %v2768_v31 = vmul.f32 %v2741_v18, %v15497_v33  ;;  %v2589_v13 = vsel %vm203_vm3, %v2577_v10, %v15523_v39  ;;  %v2809_v45 = vpop.permute.xlu0 %2808  ;;  %v15526_v18 = vld [vmem:[#allocation66_spill] sm:$0xff]  ;;  %v2769_v43 = vmul.f32 %v2753_v53, %v15499_v38  ;;  %v3060_v38 = vunpack.c.l.b16 %v2623_v52 }
 0x870   :  { %v2617_v24 = vmul.f32 %v2589_v13, %v15404_v40  ;;  %v2813_v62 = vsel %vm333_vm10, %v15525_v32, %v2809_v45  ;;  %v2825_v7 = vsel %vm333_vm10, %v2809_v45, %v15526_v18  ;;  %3345 = vmatmul.bf16.vlgmr.msra.gmra.mxu1 %v10698_v47  ;;  %v2950_v45 = vpack.c.b16 %v2942_v58, %v2938_v5  ;;  %v15527_v32 = vld [vmem:[#allocation2_spill] sm:$0xff]  ;;  %v15530_v58 = vld [vmem:[#allocation11_spill] sm:$0xff] }
 0x871   :  { %3419 = vmatpush.bf16.msrb.mxu1 %v3271_v3  ;;  %v2593_v3 = vsel %vm203_vm3, %v15524_v4, %v2577_v10  ;;  %v2445_v10 = vsel %vm125_vm0, %v10639_v59, %v10232_v56  ;;  %v2840_v39 = vmul.f32 %v2813_v62, %v15412_v61  ;;  %v2841_v13 = vmul.f32 %v2825_v7, %v15413_v2  ;;  %v15528_v62 = vld [vmem:[#allocation78_spill] sm:$0xff] }
 0x872   :  { %v2616_v60 = vmul.f32 %v2593_v3, %v15403_v57  ;;  %7012 = vmatmul.msk.bf16.vlgmr.msra.gmra.mxu2 %vm1883_vm6, %v10707_v8  ;;  %v2449_v4 = vsel %vm125_vm0, %v10457_v37, %v10639_v59  ;;  %v2951_v53 = vpack.c.b16 %v2943_v21, %v2939_v22  ;;  %v2469_v18 = vmul.f32 %v2444_v0, %v15527_v32  ;;  %v7113_v59 = vld [vmem:[%s14417_s4 + $0x8] sm:$0xf0] }
 0x873   :  { %v2680_v56 = vsel %vm255_vm5, %v15522_v19, %v15478_v17  ;;  %v3223_v7 = vunpack.c.h.b16 %v15528_v62  ;;  %v10756_v35 = vpack.c.bf16 %v2841_v13, %v2840_v39  ;;  %v3061_v33 = vunpack.c.h.b16 %v2623_v52  ;;  %3324 = vmatpush.bf16.msra.mxu0 %v2950_v45  ;;  %v15529_v5 = vld [vmem:[#allocation10_spill] sm:$0xff] }
 0x874   :  { %v2625_v3 = vpack.c.bf16 %v2617_v24, %v2616_v60  ;;  %3381 = vmatpush.bf16.msra.mxu3 %v2951_v53  ;;  %v2692_v17 = vmul.f32 %v2668_v14, %v15529_v5  ;;  %v10765_v0 = vpack.c.bf16 %v2769_v43, %v2768_v31  ;;  %v2472_v22 = vmul.f32 %v2449_v4, %v15520_v12  ;;  %v15532_v43 = vld [vmem:[#allocation84_spill] sm:$0xff]  ;;  %v15533_v4 = vld [vmem:[#allocation106_spill] sm:$0xff] }
 0x875   :  { %3420 = vmatpush.bf16.msrb.mxu1 %v10565_v50  ;;  %v6990_v50 = vld [vmem:[%s14417_s4] sm:$0xf]  ;;  %v2473_v52 = vmul.f32 %v2445_v10, %v15527_v32  ;;  %v2693_v21 = vmul.f32 %v2680_v56, %v15530_v58  ;;  %v3224_v19 = vunpack.c.l.b16 %v10756_v35  ;;  %v10771_v13 = vpack.c.bf16 %v2469_v18, %v2468_v1  ;;  %v10794_v1 = vpop.permute.xlu2 %2354  ;;  %v15535_v18 = vld [vmem:[#allocation96_spill] sm:$0xff] }
 0x876   :  { %v3064_v40 = vunpack.c.l.b16 %v2625_v3  ;;  %v3065_v37 = vunpack.c.h.b16 %v2625_v3  ;;  %v2659_v60 = vpop.permute.xlu1 %2658  ;;  %v15531_v3 = vunpack.c.h.b16 %v15517_v9  ;;  %v10775_v14 = vor.u32 %v7113_v59, %v6990_v50  ;;  %v7004_v59 = vld [vmem:[%s14417_s4 + $0x24] sm:$0xf0] }
 0x877   :  { %v2505_v53 = vpop.permute.xlu0 %2504  ;;  %v3183_v31 = vunpack.c.h.b16 %v10426_v30  ;;  %v2442_v10 = vsel %vm125_vm0, %v10472_v29, %v15532_v43  ;;  %3325 = vmatpush.bf16.msra.mxu0 %v10606_v36  ;;  %v3020_v30 = vunpack.c.l.b16 %v10685_v41  ;;  %v10792_v9 = vpack.c.bf16 %v2473_v52, %v2472_v22  ;;  %v7115_v36 = vld [vmem:[%s14417_s4 + $0x1c] sm:$0xf]  ;;  %v7010_v52 = vld [vmem:[%s14417_s4 + $0x20] sm:$0xf] }
 0x878   :  { %v3072_v24 = vpack.c.b16 %v3064_v40, %v3060_v38  ;;  %v3073_v39 = vpack.c.b16 %v3065_v37, %v3061_v33  ;;  %v3231_v45 = vpack.c.b16 %v3223_v7, %v15531_v3  ;;  %v2446_v38 = vsel %vm125_vm0, %v15533_v4, %v10472_v29  ;;  %3382 = vmatpush.bf16.msra.mxu3 %v10610_v46  ;;  %v15534_v40 = vld [vmem:[#allocation88_spill] sm:$0xff] }
 0x879   :  { %v2517_v33 = vsel %vm164_vm2, %v2505_v53, %v15534_v40  ;;  %v2521_v56 = vsel %vm164_vm2, %v15535_v18, %v2505_v53  ;;  %v3184_v46 = vunpack.c.l.b16 %v10765_v0  ;;  %v10804_v62 = vpack.c.bf16 %v2693_v21, %v2692_v17  ;;  %v7117_v17 = vld [vmem:[%s14417_s4 + $0x28] sm:$0xf0]  ;;  %v15538_v3 = vld [vmem:[#allocation76_spill] sm:$0xff]  ;;  %v15539_v53 = vld [vmem:[#allocation125_spill] sm:$0xff] }
 0x87a   :  { %v2545_v29 = vmul.f32 %v2517_v33, %v15426_v16  ;;  %v2544_v7 = vmul.f32 %v2521_v56, %v15425_v34  ;;  %3432 = vmatpush.bf16.msrb.mxu2 %v3072_v24  ;;  %v15536_v37 = vunpack.c.l.b16 %v10633_v51  ;;  %3489 = vmatpush.bf16.msra.mxu1 %v3073_v39  ;;  %v3021_v22 = vunpack.c.h.b16 %v10685_v41  ;;  %v15541_v18 = vld [vmem:[#allocation105_spill] sm:$0xff] }
 0x87b   :  { %3394 = vmatpush.bf16.msrb.mxu0 %v3231_v45  ;;  %v2460_v21 = vmul.f32 %v2446_v38, %v15520_v12  ;;  %v2461_v24 = vmul.f32 %v2442_v10, %v15527_v32  ;;  %3383 = vmatmul.bf16.vlgmr.msra.gmra.mxu3 %v10775_v14  ;;  %v3180_v41 = vunpack.c.l.b16 %v10692_v55  ;;  %v2667_v45 = vsel %vm255_vm5, %v15538_v3, %v10719_v49  ;;  %v15540_v38 = vld [vmem:[#allocation112_spill] sm:$0xff] }
 0x87c   :  { %v3232_v50 = vpack.c.b16 %v3224_v19, %v15536_v37  ;;  %3326 = vmatmul.bf16.vlgmr.msra.gmra.mxu0 %v10775_v14  ;;  %v15537_v19 = vunpack.c.h.b16 %v10395_v27  ;;  %v2679_v43 = vsel %vm255_vm5, %v10719_v49, %v15539_v53  ;;  %v2553_v10 = vpack.c.bf16 %v2545_v29, %v2544_v7  ;;  %v15542_v37 = vld [vmem:[#allocation109_spill] sm:$0xff] }
 0x87d   :  { %v3143_v4 = vunpack.c.h.b16 %v10547_v44  ;;  %v10836_v27 = vor.u32 %v7115_v36, %v7004_v59  ;;  %v10838_v40 = vor.u32 %v7117_v17, %v7010_v52  ;;  %v2984_v33 = vunpack.c.l.b16 %v10792_v9  ;;  %v15543_v59 = vld [vmem:[#allocation95_spill] sm:$0xff]  ;;  %v15544_v17 = vld [vmem:[#allocation64_spill] sm:$0xff] }
 0x87e   :  { %v3191_v39 = vpack.c.b16 %v3183_v31, %v15537_v19  ;;  %3451 = vmatpush.bf16.msrb.mxu3 %v3232_v50  ;;  %v3192_v31 = vpack.c.b16 %v3184_v46, %v3180_v41  ;;  %v2666_v56 = vsel %vm255_vm5, %v15541_v18, %v2659_v60  ;;  %v2678_v49 = vsel %vm255_vm5, %v2659_v60, %v15542_v37  ;;  %v2665_v44 = vpop.permute.xlu1 %2664  ;;  %v15545_v41 = vld [vmem:[#allocation119_spill] sm:$0xff]  ;;  %v2881_v37 = vpop.permute.xlu2 %2880 }
 0x87f   :  { %3395 = vmatpush.bf16.msrb.mxu0 %v15540_v38  ;;  %3433 = vmatpush.bf16.msrb.mxu2 %v10444_v25  ;;  %v3024_v29 = vunpack.c.l.b16 %v2553_v10  ;;  %v3025_v36 = vunpack.c.h.b16 %v2553_v10  ;;  %v2688_v46 = vmul.f32 %v2667_v45, %v15529_v5  ;;  %v2689_v7 = vmul.f32 %v2679_v43, %v15530_v58  ;;  %v2429_v60 = vpop.permute.xlu0 %2428 }
 0x880   :  { %3490 = vmatpush.bf16.msra.mxu1 %v10448_v54  ;;  %v2669_v50 = vsel %vm255_vm5, %v10279_v11, %v2665_v44  ;;  %v2681_v52 = vsel %vm255_vm5, %v2665_v44, %v15543_v59  ;;  %v2443_v19 = vsel %vm125_vm0, %v2429_v60, %v15544_v17  ;;  %v2447_v3 = vsel %vm125_vm0, %v15545_v41, %v2429_v60  ;;  %v15552_v17 = vld [vmem:[#allocation129_spill] sm:$0xff] }
 0x881   :  { %v2696_v25 = vmul.f32 %v2669_v50, %v15529_v5  ;;  %v2697_v54 = vmul.f32 %v2681_v52, %v15530_v58  ;;  %v2684_v11 = vmul.f32 %v2666_v56, %v15529_v5  ;;  %v2685_v45 = vmul.f32 %v2678_v49, %v15530_v58  ;;  %3350 = vmatmul.bf16.gmra.mxu1 %v10836_v27 }
 0x882   :  { %3452 = vmatpush.bf16.msrb.mxu3 %v10614_v20  ;;  %v3032_v20 = vpack.c.b16 %v3024_v29, %v3020_v30  ;;  %v2985_v53 = vunpack.c.h.b16 %v10792_v9  ;;  %v2464_v10 = vmul.f32 %v2447_v3, %v15520_v12  ;;  %v2465_v38 = vmul.f32 %v2443_v19, %v15527_v32  ;;  %7013 = vmatmul.msk.bf16.gmra.mxu2 %vm1883_vm6, %v10838_v40  ;;  %v15548_v30 = vld [vmem:[#allocation82_spill] sm:$0xff]  ;;  %v7002_v9 = vld [vmem:[%s14417_s4 + $0x18] sm:$0xf] }
 0x883   :  { %3396 = vmatpush.bf16.msrb.mxu0 %v3191_v39  ;;  %v10870_v43 = vpack.c.bf16 %v2697_v54, %v2696_v25  ;;  %v3033_v18 = vpack.c.b16 %v3025_v36, %v3021_v22  ;;  %v15546_v56 = vunpack.c.h.b16 %v10324_v26  ;;  %v15547_v39 = vunpack.c.h.b16 %v10545_v6  ;;  %v7116_v22 = vld [vmem:[%s14417_s4 + $0x20] sm:$0xf0]  ;;  %v15549_v26 = vld [vmem:[#allocation116_spill] sm:$0xff] }
 0x884   :  { %3434 = vmatpush.bf16.msrb.mxu2 %v3032_v20  ;;  %v3139_v44 = vunpack.c.h.b16 %v15548_v30  ;;  %v2980_v29 = vunpack.c.l.b16 %v10771_v13  ;;  %v2981_v36 = vunpack.c.h.b16 %v10771_v13  ;;  %v2475_v50 = vpack.c.bf16 %v2461_v24, %v2460_v21  ;;  %v15553_v21 = vld [vmem:[#allocation124_spill] sm:$0xff] }
 0x885   :  { %v3029_v49 = vpack.c.b16 %v15547_v39, %v15546_v56  ;;  %3491 = vmatpush.bf16.msra.mxu1 %v3033_v18  ;;  %v15550_v6 = vunpack.c.l.b16 %v15549_v26  ;;  %v15551_v59 = vunpack.c.l.b16 %v10622_v63  ;;  %v3140_v60 = vunpack.c.l.b16 %v10804_v62  ;;  %v15556_v56 = vld [vmem:[#allocation56_spill] sm:$0xff]  ;;  %v15558_v39 = vld [vmem:[#allocation91_spill] sm:$0xff] }
 0x886   :  { %3453 = vmatpush.bf16.msrb.mxu3 %v3192_v31  ;;  %v3144_v25 = vunpack.c.l.b16 %v10870_v43  ;;  %v10895_v54 = vpack.c.bf16 %v2685_v45, %v2684_v11  ;;  %v3151_v19 = vpack.c.b16 %v3143_v4, %v3139_v44  ;;  %v2992_v41 = vpack.c.b16 %v2984_v33, %v2980_v29  ;;  %v2361_v20 = vpop.permute.xlu1 %2360  ;;  %v15554_v45 = vld [vmem:[#allocation4_spill] sm:$0xff] }
 0x887   :  { %v3188_v52 = vpack.c.b16 %v15551_v59, %v15550_v6  ;;  %3397 = vmatpush.bf16.msrb.mxu0 %v15552_v17  ;;  %v2993_v3 = vpack.c.b16 %v2985_v53, %v2981_v36  ;;  %v10898_v13 = vpack.c.bf16 %v2689_v7, %v2688_v46  ;;  %v2885_v24 = vsel %vm372_vm9, %v15553_v21, %v2881_v37  ;;  %v2359_v46 = vpop.permute.xlu0 %2358  ;;  %v15561_v59 = vld [vmem:[#allocation18_spill] sm:$0xff] }
 0x888   :  { %v2477_v31 = vpack.c.bf16 %v2465_v38, %v2464_v10  ;;  %v10903_v18 = vor.u32 %v7116_v22, %v7002_v9  ;;  %v2897_v11 = vsel %vm372_vm9, %v2881_v37, %v10578_v42  ;;  %3435 = vmatpush.bf16.msrb.mxu2 %v10630_v28  ;;  %v2373_v4 = vsel %vm86_vm1, %v2361_v20, %v10393_v23  ;;  %v15555_v10 = vld [vmem:[#allocation5_spill] sm:$0xff]  ;;  %v15557_v28 = vld [vmem:[#allocation123_spill] sm:$0xff]  ;;  %v15560_v9 = vld [vmem:[#allocation86_spill] sm:$0xff] }
 0x889   :  { %v2377_v33 = vsel %vm86_vm1, %v10658_v15, %v2361_v20  ;;  %v3152_v7 = vpack.c.b16 %v3144_v25, %v3140_v60  ;;  %3492 = vmatpush.bf16.msra.mxu1 %v3029_v49  ;;  %v2401_v38 = vmul.f32 %v2373_v4, %v15555_v10  ;;  %v2372_v42 = vsel %vm86_vm1, %v2359_v46, %v15556_v56  ;;  %v15559_v15 = vld [vmem:[#allocation80_spill] sm:$0xff]  ;;  %v15562_v60 = vld [vmem:[#allocation25_spill] sm:$0xff]  ;;  %v15567_v56 = vld [vmem:[#allocation87_spill] sm:$0xff] }
 0x88a   :  { %3454 = vmatpush.bf16.msrb.mxu3 %v3188_v52  ;;  %v2400_v53 = vmul.f32 %v2377_v33, %v15554_v45  ;;  %v3104_v37 = vunpack.c.l.b16 %v15557_v28  ;;  %v2370_v23 = vsel %vm86_vm1, %v10794_v1, %v15558_v39  ;;  %v2376_v49 = vsel %vm86_vm1, %v15559_v15, %v2359_v46  ;;  %v15563_v4 = vld [vmem:[#allocation85_spill] sm:$0xff]  ;;  %v15565_v46 = vld [vmem:[#allocation75_spill] sm:$0xff] }
 0x88b   :  { %3398 = vmatpush.bf16.msrb.mxu0 %v3151_v19  ;;  %v2397_v30 = vmul.f32 %v2372_v42, %v15555_v10  ;;  %v3132_v44 = vunpack.c.l.b16 %v10895_v54  ;;  %v2374_v22 = vsel %vm86_vm1, %v15560_v9, %v10794_v1  ;;  %v2396_v36 = vmul.f32 %v2376_v49, %v15554_v45  ;;  %3388 = vmatmul.bf16.gmra.mxu3 %v10903_v18  ;;  %v15568_v9 = vld [vmem:[#allocation104_spill] sm:$0xff] }
 0x88c   :  { %v2409_v29 = vpack.c.bf16 %v2401_v38, %v2400_v53  ;;  %v2976_v6 = vunpack.c.l.b16 %v2477_v31  ;;  %v2912_v52 = vmul.f32 %v2885_v24, %v15561_v59  ;;  %v2913_v25 = vmul.f32 %v2897_v11, %v15562_v60  ;;  %3331 = vmatmul.bf16.gmra.mxu0 %v10903_v18  ;;  %3436 = vmatpush.bf16.msrb.mxu2 %v2992_v41 }
 0x88d   :  { %v3136_v17 = vunpack.c.l.b16 %v10898_v13  ;;  %v2977_v19 = vunpack.c.h.b16 %v2477_v31  ;;  %v2407_v21 = vpack.c.bf16 %v2397_v30, %v2396_v36  ;;  %v2972_v20 = vunpack.c.l.b16 %v2475_v50  ;;  %3493 = vmatpush.bf16.msra.mxu1 %v2993_v3 }
 0x88e   :  { %3455 = vmatpush.bf16.msrb.mxu3 %v3152_v7  ;;  %v2973_v1 = vunpack.c.h.b16 %v2475_v50  ;;  %v15564_v33 = vunpack.c.h.b16 %v15563_v4  ;;  %v15566_v53 = vunpack.c.h.b16 %v15565_v46  ;;  %v2388_v24 = vmul.f32 %v2374_v22, %v15554_v45  ;;  %v2879_v15 = vpop.permute.xlu1 %2878  ;;  %v15569_v4 = vld [vmem:[#allocation74_spill] sm:$0xff] }
 0x88f   :  { %v2389_v11 = vmul.f32 %v2370_v23, %v15555_v10  ;;  %3399 = vmatpush.bf16.msrb.mxu0 %v15567_v56  ;;  %v3148_v42 = vpack.c.b16 %v3136_v17, %v3132_v44  ;;  %v2944_v39 = vunpack.c.l.b16 %v2409_v29  ;;  %v2988_v31 = vpack.c.b16 %v2976_v6, %v2972_v20  ;;  %v2357_v3 = vpop.permute.xlu0 %2356  ;;  %v15570_v6 = vld [vmem:[#allocation65_spill] sm:$0xff]  ;;  %v15572_v17 = vld [vmem:[#allocation67_spill] sm:$0xff] }
 0x890   :  { %v3111_v38 = vpack.c.b16 %v15566_v53, %v15564_v33  ;;  %v2940_v41 = vunpack.c.l.b16 %v2407_v21  ;;  %v2941_v7 = vunpack.c.h.b16 %v2407_v21  ;;  %v2945_v49 = vunpack.c.h.b16 %v2409_v29 }
 0x891   :  { %v2921_v50 = vpack.c.bf16 %v2913_v25, %v2912_v52  ;;  %v2989_v30 = vpack.c.b16 %v2977_v19, %v2973_v1  ;;  %v2884_v36 = vsel %vm372_vm9, %v15568_v9, %v2879_v15  ;;  %v2896_v23 = vsel %vm372_vm9, %v2879_v15, %v15569_v4  ;;  %3437 = vmatpush.bf16.msrb.mxu2 %v2988_v31  ;;  %v15571_v52 = vld [vmem:[#allocation103_spill] sm:$0xff]  ;;  %v15573_v1 = vld [vmem:[#allocation128_spill] sm:$0xff] }
 0x892   :  { %3456 = vmatpush.bf16.msrb.mxu3 %v3148_v42  ;;  %v2908_v44 = vmul.f32 %v2884_v36, %v15561_v59  ;;  %v2909_v22 = vmul.f32 %v2896_v23, %v15562_v60  ;;  %v2371_v29 = vsel %vm86_vm1, %v2357_v3, %v15570_v6  ;;  %v3100_v25 = vunpack.c.l.b16 %v15571_v52  ;;  %7014 = vmatmul.msk.bf16.vlgmr.msrb.gmra.mxu1 %vm1883_vm6, %v10707_v8  ;;  %v15576_v9 = vld [vmem:[#allocation107_spill] sm:$0xff]  ;;  %v15578_v23 = vld [vmem:[#allocation114_spill] sm:$0xff] }
 0x893   :  { %3494 = vmatpush.bf16.msra.mxu1 %v2989_v30  ;;  %3400 = vmatpush.bf16.msrb.mxu0 %v3111_v38  ;;  %v2375_v19 = vsel %vm86_vm1, %v15572_v17, %v2357_v3  ;;  %v2393_v21 = vmul.f32 %v2371_v29, %v15555_v10  ;;  %v2952_v20 = vpack.c.b16 %v2944_v39, %v2940_v41  ;;  %v3092_v33 = vunpack.c.l.b16 %v15573_v1  ;;  %v15574_v38 = vld [vmem:[#allocation69_spill] sm:$0xff]  ;;  %v15579_v17 = vld [vmem:[#allocation111_spill] sm:$0xff] }
 0x894   :  { %v2919_v46 = vpack.c.bf16 %v2909_v22, %v2908_v44  ;;  %v2392_v53 = vmul.f32 %v2375_v19, %v15554_v45  ;;  %v3112_v56 = vpack.c.b16 %v3104_v37, %v3100_v25  ;;  %v2953_v42 = vpack.c.b16 %v2945_v49, %v2941_v7  ;;  %v15580_v19 = vld [vmem:[#allocation118_spill] sm:$0xff] }
 0x895   :  { %v2403_v31 = vpack.c.bf16 %v2389_v11, %v2388_v24  ;;  %v3264_v15 = vunpack.c.l.b16 %v2921_v50  ;;  %v15575_v30 = vunpack.c.h.b16 %v15574_v38  ;;  %v15577_v36 = vunpack.c.h.b16 %v15576_v9  ;;  %3438 = vmatpush.bf16.msrb.mxu2 %v2952_v20 }
 0x896   :  { %v3096_v3 = vunpack.c.l.b16 %v15578_v23  ;;  %v3265_v39 = vunpack.c.h.b16 %v2921_v50  ;;  %v3260_v41 = vunpack.c.l.b16 %v2919_v46  ;;  %v3261_v6 = vunpack.c.h.b16 %v2919_v46  ;;  %3457 = vmatpush.bf16.msrb.mxu3 %v3112_v56  ;;  %v2877_v11 = vpop.permute.xlu1 %2876 }
 0x897   :  { %v3107_v4 = vpack.c.b16 %v15577_v36, %v15575_v30  ;;  %v2405_v44 = vpack.c.bf16 %v2393_v21, %v2392_v53  ;;  %v3221_v22 = vunpack.c.h.b16 %v10633_v51  ;;  %v3225_v37 = vunpack.c.h.b16 %v10756_v35  ;;  %3495 = vmatpush.bf16.msra.mxu1 %v2953_v42  ;;  %v2875_v20 = vpop.permute.xlu0 %2874  ;;  %v15581_v53 = vld [vmem:[#allocation98_spill] sm:$0xff]  ;;  %v15582_v42 = vld [vmem:[#allocation89_spill] sm:$0xff] }
 0x898   :  { %v3108_v24 = vpack.c.b16 %v3096_v3, %v3092_v33  ;;  %v3272_v49 = vpack.c.b16 %v3264_v15, %v3260_v41  ;;  %v3273_v25 = vpack.c.b16 %v3265_v39, %v3261_v6  ;;  %v2883_v50 = vsel %vm372_vm9, %v15579_v17, %v2877_v11  ;;  %v15583_v39 = vld [vmem:[#allocation130_spill] sm:$0xff] }
 0x899   :  { %3401 = vmatpush.bf16.msrb.mxu0 %v3107_v4  ;;  %v2936_v7 = vunpack.c.l.b16 %v2405_v44  ;;  %v2937_v29 = vunpack.c.h.b16 %v2405_v44  ;;  %v2895_v21 = vsel %vm372_vm9, %v2877_v11, %v15580_v19  ;;  %v2932_v51 = vunpack.c.l.b16 %v2403_v31 }
 0x89a   :  { %v2933_v46 = vunpack.c.h.b16 %v2403_v31  ;;  %3458 = vmatpush.bf16.msrb.mxu3 %v3108_v24  ;;  %v2904_v35 = vmul.f32 %v2883_v50, %v15561_v59  ;;  %v2905_v33 = vmul.f32 %v2895_v21, %v15562_v60  ;;  %v2882_v56 = vsel %vm372_vm9, %v15581_v53, %v2875_v20  ;;  %v15584_v24 = vld [vmem:[#allocation52_spill] sm:$0xff] }
 0x89b   :  { %v2894_v15 = vsel %vm372_vm9, %v2875_v20, %v15582_v42  ;;  %v2900_v38 = vmul.f32 %v2882_v56, %v15561_v59  ;;  %v2948_v9 = vpack.c.b16 %v2936_v7, %v2932_v51  ;;  %v3233_v3 = vpack.c.b16 %v3225_v37, %v3221_v22 }
 0x89c   :  { %v2901_v30 = vmul.f32 %v2894_v15, %v15562_v60  ;;  %v2949_v31 = vpack.c.b16 %v2937_v29, %v2933_v46  ;;  %v2917_v36 = vpack.c.bf16 %v2905_v33, %v2904_v35  ;;  %3402 = vmatmul.bf16.vlgmr.msrb.gmra.mxu0 %v10698_v47  ;;  %v3217_v41 = vunpack.c.h.b16 %v15583_v39  ;;  %v15592_v60 = vld [vmem:[#allocation35_spill] sm:$0xff] }
 0x89d   :  { %3476 = vmatpush.bf16.msra.mxu0 %v3272_v49  ;;  %3459 = vmatmul.bf16.vlgmr.msrb.gmra.mxu3 %v10698_v47  ;;  %v3213_v11 = vunpack.c.h.b16 %v15584_v24  ;;  %v3185_v50 = vunpack.c.h.b16 %v10765_v0  ;;  %v3181_v22 = vunpack.c.h.b16 %v10692_v55  ;;  %v3177_v19 = vunpack.c.h.b16 %v10622_v63 }
 0x89e   :  { %3533 = vmatpush.bf16.msra.mxu3 %v3273_v25  ;;  %v2915_v4 = vpack.c.bf16 %v2901_v30, %v2900_v38  ;;  %3439 = vmatpush.bf16.msrb.mxu2 %v2948_v9  ;;  %v3256_v6 = vunpack.c.l.b16 %v2917_v36  ;;  %v3257_v44 = vunpack.c.h.b16 %v2917_v36  ;;  %v3173_v21 = vunpack.c.h.b16 %v15549_v26 }
 0x89f   :  { %3496 = vmatpush.bf16.msra.mxu1 %v2949_v31  ;;  %v3229_v29 = vpack.c.b16 %v3217_v41, %v3213_v11  ;;  %v3193_v37 = vpack.c.b16 %v3185_v50, %v3181_v22  ;;  %v3145_v51 = vunpack.c.h.b16 %v10870_v43  ;;  %v3141_v0 = vunpack.c.h.b16 %v10804_v62 }
 0x8a0   :  { %v3252_v7 = vunpack.c.l.b16 %v2915_v4  ;;  %v3253_v49 = vunpack.c.h.b16 %v2915_v4  ;;  %v3189_v20 = vpack.c.b16 %v3177_v19, %v3173_v21  ;;  %v3133_v46 = vunpack.c.h.b16 %v10895_v54 }
 0x8a1   :  { %3440 = vmatmul.bf16.vlgmr.msrb.gmra.mxu2 %v10775_v14  ;;  %v3153_v55 = vpack.c.b16 %v3145_v51, %v3141_v0  ;;  %v3137_v35 = vunpack.c.h.b16 %v10898_v13  ;;  %v3105_v26 = vunpack.c.h.b16 %v15557_v28  ;;  %v3101_v43 = vunpack.c.h.b16 %v15571_v52 }
 0x8a2   :  { %3508 = vmatpush.bf16.msra.mxu2 %v3233_v3  ;;  %v3268_v25 = vpack.c.b16 %v3256_v6, %v3252_v7  ;;  %v3269_v17 = vpack.c.b16 %v3257_v44, %v3253_v49  ;;  %7015 = vmatmul.msk.bf16.gmra.mxu1 %vm1883_vm6, %v10838_v40  ;;  %v3093_v33 = vunpack.c.h.b16 %v15573_v1  ;;  %v3097_v53 = vunpack.c.h.b16 %v15578_v23 }
 0x8a3   :  { %v3149_v63 = vpack.c.b16 %v3137_v35, %v3133_v46  ;;  %v3113_v62 = vpack.c.b16 %v3105_v26, %v3101_v43  ;;  %v7247_v13 = vmov 2   ;;  %v15587_v26 = vld [vmem:[#allocation34_spill] sm:$0xff] }
 0x8a4   :  { %3477 = vmatpush.bf16.msra.mxu0 %v3268_v25  ;;  %3534 = vmatpush.bf16.msra.mxu3 %v3269_v17  ;;  %v3109_v54 = vpack.c.b16 %v3097_v53, %v3093_v33 }
 0x8a5   :  { %7153 = vset.pattern.permute.xlu1 %v7247_v13  ;;  %7154 = vset.pattern.permute.xlu2 %v7247_v13 }
 0x8a6   :  { %3509 = vmatpush.bf16.msra.mxu2 %v3229_v29  ;;  %7152 = vset.pattern.permute.xlu0 %v7247_v13 }
 0x8aa   :  { %3510 = vmatpush.bf16.msra.mxu2 %v3193_v37 }
 0x8ac   :  { %3407 = vmatmul.bf16.gmra.mxu0 %v10836_v27 }
 0x8ad   :  { %3464 = vmatmul.bf16.gmra.mxu3 %v10836_v27 }
 0x8ae   :  { %3511 = vmatpush.bf16.msra.mxu2 %v3189_v20  ;;  %v15585_v20 = vld [vmem:[#allocation36_spill] sm:$0xff] }
 0x8b1   :  { %3445 = vmatmul.bf16.gmra.mxu2 %v10903_v18 }
 0x8b2   :  { %3512 = vmatpush.bf16.msra.mxu2 %v3153_v55  ;;  %3497 = vmatmul.bf16.vlgmr.msra.gmra.mxu1 %v10775_v14  ;;  %v15586_v55 = vld [vmem:[#allocation37_spill] sm:$0xff] }
 0x8b6   :  { %3513 = vmatpush.bf16.msra.mxu2 %v3149_v63 }
 0x8ba   :  { %3514 = vmatpush.bf16.msra.mxu2 %v3113_v62 }
 0x8bc   :  { %7016 = vmatmul.msk.bf16.vlgmr.msra.gmra.mxu0 %vm1883_vm6, %v10707_v8 }
 0x8bd   :  { %7018 = vmatmul.msk.bf16.vlgmr.msra.gmra.mxu3 %vm1883_vm6, %v10707_v8  ;;  %v7212_v8 = vld [vmem:[%s14414_s11 + $0x18] sm:$0xff] }
 0x8be   :  { %3515 = vmatpush.bf16.msra.mxu2 %v3109_v54  ;;  %3723 = vperm.xlu1 %7153, %v7212_v8   ;;  %v15590_v8 = vld [vmem:[#allocation40_spill] sm:$0xff] }
 0x8c1   :  { %3516 = vmatmul.bf16.vlgmr.msra.gmra.mxu2 %v10698_v47  ;;  %v7213_v47 = vld [vmem:[%s14414_s11] sm:$0xff] }
 0x8c2   :  { %3502 = vmatmul.bf16.gmra.mxu1 %v10903_v18  ;;  %3711 = vperm.xlu2 %7154, %v7213_v47   ;;  %v7215_v18 = vld [vmem:[%s14414_s11 + $0x8] sm:$0xff] }
 0x8c6   :  { %3715 = vperm.xlu1 %7153, %v7215_v18  }
 0x8cc   :  { %7017 = vmatmul.msk.bf16.gmra.mxu0 %vm1883_vm6, %v10838_v40 }
 0x8cd   :  { %7019 = vmatmul.msk.bf16.gmra.mxu3 %vm1883_vm6, %v10838_v40  ;;  %v7214_v40 = vld [vmem:[%s14414_s11 + $0x10] sm:$0xff] }
 0x8ce   :  { %3719 = vperm.xlu0 %7152, %v7214_v40   ;;  %v15591_v40 = vld [vmem:[#allocation41_spill] sm:$0xff] }
 0x8d1   :  { %3521 = vmatmul.bf16.gmra.mxu2 %v10836_v27 }
 0x8ed   :  { %v3346_v14 = vpop.f32.mrf.mxu1 }
 0x8f5   :  { %v3348_v27 = vpop.f32.mrf.mxu1  ;;  %v3365_v52 = vpop.f32.mrf.mxu2 }
 0x8f9   :  { %v3327_v28 = vpop.f32.mrf.mxu0 }
 0x8fa   :  { %v3328_v51 = vadd.f32 %v3327_v28, %v15585_v20 }
 0x8fc   :  { %v3347_v62 = vadd.f32 %v3346_v14, %v3328_v51 }
 0x8fd   :  { %v3367_v42 = vpop.f32.mrf.mxu2 }
 0x8fe   :  { %v3384_v1 = vpop.f32.mrf.mxu3  ;;  %v11036_v23 = vpop.f32.mrf.mxu1  ;;  %v11057_v13 = vadd.f32 %v3365_v52, %v3347_v62 }
 0x8ff   :  { %v3385_v46 = vadd.f32 %v3384_v1, %v15586_v55 }
 0x900   :  { %15589 = vst [vmem:[#allocation94_spill] sm:$0xff] %v11057_v13 }
 0x901   :  { %v3329_v56 = vpop.f32.mrf.mxu0 }
 0x902   :  { %v3330_v47 = vadd.f32 %v3329_v56, %v15590_v8 }
 0x904   :  { %v3349_v52 = vadd.f32 %v3348_v27, %v3330_v47  ;;  %v15602_v47 = vld [vmem:[#allocation42_spill] sm:$0xff] }
 0x905   :  { %v11040_v36 = vpop.f32.mrf.mxu2 }
 0x906   :  { %v3386_v15 = vpop.f32.mrf.mxu3  ;;  %v11038_v38 = vpop.f32.mrf.mxu1 }
 0x907   :  { %v3387_v18 = vadd.f32 %v3386_v15, %v15591_v40 }
 0x909   :  { %v3332_v30 = vpop.f32.mrf.mxu0 }
 0x90d   :  { %v11046_v6 = vpop.f32.mrf.mxu2 }
 0x90e   :  { %v3389_v9 = vpop.f32.mrf.mxu3 }
 0x90f   :  { %v3422_v31 = vpop.f32.mrf.mxu1 }
 0x911   :  { %v11042_v4 = vpop.f32.mrf.mxu0 }
 0x916   :  { %v11044_v3 = vpop.f32.mrf.mxu3 }
 0x917   :  { %v3424_v41 = vpop.f32.mrf.mxu1 }
 0x919   :  { %v3403_v39 = vpop.f32.mrf.mxu0 }
 0x91a   :  { %v3404_v63 = vadd.f32 %v3403_v39, %v3385_v46 }
 0x91c   :  { %v11055_v53 = vadd.f32 %v3422_v31, %v3404_v63  ;;  %v15597_v63 = vld [vmem:[#allocation44_spill] sm:$0xff] }
 0x91e   :  { %15588 = vst [vmem:[#allocation110_spill] sm:$0xff] %v11055_v53  ;;  %v3546_v31 = vadd.f32 %v11055_v53, %v11057_v13 }
 0x91f   :  { %v3427_v7 = vpop.f32.mrf.mxu1 }
 0x920   :  { %v3460_v44 = vpop.f32.mrf.mxu3 }
 0x921   :  { %v3405_v24 = vpop.f32.mrf.mxu0 }
 0x922   :  { %v3406_v46 = vadd.f32 %v3405_v24, %v3387_v18  ;;  %v11074_v24 = vadd.f32 %v3367_v42, %v3349_v52  ;;  %v15600_v18 = vld [vmem:[#allocation39_spill] sm:$0xff] }
 0x923   :  { %v15606_v52 = vld [vmem:[#allocation47_spill] sm:$0xff] }
 0x924   :  { %v3441_v11 = vpop.f32.mrf.mxu2  ;;  %v11070_v15 = vadd.f32 %v3424_v41, %v3406_v46  ;;  %15598 = vst [vmem:[#allocation79_spill] sm:$0xff] %v11074_v24 }
 0x925   :  { %v3442_v43 = vadd.f32 %v3441_v11, %v15587_v26  ;;  %v15594_v11 = vld [vmem:[#allocation38_spill] sm:$0xff] }
 0x926   :  { %15596 = vst [vmem:[#allocation58_spill] sm:$0xff] %v11070_v15 }
 0x927   :  { %v11048_v17 = vpop.f32.mrf.mxu1  ;;  %v3461_v54 = vadd.f32 %v3460_v44, %v3442_v43  ;;  %v3333_v43 = vadd.f32 %v3332_v30, %v15597_v63 }
 0x928   :  { %v3462_v49 = vpop.f32.mrf.mxu3 }
 0x929   :  { %v3408_v29 = vpop.f32.mrf.mxu0  ;;  %v3352_v30 = vadd.f32 %v11036_v23, %v3333_v43 }
 0x92c   :  { %v3443_v25 = vpop.f32.mrf.mxu2 }
 0x92d   :  { %v3444_v14 = vadd.f32 %v3443_v25, %v15594_v11  ;;  %v15599_v25 = vld [vmem:[#allocation45_spill] sm:$0xff] }
 0x92f   :  { %v3498_v21 = vpop.f32.mrf.mxu1 }
 0x930   :  { %v3465_v50 = vpop.f32.mrf.mxu3  ;;  %v3499_v28 = vadd.f32 %v3498_v21, %v15592_v60  ;;  %v3463_v21 = vadd.f32 %v3462_v49, %v3444_v14  ;;  %v3551_v49 = vadd.f32 %v11070_v15, %v11074_v24 }
 0x931   :  { %v3410_v22 = vpop.f32.mrf.mxu0 }
 0x934   :  { %v3446_v37 = vpop.f32.mrf.mxu2 }
 0x935   :  { %v3447_v41 = vadd.f32 %v3446_v37, %v15602_v47 }
 0x937   :  { %v3500_v1 = vpop.f32.mrf.mxu1 }
 0x938   :  { %v11050_v19 = vpop.f32.mrf.mxu3 }
 0x939   :  { %v3479_v0 = vpop.f32.mrf.mxu0 }
 0x93a   :  { %v11062_v20 = vadd.f32 %v3479_v0, %v3461_v54  ;;  %v3390_v54 = vadd.f32 %v3389_v9, %v15599_v25 }
 0x93c   :  { %v3448_v35 = vpop.f32.mrf.mxu2  ;;  %15593 = vst [vmem:[#allocation132_spill] sm:$0xff] %v11062_v20  ;;  %v3547_v56 = vadd.f32 %v3546_v31, %v11062_v20 }
 0x93f   :  { %v3503_v14 = vpop.f32.mrf.mxu1 }
 0x940   :  { %v3536_v33 = vpop.f32.mrf.mxu3 }
 0x941   :  { %v3481_v55 = vpop.f32.mrf.mxu0 }
 0x944   :  { %v3517_v39 = vpop.f32.mrf.mxu2 }
 0x945   :  { %v3518_v51 = vadd.f32 %v3517_v39, %v3499_v28  ;;  %v3501_v28 = vadd.f32 %v3500_v1, %v15600_v18  ;;  %v11078_v39 = vadd.f32 %v3481_v55, %v3463_v21  ;;  %v3466_v55 = vadd.f32 %v3465_v50, %v3447_v41  ;;  %v15607_v21 = vld [vmem:[#allocation48_spill] sm:$0xff]  ;;  %v15610_v50 = vld [vmem:[#allocation46_spill] sm:$0xff] }
 0x946   :  { %v3392_v23 = vadd.f32 %v11044_v3, %v15607_v21 }
 0x947   :  { %v11067_v44 = vadd.f32 %v3536_v33, %v3518_v51  ;;  %15601 = vst [vmem:[#allocation100_spill] sm:$0xff] %v11078_v39  ;;  %v3409_v33 = vadd.f32 %v3408_v29, %v3390_v54  ;;  %v3552_v9 = vadd.f32 %v3551_v49, %v11078_v39  ;;  %v11091_v29 = vadd.f32 %v11040_v36, %v3352_v30  ;;  %v3505_v3 = vpop.f32.mrf.mxu1 }
 0x948   :  { %v3538_v62 = vpop.f32.mrf.mxu3  ;;  %v3411_v54 = vadd.f32 %v3410_v22, %v3392_v23 }
 0x949   :  { %15595 = vst [vmem:[#allocation72_spill] sm:$0xff] %v11067_v44  ;;  %v3548_v0 = vadd.f32 %v3547_v56, %v11067_v44  ;;  %v3484_v42 = vpop.f32.mrf.mxu0  ;;  %v11087_v1 = vadd.f32 %v3427_v7, %v3409_v33  ;;  %v3335_v56 = vadd.f32 %v11042_v4, %v15606_v52 }
 0x94a   :  { %15605 = vst [vmem:[#allocation83_spill] sm:$0xff] %v11091_v29  ;;  %v11108_v49 = vadd.f32 %v11048_v17, %v3411_v54  ;;  %v15617_v54 = vld [vmem:[#allocation50_spill] sm:$0xff] }
 0x94b   :  { %3549 = vadd.xlane.f32.xlu1 %v3548_v0  ;;  %15604 = vst [vmem:[#allocation59_spill] sm:$0xff] %v11087_v1  ;;  %v15608_v0 = vld [vmem:[#allocation43_spill] sm:$0xff]  ;;  %v3556_v36 = vadd.f32 %v11087_v1, %v11091_v29  ;;  %v3354_v33 = vadd.f32 %v11038_v38, %v3335_v56 }
 0x94c   :  { %v3519_v27 = vpop.f32.mrf.mxu2  ;;  %v3504_v43 = vadd.f32 %v3503_v14, %v15608_v0  ;;  %15612 = vst [vmem:[#allocation113_spill] sm:$0xff] %v11108_v49  ;;  %v15614_v14 = vld [vmem:[#allocation49_spill] sm:$0xff] }
 0x94d   :  { %v3520_v46 = vadd.f32 %v3519_v27, %v3501_v28  ;;  %v3449_v28 = vadd.f32 %v3448_v35, %v15610_v50  ;;  %v11113_v35 = vadd.f32 %v11046_v6, %v3354_v33  ;;  %v11124_v6 = vpop.permute.xlu1 %3723 }
 0x94f   :  { %v11084_v51 = vadd.f32 %v3538_v62, %v3520_v46  ;;  %v11098_v62 = vadd.f32 %v3484_v42, %v3466_v55  ;;  %v3468_v30 = vadd.f32 %v11050_v19, %v3449_v28  ;;  %15613 = vst [vmem:[#allocation73_spill] sm:$0xff] %v11113_v35  ;;  %v3506_v42 = vadd.f32 %v3505_v3, %v15614_v14 }
 0x950   :  { %v3541_v37 = vpop.f32.mrf.mxu3 }
 0x951   :  { %15603 = vst [vmem:[#allocation117_spill] sm:$0xff] %v11084_v51  ;;  %v3553_v31 = vadd.f32 %v3552_v9, %v11084_v51  ;;  %v3557_v4 = vadd.f32 %v3556_v36, %v11098_v62  ;;  %v3486_v46 = vpop.f32.mrf.mxu0 }
 0x952   :  { %15609 = vst [vmem:[#allocation127_spill] sm:$0xff] %v11098_v62  ;;  %v11116_v9 = vadd.f32 %v3486_v46, %v3468_v30 }
 0x953   :  { %3554 = vadd.xlane.f32.xlu2 %v3553_v31 }
 0x954   :  { %v3522_v7 = vpop.f32.mrf.mxu2  ;;  %15615 = vst [vmem:[#allocation77_spill] sm:$0xff] %v11116_v9 }
 0x955   :  { %v3523_v27 = vadd.f32 %v3522_v7, %v3504_v43  ;;  %v11126_v23 = vpop.permute.xlu1 %3715  ;;  %v11128_v43 = vpop.permute.xlu2 %3711 }
 0x957   :  { %v11104_v41 = vadd.f32 %v3541_v37, %v3523_v27  ;;  %v3561_v37 = vadd.f32 %v11108_v49, %v11113_v35 }
 0x958   :  { %v3543_v55 = vpop.f32.mrf.mxu3 }
 0x959   :  { %15611 = vst [vmem:[#allocation133_spill] sm:$0xff] %v11104_v41  ;;  %v3558_v22 = vadd.f32 %v3557_v4, %v11104_v41  ;;  %v3562_v19 = vadd.f32 %v3561_v37, %v11116_v9 }
 0x95b   :  { %3559 = vadd.xlane.f32.xlu2 %v3558_v22 }
 0x95c   :  { %v3524_v38 = vpop.f32.mrf.mxu2 }
 0x95d   :  { %v3525_v31 = vadd.f32 %v3524_v38, %v3506_v42 }
 0x95f   :  { %v11120_v17 = vadd.f32 %v3543_v55, %v3525_v31 }
 0x961   :  { %15616 = vst [vmem:[#allocation99_spill] sm:$0xff] %v11120_v17  ;;  %v3563_v56 = vadd.f32 %v3562_v19, %v11120_v17 }
 0x963   :  { %3564 = vadd.xlane.f32.xlu0 %v3563_v56 }
 0x9be   :  { %v3550_v7 = vpop.xlane.xlu1 %3549 }
 0x9bf   :  { %v3566_v28 = vmul.f32 %v3550_v7, %v15617_v54 }
 0x9c1   :  { %v11132_v27 = vsub.f32 %v11057_v13, %v3566_v28  ;;  %v11135_v36 = vsub.f32 %v11055_v53, %v3566_v28  ;;  %v11138_v33 = vsub.f32 %v11062_v20, %v3566_v28  ;;  %v11141_v4 = vsub.f32 %v11067_v44, %v3566_v28 }
 0x9c3   :  { %v3586_v3 = vmul.f32 %v11132_v27, %v11132_v27  ;;  %v3587_v46 = vmul.f32 %v11135_v36, %v11135_v36  ;;  %v3588_v30 = vmul.f32 %v11138_v33, %v11138_v33  ;;  %v3589_v55 = vmul.f32 %v11141_v4, %v11141_v4 }
 0x9c5   :  { %v3602_v22 = vadd.f32 %v3587_v46, %v3586_v3 }
 0x9c6   :  { %v3555_v42 = vpop.xlane.xlu2 %3554 }
 0x9c7   :  { %v3567_v38 = vmul.f32 %v3555_v42, %v15617_v54  ;;  %v3603_v31 = vadd.f32 %v3602_v22, %v3588_v30  ;;  %v11168_v30 = vpop.permute.xlu0 %3719 }
 0x9c9   :  { %v11153_v37 = vsub.f32 %v11074_v24, %v3567_v38  ;;  %v11156_v19 = vsub.f32 %v11070_v15, %v3567_v38  ;;  %v11159_v56 = vsub.f32 %v11078_v39, %v3567_v38  ;;  %v3604_v7 = vadd.f32 %v3603_v31, %v3589_v55 }
 0x9ca   :  { %v11162_v28 = vsub.f32 %v11084_v51, %v3567_v38 }
 0x9cb   :  { %3605 = vadd.xlane.f32.xlu2 %v3604_v7  ;;  %v3590_v3 = vmul.f32 %v11153_v37, %v11153_v37  ;;  %v3591_v46 = vmul.f32 %v11156_v19, %v11156_v19  ;;  %v3592_v22 = vmul.f32 %v11159_v56, %v11159_v56 }
 0x9cc   :  { %v3593_v55 = vmul.f32 %v11162_v28, %v11162_v28 }
 0x9cd   :  { %v3607_v42 = vadd.f32 %v3591_v46, %v3590_v3 }
 0x9ce   :  { %v3560_v60 = vpop.xlane.xlu2 %3559 }
 0x9cf   :  { %v3568_v26 = vmul.f32 %v3560_v60, %v15617_v54  ;;  %v3608_v38 = vadd.f32 %v3607_v42, %v3592_v22 }
 0x9d1   :  { %v11176_v31 = vsub.f32 %v11091_v29, %v3568_v26  ;;  %v11179_v7 = vsub.f32 %v11087_v1, %v3568_v26  ;;  %v11182_v18 = vsub.f32 %v11098_v62, %v3568_v26  ;;  %v3609_v11 = vadd.f32 %v3608_v38, %v3593_v55 }
 0x9d2   :  { %v11185_v3 = vsub.f32 %v11104_v41, %v3568_v26 }
 0x9d3   :  { %3610 = vadd.xlane.f32.xlu0 %v3609_v11  ;;  %v3594_v60 = vmul.f32 %v11176_v31, %v11176_v31  ;;  %v3595_v46 = vmul.f32 %v11179_v7, %v11179_v7  ;;  %v3596_v22 = vmul.f32 %v11182_v18, %v11182_v18 }
 0x9d4   :  { %v3597_v55 = vmul.f32 %v11185_v3, %v11185_v3 }
 0x9d5   :  { %v3612_v42 = vadd.f32 %v3595_v46, %v3594_v60 }
 0x9d6   :  { %v3565_v14 = vpop.xlane.xlu0 %3564 }
 0x9d7   :  { %v3569_v50 = vmul.f32 %v3565_v14, %v15617_v54  ;;  %v3613_v11 = vadd.f32 %v3612_v42, %v3596_v22 }
 0x9d9   :  { %v11197_v26 = vsub.f32 %v11113_v35, %v3569_v50  ;;  %v11200_v38 = vsub.f32 %v11108_v49, %v3569_v50  ;;  %v11203_v0 = vsub.f32 %v11116_v9, %v3569_v50  ;;  %v3614_v47 = vadd.f32 %v3613_v11, %v3597_v55 }
 0x9da   :  { %v11206_v60 = vsub.f32 %v11120_v17, %v3569_v50 }
 0x9db   :  { %3615 = vadd.xlane.f32.xlu0 %v3614_v47  ;;  %v3598_v14 = vmul.f32 %v11197_v26, %v11197_v26  ;;  %v3599_v46 = vmul.f32 %v11200_v38, %v11200_v38  ;;  %v3600_v22 = vmul.f32 %v11203_v0, %v11203_v0 }
 0x9dc   :  { %v3601_v20 = vmul.f32 %v11206_v60, %v11206_v60 }
 0x9dd   :  { %v3617_v42 = vadd.f32 %v3599_v46, %v3598_v14 }
 0x9df   :  { %v3618_v9 = vadd.f32 %v3617_v42, %v3600_v22 }
 0x9e1   :  { %v3619_v44 = vadd.f32 %v3618_v9, %v3601_v20 }
 0x9e3   :  { %3620 = vadd.xlane.f32.xlu1 %v3619_v44 }
 0xa3e   :  { %v3606_v47 = vpop.xlane.xlu2 %3605 }
 0xa3f   :  { %v3622_v50 = vmul.f32 %v3606_v47, %v15617_v54 }
 0xa41   :  { %v3626_v55 = vadd.f32 1e-05, %v3622_v50 }
 0xa43   :  { %7180 = vrsqrt.f32 %v3626_v55  ;;  %vm3636_vm4 = vweird.f32 %v3626_v55 }
 0xa46   :  { %v3611_v11 = vpop.xlane.xlu0 %3610 }
 0xa47   :  { %v3623_v17 = vmul.f32 %v3611_v11, %v15617_v54 }
 0xa49   :  { %v7181_v39 = vpop.eup %7180  ;;  %v3627_v51 = vadd.f32 1e-05, %v3623_v17  ;;  %v7216_v17 = vld [vmem:[%s14415_s10] sm:$0xff] }
 0xa4a   :  { %v3631_v62 = vmul.f32 %v7181_v39, %v3626_v55  ;;  %vm3637_vm15 = vweird.f32 %v7181_v39 }
 0xa4b   :  { %7182 = vrsqrt.f32 %v3627_v51  ;;  %vm3638_vm7 = vmor %vm3636_vm4, %vm3637_vm15  ;;  %vm3646_vm12 = vweird.f32 %v3627_v51 }
 0xa4c   :  { %v3632_v41 = vmul.f32 %v7181_v39, %v3631_v62 }
 0xa4e   :  { %v3633_v14 = vmul.f32 0.5, %v3632_v41  ;;  %v3616_v46 = vpop.xlane.xlu0 %3615 }
 0xa4f   :  { %v3624_v40 = vmul.f32 %v3616_v46, %v15617_v54 }
 0xa50   :  { %v3634_v22 = vsub.f32 1.5, %v3633_v14 }
 0xa51   :  { %v7183_v20 = vpop.eup %7182  ;;  %v3628_v44 = vadd.f32 1e-05, %v3624_v40 }
 0xa52   :  { %v3635_v9 = vmul.f32 %v7181_v39, %v3634_v22  ;;  %v3641_v42 = vmul.f32 %v7183_v20, %v3627_v51  ;;  %vm3647_vm11 = vweird.f32 %v7183_v20 }
 0xa53   :  { %7184 = vrsqrt.f32 %v3628_v44  ;;  %vm3648_vm13 = vmor %vm3646_vm12, %vm3647_vm11  ;;  %vm3656_vm15 = vweird.f32 %v3628_v44 }
 0xa54   :  { %v3642_v47 = vmul.f32 %v7183_v20, %v3641_v42  ;;  %v3639_v50 = vsel %vm3638_vm7, %v7181_v39, %v3635_v9  ;;  %v7217_v42 = vld [vmem:[%s14415_s10 + $0x8] sm:$0xff] }
 0xa55   :  { %v3670_v62 = vmul.f32 %v7216_v17, %v3639_v50 }
 0xa56   :  { %v3643_v41 = vmul.f32 0.5, %v3642_v47  ;;  %v3621_v11 = vpop.xlane.xlu1 %3620 }
 0xa57   :  { %v3625_v46 = vmul.f32 %v3621_v11, %v15617_v54  ;;  %3676 = vperm.xlu2 %7154, %v3670_v62  }
 0xa58   :  { %v3644_v14 = vsub.f32 1.5, %v3643_v41 }
 0xa59   :  { %v7185_v40 = vpop.eup %7184  ;;  %v3629_v22 = vadd.f32 1e-05, %v3625_v46 }
 0xa5a   :  { %v3645_v55 = vmul.f32 %v7183_v20, %v3644_v14  ;;  %v3651_v8 = vmul.f32 %v7185_v40, %v3628_v44  ;;  %vm3657_vm14 = vweird.f32 %v7185_v40  ;;  %v7219_v44 = vld [vmem:[%s14415_s10 + $0x18] sm:$0xff] }
 0xa5b   :  { %7186 = vrsqrt.f32 %v3629_v22  ;;  %vm3658_vm4 = vmor %vm3656_vm15, %vm3657_vm14  ;;  %vm3666_vm11 = vweird.f32 %v3629_v22 }
 0xa5c   :  { %v3652_v39 = vmul.f32 %v7185_v40, %v3651_v8  ;;  %v3649_v9 = vsel %vm3648_vm13, %v7183_v20, %v3645_v55  ;;  %v7218_v8 = vld [vmem:[%s14415_s10 + $0x10] sm:$0xff] }
 0xa5d   :  { %v3671_v47 = vmul.f32 %v7217_v42, %v3649_v9 }
 0xa5e   :  { %v3653_v50 = vmul.f32 0.5, %v3652_v39 }
 0xa5f   :  { %3681 = vperm.xlu1 %7153, %v3671_v47  }
 0xa60   :  { %v3654_v17 = vsub.f32 1.5, %v3653_v50 }
 0xa61   :  { %v7187_v62 = vpop.eup %7186 }
 0xa62   :  { %v3655_v41 = vmul.f32 %v7185_v40, %v3654_v17  ;;  %v3661_v11 = vmul.f32 %v7187_v62, %v3629_v22  ;;  %vm3667_vm7 = vweird.f32 %v7187_v62 }
 0xa63   :  { %vm3668_vm12 = vmor %vm3666_vm11, %vm3667_vm7 }
 0xa64   :  { %v3662_v51 = vmul.f32 %v7187_v62, %v3661_v11  ;;  %v3659_v46 = vsel %vm3658_vm4, %v7185_v40, %v3655_v41 }
 0xa65   :  { %v3672_v20 = vmul.f32 %v7218_v8, %v3659_v46 }
 0xa66   :  { %v3663_v14 = vmul.f32 0.5, %v3662_v51 }
 0xa67   :  { %3686 = vperm.xlu1 %7153, %v3672_v20  }
 0xa68   :  { %v3664_v55 = vsub.f32 1.5, %v3663_v14 }
 0xa6a   :  { %v3665_v39 = vmul.f32 %v7187_v62, %v3664_v55 }
 0xa6c   :  { %v3669_v9 = vsel %vm3668_vm12, %v7187_v62, %v3665_v39 }
 0xa6d   :  { %v3673_v42 = vmul.f32 %v7219_v44, %v3669_v9 }
 0xa6f   :  { %3691 = vperm.xlu2 %7154, %v3673_v42  }
 0xab1   :  { %v3677_v40 = vpop.permute.xlu2 %3676 }
 0xab2   :  { %v3694_v47 = vmul.f32 %v3677_v40, %v11132_v27  ;;  %v3695_v50 = vmul.f32 %v3677_v40, %v11135_v36  ;;  %v3697_v17 = vmul.f32 %v3677_v40, %v11141_v4  ;;  %v3696_v62 = vmul.f32 %v3677_v40, %v11138_v33 }
 0xab4   :  { %v3726_v41 = vadd.f32 %v11128_v43, %v3694_v47  ;;  %v3727_v11 = vadd.f32 %v11128_v43, %v3695_v50  ;;  %v3729_v22 = vadd.f32 %v11128_v43, %v3697_v17  ;;  %v3728_v36 = vadd.f32 %v11128_v43, %v3696_v62 }
 0xab6   :  { %v3742_v51 = vmax.f32 %v3726_v41, 0.0  ;;  %v3743_v46 = vmax.f32 %v3727_v11, 0.0  ;;  %v11239_v8 = vmax.f32 %v3729_v22, 0.0  ;;  %v11248_v4 = vmax.f32 %v3728_v36, 0.0 }
 0xab8   :  { %4006 = vrot.lane.b32.xlu0 %v11239_v8, %s7239_s27  ;;  %3990 = vrot.lane.b32.xlu1 %v3743_v46, %s7239_s27  ;;  %v11244_v27 = vpack.c.bf16 %v3743_v46, %v3742_v51 }
 0xab9   :  { %3982 = vrot.lane.b32.xlu2 %v3742_v51, %s7239_s27 }
 0xaba   :  { %15618 = vst [vmem:[#allocation54_spill] sm:$0xff] %v11244_v27 }
 0xac0   :  { %4222 = vrot.lane.b32.xlu0 %v11248_v4, %s7242_s30  ;;  %4214 = vrot.lane.b32.xlu1 %v3743_v46, %s7242_s30 }
 0xac1   :  { %4206 = vrot.lane.b32.xlu2 %v3742_v51, %s7242_s30 }
 0xac8   :  { %3934 = vrot.lane.b32.xlu0 %v11239_v8, %s7238_s26  ;;  %3918 = vrot.lane.b32.xlu1 %v3743_v46, %s7238_s26 }
 0xac9   :  { %3910 = vrot.lane.b32.xlu2 %v3742_v51, %s7238_s26 }
 0xad0   :  { %4150 = vrot.lane.b32.xlu0 %v11248_v4, %s7241_s29  ;;  %4142 = vrot.lane.b32.xlu1 %v3743_v46, %s7241_s29 }
 0xad1   :  { %4134 = vrot.lane.b32.xlu2 %v3742_v51, %s7241_s29  ;;  %v3682_v43 = vpop.permute.xlu1 %3681 }
 0xad2   :  { %v3698_v33 = vmul.f32 %v3682_v43, %v11153_v37  ;;  %v3701_v20 = vmul.f32 %v3682_v43, %v11162_v28  ;;  %v3700_v39 = vmul.f32 %v3682_v43, %v11159_v56  ;;  %v3699_v28 = vmul.f32 %v3682_v43, %v11156_v19  ;;  %v11312_v19 = vpop.permute.xlu2 %3691 }
 0xad3   :  { %v3707_v57 = vmul.f32 %v11312_v19, %v11200_v38 }
 0xad4   :  { %v3730_v14 = vadd.f32 %v11126_v23, %v3698_v33  ;;  %v3733_v55 = vadd.f32 %v11126_v23, %v3701_v20  ;;  %v3732_v44 = vadd.f32 %v11126_v23, %v3700_v39  ;;  %v3731_v42 = vadd.f32 %v11126_v23, %v3699_v28 }
 0xad6   :  { %v11289_v9 = vmax.f32 %v3730_v14, 0.0  ;;  %v11291_v37 = vmax.f32 %v3733_v55, 0.0  ;;  %v11302_v56 = vmax.f32 %v3732_v44, 0.0  ;;  %v11304_v40 = vmax.f32 %v3731_v42, 0.0 }
 0xad8   :  { %3862 = vrot.lane.b32.xlu0 %v11239_v8, %s7237_s0  ;;  %3846 = vrot.lane.b32.xlu1 %v3743_v46, %s7237_s0 }
 0xad9   :  { %3838 = vrot.lane.b32.xlu2 %v3742_v51, %s7237_s0  ;;  %v3687_v50 = vpop.permute.xlu1 %3686 }
 0xada   :  { %v3703_v20 = vmul.f32 %v3687_v50, %v11179_v7  ;;  %v3705_v44 = vmul.f32 %v3687_v50, %v11185_v3  ;;  %v3702_v42 = vmul.f32 %v3687_v50, %v11176_v31  ;;  %v3704_v31 = vmul.f32 %v3687_v50, %v11182_v18 }
 0xadc   :  { %v3735_v14 = vadd.f32 %v11168_v30, %v3703_v20  ;;  %v3737_v20 = vadd.f32 %v11168_v30, %v3705_v44  ;;  %v3734_v3 = vadd.f32 %v11168_v30, %v3702_v42  ;;  %v3736_v44 = vadd.f32 %v11168_v30, %v3704_v31 }
 0xade   :  { %v11389_v7 = vmax.f32 %v3735_v14, 0.0  ;;  %v11407_v25 = vmax.f32 %v3737_v20, 0.0  ;;  %v11409_v63 = vmax.f32 %v3734_v3, 0.0  ;;  %v11424_v50 = vmax.f32 %v3736_v44, 0.0 }
 0xae0   :  { %4078 = vrot.lane.b32.xlu0 %v11248_v4, %s7240_s28  ;;  %4070 = vrot.lane.b32.xlu1 %v3743_v46, %s7240_s28 }
 0xae1   :  { %4062 = vrot.lane.b32.xlu2 %v3742_v51, %s7240_s28 }
 0xae8   :  { %4294 = vrot.lane.b32.xlu0 %v11248_v4, %s7243_s13  ;;  %4286 = vrot.lane.b32.xlu1 %v3743_v46, %s7243_s13 }
 0xae9   :  { %4278 = vrot.lane.b32.xlu2 %v3742_v51, %s7243_s13 }
 0xaf0   :  { %3790 = vrot.lane.b32.xlu0 %v11239_v8, %s7236_s25  ;;  %3774 = vrot.lane.b32.xlu1 %v3743_v46, %s7236_s25 }
 0xaf1   :  { %3766 = vrot.lane.b32.xlu2 %v3742_v51, %s7236_s25 }
 0xaf8   :  { %3998 = vrot.lane.b32.xlu0 %v11248_v4, %s7239_s27  ;;  %4158 = vrot.lane.b32.xlu1 %v11239_v8, %s7241_s29 }
 0xaf9   :  { %4230 = vrot.lane.b32.xlu2 %v11239_v8, %s7242_s30 }
 0xb00   :  { %3984 = vrot.lane.b32.xlu0 %v11289_v9, %s7239_s27  ;;  %4008 = vrot.lane.b32.xlu1 %v11291_v37, %s7239_s27 }
 0xb01   :  { %3926 = vrot.lane.b32.xlu2 %v11248_v4, %s7238_s26 }
 0xb08   :  { %4208 = vrot.lane.b32.xlu0 %v11289_v9, %s7242_s30  ;;  %4224 = vrot.lane.b32.xlu1 %v11302_v56, %s7242_s30 }
 0xb09   :  { %3992 = vrot.lane.b32.xlu2 %v11304_v40, %s7239_s27 }
 0xb10   :  { %3912 = vrot.lane.b32.xlu0 %v11289_v9, %s7238_s26  ;;  %3936 = vrot.lane.b32.xlu1 %v11291_v37, %s7238_s26 }
 0xb11   :  { %4216 = vrot.lane.b32.xlu2 %v11304_v40, %s7242_s30 }
 0xb13   :  { %v11320_v23 = vpop.permute.xlu2 %3982 }
 0xb18   :  { %4136 = vrot.lane.b32.xlu0 %v11289_v9, %s7241_s29  ;;  %4152 = vrot.lane.b32.xlu1 %v11302_v56, %s7241_s29 }
 0xb19   :  { %3920 = vrot.lane.b32.xlu2 %v11304_v40, %s7238_s26 }
 0xb1b   :  { %v11328_v47 = vpop.permute.xlu2 %4206 }
 0xb20   :  { %3840 = vrot.lane.b32.xlu0 %v11289_v9, %s7237_s0  ;;  %3864 = vrot.lane.b32.xlu1 %v11291_v37, %s7237_s0 }
 0xb21   :  { %4144 = vrot.lane.b32.xlu2 %v11304_v40, %s7241_s29 }
 0xb23   :  { %v11336_v17 = vpop.permute.xlu2 %3910 }
 0xb28   :  { %4064 = vrot.lane.b32.xlu0 %v11289_v9, %s7240_s28  ;;  %4080 = vrot.lane.b32.xlu1 %v11302_v56, %s7240_s28 }
 0xb29   :  { %3848 = vrot.lane.b32.xlu2 %v11304_v40, %s7237_s0 }
 0xb2a   :  { %v11344_v41 = vpop.permute.xlu0 %4006  ;;  %v11346_v11 = vpop.permute.xlu1 %3990 }
 0xb2b   :  { %15619 = vst [vmem:[#allocation70_spill] sm:$0xff] %v11344_v41  ;;  %v11348_v22 = vpop.permute.xlu2 %4134 }
 0xb2c   :  { %15620 = vst [vmem:[#allocation57_spill] sm:$0xff] %v11346_v11 }
 0xb30   :  { %4280 = vrot.lane.b32.xlu0 %v11289_v9, %s7243_s13  ;;  %4296 = vrot.lane.b32.xlu1 %v11302_v56, %s7243_s13 }
 0xb31   :  { %4072 = vrot.lane.b32.xlu2 %v11304_v40, %s7240_s28 }
 0xb32   :  { %v11356_v62 = vpop.permute.xlu0 %4222  ;;  %v11358_v51 = vpop.permute.xlu1 %4214 }
 0xb33   :  { %v11360_v46 = vpop.permute.xlu2 %3838 }
 0xb38   :  { %3768 = vrot.lane.b32.xlu0 %v11289_v9, %s7236_s25  ;;  %3792 = vrot.lane.b32.xlu1 %v11291_v37, %s7236_s25 }
 0xb39   :  { %4288 = vrot.lane.b32.xlu2 %v11304_v40, %s7243_s13 }
 0xb3a   :  { %v11368_v36 = vpop.permute.xlu0 %3934  ;;  %v11370_v43 = vpop.permute.xlu1 %3918 }
 0xb3b   :  { %v11372_v33 = vpop.permute.xlu2 %4062 }
 0xb3c   :  { %15621 = vst [vmem:[#allocation108_spill] sm:$0xff] %v11372_v33 }
 0xb40   :  { %4232 = vrot.lane.b32.xlu0 %v11291_v37, %s7242_s30  ;;  %4000 = vrot.lane.b32.xlu1 %v11302_v56, %s7239_s27 }
 0xb41   :  { %3776 = vrot.lane.b32.xlu2 %v11304_v40, %s7236_s25 }
 0xb42   :  { %v11382_v55 = vpop.permute.xlu0 %4150  ;;  %v11384_v39 = vpop.permute.xlu1 %4142 }
 0xb43   :  { %v11386_v28 = vpop.permute.xlu2 %4278 }
 0xb44   :  { %15622 = vst [vmem:[#allocation55_spill] sm:$0xff] %v11386_v28 }
 0xb48   :  { %3928 = vrot.lane.b32.xlu0 %v11302_v56, %s7238_s26  ;;  %3994 = vrot.lane.b32.xlu1 %v11389_v7, %s7239_s27 }
 0xb49   :  { %4160 = vrot.lane.b32.xlu2 %v11291_v37, %s7241_s29 }
 0xb4a   :  { %v11399_v21 = vpop.permute.xlu0 %3862  ;;  %v11401_v52 = vpop.permute.xlu1 %3846 }
 0xb4b   :  { %15623 = vst [vmem:[#allocation71_spill] sm:$0xff] %v11399_v21  ;;  %v11404_v14 = vpop.permute.xlu2 %3766 }
 0xb4c   :  { %15624 = vst [vmem:[#allocation63_spill] sm:$0xff] %v11401_v52 }
 0xb50   :  { %4010 = vrot.lane.b32.xlu0 %v11407_v25, %s7239_s27  ;;  %4218 = vrot.lane.b32.xlu1 %v11389_v7, %s7242_s30 }
 0xb51   :  { %3986 = vrot.lane.b32.xlu2 %v11409_v63, %s7239_s27 }
 0xb52   :  { %v11418_v42 = vpop.permute.xlu0 %4078  ;;  %v11420_v49 = vpop.permute.xlu1 %4070 }
 0xb53   :  { %15625 = vst [vmem:[#allocation81_spill] sm:$0xff] %v11418_v42  ;;  %v11422_v18 = vpop.permute.xlu2 %4230 }
 0xb58   :  { %4226 = vrot.lane.b32.xlu0 %v11424_v50, %s7242_s30  ;;  %3922 = vrot.lane.b32.xlu1 %v11389_v7, %s7238_s26 }
 0xb59   :  { %4210 = vrot.lane.b32.xlu2 %v11409_v63, %s7242_s30 }
 0xb5a   :  { %v11432_v20 = vpop.permute.xlu0 %4294  ;;  %v11434_v30 = vpop.permute.xlu1 %4286 }
 0xb5b   :  { %15626 = vst [vmem:[#allocation93_spill] sm:$0xff] %v11432_v20  ;;  %v11436_v3 = vpop.permute.xlu2 %3926 }
 0xb60   :  { %3938 = vrot.lane.b32.xlu0 %v11407_v25, %s7238_s26  ;;  %4146 = vrot.lane.b32.xlu1 %v11389_v7, %s7241_s29 }
 0xb61   :  { %3914 = vrot.lane.b32.xlu2 %v11409_v63, %s7238_s26 }
 0xb62   :  { %v11444_v31 = vpop.permute.xlu0 %3790  ;;  %v11446_v44 = vpop.permute.xlu1 %3774 }
 0xb63   :  { %15627 = vst [vmem:[#allocation53_spill] sm:$0xff] %v11444_v31  ;;  %v11448_v53 = vpop.permute.xlu2 %3992 }
 0xb64   :  { %15628 = vst [vmem:[#allocation131_spill] sm:$0xff] %v11446_v44 }
 0xb68   :  { %4154 = vrot.lane.b32.xlu0 %v11424_v50, %s7241_s29  ;;  %3850 = vrot.lane.b32.xlu1 %v11389_v7, %s7237_s0 }
 0xb69   :  { %4138 = vrot.lane.b32.xlu2 %v11409_v63, %s7241_s29 }
 0xb6a   :  { %v11456_v13 = vpop.permute.xlu0 %3998  ;;  %v11458_v35 = vpop.permute.xlu1 %4158 }
 0xb6b   :  { %15629 = vst [vmem:[#allocation60_spill] sm:$0xff] %v11456_v13  ;;  %v11460_v15 = vpop.permute.xlu2 %4216  ;;  %v15699_v13 = vld [vmem:[#allocation27_spill] sm:$0xff] }
 0xb6c   :  { %15630 = vst [vmem:[#allocation121_spill] sm:$0xff] %v11458_v35 }
 0xb6d   :  { %15631 = vst [vmem:[#allocation97_spill] sm:$0xff] %v11460_v15 }
 0xb70   :  { %3866 = vrot.lane.b32.xlu0 %v11407_v25, %s7237_s0  ;;  %4074 = vrot.lane.b32.xlu1 %v11389_v7, %s7240_s28 }
 0xb71   :  { %3842 = vrot.lane.b32.xlu2 %v11409_v63, %s7237_s0 }
 0xb72   :  { %v11468_v24 = vpop.permute.xlu0 %3984  ;;  %v11470_v1 = vpop.permute.xlu1 %4008 }
 0xb73   :  { %v11472_v29 = vpop.permute.xlu2 %3920 }
 0xb74   :  { %15632 = vst [vmem:[#allocation68_spill] sm:$0xff] %v11472_v29 }
 0xb78   :  { %4082 = vrot.lane.b32.xlu0 %v11424_v50, %s7240_s28  ;;  %4290 = vrot.lane.b32.xlu1 %v11389_v7, %s7243_s13 }
 0xb79   :  { %4066 = vrot.lane.b32.xlu2 %v11409_v63, %s7240_s28 }
 0xb7a   :  { %v11480_v54 = vpop.permute.xlu0 %4208  ;;  %v11482_v59 = vpop.permute.xlu1 %4224 }
 0xb7b   :  { %15633 = vst [vmem:[#allocation92_spill] sm:$0xff] %v11480_v54  ;;  %v11484_v10 = vpop.permute.xlu2 %4144  ;;  %v15690_v54 = vld [vmem:[#allocation23_spill] sm:$0xff] }
 0xb7c   :  { %15634 = vst [vmem:[#allocation90_spill] sm:$0xff] %v11482_v59 }
 0xb7d   :  { %15635 = vst [vmem:[#allocation51_spill] sm:$0xff] %v11484_v10 }
 0xb80   :  { %4298 = vrot.lane.b32.xlu0 %v11424_v50, %s7243_s13  ;;  %3778 = vrot.lane.b32.xlu1 %v11389_v7, %s7236_s25 }
 0xb81   :  { %4282 = vrot.lane.b32.xlu2 %v11409_v63, %s7243_s13 }
 0xb82   :  { %v11492_v45 = vpop.permute.xlu0 %3912  ;;  %v11494_v32 = vpop.permute.xlu1 %3936 }
 0xb83   :  { %15636 = vst [vmem:[#allocation101_spill] sm:$0xff] %v11492_v45  ;;  %v11496_v12 = vpop.permute.xlu2 %3848 }
 0xb84   :  { %15637 = vst [vmem:[#allocation120_spill] sm:$0xff] %v11494_v32  ;;  %v3709_v32 = vmul.f32 %v11312_v19, %v11206_v60  ;;  %v3706_v60 = vmul.f32 %v11312_v19, %v11197_v26 }
 0xb85   :  { %15638 = vst [vmem:[#allocation126_spill] sm:$0xff] %v11496_v12 }
 0xb86   :  { %v3741_v12 = vadd.f32 %v11124_v6, %v3709_v32  ;;  %v3738_v32 = vadd.f32 %v11124_v6, %v3706_v60 }
 0xb88   :  { %3794 = vrot.lane.b32.xlu0 %v11407_v25, %s7236_s25  ;;  %4234 = vrot.lane.b32.xlu1 %v11407_v25, %s7242_s30  ;;  %v11529_v29 = vmax.f32 %v3741_v12, 0.0 }
 0xb89   :  { %3770 = vrot.lane.b32.xlu2 %v11409_v63, %s7236_s25 }
 0xb8a   :  { %v11504_v58 = vpop.permute.xlu0 %4136  ;;  %v11506_v5 = vpop.permute.xlu1 %4152 }
 0xb8b   :  { %15639 = vst [vmem:[#allocation102_spill] sm:$0xff] %v11504_v58  ;;  %v11508_v10 = vpop.permute.xlu2 %4072 }
 0xb8c   :  { %15640 = vst [vmem:[#allocation122_spill] sm:$0xff] %v11506_v5 }
 0xb8d   :  { %15641 = vst [vmem:[#allocation115_spill] sm:$0xff] %v11508_v10  ;;  %v3708_v10 = vmul.f32 %v11312_v19, %v11203_v0  ;;  %v3739_v0 = vadd.f32 %v11124_v6, %v3707_v57  ;;  %v11548_v19 = vmax.f32 %v3738_v32, 0.0 }
 0xb8f   :  { %v3740_v26 = vadd.f32 %v11124_v6, %v3708_v10 }
 0xb90   :  { %4162 = vrot.lane.b32.xlu0 %v11407_v25, %s7241_s29  ;;  %3930 = vrot.lane.b32.xlu1 %v11424_v50, %s7238_s26 }
 0xb91   :  { %4002 = vrot.lane.b32.xlu2 %v11424_v50, %s7239_s27 }
 0xb92   :  { %v11519_v45 = vpop.permute.xlu0 %3840  ;;  %v11521_v58 = vpop.permute.xlu1 %3864 }
 0xb93   :  { %15642 = vst [vmem:[#allocation61_spill] sm:$0xff] %v11519_v45  ;;  %v11523_v5 = vpop.permute.xlu2 %4288  ;;  %v11552_v45 = vmax.f32 %v3739_v0, 0.0 }
 0xb94   :  { %15643 = vst [vmem:[#allocation62_spill] sm:$0xff] %v11521_v58  ;;  %v11550_v58 = vmax.f32 %v3740_v26, 0.0 }
 0xb95   :  { %15644 = vst [vmem:[#allocation66_spill] sm:$0xff] %v11523_v5  ;;  %v11716_v35 = vpack.c.bf16 %v11552_v45, %v11548_v19 }
 0xb97   :  { %15685 = vst [vmem:[#allocation130_spill] sm:$0xff] %v11716_v35 }
 0xb98   :  { %3858 = vrot.lane.b32.xlu0 %v11424_v50, %s7237_s0  ;;  %4012 = vrot.lane.b32.xlu1 %v11529_v29, %s7239_s27 }
 0xb99   :  { %4090 = vrot.lane.b32.xlu2 %v11407_v25, %s7240_s28 }
 0xb9a   :  { %v11541_v5 = vpop.permute.xlu0 %4064  ;;  %v11543_v12 = vpop.permute.xlu1 %4080 }
 0xb9b   :  { %15645 = vst [vmem:[#allocation78_spill] sm:$0xff] %v11541_v5  ;;  %v11546_v38 = vpop.permute.xlu2 %3776 }
 0xb9c   :  { %15646 = vst [vmem:[#allocation84_spill] sm:$0xff] %v11543_v12 }
 0xb9d   :  { %15647 = vst [vmem:[#allocation106_spill] sm:$0xff] %v11546_v38 }
 0xba0   :  { %4228 = vrot.lane.b32.xlu1 %v11550_v58, %s7242_s30  ;;  %3988 = vrot.lane.b32.xlu0 %v11548_v19, %s7239_s27 }
 0xba1   :  { %3996 = vrot.lane.b32.xlu2 %v11552_v45, %s7239_s27 }
 0xba2   :  { %v11560_v10 = vpop.permute.xlu0 %4280  ;;  %v11562_v57 = vpop.permute.xlu1 %4296 }
 0xba3   :  { %15648 = vst [vmem:[#allocation88_spill] sm:$0xff] %v11560_v10  ;;  %v11564_v6 = vpop.permute.xlu2 %4160 }
 0xba4   :  { %15649 = vst [vmem:[#allocation96_spill] sm:$0xff] %v11562_v57 }
 0xba5   :  { %15650 = vst [vmem:[#allocation76_spill] sm:$0xff] %v11564_v6 }
 0xba8   :  { %3940 = vrot.lane.b32.xlu1 %v11529_v29, %s7238_s26  ;;  %4212 = vrot.lane.b32.xlu0 %v11548_v19, %s7242_s30 }
 0xba9   :  { %4220 = vrot.lane.b32.xlu2 %v11552_v45, %s7242_s30 }
 0xbaa   :  { %v11572_v60 = vpop.permute.xlu0 %3768  ;;  %v11574_v32 = vpop.permute.xlu1 %3792 }
 0xbab   :  { %15651 = vst [vmem:[#allocation125_spill] sm:$0xff] %v11572_v60  ;;  %v11576_v26 = vpop.permute.xlu2 %3986 }
 0xbac   :  { %15652 = vst [vmem:[#allocation112_spill] sm:$0xff] %v11574_v32 }
 0xbb0   :  { %4156 = vrot.lane.b32.xlu1 %v11550_v58, %s7241_s29  ;;  %3916 = vrot.lane.b32.xlu0 %v11548_v19, %s7238_s26 }
 0xbb1   :  { %3924 = vrot.lane.b32.xlu2 %v11552_v45, %s7238_s26 }
 0xbb2   :  { %v11584_v0 = vpop.permute.xlu0 %4232  ;;  %v11586_v38 = vpop.permute.xlu1 %4000 }
 0xbb3   :  { %15653 = vst [vmem:[#allocation105_spill] sm:$0xff] %v11584_v0  ;;  %v11588_v6 = vpop.permute.xlu2 %4210 }
 0xbb4   :  { %15654 = vst [vmem:[#allocation109_spill] sm:$0xff] %v11586_v38 }
 0xbb5   :  { %15655 = vst [vmem:[#allocation95_spill] sm:$0xff] %v11588_v6 }
 0xbb8   :  { %3868 = vrot.lane.b32.xlu1 %v11529_v29, %s7237_s0  ;;  %4140 = vrot.lane.b32.xlu0 %v11548_v19, %s7241_s29 }
 0xbb9   :  { %4148 = vrot.lane.b32.xlu2 %v11552_v45, %s7241_s29 }
 0xbba   :  { %v11596_v32 = vpop.permute.xlu0 %3928  ;;  %v11598_v60 = vpop.permute.xlu1 %3994 }
 0xbbb   :  { %15656 = vst [vmem:[#allocation64_spill] sm:$0xff] %v11596_v32  ;;  %v11600_v57 = vpop.permute.xlu2 %3914 }
 0xbbc   :  { %15657 = vst [vmem:[#allocation119_spill] sm:$0xff] %v11598_v60  ;;  %v15691_v60 = vld [vmem:[#allocation17_spill] sm:$0xff] }
 0xbbd   :  { %15658 = vst [vmem:[#allocation82_spill] sm:$0xff] %v11600_v57 }
 0xbc0   :  { %4084 = vrot.lane.b32.xlu1 %v11550_v58, %s7240_s28  ;;  %3844 = vrot.lane.b32.xlu0 %v11548_v19, %s7237_s0 }
 0xbc1   :  { %3852 = vrot.lane.b32.xlu2 %v11552_v45, %s7237_s0 }
 0xbc2   :  { %v11608_v38 = vpop.permute.xlu0 %4010  ;;  %v11610_v0 = vpop.permute.xlu1 %4218 }
 0xbc3   :  { %15659 = vst [vmem:[#allocation116_spill] sm:$0xff] %v11608_v38  ;;  %v11612_v10 = vpop.permute.xlu2 %4138 }
 0xbc4   :  { %15660 = vst [vmem:[#allocation129_spill] sm:$0xff] %v11610_v0 }
 0xbc5   :  { %15661 = vst [vmem:[#allocation124_spill] sm:$0xff] %v11612_v10 }
 0xbc8   :  { %4300 = vrot.lane.b32.xlu1 %v11550_v58, %s7243_s13  ;;  %4068 = vrot.lane.b32.xlu0 %v11548_v19, %s7240_s28 }
 0xbc9   :  { %4076 = vrot.lane.b32.xlu2 %v11552_v45, %s7240_s28 }
 0xbca   :  { %v11620_v32 = vpop.permute.xlu0 %4226  ;;  %v11622_v12 = vpop.permute.xlu1 %3922 }
 0xbcb   :  { %15662 = vst [vmem:[#allocation56_spill] sm:$0xff] %v11620_v32  ;;  %v11624_v5 = vpop.permute.xlu2 %3842  ;;  %v15683_v32 = vld [vmem:[#allocation31_spill] sm:$0xff] }
 0xbcc   :  { %15663 = vst [vmem:[#allocation123_spill] sm:$0xff] %v11622_v12 }
 0xbcd   :  { %15664 = vst [vmem:[#allocation91_spill] sm:$0xff] %v11624_v5 }
 0xbd0   :  { %3796 = vrot.lane.b32.xlu1 %v11529_v29, %s7236_s25  ;;  %4284 = vrot.lane.b32.xlu0 %v11548_v19, %s7243_s13 }
 0xbd1   :  { %4292 = vrot.lane.b32.xlu2 %v11552_v45, %s7243_s13 }
 0xbd2   :  { %v11632_v10 = vpop.permute.xlu0 %3938  ;;  %v11634_v57 = vpop.permute.xlu1 %4146 }
 0xbd3   :  { %15665 = vst [vmem:[#allocation80_spill] sm:$0xff] %v11632_v10  ;;  %v11636_v6 = vpop.permute.xlu2 %4066 }
 0xbd4   :  { %15666 = vst [vmem:[#allocation86_spill] sm:$0xff] %v11634_v57 }
 0xbd5   :  { %15667 = vst [vmem:[#allocation85_spill] sm:$0xff] %v11636_v6 }
 0xbd8   :  { %3854 = vrot.lane.b32.xlu1 %v11248_v4, %s7237_s0  ;;  %3772 = vrot.lane.b32.xlu0 %v11548_v19, %s7236_s25  ;;  %v3950_v19 = vsel %vm164_vm2, %v11336_v17, %v11370_v43 }
 0xbd9   :  { %3780 = vrot.lane.b32.xlu2 %v11552_v45, %s7236_s25 }
 0xbda   :  { %v11644_v5 = vpop.permute.xlu0 %4154  ;;  %v11646_v12 = vpop.permute.xlu1 %3850 }
 0xbdb   :  { %15668 = vst [vmem:[#allocation75_spill] sm:$0xff] %v11644_v5  ;;  %v11648_v0 = vpop.permute.xlu2 %4282 }
 0xbdc   :  { %15669 = vst [vmem:[#allocation87_spill] sm:$0xff] %v11646_v12 }
 0xbdd   :  { %15670 = vst [vmem:[#allocation104_spill] sm:$0xff] %v11648_v0 }
 0xbe0   :  { %4164 = vrot.lane.b32.xlu1 %v11529_v29, %s7241_s29  ;;  %4004 = vrot.lane.b32.xlu0 %v11550_v58, %s7239_s27 }
 0xbe1   :  { %4236 = vrot.lane.b32.xlu2 %v11529_v29, %s7242_s30 }
 0xbe2   :  { %v11656_v6 = vpop.permute.xlu0 %3866  ;;  %v11658_v57 = vpop.permute.xlu1 %4074 }
 0xbe3   :  { %15671 = vst [vmem:[#allocation74_spill] sm:$0xff] %v11656_v6  ;;  %v11660_v10 = vpop.permute.xlu2 %3770 }
 0xbe4   :  { %15672 = vst [vmem:[#allocation65_spill] sm:$0xff] %v11658_v57 }
 0xbe5   :  { %15673 = vst [vmem:[#allocation103_spill] sm:$0xff] %v11660_v10 }
 0xbe8   :  { %3860 = vrot.lane.b32.xlu1 %v11550_v58, %s7237_s0  ;;  %4086 = vrot.lane.b32.xlu0 %v11239_v8, %s7240_s28 }
 0xbe9   :  { %3932 = vrot.lane.b32.xlu2 %v11550_v58, %s7238_s26 }
 0xbea   :  { %v11668_v0 = vpop.permute.xlu0 %4082  ;;  %v11670_v12 = vpop.permute.xlu1 %4290 }
 0xbeb   :  { %15674 = vst [vmem:[#allocation67_spill] sm:$0xff] %v11668_v0  ;;  %v11672_v5 = vpop.permute.xlu2 %4002 }
 0xbec   :  { %15675 = vst [vmem:[#allocation128_spill] sm:$0xff] %v11670_v12  ;;  %v4022_v12 = vsel %vm203_vm3, %v11320_v23, %v11346_v11 }
 0xbed   :  { %15676 = vst [vmem:[#allocation69_spill] sm:$0xff] %v11672_v5  ;;  %v4026_v5 = vsel %vm203_vm3, %v11344_v41, %v11320_v23  ;;  %v4031_v59 = vmul.f32 %v4022_v12, %v15683_v32  ;;  %v11712_v23 = vpack.c.bf16 %v11389_v7, %v11409_v63  ;;  %v4246_v63 = vsel %vm333_vm10, %v11328_v47, %v11358_v51  ;;  %v15693_v41 = vld [vmem:[#allocation32_spill] sm:$0xff] }
 0xbee   :  { %v4518_v7 = vunpack.c.l.b16 %v11244_v27  ;;  %v4530_v12 = vunpack.c.l.b16 %v11716_v35  ;;  %v4254_v15 = vmul.f32 %v4246_v63, %v15690_v54  ;;  %v15703_v35 = vld [vmem:[#allocation16_spill] sm:$0xff] }
 0xbef   :  { %15684 = vst [vmem:[#allocation89_spill] sm:$0xff] %v11712_v23 }
 0xbf0   :  { %4088 = vrot.lane.b32.xlu1 %v11291_v37, %s7240_s28  ;;  %4092 = vrot.lane.b32.xlu0 %v11529_v29, %s7240_s28 }
 0xbf1   :  { %3856 = vrot.lane.b32.xlu2 %v11302_v56, %s7237_s0 }
 0xbf2   :  { %v11680_v10 = vpop.permute.xlu0 %4298  ;;  %v11682_v57 = vpop.permute.xlu1 %3778 }
 0xbf3   :  { %15677 = vst [vmem:[#allocation107_spill] sm:$0xff] %v11680_v10  ;;  %v11684_v6 = vpop.permute.xlu2 %4090  ;;  %v15682_v10 = vld [vmem:[#allocation30_spill] sm:$0xff] }
 0xbf4   :  { %15678 = vst [vmem:[#allocation114_spill] sm:$0xff] %v11682_v57  ;;  %v11700_v57 = vpack.c.bf16 %v11304_v40, %v11289_v9  ;;  %v4030_v0 = vmul.f32 %v4026_v5, %v15682_v10  ;;  %v11724_v5 = vpack.c.bf16 %v11529_v29, %v11550_v58 }
 0xbf5   :  { %15679 = vst [vmem:[#allocation111_spill] sm:$0xff] %v11684_v6  ;;  %v11704_v6 = vpack.c.bf16 %v11239_v8, %v11248_v4 }
 0xbf6   :  { %15680 = vst [vmem:[#allocation118_spill] sm:$0xff] %v11700_v57 }
 0xbf7   :  { %15681 = vst [vmem:[#allocation98_spill] sm:$0xff] %v11704_v6  ;;  %v4170_v6 = vsel %vm294_vm8, %v11384_v39, %v11382_v55 }
 0xbf8   :  { %3782 = vrot.lane.b32.xlu1 %v11248_v4, %s7236_s25  ;;  %3788 = vrot.lane.b32.xlu0 %v11550_v58, %s7236_s25  ;;  %15688 = vst [vmem:[#allocation135_spill] sm:$0xff] %v11724_v5  ;;  %v4242_v4 = vsel %vm333_vm10, %v11358_v51, %v11356_v62  ;;  %v3954_v58 = vsel %vm164_vm2, %v11368_v36, %v11336_v17 }
 0xbf9   :  { %3786 = vrot.lane.b32.xlu2 %v11424_v50, %s7236_s25  ;;  %v4255_v11 = vmul.f32 %v4242_v4, %v15691_v60  ;;  %v11758_v17 = vpack.c.bf16 %v11291_v37, %v11302_v56  ;;  %v3958_v51 = vmul.f32 %v3954_v58, %v15693_v41  ;;  %v4174_v4 = vsel %vm294_vm8, %v11348_v22, %v11384_v39 }
 0xbfa   :  { %v11718_v9 = vpop.permute.xlu0 %3794  ;;  %v11720_v40 = vpop.permute.xlu1 %4234  ;;  %v3882_v39 = vsel %vm125_vm0, %v11399_v21, %v11360_v46  ;;  %v4183_v27 = vmul.f32 %v4170_v6, %v15699_v13  ;;  %v4098_v58 = vsel %vm255_vm5, %v11420_v49, %v11418_v42  ;;  %v4238_v6 = vsel %vm333_vm10, %v11356_v62, %v11422_v18  ;;  %v15704_v62 = vld [vmem:[#allocation14_spill] sm:$0xff]  ;;  %v15725_v21 = vld [vmem:[#allocation8_spill] sm:$0xff] }
 0xbfb   :  { %15686 = vst [vmem:[#allocation52_spill] sm:$0xff] %v11718_v9  ;;  %v11734_v45 = vpop.permute.xlu2 %3996  ;;  %v11748_v9 = vpack.c.bf16 %v4031_v59, %v4030_v0  ;;  %v15694_v59 = vld [vmem:[#allocation33_spill] sm:$0xff]  ;;  %v15732_v42 = vld [vmem:[#allocation20_spill] sm:$0xff] }
 0xbfc   :  { %15687 = vst [vmem:[#allocation134_spill] sm:$0xff] %v11720_v40  ;;  %v4522_v40 = vunpack.c.l.b16 %v11700_v57  ;;  %v3959_v0 = vmul.f32 %v3950_v19, %v15694_v59  ;;  %v11779_v19 = vpack.c.bf16 %v11407_v25, %v11424_v50 }
 0xbfd   :  { %15689 = vst [vmem:[#allocation136_spill] sm:$0xff] %v11734_v45  ;;  %v4526_v45 = vunpack.c.l.b16 %v11712_v23 }
 0xbfe   :  { %15692 = vst [vmem:[#allocation137_spill] sm:$0xff] %v11758_v17  ;;  %v11774_v63 = vpack.c.b16 %v4522_v40, %v4518_v7  ;;  %v15707_v17 = vld [vmem:[#allocation29_spill] sm:$0xff] }
 0xbff   :  { %15696 = vst [vmem:[#allocation139_spill] sm:$0xff] %v11779_v19  ;;  %v11793_v7 = vpack.c.b16 %v4530_v12, %v4526_v45  ;;  %v11809_v45 = vpack.c.bf16 %v4255_v11, %v4254_v15  ;;  %v11811_v12 = vpack.c.bf16 %v3959_v0, %v3958_v51  ;;  %v4314_v15 = vsel %vm372_vm9, %v11434_v30, %v11432_v20  ;;  %v15705_v0 = vld [vmem:[#allocation15_spill] sm:$0xff] }
 0xc00   :  { %4308 = vrot.lane.b32.xlu1 %v11529_v29, %s7243_s13  ;;  %4306 = vrot.lane.b32.xlu0 %v11407_v25, %s7243_s13  ;;  %15695 = vst [vmem:[#allocation138_spill] sm:$0xff] %v11774_v63  ;;  %v3878_v29 = vsel %vm125_vm0, %v11360_v46, %v11401_v52  ;;  %v15698_v25 = vld [vmem:[#allocation26_spill] sm:$0xff]  ;;  %v4102_v46 = vsel %vm255_vm5, %v11372_v33, %v11420_v49  ;;  %v15702_v49 = vld [vmem:[#allocation13_spill] sm:$0xff] }
 0xc01   :  { %3784 = vrot.lane.b32.xlu2 %v11302_v56, %s7236_s25  ;;  %15697 = vst [vmem:[#allocation140_spill] sm:$0xff] %v11793_v7  ;;  %v4182_v50 = vmul.f32 %v4174_v4, %v15698_v25  ;;  %v4250_v4 = vsel %vm333_vm10, %v11422_v18, %v11328_v47  ;;  %v3886_v5 = vmul.f32 %v3882_v39, %v15702_v49  ;;  %v15723_v33 = vld [vmem:[#allocation121_spill] sm:$0xff] }
 0xc02   :  { %v11805_v57 = vpop.permute.xlu0 %4162  ;;  %v11807_v56 = vpop.permute.xlu1 %3930  ;;  %v3887_v23 = vmul.f32 %v3878_v29, %v15703_v35  ;;  %v4318_v11 = vsel %vm372_vm9, %v11386_v28, %v11434_v30  ;;  %v4110_v51 = vmul.f32 %v4102_v46, %v15704_v62  ;;  %v4111_v47 = vmul.f32 %v4098_v58, %v15705_v0  ;;  %v15706_v28 = vld [vmem:[#allocation28_spill] sm:$0xff]  ;;  %v15720_v46 = vld [vmem:[#allocation119_spill] sm:$0xff]  ;;  %v15726_v63 = vld [vmem:[#allocation9_spill] sm:$0xff] }
 0xc03   :  { %15700 = vst [vmem:[#allocation141_spill] sm:$0xff] %v11805_v57  ;;  %v11821_v40 = vpop.permute.xlu2 %4220  ;;  %v3942_v18 = vsel %vm164_vm2, %v11436_v3, %v11368_v36  ;;  %v3946_v39 = vsel %vm164_vm2, %v11370_v43, %v11436_v3  ;;  %v11843_v29 = vpack.c.bf16 %v4183_v27, %v4182_v50  ;;  %v4256_v20 = vmul.f32 %v4238_v6, %v15412_v61  ;;  %v15730_v57 = vld [vmem:[#allocation68_spill] sm:$0xff] }
 0xc04   :  { %15701 = vst [vmem:[#allocation142_spill] sm:$0xff] %v11807_v56  ;;  %v4257_v30 = vmul.f32 %v4250_v4, %v15413_v2  ;;  %v4326_v58 = vmul.f32 %v4318_v11, %v15706_v28  ;;  %v4327_v19 = vmul.f32 %v4314_v15, %v15707_v17  ;;  %v3810_v36 = vsel %vm86_vm1, %v11444_v31, %v11404_v14  ;;  %v15719_v31 = vld [vmem:[#allocation57_spill] sm:$0xff] }
 0xc05   :  { %v3806_v27 = vsel %vm86_vm1, %v11404_v14, %v11446_v44  ;;  %v11858_v43 = vpack.c.bf16 %v3887_v23, %v3886_v5  ;;  %v3960_v3 = vmul.f32 %v3946_v39, %v15425_v34  ;;  %v3961_v50 = vmul.f32 %v3942_v18, %v15426_v16  ;;  %v15709_v5 = vld [vmem:[#allocation21_spill] sm:$0xff]  ;;  %v15710_v39 = vld [vmem:[#allocation22_spill] sm:$0xff] }
 0xc06   :  { %v11865_v4 = vpack.c.bf16 %v4111_v47, %v4110_v51  ;;  %v3814_v11 = vmul.f32 %v3810_v36, %v15709_v5  ;;  %v3815_v18 = vmul.f32 %v3806_v27, %v15710_v39  ;;  %v11886_v14 = vpack.c.bf16 %v4257_v30, %v4256_v20 }
 0xc07   :  { %v11888_v15 = vpack.c.bf16 %v4327_v19, %v4326_v58  ;;  %v11894_v6 = vpack.c.bf16 %v3961_v50, %v3960_v3  ;;  %v15717_v3 = vld [vmem:[#allocation70_spill] sm:$0xff]  ;;  %v15718_v50 = vld [vmem:[#allocation60_spill] sm:$0xff] }
 0xc08   :  { %4304 = vrot.lane.b32.xlu0 %v11291_v37, %s7243_s13  ;;  %15708 = vst [vmem:[#allocation143_spill] sm:$0xff] %v11865_v4  ;;  %v4023_v37 = vsel %vm203_vm3, %v11468_v24, %v11448_v53  ;;  %v11906_v23 = vpack.c.bf16 %v3815_v18, %v3814_v11  ;;  %v4014_v44 = vsel %vm203_vm3, %v15718_v50, %v15717_v3  ;;  %v15722_v58 = vld [vmem:[#allocation92_spill] sm:$0xff]  ;;  %v15737_v4 = vld [vmem:[#allocation102_spill] sm:$0xff] }
 0xc09   :  { %4302 = vrot.lane.b32.xlu2 %v11239_v8, %s7243_s13  ;;  %v4027_v8 = vsel %vm203_vm3, %v11470_v1, %v11468_v24  ;;  %15713 = vst [vmem:[#allocation146_spill] sm:$0xff] %v11886_v14  ;;  %v4028_v24 = vsel %vm203_vm3, %v11608_v38, %v11576_v26  ;;  %v4035_v19 = vmul.f32 %v4023_v37, %v15683_v32  ;;  %v15731_v14 = vld [vmem:[#allocation101_spill] sm:$0xff] }
 0xc0a   :  { %v11882_v51 = vpop.permute.xlu0 %3858  ;;  %v11884_v47 = vpop.permute.xlu1 %4012  ;;  %15714 = vst [vmem:[#allocation147_spill] sm:$0xff] %v11888_v15  ;;  %v4034_v30 = vmul.f32 %v4027_v8, %v15682_v10  ;;  %v4018_v20 = vsel %vm203_vm3, %v15719_v31, %v15718_v50  ;;  %v4024_v37 = vsel %vm203_vm3, %v11576_v26, %v15720_v46  ;;  %v15721_v8 = vld [vmem:[#allocation97_spill] sm:$0xff]  ;;  %v4038_v18 = vmul.f32 %v4028_v24, %v15682_v10  ;;  %v15724_v50 = vld [vmem:[#allocation90_spill] sm:$0xff]  ;;  %v15736_v15 = vld [vmem:[#allocation51_spill] sm:$0xff] }
 0xc0b   :  { %15711 = vst [vmem:[#allocation144_spill] sm:$0xff] %v11882_v51  ;;  %v11890_v36 = vpop.permute.xlu2 %3924  ;;  %v4247_v11 = vsel %vm333_vm10, %v15722_v58, %v15721_v8  ;;  %v4166_v31 = vsel %vm294_vm8, %v11382_v55, %v15723_v33  ;;  %v4243_v26 = vsel %vm333_vm10, %v15721_v8, %v15724_v50  ;;  %v4032_v24 = vmul.f32 %v4018_v20, %v15725_v21  ;;  %v15734_v46 = vld [vmem:[#allocation129_spill] sm:$0xff] }
 0xc0c   :  { %15712 = vst [vmem:[#allocation145_spill] sm:$0xff] %v11884_v47  ;;  %v4033_v27 = vmul.f32 %v4014_v44, %v15726_v63  ;;  %v4048_v51 = vpack.c.bf16 %v4035_v19, %v4034_v30  ;;  %v4039_v3 = vmul.f32 %v4024_v37, %v15683_v32  ;;  %v4178_v55 = vsel %vm294_vm8, %v15723_v33, %v11348_v22  ;;  %v15728_v19 = vld [vmem:[#allocation136_spill] sm:$0xff] }
 0xc0d   :  { %15715 = vst [vmem:[#allocation148_spill] sm:$0xff] %v11890_v36  ;;  %v4258_v7 = vmul.f32 %v4247_v11, %v15690_v54  ;;  %v4259_v20 = vmul.f32 %v4243_v26, %v15691_v60  ;;  %v15729_v37 = vld [vmem:[#allocation12_spill] sm:$0xff]  ;;  %v3951_v52 = vsel %vm164_vm2, %v15731_v14, %v15730_v57 }
 0xc0e   :  { %15716 = vst [vmem:[#allocation149_spill] sm:$0xff] %v11894_v6  ;;  %v4050_v44 = vpack.c.bf16 %v4039_v3, %v4038_v18  ;;  %v4184_v11 = vmul.f32 %v4166_v31, %v15729_v37  ;;  %v11965_v3 = vpack.c.bf16 %v4033_v27, %v4032_v24  ;;  %v15733_v6 = vld [vmem:[#allocation56_spill] sm:$0xff]  ;;  %v15738_v27 = vld [vmem:[#allocation122_spill] sm:$0xff] }
 0xc0f   :  { %v15735_v31 = vld [vmem:[#allocation120_spill] sm:$0xff]  ;;  %v4171_v24 = vsel %vm294_vm8, %v15736_v15, %v15738_v27 }
 0xc10   :  { %v3955_v38 = vsel %vm164_vm2, %v15735_v31, %v15731_v14  ;;  %v4487_v16 = vunpack.c.h.b16 %v4050_v44 }
 0xc11   :  { %v3962_v2 = vmul.f32 %v3955_v38, %v15693_v41  ;;  %v15743_v38 = vld [vmem:[#allocation126_spill] sm:$0xff] }
 0xc12   :  { %v11945_v56 = vpop.permute.xlu1 %4228  ;;  %v3989_v8 = vpop.permute.xlu0 %3988 }
 0xc13   :  { %15727 = vst [vmem:[#allocation70_spill] sm:$0xff] %v11945_v56  ;;  %v4025_v30 = vsel %vm203_vm3, %v3989_v8, %v15728_v19  ;;  %v4029_v22 = vsel %vm203_vm3, %v11884_v47, %v3989_v8  ;;  %v11956_v33 = vpop.permute.xlu2 %4148  ;;  %v4185_v19 = vmul.f32 %v4178_v55, %v15732_v42  ;;  %v4244_v8 = vsel %vm333_vm10, %v15734_v46, %v15733_v6  ;;  %v15739_v6 = vld [vmem:[#allocation95_spill] sm:$0xff] }
 0xc14   :  { %v4042_v26 = vmul.f32 %v4029_v22, %v15682_v10  ;;  %v4043_v18 = vmul.f32 %v4025_v30, %v15683_v32  ;;  %v4482_v47 = vunpack.c.l.b16 %v4048_v51  ;;  %v4175_v30 = vsel %vm294_vm8, %v15737_v4, %v15736_v15 }
 0xc15   :  { %v4272_v22 = vpack.c.bf16 %v4259_v20, %v4258_v7  ;;  %v3963_v32 = vmul.f32 %v3951_v52, %v15694_v59  ;;  %v4486_v10 = vunpack.c.l.b16 %v4050_v44  ;;  %v4248_v14 = vsel %vm333_vm10, %v15739_v6, %v15734_v46 }
 0xc16   :  { %v4052_v55 = vpack.c.bf16 %v4043_v18, %v4042_v26  ;;  %v4263_v34 = vmul.f32 %v4244_v8, %v15691_v60  ;;  %v4186_v57 = vmul.f32 %v4175_v30, %v15698_v25  ;;  %v4187_v15 = vmul.f32 %v4171_v24, %v15699_v13  ;;  %v15744_v30 = vld [vmem:[#allocation61_spill] sm:$0xff] }
 0xc17   :  { %v4245_v52 = vsel %vm333_vm10, %v11821_v40, %v11945_v56  ;;  %v4262_v7 = vmul.f32 %v4248_v14, %v15690_v54  ;;  %v4483_v18 = vunpack.c.h.b16 %v4048_v51  ;;  %v12002_v8 = vpack.c.bf16 %v4185_v19, %v4184_v11  ;;  %v15756_v51 = vld [vmem:[#allocation84_spill] sm:$0xff] }
 0xc18   :  { %v4490_v63 = vunpack.c.l.b16 %v4052_v55  ;;  %v4491_v21 = vunpack.c.h.b16 %v4052_v55  ;;  %v3879_v24 = vsel %vm125_vm0, %v15744_v30, %v15743_v38  ;;  %v15745_v55 = vld [vmem:[#allocation62_spill] sm:$0xff]  ;;  %v3976_v19 = vpack.c.bf16 %v3963_v32, %v3962_v2  ;;  %v15748_v38 = vld [vmem:[#allocation80_spill] sm:$0xff]  ;;  %v15752_v32 = vld [vmem:[#allocation123_spill] sm:$0xff] }
 0xc19   :  { %15742 = vst [vmem:[#allocation97_spill] sm:$0xff] %v12002_v8  ;;  %v3883_v56 = vsel %vm125_vm0, %v15745_v55, %v15744_v30  ;;  %v12023_v11 = vpack.c.bf16 %v4187_v15, %v4186_v57  ;;  %v15747_v30 = vld [vmem:[#allocation82_spill] sm:$0xff]  ;;  %v4642_v55 = vunpack.c.l.b16 %v4272_v22  ;;  %v3891_v2 = vmul.f32 %v3879_v24, %v15703_v35 }
 0xc1a   :  { %v11998_v20 = vpop.permute.xlu1 %3940  ;;  %v12000_v46 = vpop.permute.xlu0 %4212  ;;  %v4498_v44 = vpack.c.b16 %v4490_v63, %v4486_v10  ;;  %v4499_v26 = vpack.c.b16 %v4491_v21, %v4487_v16  ;;  %v12018_v16 = vpack.c.bf16 %v4263_v34, %v4262_v7  ;;  %v4267_v21 = vmul.f32 %v4245_v52, %v15691_v60 }
 0xc1b   :  { %15740 = vst [vmem:[#allocation60_spill] sm:$0xff] %v11998_v20  ;;  %v4249_v14 = vsel %vm333_vm10, %v12000_v46, %v11821_v40  ;;  %v12016_v10 = vpop.permute.xlu2 %3852  ;;  %v3956_v40 = vsel %vm164_vm2, %v15748_v38, %v15747_v30  ;;  %v15750_v34 = vunpack.c.l.b16 %v11748_v9  ;;  %v15751_v7 = vunpack.c.h.b16 %v11748_v9 }
 0xc1c   :  { %15741 = vst [vmem:[#allocation57_spill] sm:$0xff] %v12000_v46  ;;  %v4266_v63 = vmul.f32 %v4249_v14, %v15690_v54  ;;  %4746 = vmatpush.bf16.msrb.mxu0 %v4498_v44  ;;  %4803 = vmatpush.bf16.msrb.mxu3 %v4499_v26  ;;  %v3890_v57 = vmul.f32 %v3883_v56, %v15702_v49  ;;  %v4643_v14 = vunpack.c.h.b16 %v4272_v22  ;;  %v4442_v56 = vunpack.c.l.b16 %v3976_v19  ;;  %v15754_v26 = vld [vmem:[#allocation115_spill] sm:$0xff] }
 0xc1d   :  { %15746 = vst [vmem:[#allocation92_spill] sm:$0xff] %v12016_v10  ;;  %v4494_v52 = vpack.c.b16 %v4482_v47, %v15750_v34  ;;  %v4495_v44 = vpack.c.b16 %v4483_v18, %v15751_v7  ;;  %v3952_v15 = vsel %vm164_vm2, %v15747_v30, %v15752_v32  ;;  %v15753_v18 = vunpack.c.l.b16 %v11809_v45  ;;  %v15755_v30 = vld [vmem:[#allocation78_spill] sm:$0xff] }
 0xc1e   :  { %v12029_v46 = vpack.c.bf16 %v4267_v21, %v4266_v63  ;;  %v4646_v21 = vunpack.c.l.b16 %v12018_v16  ;;  %v3966_v63 = vmul.f32 %v3956_v40, %v15693_v41  ;;  %v4443_v34 = vunpack.c.h.b16 %v3976_v19 }
 0xc1f   :  { %v4654_v24 = vpack.c.b16 %v4642_v55, %v15753_v18  ;;  %v4602_v7 = vunpack.c.l.b16 %v12023_v11  ;;  %v4103_v22 = vsel %vm255_vm5, %v15755_v30, %v15754_v26  ;;  %v4099_v40 = vsel %vm255_vm5, %v15754_v26, %v15756_v51  ;;  %v15760_v51 = vld [vmem:[#allocation75_spill] sm:$0xff] }
 0xc20   :  { %15749 = vst [vmem:[#allocation121_spill] sm:$0xff] %v12029_v46  ;;  %v4650_v47 = vunpack.c.l.b16 %v12029_v46  ;;  %4747 = vmatpush.bf16.msrb.mxu0 %v4494_v52  ;;  %4804 = vmatpush.bf16.msrb.mxu3 %v4495_v44  ;;  %v3967_v52 = vmul.f32 %v3952_v15, %v15694_v59  ;;  %v3904_v18 = vpack.c.bf16 %v3891_v2, %v3890_v57  ;;  %v15758_v30 = vunpack.c.h.b16 %v11809_v45  ;;  %v15761_v46 = vld [vmem:[#allocation86_spill] sm:$0xff] }
 0xc21   :  { %v4172_v2 = vsel %vm294_vm8, %v15761_v46, %v15760_v51 }
 0xc22   :  { %v12058_v44 = vpop.permute.xlu1 %4156  ;;  %v3917_v9 = vpop.permute.xlu0 %3916  ;;  %v4658_v55 = vpack.c.b16 %v4650_v47, %v4646_v21  ;;  %v12070_v26 = vpack.c.b16 %v4643_v14, %v15758_v30  ;;  %v3978_v15 = vpack.c.bf16 %v3967_v52, %v3966_v63  ;;  %v4114_v47 = vmul.f32 %v4103_v22, %v15704_v62  ;;  %v15764_v30 = vld [vmem:[#allocation124_spill] sm:$0xff] }
 0xc23   :  { %15757 = vst [vmem:[#allocation90_spill] sm:$0xff] %v12058_v44  ;;  %v3953_v19 = vsel %vm164_vm2, %v3917_v9, %v11890_v36  ;;  %v3957_v54 = vsel %vm164_vm2, %v11998_v20, %v3917_v9  ;;  %v12066_v60 = vpop.permute.xlu2 %4076  ;;  %v4115_v9 = vmul.f32 %v4099_v40, %v15705_v0  ;;  %v15762_v36 = vunpack.c.l.b16 %v11811_v12  ;;  %v15767_v40 = vld [vmem:[#allocation88_spill] sm:$0xff] }
 0xc24   :  { %15759 = vst [vmem:[#allocation101_spill] sm:$0xff] %v12070_v26  ;;  %v3970_v57 = vmul.f32 %v3957_v54, %v15693_v41  ;;  %v3971_v21 = vmul.f32 %v3953_v19, %v15694_v59  ;;  %4765 = vmatpush.bf16.msrb.mxu1 %v4658_v55  ;;  %v15763_v14 = vunpack.c.h.b16 %v11811_v12  ;;  %v4176_v52 = vsel %vm294_vm8, %v15764_v30, %v15761_v46  ;;  %v15766_v55 = vld [vmem:[#allocation66_spill] sm:$0xff] }
 0xc25   :  { %v4454_v45 = vpack.c.b16 %v4442_v56, %v15762_v36  ;;  %v15765_v54 = vunpack.c.l.b16 %v11843_v29  ;;  %v4603_v22 = vunpack.c.h.b16 %v12023_v11  ;;  %v4319_v36 = vsel %vm372_vm9, %v15767_v40, %v15766_v55  ;;  %v15768_v56 = vld [vmem:[#allocation96_spill] sm:$0xff] }
 0xc26   :  { %v4455_v63 = vpack.c.b16 %v4443_v34, %v15763_v14  ;;  %v3980_v26 = vpack.c.bf16 %v3971_v21, %v3970_v57  ;;  %v4315_v12 = vsel %vm372_vm9, %v15766_v55, %v15768_v56  ;;  %v4191_v34 = vmul.f32 %v4172_v2, %v15699_v13  ;;  %v15770_v40 = vld [vmem:[#allocation76_spill] sm:$0xff] }
 0xc27   :  { %v12090_v19 = vpack.c.b16 %v4602_v7, %v15765_v54  ;;  %v4402_v46 = vunpack.c.l.b16 %v3904_v18  ;;  %v4446_v57 = vunpack.c.l.b16 %v3978_v15  ;;  %v4447_v7 = vunpack.c.h.b16 %v3978_v15 }
 0xc28   :  { %4766 = vmatpush.bf16.msrb.mxu1 %v4654_v24  ;;  %v4450_v21 = vunpack.c.l.b16 %v3980_v26  ;;  %v4451_v14 = vunpack.c.h.b16 %v3980_v26  ;;  %v12102_v54 = vpack.c.bf16 %v4115_v9, %v4114_v47  ;;  %v4190_v11 = vmul.f32 %v4176_v52, %v15698_v25 }
 0xc29   :  { %v4173_v59 = vsel %vm294_vm8, %v11956_v33, %v12058_v44  ;;  %v4403_v41 = vunpack.c.h.b16 %v3904_v18  ;;  %v4167_v2 = vsel %vm294_vm8, %v15738_v27, %v15770_v40  ;;  %v4179_v24 = vsel %vm294_vm8, %v15770_v40, %v15737_v4  ;;  %v15773_v4 = vld [vmem:[#allocation91_spill] sm:$0xff]  ;;  %v15774_v40 = vld [vmem:[#allocation74_spill] sm:$0xff] }
 0xc2a   :  { %15769 = vst [vmem:[#allocation129_spill] sm:$0xff] %v12102_v54  ;;  %v12117_v26 = vpop.permute.xlu1 %3868  ;;  %v12119_v15 = vpop.permute.xlu0 %4140  ;;  %v4458_v47 = vpack.c.b16 %v4450_v21, %v4446_v57  ;;  %v4459_v9 = vpack.c.b16 %v4451_v14, %v4447_v7  ;;  %v4330_v52 = vmul.f32 %v4319_v36, %v15706_v28  ;;  %v4331_v18 = vmul.f32 %v4315_v12, %v15707_v17  ;;  %v15793_v12 = vld [vmem:[#allocation9_spill] sm:$0xff] }
 0xc2b   :  { %15771 = vst [vmem:[#allocation120_spill] sm:$0xff] %v12117_v26  ;;  %v12123_v55 = vpack.c.bf16 %v4191_v34, %v4190_v11  ;;  %v4177_v27 = vsel %vm294_vm8, %v12119_v15, %v11956_v33  ;;  %v12129_v56 = vpop.permute.xlu2 %4292  ;;  %v3884_v44 = vsel %vm125_vm0, %v15774_v40, %v15773_v4  ;;  %v4195_v57 = vmul.f32 %v4173_v59, %v15699_v13  ;;  %v15778_v40 = vld [vmem:[#allocation106_spill] sm:$0xff]  ;;  %v15779_v59 = vld [vmem:[#allocation125_spill] sm:$0xff] }
 0xc2c   :  { %15772 = vst [vmem:[#allocation51_spill] sm:$0xff] %v12119_v15  ;;  %v4194_v36 = vmul.f32 %v4177_v27, %v15698_v25  ;;  %4748 = vmatpush.bf16.msrb.mxu0 %v4458_v47  ;;  %4805 = vmatpush.bf16.msrb.mxu3 %v4459_v9  ;;  %v4188_v34 = vmul.f32 %v4167_v2, %v15729_v37  ;;  %v15775_v33 = vunpack.c.l.b16 %v11858_v43  ;;  %v15776_v14 = vunpack.c.h.b16 %v11843_v29  ;;  %v15780_v9 = vld [vmem:[#allocation112_spill] sm:$0xff]  ;;  %v15781_v27 = vld [vmem:[#allocation87_spill] sm:$0xff] }
 0xc2d   :  { %v4189_v21 = vmul.f32 %v4179_v24, %v15732_v42  ;;  %v3807_v47 = vsel %vm86_vm1, %v15779_v59, %v15778_v40  ;;  %v3811_v2 = vsel %vm86_vm1, %v15780_v9, %v15779_v59  ;;  %v3894_v29 = vmul.f32 %v3884_v44, %v15702_v49  ;;  %v15784_v59 = vld [vmem:[#allocation105_spill] sm:$0xff]  ;;  %v15794_v40 = vld [vmem:[#allocation67_spill] sm:$0xff] }
 0xc2e   :  { %v12142_v7 = vpack.c.b16 %v4402_v46, %v15775_v33  ;;  %v12146_v11 = vpack.c.b16 %v4603_v22, %v15776_v14  ;;  %v3880_v46 = vsel %vm125_vm0, %v15773_v4, %v15781_v27  ;;  %v12160_v24 = vpack.c.bf16 %v4195_v57, %v4194_v36  ;;  %v15795_v9 = vld [vmem:[#allocation65_spill] sm:$0xff] }
 0xc2f   :  { %v15783_v22 = vunpack.c.h.b16 %v11858_v43  ;;  %v4562_v14 = vunpack.c.l.b16 %v12102_v54  ;;  %v12169_v25 = vpack.c.bf16 %v4331_v18, %v4330_v52  ;;  %v4239_v13 = vsel %vm333_vm10, %v15724_v50, %v15784_v59  ;;  %v15786_v50 = vld [vmem:[#allocation109_spill] sm:$0xff] }
 0xc30   :  { %15777 = vst [vmem:[#allocation102_spill] sm:$0xff] %v12146_v11  ;;  %4749 = vmatpush.bf16.msrb.mxu0 %v4454_v45  ;;  %4806 = vmatpush.bf16.msrb.mxu3 %v4455_v63  ;;  %v4606_v4 = vunpack.c.l.b16 %v12123_v55  ;;  %v4610_v44 = vunpack.c.l.b16 %v12160_v24  ;;  %v12177_v43 = vpack.c.bf16 %v4189_v21, %v4188_v34  ;;  %v3818_v57 = vmul.f32 %v3811_v2, %v15709_v5 }
 0xc31   :  { %15782 = vst [vmem:[#allocation122_spill] sm:$0xff] %v12160_v24  ;;  %v12165_v33 = vpack.c.b16 %v4403_v41, %v15783_v22  ;;  %v3819_v41 = vmul.f32 %v3807_v47, %v15710_v39  ;;  %v3895_v52 = vmul.f32 %v3880_v46, %v15703_v35  ;;  %v4251_v18 = vsel %vm333_vm10, %v15784_v59, %v15722_v58  ;;  %v15789_v22 = vld [vmem:[#allocation64_spill] sm:$0xff] }
 0xc32   :  { %15785 = vst [vmem:[#allocation95_spill] sm:$0xff] %v12177_v43  ;;  %v4015_v45 = vsel %vm203_vm3, %v15786_v50, %v11470_v1  ;;  %v4019_v63 = vsel %vm203_vm3, %v11448_v53, %v15786_v50  ;;  %v12194_v36 = vpop.permute.xlu1 %4084  ;;  %v3845_v34 = vpop.permute.xlu0 %3844  ;;  %v4618_v21 = vpack.c.b16 %v4610_v44, %v4606_v4  ;;  %v4260_v47 = vmul.f32 %v4239_v13, %v15412_v61  ;;  %v15790_v59 = vld [vmem:[#allocation68_spill] sm:$0xff] }
 0xc33   :  { %15787 = vst [vmem:[#allocation61_spill] sm:$0xff] %v12194_v36  ;;  %v3906_v2 = vpack.c.bf16 %v3895_v52, %v3894_v29  ;;  %v3881_v58 = vsel %vm125_vm0, %v3845_v34, %v12016_v10  ;;  %v3885_v1 = vsel %vm125_vm0, %v12117_v26, %v3845_v34  ;;  %v12203_v46 = vpop.permute.xlu2 %3780  ;;  %v3943_v53 = vsel %vm164_vm2, %v15789_v22, %v15735_v31  ;;  %v15791_v44 = vld [vmem:[#allocation24_spill] sm:$0xff] }
 0xc34   :  { %15788 = vst [vmem:[#allocation82_spill] sm:$0xff] %v12203_v46  ;;  %v3947_v13 = vsel %vm164_vm2, %v15790_v59, %v15789_v22  ;;  %v3898_v29 = vmul.f32 %v3885_v1, %v15702_v49  ;;  %v3899_v4 = vmul.f32 %v3881_v58, %v15703_v35  ;;  %4767 = vmatpush.bf16.msrb.mxu1 %v4618_v21  ;;  %v15792_v50 = vld [vmem:[#allocation8_spill] sm:$0xff]  ;;  %v4682_v22 = vunpack.c.l.b16 %v12169_v25  ;;  %v15796_v59 = vld [vmem:[#allocation7_spill] sm:$0xff]  ;;  %v15797_v21 = vld [vmem:[#allocation6_spill] sm:$0xff] }
 0xc35   :  { %v4261_v52 = vmul.f32 %v4251_v18, %v15791_v44  ;;  %v4036_v34 = vmul.f32 %v4019_v63, %v15792_v50  ;;  %v4037_v54 = vmul.f32 %v4015_v45, %v15793_v12  ;;  %v4100_v31 = vsel %vm255_vm5, %v15795_v9, %v15794_v40  ;;  %v15798_v18 = vld [vmem:[#allocation85_spill] sm:$0xff] }
 0xc36   :  { %v3832_v11 = vpack.c.bf16 %v3819_v41, %v3818_v57  ;;  %v3908_v24 = vpack.c.bf16 %v3899_v4, %v3898_v29  ;;  %v4683_v1 = vunpack.c.h.b16 %v12169_v25  ;;  %v3964_v58 = vmul.f32 %v3947_v13, %v15796_v59 }
 0xc37   :  { %v3965_v35 = vmul.f32 %v3943_v53, %v15797_v21  ;;  %v4104_v45 = vsel %vm255_vm5, %v15798_v18, %v15795_v9  ;;  %v4406_v63 = vunpack.c.l.b16 %v3906_v2  ;;  %v4119_v49 = vmul.f32 %v4100_v31, %v15705_v0 }
 0xc38   :  { %4768 = vmatpush.bf16.msrb.mxu1 %v12090_v19  ;;  %v4410_v41 = vunpack.c.l.b16 %v3908_v24  ;;  %v4407_v57 = vunpack.c.h.b16 %v3906_v2  ;;  %v4411_v29 = vunpack.c.h.b16 %v3908_v24  ;;  %v12232_v4 = vpack.c.bf16 %v4261_v52, %v4260_v47  ;;  %v15801_v52 = vld [vmem:[#allocation143_spill] sm:$0xff] }
 0xc39   :  { %v4049_v25 = vpack.c.bf16 %v4037_v54, %v4036_v34  ;;  %v4101_v53 = vsel %vm255_vm5, %v12066_v60, %v12194_v36  ;;  %v4604_v13 = vunpack.c.l.b16 %v12177_v43  ;;  %v4118_v9 = vmul.f32 %v4104_v45, %v15704_v62 }
 0xc3a   :  { %15799 = vst [vmem:[#allocation80_spill] sm:$0xff] %v12232_v4  ;;  %v12240_v10 = vpop.permute.xlu1 %4300  ;;  %v12242_v31 = vpop.permute.xlu0 %4068  ;;  %v4418_v19 = vpack.c.b16 %v4410_v41, %v4406_v63  ;;  %v4419_v26 = vpack.c.b16 %v4411_v29, %v4407_v57  ;;  %v4362_v2 = vunpack.c.l.b16 %v3832_v11  ;;  %v3977_v24 = vpack.c.bf16 %v3965_v35, %v3964_v58  ;;  %v15803_v63 = vld [vmem:[#allocation147_spill] sm:$0xff]  ;;  %v15806_v57 = vld [vmem:[#allocation128_spill] sm:$0xff] }
 0xc3b   :  { %15800 = vst [vmem:[#allocation123_spill] sm:$0xff] %v12240_v10  ;;  %v4105_v54 = vsel %vm255_vm5, %v12242_v31, %v12066_v60  ;;  %v4237_v47 = vpop.permute.xlu2 %4236  ;;  %v15802_v34 = vunpack.c.l.b16 %v15801_v52  ;;  %v4363_v43 = vunpack.c.h.b16 %v3832_v11  ;;  %v12250_v15 = vpack.c.bf16 %v4119_v49, %v4118_v9  ;;  %v15805_v58 = vld [vmem:[#allocation107_spill] sm:$0xff]  ;;  %v15824_v52 = vld [vmem:[#allocation114_spill] sm:$0xff] }
 0xc3c   :  { %v4123_v45 = vmul.f32 %v4101_v53, %v15705_v0  ;;  %v4122_v20 = vmul.f32 %v4105_v54, %v15704_v62  ;;  %4750 = vmatpush.bf16.msrb.mxu0 %v4418_v19  ;;  %v15804_v41 = vunpack.c.l.b16 %v15803_v63  ;;  %v4316_v60 = vsel %vm372_vm9, %v15806_v57, %v15805_v58  ;;  %4807 = vmatpush.bf16.msrb.mxu3 %v4419_v26  ;;  %v15810_v26 = vld [vmem:[#allocation104_spill] sm:$0xff]  ;;  %v15818_v62 = vld [vmem:[#allocation103_spill] sm:$0xff] }
 0xc3d   :  { %v4574_v36 = vpack.c.b16 %v4562_v14, %v15802_v34  ;;  %v15807_v14 = vunpack.c.h.b16 %v15803_v63  ;;  %v4644_v49 = vunpack.c.l.b16 %v12232_v4  ;;  %v4484_v29 = vunpack.c.l.b16 %v4049_v25  ;;  %v15811_v63 = vld [vmem:[#allocation116_spill] sm:$0xff] }
 0xc3e   :  { %v12256_v35 = vpack.c.b16 %v4682_v22, %v15804_v41  ;;  %v12267_v53 = vpack.c.bf16 %v4123_v45, %v4122_v20  ;;  %v15808_v9 = vunpack.c.l.b16 %v11906_v23  ;;  %v4485_v22 = vunpack.c.h.b16 %v4049_v25  ;;  %v15812_v41 = vld [vmem:[#allocation69_spill] sm:$0xff]  ;;  %v15814_v25 = vld [vmem:[#allocation119_spill] sm:$0xff]  ;;  %v15819_v0 = vld [vmem:[#allocation52_spill] sm:$0xff] }
 0xc3f   :  { %v12264_v11 = vpack.c.b16 %v4683_v1, %v15807_v14  ;;  %v15809_v54 = vunpack.c.l.b16 %v12002_v8  ;;  %v4320_v1 = vsel %vm372_vm9, %v15810_v26, %v15806_v57  ;;  %v4016_v20 = vsel %vm203_vm3, %v15812_v41, %v15811_v63 }
 0xc40   :  { %v12271_v19 = vpack.c.b16 %v4362_v2, %v15808_v9  ;;  %v15813_v45 = vunpack.c.h.b16 %v11906_v23  ;;  %v4444_v2 = vunpack.c.l.b16 %v3977_v24  ;;  %v4335_v9 = vmul.f32 %v4316_v60, %v15707_v17  ;;  %4751 = vmatpush.bf16.msrb.mxu0 %v12142_v7  ;;  %4808 = vmatpush.bf16.msrb.mxu3 %v12165_v33 }
 0xc41   :  { %v12275_v34 = vpack.c.b16 %v4604_v13, %v15809_v54  ;;  %v4020_v13 = vsel %vm203_vm3, %v15814_v25, %v15812_v41  ;;  %v4566_v57 = vunpack.c.l.b16 %v12250_v15  ;;  %v4570_v54 = vunpack.c.l.b16 %v12267_v53 }
 0xc42   :  { %v12287_v14 = vpack.c.b16 %v4363_v43, %v15813_v45  ;;  %v4317_v23 = vsel %vm372_vm9, %v12129_v56, %v12240_v10  ;;  %v15815_v43 = vld [vmem:[#allocation146_spill] sm:$0xff]  ;;  %v15817_v41 = vunpack.c.l.b16 %v11965_v3  ;;  %v4445_v7 = vunpack.c.h.b16 %v3977_v24  ;;  %v12315_v4 = vpop.permute.xlu1 %3796  ;;  %v12317_v26 = vpop.permute.xlu0 %4284 }
 0xc43   :  { %v15816_v63 = vunpack.c.l.b16 %v15815_v43  ;;  %v4334_v25 = vmul.f32 %v4320_v1, %v15706_v28  ;;  %v3812_v8 = vsel %vm86_vm1, %v15819_v0, %v15818_v62  ;;  %15820 = vst [vmem:[#allocation115_spill] sm:$0xff] %v12317_v26  ;;  %v4578_v33 = vpack.c.b16 %v4570_v54, %v4566_v57 }
 0xc44   :  { %v12308_v60 = vpack.c.b16 %v4484_v29, %v15817_v41  ;;  %v4040_v29 = vmul.f32 %v4020_v13, %v15792_v50  ;;  %v4041_v24 = vmul.f32 %v4016_v20, %v15793_v12  ;;  %v4321_v1 = vsel %vm372_vm9, %v12317_v26, %v12129_v56  ;;  %v15822_v41 = vld [vmem:[#allocation149_spill] sm:$0xff]  ;;  %v3933_v56 = vpop.permute.xlu2 %3932  ;;  %v15841_v26 = vld [vmem:[#allocation90_spill] sm:$0xff] }
 0xc45   :  { %v12304_v45 = vpack.c.b16 %v4644_v49, %v15816_v63  ;;  %v15821_v49 = vunpack.c.h.b16 %v11965_v3  ;;  %v15823_v43 = vunpack.c.l.b16 %v15822_v41  ;;  %v4346_v10 = vpack.c.bf16 %v4335_v9, %v4334_v25  ;;  %4769 = vmatpush.bf16.msrb.mxu1 %v4578_v33  ;;  %v15828_v25 = vld [vmem:[#allocation56_spill] sm:$0xff] }
 0xc46   :  { %v3808_v3 = vsel %vm86_vm1, %v15818_v62, %v15824_v52  ;;  %v4338_v13 = vmul.f32 %v4321_v1, %v15706_v28  ;;  %v3822_v57 = vmul.f32 %v3812_v8, %v15709_v5  ;;  %v12369_v54 = vpack.c.bf16 %v4041_v24, %v4040_v29 }
 0xc47   :  { %v12321_v63 = vpack.c.b16 %v4485_v22, %v15821_v49  ;;  %v12331_v58 = vpack.c.b16 %v4444_v2, %v15823_v43  ;;  %v4339_v22 = vmul.f32 %v4317_v23, %v15707_v17  ;;  %v15825_v2 = vunpack.c.h.b16 %v15822_v41  ;;  %v15826_v43 = vld [vmem:[#allocation111_spill] sm:$0xff]  ;;  %v15827_v23 = vld [vmem:[#allocation134_spill] sm:$0xff] }
 0xc48   :  { %v4096_v62 = vsel %vm255_vm5, %v15794_v40, %v15826_v43  ;;  %v4240_v33 = vsel %vm333_vm10, %v15828_v25, %v15827_v23  ;;  %v4252_v8 = vsel %vm333_vm10, %v15827_v23, %v15739_v6  ;;  %v3823_v1 = vmul.f32 %v3808_v3, %v15710_v39  ;;  %v15829_v41 = vld [vmem:[#allocation70_spill] sm:$0xff]  ;;  %v15833_v3 = vld [vmem:[#allocation141_spill] sm:$0xff] }
 0xc49   :  { %v12344_v9 = vpack.c.b16 %v4445_v7, %v15825_v2  ;;  %v4348_v49 = vpack.c.bf16 %v4339_v22, %v4338_v13  ;;  %v4108_v7 = vsel %vm255_vm5, %v15826_v43, %v15798_v18  ;;  %v4241_v40 = vsel %vm333_vm10, %v15829_v41, %v4237_v47  ;;  %v15830_v2 = vld [vmem:[#allocation57_spill] sm:$0xff]  ;;  %4770 = vmatpush.bf16.msrb.mxu1 %v4574_v36  ;;  %v15831_v22 = vld [vmem:[#allocation10_spill] sm:$0xff]  ;;  %v15832_v41 = vld [vmem:[#allocation11_spill] sm:$0xff] }
 0xc4a   :  { %v4253_v25 = vsel %vm333_vm10, %v4237_v47, %v15830_v2  ;;  %v4686_v20 = vunpack.c.l.b16 %v4346_v10  ;;  %v12373_v13 = vmul.f32 %v4096_v62, %v15831_v22  ;;  %v3834_v23 = vpack.c.bf16 %v3823_v1, %v3822_v57  ;;  %v12382_v24 = vpop.permute.xlu1 %3854  ;;  %v3773_v36 = vpop.permute.xlu0 %3772 }
 0xc4b   :  { %v4690_v6 = vunpack.c.l.b16 %v4348_v49  ;;  %v4264_v18 = vmul.f32 %v4240_v33, %v15412_v61  ;;  %v4265_v43 = vmul.f32 %v4252_v8, %v15791_v44  ;;  %v12378_v28 = vmul.f32 %v4108_v7, %v15832_v41 }
 0xc4c   :  { %v4268_v47 = vmul.f32 %v4241_v40, %v15412_v61  ;;  %v4269_v29 = vmul.f32 %v4253_v25, %v15791_v44  ;;  %v4168_v57 = vsel %vm294_vm8, %v15760_v51, %v15833_v3  ;;  %v4691_v62 = vunpack.c.h.b16 %v4348_v49  ;;  %v15835_v40 = vld [vmem:[#allocation140_spill] sm:$0xff]  ;;  %v7118_v25 = vld [vmem:[%s14418_s5 + $0x4] sm:$0xf] }
 0xc4d   :  { %v4698_v2 = vpack.c.b16 %v4690_v6, %v4686_v20  ;;  %v3809_v33 = vsel %vm86_vm1, %v3773_v36, %v12203_v46  ;;  %v3813_v8 = vsel %vm86_vm1, %v12315_v4, %v3773_v36  ;;  %v4180_v1 = vsel %vm294_vm8, %v15833_v3, %v15764_v30  ;;  %v15834_v20 = vld [vmem:[#allocation142_spill] sm:$0xff]  ;;  %4771 = vmatpush.bf16.msrb.mxu1 %v15835_v40  ;;  %v7024_v6 = vld [vmem:[%s14418_s5 + $0xc] sm:$0xf0] }
 0xc4e   :  { %v3948_v7 = vsel %vm164_vm2, %v15752_v32, %v15834_v20  ;;  %v3826_v51 = vmul.f32 %v3813_v8, %v15709_v5  ;;  %v3827_v49 = vmul.f32 %v3809_v33, %v15710_v39  ;;  %v4687_v30 = vunpack.c.h.b16 %v4346_v10  ;;  %v7030_v5 = vld [vmem:[%s14418_s5 + $0x8] sm:$0xf]  ;;  %v7120_v10 = vld [vmem:[%s14418_s5 + $0x10] sm:$0xf0] }
 0xc4f   :  { %v12411_v3 = vpack.c.bf16 %v4265_v43, %v4264_v18  ;;  %v3944_v32 = vsel %vm164_vm2, %v15834_v20, %v15748_v38  ;;  %4790 = vmatpush.bf16.msrb.mxu2 %v4698_v2  ;;  %v4366_v36 = vunpack.c.l.b16 %v3834_v23  ;;  %v4192_v33 = vmul.f32 %v4168_v57, %v15729_v37  ;;  %v3857_v43 = vpop.permute.xlu2 %3856  ;;  %v15837_v57 = vld [vmem:[#allocation138_spill] sm:$0xff]  ;;  %v15842_v46 = vld [vmem:[#allocation51_spill] sm:$0xff] }
 0xc50   :  { %v12418_v8 = vpack.c.bf16 %v4269_v29, %v4268_v47  ;;  %v3836_v40 = vpack.c.bf16 %v3827_v49, %v3826_v51  ;;  %v4367_v39 = vunpack.c.h.b16 %v3834_v23  ;;  %v4193_v18 = vmul.f32 %v4180_v1, %v15732_v42  ;;  %v15836_v29 = vld [vmem:[#allocation144_spill] sm:$0xff] }
 0xc51   :  { %v3968_v38 = vmul.f32 %v3948_v7, %v15796_v59  ;;  %v4699_v2 = vpack.c.b16 %v4691_v62, %v4687_v30  ;;  %v12428_v20 = vor.u32 %v7118_v25, %v7024_v6  ;;  %v3969_v47 = vmul.f32 %v3944_v32, %v15797_v21  ;;  %4772 = vmatpush.bf16.msrb.mxu1 %v15837_v57  ;;  %v15838_v1 = vld [vmem:[#allocation60_spill] sm:$0xff] }
 0xc52   :  { %v3876_v23 = vsel %vm125_vm0, %v15781_v27, %v15836_v29  ;;  %v4370_v51 = vunpack.c.l.b16 %v3836_v40  ;;  %v4371_v49 = vunpack.c.h.b16 %v3836_v40  ;;  %v4488_v17 = vunpack.c.l.b16 %v12369_v54  ;;  %v15839_v62 = vld [vmem:[#allocation148_spill] sm:$0xff]  ;;  %v15840_v27 = vld [vmem:[#allocation121_spill] sm:$0xff]  ;;  %v4165_v40 = vpop.permute.xlu1 %4164  ;;  %v4005_v57 = vpop.permute.xlu0 %4004 }
 0xc53   :  { %v3945_v7 = vsel %vm164_vm2, %v3933_v56, %v15838_v1  ;;  %v3949_v25 = vsel %vm164_vm2, %v15839_v62, %v3933_v56  ;;  %4791 = vmatpush.bf16.msrb.mxu2 %v12256_v35  ;;  %v12444_v6 = vor.u32 %v7120_v10, %v7030_v5  ;;  %v4651_v30 = vunpack.c.h.b16 %v15840_v27  ;;  %v15843_v35 = vld [vmem:[#allocation145_spill] sm:$0xff]  ;;  %v15844_v10 = vld [vmem:[#allocation136_spill] sm:$0xff] }
 0xc54   :  { %v4652_v32 = vunpack.c.l.b16 %v12418_v8  ;;  %v4378_v44 = vpack.c.b16 %v4370_v51, %v4366_v36  ;;  %v4379_v61 = vpack.c.b16 %v4371_v49, %v4367_v39  ;;  %v4169_v1 = vsel %vm294_vm8, %v15841_v26, %v4165_v40  ;;  %4773 = vmatmul.bf16.vlgmr.msrb.gmra.mxu1 %v12428_v20  ;;  %v7119_v49 = vld [vmem:[%s14418_s5 + $0x8] sm:$0xf0] }
 0xc55   :  { %4847 = vmatpush.bf16.msra.mxu1 %v4699_v2  ;;  %v4181_v56 = vsel %vm294_vm8, %v4165_v40, %v15842_v46  ;;  %v4017_v5 = vsel %vm203_vm3, %v4005_v57, %v15843_v35  ;;  %v4021_v2 = vsel %vm203_vm3, %v15844_v10, %v4005_v57  ;;  %v3972_v39 = vmul.f32 %v3949_v25, %v15796_v59  ;;  %v7022_v46 = vld [vmem:[%s14418_s5] sm:$0xf] }
 0xc56   :  { %v3973_v36 = vmul.f32 %v3945_v7, %v15797_v21  ;;  %v4044_v26 = vmul.f32 %v4021_v2, %v15792_v50  ;;  %v4045_v51 = vmul.f32 %v4017_v5, %v15793_v12  ;;  %4752 = vmatpush.bf16.msrb.mxu0 %v4378_v44  ;;  %v4489_v62 = vunpack.c.h.b16 %v12369_v54  ;;  %4809 = vmatpush.bf16.msrb.mxu3 %v4379_v61  ;;  %v15845_v54 = vld [vmem:[#allocation74_spill] sm:$0xff] }
 0xc57   :  { %v12472_v27 = vpack.c.bf16 %v4193_v18, %v4192_v33  ;;  %v4196_v25 = vmul.f32 %v4169_v1, %v15729_v37  ;;  %v4197_v7 = vmul.f32 %v4181_v56, %v15732_v42  ;;  %7044 = vmatmul.msk.bf16.vlgmr.msrb.gmra.mxu2 %vm1883_vm6, %v12444_v6  ;;  %v12480_v44 = vpack.c.bf16 %v12378_v28, %v12373_v13  ;;  %v15846_v18 = vld [vmem:[#allocation3_spill] sm:$0xff] }
 0xc58   :  { %v4648_v40 = vunpack.c.l.b16 %v12411_v3  ;;  %v3979_v57 = vpack.c.bf16 %v3969_v47, %v3968_v38  ;;  %v4053_v35 = vpack.c.bf16 %v4045_v51, %v4044_v26  ;;  %v3872_v33 = vsel %vm125_vm0, %v15836_v29, %v15845_v54  ;;  %v15848_v47 = vld [vmem:[#allocation71_spill] sm:$0xff]  ;;  %v15855_v54 = vld [vmem:[#allocation122_spill] sm:$0xff] }
 0xc59   :  { %4848 = vmatpush.bf16.msra.mxu1 %v12264_v11  ;;  %v3896_v61 = vmul.f32 %v3876_v23, %v15846_v18  ;;  %v15847_v1 = vunpack.c.h.b16 %v12018_v16  ;;  %v12491_v5 = vor.u32 %v7119_v49, %v7022_v46  ;;  %v3981_v28 = vpack.c.bf16 %v3973_v36, %v3972_v39  ;;  %v15849_v29 = vld [vmem:[#allocation63_spill] sm:$0xff]  ;;  %v15851_v39 = vld [vmem:[#allocation126_spill] sm:$0xff] }
 0xc5a   :  { %v4492_v13 = vunpack.c.l.b16 %v4053_v35  ;;  %v4493_v10 = vunpack.c.h.b16 %v4053_v35  ;;  %4753 = vmatpush.bf16.msrb.mxu0 %v12271_v19  ;;  %v4660_v38 = vpack.c.b16 %v4652_v32, %v4648_v40  ;;  %v3870_v11 = vsel %vm125_vm0, %v12382_v24, %v15848_v47  ;;  %4810 = vmatpush.bf16.msrb.mxu3 %v12287_v14  ;;  %v15850_v19 = vld [vmem:[#allocation62_spill] sm:$0xff]  ;;  %v3861_v26 = vpop.permute.xlu1 %3860  ;;  %v4087_v51 = vpop.permute.xlu0 %4086  ;;  %v15854_v40 = vld [vmem:[#allocation92_spill] sm:$0xff] }
 0xc5b   :  { %v4659_v56 = vpack.c.b16 %v4651_v30, %v15847_v1  ;;  %v3874_v23 = vsel %vm125_vm0, %v15849_v29, %v12382_v24  ;;  %v12502_v16 = vpack.c.bf16 %v4197_v7, %v4196_v25  ;;  %v3787_v30 = vpop.permute.xlu2 %3786  ;;  %v4608_v2 = vunpack.c.l.b16 %v12472_v27  ;;  %v15852_v49 = vld [vmem:[#allocation2_spill] sm:$0xff]  ;;  %v15853_v7 = vld [vmem:[#allocation120_spill] sm:$0xff] }
 0xc5c   :  { %v3871_v32 = vsel %vm125_vm0, %v3857_v43, %v15850_v19  ;;  %v3875_v36 = vsel %vm125_vm0, %v15851_v39, %v3857_v43  ;;  %v4500_v24 = vpack.c.b16 %v4492_v13, %v4488_v17  ;;  %v4501_v46 = vpack.c.b16 %v4493_v10, %v4489_v62  ;;  %v7123_v13 = vld [vmem:[%s14418_s5 + $0x28] sm:$0xf0]  ;;  %v7036_v29 = vld [vmem:[%s14418_s5 + $0x24] sm:$0xf0]  ;;  %v15856_v39 = vld [vmem:[#allocation101_spill] sm:$0xff] }
 0xc5d   :  { %v3897_v25 = vmul.f32 %v3872_v33, %v15852_v49  ;;  %v3873_v14 = vsel %vm125_vm0, %v3861_v26, %v15853_v7  ;;  %v3877_v35 = vsel %vm125_vm0, %v15854_v40, %v3861_v26  ;;  %4754 = vmatmul.bf16.vlgmr.msrb.gmra.mxu0 %v12491_v5  ;;  %v4611_v1 = vunpack.c.h.b16 %v15855_v54  ;;  %4811 = vmatmul.bf16.vlgmr.msrb.gmra.mxu3 %v12491_v5  ;;  %v7042_v33 = vld [vmem:[%s14418_s5 + $0x20] sm:$0xf] }
 0xc5e   :  { %4822 = vmatpush.bf16.msra.mxu0 %v4659_v56  ;;  %4879 = vmatpush.bf16.msra.mxu3 %v4660_v38  ;;  %v3888_v43 = vmul.f32 %v3874_v23, %v15846_v18  ;;  %v3889_v56 = vmul.f32 %v3870_v11, %v15852_v49  ;;  %v4452_v17 = vunpack.c.l.b16 %v3981_v28  ;;  %v4453_v62 = vunpack.c.h.b16 %v3981_v28  ;;  %v7121_v28 = vld [vmem:[%s14418_s5 + $0x1c] sm:$0xf] }
 0xc5f   :  { %v3892_v10 = vmul.f32 %v3875_v36, %v15846_v18  ;;  %v3893_v38 = vmul.f32 %v3871_v32, %v15852_v49  ;;  %4860 = vmatpush.bf16.msra.mxu2 %v4500_v24  ;;  %4917 = vmatpush.bf16.msrb.mxu1 %v4501_v46  ;;  %v4612_v47 = vunpack.c.l.b16 %v12502_v16  ;;  %v4448_v11 = vunpack.c.l.b16 %v3979_v57 }
 0xc60   :  { %v3804_v23 = vsel %vm86_vm1, %v15824_v52, %v3787_v30  ;;  %v3900_v19 = vmul.f32 %v3877_v35, %v15846_v18  ;;  %v3901_v32 = vmul.f32 %v3873_v14, %v15852_v49  ;;  %v4449_v36 = vunpack.c.h.b16 %v3979_v57  ;;  %v15932_v18 = vld [vmem:[#allocation19_spill] sm:$0xff] }
 0xc61   :  { %v12545_v26 = vpack.c.bf16 %v3897_v25, %v3896_v61  ;;  %v3800_v24 = vsel %vm86_vm1, %v3787_v30, %v15819_v0  ;;  %v15857_v46 = vunpack.c.h.b16 %v12123_v55  ;;  %v12553_v40 = vor.u32 %v7123_v13, %v7042_v33  ;;  %v15858_v61 = vld [vmem:[#allocation4_spill] sm:$0xff] }
 0xc62   :  { %4823 = vmatpush.bf16.msra.mxu0 %v15856_v39  ;;  %4880 = vmatpush.bf16.msra.mxu3 %v12304_v45  ;;  %v12555_v52 = vpack.c.bf16 %v3889_v56, %v3888_v43  ;;  %v4460_v35 = vpack.c.b16 %v4452_v17, %v4448_v11  ;;  %v4461_v14 = vpack.c.b16 %v4453_v62, %v4449_v36  ;;  %v4571_v55 = vunpack.c.h.b16 %v12267_v53  ;;  %v15859_v45 = vld [vmem:[#allocation5_spill] sm:$0xff]  ;;  %v15861_v17 = vld [vmem:[#allocation108_spill] sm:$0xff]  ;;  %v4089_v33 = vpop.permute.xlu1 %4088  ;;  %v4093_v13 = vpop.permute.xlu0 %4092  ;;  %v15863_v53 = vld [vmem:[#allocation78_spill] sm:$0xff] }
 0xc63   :  { %v4619_v7 = vpack.c.b16 %v4611_v1, %v15857_v46  ;;  %v12557_v54 = vor.u32 %v7121_v28, %v7036_v29  ;;  %v12559_v57 = vpack.c.bf16 %v3893_v38, %v3892_v10  ;;  %v3824_v25 = vmul.f32 %v3804_v23, %v15858_v61  ;;  %4861 = vmatpush.bf16.msra.mxu2 %v12308_v60  ;;  %v15860_v43 = vld [vmem:[#allocation81_spill] sm:$0xff]  ;;  %v15862_v60 = vld [vmem:[#allocation84_spill] sm:$0xff] }
 0xc64   :  { %4918 = vmatpush.bf16.msrb.mxu1 %v12321_v63  ;;  %v4620_v0 = vpack.c.b16 %v4612_v47, %v4608_v2  ;;  %v3825_v30 = vmul.f32 %v3800_v24, %v15859_v45  ;;  %v3909_v1 = vpack.c.bf16 %v3901_v32, %v3900_v19  ;;  %v4094_v56 = vsel %vm255_vm5, %v15860_v43, %v4087_v51  ;;  %v15864_v10 = vld [vmem:[#allocation61_spill] sm:$0xff]  ;;  %v3785_v47 = vpop.permute.xlu2 %3784  ;;  %v7034_v19 = vld [vmem:[%s14418_s5 + $0x18] sm:$0xf] }
 0xc65   :  { %v4106_v62 = vsel %vm255_vm5, %v4087_v51, %v15861_v17  ;;  %v4095_v63 = vsel %vm255_vm5, %v15862_v60, %v4089_v33  ;;  %v4107_v2 = vsel %vm255_vm5, %v4089_v33, %v15863_v53  ;;  %v4097_v38 = vsel %vm255_vm5, %v15864_v10, %v4093_v13  ;;  %v7122_v32 = vld [vmem:[%s14418_s5 + $0x20] sm:$0xf0]  ;;  %4778 = vmatmul.bf16.gmra.mxu1 %v12557_v54  ;;  %v15865_v17 = vld [vmem:[#allocation102_spill] sm:$0xff] }
 0xc66   :  { %4824 = vmatpush.bf16.msra.mxu0 %v4619_v7  ;;  %4881 = vmatpush.bf16.msra.mxu3 %v4620_v0  ;;  %v4109_v51 = vsel %vm255_vm5, %v4093_v13, %v12242_v31  ;;  %v4116_v11 = vmul.f32 %v4095_v63, %v15831_v22  ;;  %v4117_v28 = vmul.f32 %v4107_v2, %v15832_v41  ;;  %v4408_v36 = vunpack.c.l.b16 %v12545_v26  ;;  %v15867_v2 = vld [vmem:[#allocation112_spill] sm:$0xff] }
 0xc67   :  { %v4124_v29 = vmul.f32 %v4097_v38, %v15831_v22  ;;  %v4125_v23 = vmul.f32 %v4109_v51, %v15832_v41  ;;  %v4112_v31 = vmul.f32 %v4094_v56, %v15831_v22  ;;  %v4113_v39 = vmul.f32 %v4106_v62, %v15832_v41  ;;  %4862 = vmatpush.bf16.msra.mxu2 %v4460_v35 }
 0xc68   :  { %4919 = vmatpush.bf16.msrb.mxu1 %v4461_v14  ;;  %v4568_v24 = vunpack.c.l.b16 %v12480_v44  ;;  %v12599_v46 = vpack.c.bf16 %v4117_v28, %v4116_v11  ;;  %7045 = vmatmul.msk.bf16.gmra.mxu2 %vm1883_vm6, %v12553_v40  ;;  %v4412_v0 = vunpack.c.l.b16 %v3909_v1  ;;  %v4413_v43 = vunpack.c.h.b16 %v3909_v1  ;;  %v15869_v11 = vld [vmem:[#allocation53_spill] sm:$0xff] }
 0xc69   :  { %v12601_v7 = vpack.c.bf16 %v4125_v23, %v4124_v29  ;;  %v15866_v35 = vunpack.c.h.b16 %v12250_v15  ;;  %v12609_v56 = vor.u32 %v7122_v32, %v7034_v19  ;;  %v4409_v62 = vunpack.c.h.b16 %v12545_v26  ;;  %v15870_v29 = vld [vmem:[#allocation131_spill] sm:$0xff] }
 0xc6a   :  { %4825 = vmatpush.bf16.msra.mxu0 %v15865_v17  ;;  %4882 = vmatpush.bf16.msra.mxu3 %v12275_v34  ;;  %v4400_v33 = vunpack.c.l.b16 %v12555_v52  ;;  %v3835_v13 = vpack.c.bf16 %v3825_v30, %v3824_v25  ;;  %v4404_v63 = vunpack.c.l.b16 %v12559_v57  ;;  %v4401_v1 = vunpack.c.h.b16 %v12555_v52  ;;  %v15868_v34 = vld [vmem:[#allocation106_spill] sm:$0xff]  ;;  %v3783_v25 = vpop.permute.xlu1 %3782  ;;  %v3789_v30 = vpop.permute.xlu0 %3788 }
 0xc6b   :  { %v4579_v14 = vpack.c.b16 %v4571_v55, %v15866_v35  ;;  %v4572_v60 = vunpack.c.l.b16 %v12601_v7  ;;  %v12616_v53 = vpack.c.bf16 %v4113_v39, %v4112_v31  ;;  %v3799_v15 = vsel %vm86_vm1, %v3785_v47, %v15867_v2  ;;  %4863 = vmatpush.bf16.msra.mxu2 %v12331_v58  ;;  %v15876_v35 = vld [vmem:[#allocation139_spill] sm:$0xff] }
 0xc6c   :  { %v3803_v55 = vsel %vm86_vm1, %v15868_v34, %v3785_v47  ;;  %4920 = vmatpush.bf16.msrb.mxu1 %v12344_v9  ;;  %v4405_v26 = vunpack.c.h.b16 %v12559_v57  ;;  %v4420_v10 = vpack.c.b16 %v4412_v0, %v4408_v36  ;;  %v4421_v38 = vpack.c.b16 %v4413_v43, %v4409_v62  ;;  %v15871_v57 = vld [vmem:[#allocation82_spill] sm:$0xff]  ;;  %v15874_v0 = vld [vmem:[#allocation129_spill] sm:$0xff]  ;;  %v4303_v62 = vpop.permute.xlu2 %4302 }
 0xc6d   :  { %v4580_v52 = vpack.c.b16 %v4572_v60, %v4568_v24  ;;  %v4564_v51 = vunpack.c.l.b16 %v12599_v46  ;;  %v3798_v28 = vsel %vm86_vm1, %v3783_v25, %v15869_v11  ;;  %v3802_v58 = vsel %vm86_vm1, %v15870_v29, %v3783_v25  ;;  %4759 = vmatmul.bf16.gmra.mxu0 %v12609_v56  ;;  %4816 = vmatmul.bf16.gmra.mxu3 %v12609_v56 }
 0xc6e   :  { %4826 = vmatpush.bf16.msra.mxu0 %v4579_v14  ;;  %v3801_v9 = vsel %vm86_vm1, %v3789_v30, %v12315_v4  ;;  %v3805_v47 = vsel %vm86_vm1, %v15871_v57, %v3789_v30  ;;  %v3816_v23 = vmul.f32 %v3802_v58, %v15858_v61  ;;  %v3817_v19 = vmul.f32 %v3798_v28, %v15859_v45  ;;  %v15872_v4 = vld [vmem:[#allocation143_spill] sm:$0xff]  ;;  %v15880_v28 = vld [vmem:[#allocation130_spill] sm:$0xff] }
 0xc6f   :  { %v3828_v32 = vmul.f32 %v3805_v47, %v15858_v61  ;;  %v3829_v31 = vmul.f32 %v3801_v9, %v15859_v45  ;;  %v3820_v39 = vmul.f32 %v3803_v55, %v15858_v61  ;;  %v3821_v36 = vmul.f32 %v3799_v15, %v15859_v45  ;;  %4864 = vmatpush.bf16.msra.mxu2 %v4420_v10  ;;  %v15877_v55 = vld [vmem:[#allocation137_spill] sm:$0xff] }
 0xc70   :  { %v15873_v24 = vunpack.c.h.b16 %v15872_v4  ;;  %v15875_v43 = vunpack.c.h.b16 %v15874_v0  ;;  %v4528_v14 = vunpack.c.l.b16 %v15876_v35  ;;  %v3831_v60 = vpack.c.bf16 %v3817_v19, %v3816_v23  ;;  %4883 = vmatpush.bf16.msra.mxu3 %v4580_v52  ;;  %4921 = vmatpush.bf16.msrb.mxu1 %v4421_v38  ;;  %v15878_v10 = vld [vmem:[#allocation89_spill] sm:$0xff] }
 0xc71   :  { %v3837_v2 = vpack.c.bf16 %v3829_v31, %v3828_v32  ;;  %v4560_v34 = vunpack.c.l.b16 %v12616_v53  ;;  %v4524_v25 = vunpack.c.l.b16 %v15877_v55  ;;  %v4416_v15 = vpack.c.b16 %v4404_v63, %v4400_v33  ;;  %v15882_v52 = vld [vmem:[#allocation93_spill] sm:$0xff]  ;;  %v15883_v32 = vld [vmem:[#allocation55_spill] sm:$0xff] }
 0xc72   :  { %v4575_v17 = vpack.c.b16 %v15875_v43, %v15873_v24  ;;  %v4417_v30 = vpack.c.b16 %v4405_v26, %v4401_v1  ;;  %v15879_v11 = vunpack.c.h.b16 %v15878_v10  ;;  %v15881_v29 = vunpack.c.h.b16 %v15880_v28  ;;  %v15884_v63 = vld [vmem:[#allocation135_spill] sm:$0xff]  ;;  %v4309_v31 = vpop.permute.xlu1 %4308 }
 0xc73   :  { %v4368_v9 = vunpack.c.l.b16 %v3835_v13  ;;  %v4576_v57 = vpack.c.b16 %v4564_v51, %v4560_v34  ;;  %v4372_v47 = vunpack.c.l.b16 %v3837_v2  ;;  %v4369_v4 = vunpack.c.h.b16 %v3835_v13  ;;  %4865 = vmatpush.bf16.msra.mxu2 %v4416_v15  ;;  %v4307_v51 = vpop.permute.xlu0 %4306  ;;  %v15889_v34 = vld [vmem:[#allocation104_spill] sm:$0xff] }
 0xc74   :  { %4827 = vmatpush.bf16.msra.mxu0 %v4575_v17  ;;  %v4539_v58 = vpack.c.b16 %v15881_v29, %v15879_v11  ;;  %v4373_v23 = vunpack.c.h.b16 %v3837_v2  ;;  %v3833_v19 = vpack.c.bf16 %v3821_v36, %v3820_v39  ;;  %v4310_v38 = vsel %vm372_vm9, %v15882_v52, %v4303_v62  ;;  %4922 = vmatpush.bf16.msrb.mxu1 %v4417_v30  ;;  %v15886_v36 = vld [vmem:[#allocation123_spill] sm:$0xff]  ;;  %v15890_v30 = vld [vmem:[#allocation18_spill] sm:$0xff] }
 0xc75   :  { %v4322_v33 = vsel %vm372_vm9, %v4303_v62, %v15883_v32  ;;  %v15885_v1 = vunpack.c.l.b16 %v15884_v63  ;;  %4884 = vmatpush.bf16.msra.mxu3 %v4576_v57  ;;  %v4380_v24 = vpack.c.b16 %v4372_v47, %v4368_v9  ;;  %v4360_v0 = vunpack.c.l.b16 %v3831_v60  ;;  %v15887_v17 = vld [vmem:[#allocation115_spill] sm:$0xff]  ;;  %7046 = vmatmul.msk.bf16.vlgmr.msra.gmra.mxu1 %vm1883_vm6, %v12444_v6  ;;  %v15892_v9 = vld [vmem:[#allocation54_spill] sm:$0xff] }
 0xc76   :  { %v4381_v13 = vpack.c.b16 %v4373_v23, %v4369_v4  ;;  %v4361_v39 = vunpack.c.h.b16 %v3831_v60  ;;  %v4313_v43 = vsel %vm372_vm9, %v15886_v36, %v4309_v31  ;;  %v4325_v62 = vsel %vm372_vm9, %v4309_v31, %v15887_v17  ;;  %v15888_v2 = vld [vmem:[#allocation107_spill] sm:$0xff]  ;;  %v15891_v60 = vld [vmem:[#allocation25_spill] sm:$0xff]  ;;  %v15894_v47 = vld [vmem:[#allocation118_spill] sm:$0xff] }
 0xc77   :  { %v4540_v26 = vpack.c.b16 %v15885_v1, %v4528_v14  ;;  %v4312_v14 = vsel %vm372_vm9, %v15888_v2, %v4307_v51  ;;  %v4324_v15 = vsel %vm372_vm9, %v4307_v51, %v15889_v34  ;;  %v4340_v10 = vmul.f32 %v4313_v43, %v15890_v30  ;;  %4866 = vmatpush.bf16.msra.mxu2 %v4380_v24  ;;  %v15896_v36 = vld [vmem:[#allocation98_spill] sm:$0xff] }
 0xc78   :  { %4828 = vmatpush.bf16.msra.mxu0 %v4539_v58  ;;  %v4341_v11 = vmul.f32 %v4325_v62, %v15891_v60  ;;  %v4336_v28 = vmul.f32 %v4312_v14, %v15890_v30  ;;  %v4337_v29 = vmul.f32 %v4324_v15, %v15891_v60  ;;  %v4653_v58 = vunpack.c.h.b16 %v12418_v8  ;;  %4923 = vmatpush.bf16.msrb.mxu1 %v4381_v13 }
 0xc79   :  { %v15893_v57 = vunpack.c.h.b16 %v15892_v9  ;;  %v15895_v4 = vunpack.c.h.b16 %v15894_v47  ;;  %v4364_v52 = vunpack.c.l.b16 %v3833_v19  ;;  %v4365_v32 = vunpack.c.h.b16 %v3833_v19  ;;  %4885 = vmatpush.bf16.msra.mxu3 %v4540_v26 }
 0xc7a   :  { %v4649_v1 = vunpack.c.h.b16 %v12411_v3  ;;  %v4349_v31 = vpack.c.bf16 %v4341_v11, %v4340_v10  ;;  %v4347_v51 = vpack.c.bf16 %v4337_v29, %v4336_v28  ;;  %v15897_v43 = vunpack.c.l.b16 %v15896_v36  ;;  %v15898_v10 = vld [vmem:[#allocation80_spill] sm:$0xff]  ;;  %v15901_v28 = vld [vmem:[#allocation146_spill] sm:$0xff] }
 0xc7b   :  { %v4535_v23 = vpack.c.b16 %v15895_v4, %v15893_v57  ;;  %v4328_v62 = vmul.f32 %v4310_v38, %v15890_v30  ;;  %v4329_v8 = vmul.f32 %v4322_v33, %v15891_v60  ;;  %v4376_v24 = vpack.c.b16 %v4364_v52, %v4360_v0  ;;  %v4305_v26 = vpop.permute.xlu0 %4304  ;;  %v15899_v38 = vld [vmem:[#allocation96_spill] sm:$0xff] }
 0xc7c   :  { %v4536_v17 = vpack.c.b16 %v4524_v25, %v15897_v43  ;;  %v4377_v2 = vpack.c.b16 %v4365_v32, %v4361_v39  ;;  %v4692_v14 = vunpack.c.l.b16 %v4349_v31  ;;  %v4693_v34 = vunpack.c.h.b16 %v4349_v31  ;;  %v15900_v0 = vld [vmem:[#allocation88_spill] sm:$0xff] }
 0xc7d   :  { %4829 = vmatpush.bf16.msra.mxu0 %v4535_v23  ;;  %v4688_v15 = vunpack.c.l.b16 %v4347_v51  ;;  %v4689_v19 = vunpack.c.h.b16 %v4347_v51  ;;  %4867 = vmatpush.bf16.msra.mxu2 %v4376_v24  ;;  %v4661_v3 = vpack.c.b16 %v4653_v58, %v4649_v1  ;;  %v4645_v11 = vunpack.c.h.b16 %v15898_v10 }
 0xc7e   :  { %4886 = vmatpush.bf16.msra.mxu3 %v4536_v17  ;;  %4924 = vmatpush.bf16.msrb.mxu1 %v4377_v2  ;;  %v4311_v33 = vsel %vm372_vm9, %v15899_v38, %v4305_v26  ;;  %v4323_v39 = vsel %vm372_vm9, %v4305_v26, %v15900_v0  ;;  %v4641_v29 = vunpack.c.h.b16 %v15901_v28  ;;  %v4343_v9 = vpack.c.bf16 %v4329_v8, %v4328_v62  ;;  %v15902_v17 = vld [vmem:[#allocation95_spill] sm:$0xff]  ;;  %v15903_v2 = vld [vmem:[#allocation97_spill] sm:$0xff] }
 0xc7f   :  { %v4700_v13 = vpack.c.b16 %v4692_v14, %v4688_v15  ;;  %v4701_v25 = vpack.c.b16 %v4693_v34, %v4689_v19  ;;  %v4332_v58 = vmul.f32 %v4311_v33, %v15890_v30  ;;  %v4333_v57 = vmul.f32 %v4323_v39, %v15891_v60  ;;  %v7223_v39 = vld [vmem:[%s14414_s11] sm:$0xff] }
 0xc80   :  { %4830 = vmatmul.bf16.vlgmr.msra.gmra.mxu0 %v12428_v20  ;;  %4868 = vmatmul.bf16.vlgmr.msra.gmra.mxu2 %v12491_v5  ;;  %v4657_v47 = vpack.c.b16 %v4645_v11, %v4641_v29  ;;  %v4613_v4 = vunpack.c.h.b16 %v12502_v16  ;;  %v4609_v52 = vunpack.c.h.b16 %v12472_v27  ;;  %v4680_v32 = vunpack.c.l.b16 %v4343_v9 }
 0xc81   :  { %4936 = vmatpush.bf16.msrb.mxu2 %v4661_v3  ;;  %4887 = vmatmul.bf16.vlgmr.msra.gmra.mxu3 %v12428_v20  ;;  %v4345_v23 = vpack.c.bf16 %v4333_v57, %v4332_v58  ;;  %v4681_v31 = vunpack.c.h.b16 %v4343_v9  ;;  %v4605_v62 = vunpack.c.h.b16 %v15902_v17  ;;  %v4601_v14 = vunpack.c.h.b16 %v15903_v2 }
 0xc82   :  { %4904 = vmatpush.bf16.msrb.mxu0 %v4700_v13  ;;  %4961 = vmatpush.bf16.msrb.mxu3 %v4701_v25  ;;  %v4621_v43 = vpack.c.b16 %v4613_v4, %v4609_v52  ;;  %v4573_v34 = vunpack.c.h.b16 %v12601_v7  ;;  %v4569_v27 = vunpack.c.h.b16 %v12480_v44  ;;  %v4565_v19 = vunpack.c.h.b16 %v12599_v46 }
 0xc83   :  { %v4684_v1 = vunpack.c.l.b16 %v4345_v23  ;;  %v4685_v51 = vunpack.c.h.b16 %v4345_v23  ;;  %v4617_v16 = vpack.c.b16 %v4605_v62, %v4601_v14  ;;  %v4561_v3 = vunpack.c.h.b16 %v12616_v53 }
 0xc84   :  { %v4581_v15 = vpack.c.b16 %v4573_v34, %v4569_v27  ;;  %v4529_v7 = vunpack.c.h.b16 %v15876_v35  ;;  %v4533_v11 = vunpack.c.h.b16 %v15884_v63  ;;  %v4525_v44 = vunpack.c.h.b16 %v15877_v55 }
 0xc85   :  { %4937 = vmatpush.bf16.msrb.mxu2 %v4657_v47  ;;  %v4696_v8 = vpack.c.b16 %v4684_v1, %v4680_v32  ;;  %v4697_v24 = vpack.c.b16 %v4685_v51, %v4681_v31  ;;  %7047 = vmatmul.msk.bf16.gmra.mxu1 %vm1883_vm6, %v12553_v40  ;;  %v4577_v10 = vpack.c.b16 %v4565_v19, %v4561_v3  ;;  %v4521_v46 = vunpack.c.h.b16 %v15896_v36 }
 0xc86   :  { %v4541_v26 = vpack.c.b16 %v4533_v11, %v4529_v7  ;;  %v7248_v36 = vmov 3  }
 0xc87   :  { %4905 = vmatpush.bf16.msrb.mxu0 %v4696_v8  ;;  %4962 = vmatpush.bf16.msrb.mxu3 %v4697_v24  ;;  %v4537_v13 = vpack.c.b16 %v4525_v44, %v4521_v46 }
 0xc88   :  { %7157 = vset.pattern.permute.xlu0 %v7248_v36  ;;  %7156 = vset.pattern.permute.xlu1 %v7248_v36 }
 0xc89   :  { %4938 = vmatpush.bf16.msrb.mxu2 %v4621_v43  ;;  %7155 = vset.pattern.permute.xlu2 %v7248_v36 }
 0xc8d   :  { %4939 = vmatpush.bf16.msrb.mxu2 %v4617_v16 }
 0xc90   :  { %4835 = vmatmul.bf16.gmra.mxu0 %v12557_v54  ;;  %4873 = vmatmul.bf16.gmra.mxu2 %v12609_v56 }
 0xc91   :  { %4940 = vmatpush.bf16.msrb.mxu2 %v4581_v15  ;;  %4892 = vmatmul.bf16.gmra.mxu3 %v12557_v54 }
 0xc95   :  { %4941 = vmatpush.bf16.msrb.mxu2 %v4577_v10  ;;  %4925 = vmatmul.bf16.vlgmr.msrb.gmra.mxu1 %v12491_v5 }
 0xc99   :  { %4942 = vmatpush.bf16.msrb.mxu2 %v4541_v26 }
 0xc9d   :  { %4943 = vmatpush.bf16.msrb.mxu2 %v4537_v13 }
 0xca0   :  { %7048 = vmatmul.msk.bf16.vlgmr.msrb.gmra.mxu0 %vm1883_vm6, %v12444_v6  ;;  %4944 = vmatmul.bf16.vlgmr.msrb.gmra.mxu2 %v12428_v20 }
 0xca1   :  { %7050 = vmatmul.msk.bf16.vlgmr.msrb.gmra.mxu3 %vm1883_vm6, %v12444_v6  ;;  %v7220_v6 = vld [vmem:[%s14414_s11 + $0x8] sm:$0xff] }
 0xca2   :  { %5143 = vperm.xlu0 %7157, %v7220_v6  }
 0xca5   :  { %4930 = vmatmul.bf16.gmra.mxu1 %v12609_v56  ;;  %v7222_v56 = vld [vmem:[%s14414_s11 + $0x10] sm:$0xff] }
 0xca6   :  { %5147 = vperm.xlu2 %7155, %v7222_v56  }
 0xcae   :  { %5139 = vperm.xlu2 %7155, %v7223_v39  }
 0xcb0   :  { %7049 = vmatmul.msk.bf16.gmra.mxu0 %vm1883_vm6, %v12553_v40  ;;  %4949 = vmatmul.bf16.gmra.mxu2 %v12557_v54  ;;  %v7221_v54 = vld [vmem:[%s14414_s11 + $0x18] sm:$0xff] }
 0xcb1   :  { %7051 = vmatmul.msk.bf16.gmra.mxu3 %vm1883_vm6, %v12553_v40  ;;  %5151 = vperm.xlu1 %7156, %v7221_v54  }
 0xcd1   :  { %v4774_v5 = vpop.f32.mrf.mxu1 }
 0xcd9   :  { %v4776_v55 = vpop.f32.mrf.mxu1 }
 0xcda   :  { %v4755_v53 = vpop.f32.mrf.mxu0  ;;  %v4793_v35 = vpop.f32.mrf.mxu2 }
 0xcdb   :  { %v4775_v19 = vadd.f32 %v4774_v5, %v4755_v53 }
 0xcdd   :  { %v4794_v7 = vadd.f32 %v4793_v35, %v4775_v19 }
 0xce0   :  { %v4812_v63 = vpop.f32.mrf.mxu3 }
 0xce2   :  { %v4757_v20 = vpop.f32.mrf.mxu0  ;;  %v4779_v40 = vpop.f32.mrf.mxu1 }
 0xce3   :  { %v4795_v25 = vpop.f32.mrf.mxu2  ;;  %v4777_v54 = vadd.f32 %v4776_v55, %v4757_v20 }
 0xce8   :  { %v4814_v38 = vpop.f32.mrf.mxu3 }
 0xcea   :  { %v4760_v33 = vpop.f32.mrf.mxu0  ;;  %v12746_v0 = vpop.f32.mrf.mxu1 }
 0xceb   :  { %v4798_v28 = vpop.f32.mrf.mxu2 }
 0xcf0   :  { %v4817_v29 = vpop.f32.mrf.mxu3 }
 0xcf2   :  { %v12751_v9 = vpop.f32.mrf.mxu0  ;;  %v4850_v58 = vpop.f32.mrf.mxu1 }
 0xcf3   :  { %v12753_v57 = vpop.f32.mrf.mxu2 }
 0xcf8   :  { %v4819_v47 = vpop.f32.mrf.mxu3 }
 0xcfa   :  { %v4852_v23 = vpop.f32.mrf.mxu1 }
 0xcfd   :  { %v4831_v4 = vpop.f32.mrf.mxu0 }
 0xcfe   :  { %v4832_v16 = vadd.f32 %v4831_v4, %v4812_v63 }
 0xd00   :  { %v12755_v3 = vadd.f32 %v4850_v58, %v4832_v16  ;;  %v4796_v58 = vadd.f32 %v4795_v25, %v4777_v54 }
 0xd02   :  { %v4855_v31 = vpop.f32.mrf.mxu1  ;;  %v4974_v44 = vadd.f32 %v12755_v3, %v4794_v7 }
 0xd03   :  { %v4869_v52 = vpop.f32.mrf.mxu2 }
 0xd04   :  { %v4888_v32 = vpop.f32.mrf.mxu3 }
 0xd05   :  { %v4833_v1 = vpop.f32.mrf.mxu0  ;;  %v4889_v10 = vadd.f32 %v4888_v32, %v4869_v52 }
 0xd06   :  { %v4834_v46 = vadd.f32 %v4833_v1, %v4814_v38 }
 0xd08   :  { %v12761_v4 = vadd.f32 %v4852_v23, %v4834_v46 }
 0xd0a   :  { %v4857_v8 = vpop.f32.mrf.mxu1  ;;  %v4979_v32 = vadd.f32 %v12761_v4, %v4796_v58 }
 0xd0b   :  { %v4871_v51 = vpop.f32.mrf.mxu2 }
 0xd0c   :  { %v4890_v43 = vpop.f32.mrf.mxu3 }
 0xd0d   :  { %v4836_v17 = vpop.f32.mrf.mxu0  ;;  %v4891_v5 = vadd.f32 %v4890_v43, %v4871_v51 }
 0xd0e   :  { %v4837_v16 = vadd.f32 %v4836_v17, %v4817_v29  ;;  %v4782_v17 = vadd.f32 %v12746_v0, %v12751_v9 }
 0xd12   :  { %v4926_v15 = vpop.f32.mrf.mxu1 }
 0xd13   :  { %v4874_v62 = vpop.f32.mrf.mxu2 }
 0xd14   :  { %v4893_v24 = vpop.f32.mrf.mxu3  ;;  %v12770_v0 = vpop.permute.xlu0 %5143 }
 0xd15   :  { %v4838_v2 = vpop.f32.mrf.mxu0  ;;  %v4894_v23 = vadd.f32 %v4893_v24, %v4874_v62 }
 0xd16   :  { %v4839_v46 = vadd.f32 %v4838_v2, %v4819_v47 }
 0xd1a   :  { %v4928_v39 = vpop.f32.mrf.mxu1 }
 0xd1b   :  { %v4876_v14 = vpop.f32.mrf.mxu2 }
 0xd1c   :  { %v4895_v34 = vpop.f32.mrf.mxu3 }
 0xd1d   :  { %v4907_v27 = vpop.f32.mrf.mxu0 }
 0xd1e   :  { %v12757_v11 = vadd.f32 %v4907_v27, %v4889_v10  ;;  %v12764_v10 = vadd.f32 %v4855_v31, %v4837_v16  ;;  %v4896_v31 = vadd.f32 %v4895_v34, %v4876_v14  ;;  %v15904_v14 = vld [vmem:[#allocation50_spill] sm:$0xff] }
 0xd20   :  { %v4975_v63 = vadd.f32 %v4974_v44, %v12757_v11 }
 0xd22   :  { %v4931_v19 = vpop.f32.mrf.mxu1 }
 0xd23   :  { %v4945_v26 = vpop.f32.mrf.mxu2  ;;  %v12772_v9 = vpop.permute.xlu1 %5151 }
 0xd24   :  { %v4946_v13 = vadd.f32 %v4945_v26, %v4926_v15  ;;  %v4964_v36 = vpop.f32.mrf.mxu3  ;;  %v4780_v15 = vadd.f32 %v4779_v40, %v4760_v33 }
 0xd25   :  { %v4909_v6 = vpop.f32.mrf.mxu0 }
 0xd26   :  { %v4965_v56 = vadd.f32 %v4964_v36, %v4946_v13  ;;  %v4910_v35 = vadd.f32 %v4909_v6, %v4891_v5  ;;  %v4799_v51 = vadd.f32 %v4798_v28, %v4780_v15  ;;  %v4858_v6 = vadd.f32 %v4857_v8, %v4839_v46 }
 0xd27   :  { %v4801_v28 = vadd.f32 %v12753_v57, %v4782_v17 }
 0xd28   :  { %v4976_v53 = vadd.f32 %v4975_v63, %v4965_v56  ;;  %v4980_v55 = vadd.f32 %v4979_v32, %v4910_v35  ;;  %v4984_v44 = vadd.f32 %v12764_v10, %v4799_v51 }
 0xd2a   :  { %4977 = vadd.xlane.f32.xlu0 %v4976_v53  ;;  %v4933_v62 = vpop.f32.mrf.mxu1 }
 0xd2b   :  { %v4947_v52 = vpop.f32.mrf.mxu2 }
 0xd2c   :  { %v4948_v38 = vadd.f32 %v4947_v52, %v4928_v39  ;;  %v4966_v1 = vpop.f32.mrf.mxu3  ;;  %v4989_v39 = vadd.f32 %v4858_v6, %v4801_v28 }
 0xd2d   :  { %v4912_v27 = vpop.f32.mrf.mxu0 }
 0xd2e   :  { %v4967_v20 = vadd.f32 %v4966_v1, %v4948_v38  ;;  %v4913_v43 = vadd.f32 %v4912_v27, %v4894_v23  ;;  %v12783_v38 = vpop.permute.xlu2 %5147 }
 0xd30   :  { %v4981_v26 = vadd.f32 %v4980_v55, %v4967_v20  ;;  %v4985_v40 = vadd.f32 %v4984_v44, %v4913_v43 }
 0xd32   :  { %4982 = vadd.xlane.f32.xlu1 %v4981_v26 }
 0xd33   :  { %v4950_v25 = vpop.f32.mrf.mxu2 }
 0xd34   :  { %v4951_v13 = vadd.f32 %v4950_v25, %v4931_v19  ;;  %v4969_v29 = vpop.f32.mrf.mxu3 }
 0xd35   :  { %v4914_v36 = vpop.f32.mrf.mxu0 }
 0xd36   :  { %v4970_v33 = vadd.f32 %v4969_v29, %v4951_v13  ;;  %v4915_v24 = vadd.f32 %v4914_v36, %v4896_v31  ;;  %v12809_v17 = vpop.permute.xlu2 %5139 }
 0xd38   :  { %v4986_v54 = vadd.f32 %v4985_v40, %v4970_v33  ;;  %v4990_v2 = vadd.f32 %v4989_v39, %v4915_v24 }
 0xd3a   :  { %4987 = vadd.xlane.f32.xlu1 %v4986_v54 }
 0xd3b   :  { %v4952_v63 = vpop.f32.mrf.mxu2 }
 0xd3c   :  { %v4953_v5 = vadd.f32 %v4952_v63, %v4933_v62  ;;  %v4971_v47 = vpop.f32.mrf.mxu3 }
 0xd3e   :  { %v4972_v53 = vadd.f32 %v4971_v47, %v4953_v5 }
 0xd40   :  { %v4991_v52 = vadd.f32 %v4990_v2, %v4972_v53 }
 0xd42   :  { %4992 = vadd.xlane.f32.xlu2 %v4991_v52 }
 0xd9d   :  { %v4978_v8 = vpop.xlane.xlu0 %4977 }
 0xd9e   :  { %v4994_v34 = vmul.f32 %v4978_v8, %v15904_v14 }
 0xda0   :  { %v12775_v32 = vsub.f32 %v4794_v7, %v4994_v34  ;;  %v12778_v57 = vsub.f32 %v12755_v3, %v4994_v34  ;;  %v12781_v16 = vsub.f32 %v12757_v11, %v4994_v34  ;;  %v12785_v1 = vsub.f32 %v4965_v56, %v4994_v34 }
 0xda2   :  { %v5014_v27 = vmul.f32 %v12775_v32, %v12775_v32  ;;  %v5015_v15 = vmul.f32 %v12778_v57, %v12778_v57  ;;  %v5016_v7 = vmul.f32 %v12781_v16, %v12781_v16  ;;  %v5017_v11 = vmul.f32 %v12785_v1, %v12785_v1 }
 0xda4   :  { %v5030_v55 = vadd.f32 %v5015_v15, %v5014_v27 }
 0xda5   :  { %v4983_v19 = vpop.xlane.xlu1 %4982 }
 0xda6   :  { %v4995_v3 = vmul.f32 %v4983_v19, %v15904_v14  ;;  %v5031_v23 = vadd.f32 %v5030_v55, %v5016_v7 }
 0xda8   :  { %v12796_v26 = vsub.f32 %v4796_v58, %v4995_v3  ;;  %v12799_v56 = vsub.f32 %v12761_v4, %v4995_v3  ;;  %v12801_v25 = vsub.f32 %v4910_v35, %v4995_v3  ;;  %v5032_v44 = vadd.f32 %v5031_v23, %v5017_v11 }
 0xda9   :  { %v12803_v46 = vsub.f32 %v4967_v20, %v4995_v3 }
 0xdaa   :  { %5033 = vadd.xlane.f32.xlu1 %v5032_v44  ;;  %v5018_v13 = vmul.f32 %v12796_v26, %v12796_v26  ;;  %v5019_v29 = vmul.f32 %v12799_v56, %v12799_v56  ;;  %v5020_v58 = vmul.f32 %v12801_v25, %v12801_v25 }
 0xdab   :  { %v5021_v36 = vmul.f32 %v12803_v46, %v12803_v46 }
 0xdac   :  { %v5035_v40 = vadd.f32 %v5019_v29, %v5018_v13 }
 0xdad   :  { %v4988_v4 = vpop.xlane.xlu1 %4987 }
 0xdae   :  { %v4996_v35 = vmul.f32 %v4988_v4, %v15904_v14  ;;  %v5036_v20 = vadd.f32 %v5035_v40, %v5020_v58 }
 0xdb0   :  { %v12816_v31 = vsub.f32 %v4799_v51, %v4996_v35  ;;  %v12819_v54 = vsub.f32 %v12764_v10, %v4996_v35  ;;  %v12821_v62 = vsub.f32 %v4913_v43, %v4996_v35  ;;  %v5037_v63 = vadd.f32 %v5036_v20, %v5021_v36 }
 0xdb1   :  { %v12823_v39 = vsub.f32 %v4970_v33, %v4996_v35 }
 0xdb2   :  { %5038 = vadd.xlane.f32.xlu2 %v5037_v63  ;;  %v5022_v5 = vmul.f32 %v12816_v31, %v12816_v31  ;;  %v5023_v47 = vmul.f32 %v12819_v54, %v12819_v54  ;;  %v5024_v2 = vmul.f32 %v12821_v62, %v12821_v62 }
 0xdb3   :  { %v5025_v43 = vmul.f32 %v12823_v39, %v12823_v39 }
 0xdb4   :  { %v5040_v51 = vadd.f32 %v5023_v47, %v5022_v5 }
 0xdb5   :  { %v4993_v52 = vpop.xlane.xlu2 %4992 }
 0xdb6   :  { %v4997_v10 = vmul.f32 %v4993_v52, %v15904_v14  ;;  %v5041_v8 = vadd.f32 %v5040_v51, %v5024_v2 }
 0xdb8   :  { %v12834_v34 = vsub.f32 %v4801_v28, %v4997_v10  ;;  %v12836_v33 = vsub.f32 %v4858_v6, %v4997_v10  ;;  %v12838_v27 = vsub.f32 %v4915_v24, %v4997_v10  ;;  %v5042_v15 = vadd.f32 %v5041_v8, %v5025_v43  ;;  %v7224_v8 = vld [vmem:[%s14415_s10] sm:$0xff] }
 0xdb9   :  { %v12840_v7 = vsub.f32 %v4972_v53, %v4997_v10 }
 0xdba   :  { %5043 = vadd.xlane.f32.xlu2 %v5042_v15  ;;  %v5026_v55 = vmul.f32 %v12834_v34, %v12834_v34  ;;  %v5027_v19 = vmul.f32 %v12836_v33, %v12836_v33  ;;  %v5028_v3 = vmul.f32 %v12838_v27, %v12838_v27 }
 0xdbb   :  { %v5029_v6 = vmul.f32 %v12840_v7, %v12840_v7 }
 0xdbc   :  { %v5045_v11 = vadd.f32 %v5027_v19, %v5026_v55 }
 0xdbe   :  { %v5046_v28 = vadd.f32 %v5045_v11, %v5028_v3 }
 0xdc0   :  { %v5047_v24 = vadd.f32 %v5046_v28, %v5029_v6 }
 0xdc2   :  { %5048 = vadd.xlane.f32.xlu0 %v5047_v24 }
 0xe1d   :  { %v5034_v23 = vpop.xlane.xlu1 %5033 }
 0xe1e   :  { %v5050_v53 = vmul.f32 %v5034_v23, %v15904_v14 }
 0xe20   :  { %v5054_v44 = vadd.f32 1e-05, %v5050_v53 }
 0xe22   :  { %7188 = vrsqrt.f32 %v5054_v44  ;;  %vm5064_vm14 = vweird.f32 %v5054_v44 }
 0xe25   :  { %v5039_v13 = vpop.xlane.xlu2 %5038 }
 0xe26   :  { %v5051_v29 = vmul.f32 %v5039_v13, %v15904_v14  ;;  %v7225_v13 = vld [vmem:[%s14415_s10 + $0x8] sm:$0xff] }
 0xe28   :  { %v7189_v58 = vpop.eup %7188  ;;  %v5055_v40 = vadd.f32 1e-05, %v5051_v29 }
 0xe29   :  { %v5059_v4 = vmul.f32 %v7189_v58, %v5054_v44  ;;  %vm5065_vm13 = vweird.f32 %v7189_v58 }
 0xe2a   :  { %7190 = vrsqrt.f32 %v5055_v40  ;;  %vm5066_vm15 = vmor %vm5064_vm14, %vm5065_vm13  ;;  %vm5074_vm7 = vweird.f32 %v5055_v40 }
 0xe2b   :  { %v5060_v35 = vmul.f32 %v7189_v58, %v5059_v4 }
 0xe2d   :  { %v5061_v36 = vmul.f32 0.5, %v5060_v35  ;;  %v5044_v20 = vpop.xlane.xlu2 %5043 }
 0xe2e   :  { %v5052_v63 = vmul.f32 %v5044_v20, %v15904_v14 }
 0xe2f   :  { %v5062_v5 = vsub.f32 1.5, %v5061_v36 }
 0xe30   :  { %v7191_v47 = vpop.eup %7190  ;;  %v5056_v2 = vadd.f32 1e-05, %v5052_v63 }
 0xe31   :  { %v5063_v51 = vmul.f32 %v7189_v58, %v5062_v5  ;;  %v5069_v52 = vmul.f32 %v7191_v47, %v5055_v40  ;;  %vm5075_vm4 = vweird.f32 %v7191_v47  ;;  %v7226_v5 = vld [vmem:[%s14415_s10 + $0x10] sm:$0xff] }
 0xe32   :  { %7192 = vrsqrt.f32 %v5056_v2  ;;  %vm5076_vm11 = vmor %vm5074_vm7, %vm5075_vm4  ;;  %vm5084_vm13 = vweird.f32 %v5056_v2 }
 0xe33   :  { %v5070_v10 = vmul.f32 %v7191_v47, %v5069_v52  ;;  %v5067_v43 = vsel %vm5066_vm15, %v7189_v58, %v5063_v51 }
 0xe34   :  { %v5098_v15 = vmul.f32 %v7224_v8, %v5067_v43 }
 0xe35   :  { %v5071_v55 = vmul.f32 0.5, %v5070_v10  ;;  %v5049_v19 = vpop.xlane.xlu0 %5048 }
 0xe36   :  { %v5053_v3 = vmul.f32 %v5049_v19, %v15904_v14  ;;  %5104 = vperm.xlu2 %7155, %v5098_v15  }
 0xe37   :  { %v5072_v11 = vsub.f32 1.5, %v5071_v55 }
 0xe38   :  { %v7193_v6 = vpop.eup %7192  ;;  %v5057_v28 = vadd.f32 1e-05, %v5053_v3 }
 0xe39   :  { %v5073_v24 = vmul.f32 %v7191_v47, %v5072_v11  ;;  %v5079_v23 = vmul.f32 %v7193_v6, %v5056_v2  ;;  %vm5085_vm12 = vweird.f32 %v7193_v6  ;;  %v7227_v2 = vld [vmem:[%s14415_s10 + $0x18] sm:$0xff] }
 0xe3a   :  { %7194 = vrsqrt.f32 %v5057_v28  ;;  %vm5086_vm14 = vmor %vm5084_vm13, %vm5085_vm12  ;;  %vm5094_vm4 = vweird.f32 %v5057_v28 }
 0xe3b   :  { %v5080_v53 = vmul.f32 %v7193_v6, %v5079_v23  ;;  %v5077_v44 = vsel %vm5076_vm11, %v7191_v47, %v5073_v24 }
 0xe3c   :  { %v5099_v29 = vmul.f32 %v7225_v13, %v5077_v44 }
 0xe3d   :  { %v5081_v58 = vmul.f32 0.5, %v5080_v53 }
 0xe3e   :  { %5109 = vperm.xlu1 %7156, %v5099_v29  }
 0xe3f   :  { %v5082_v4 = vsub.f32 1.5, %v5081_v58 }
 0xe40   :  { %v7195_v35 = vpop.eup %7194 }
 0xe41   :  { %v5083_v36 = vmul.f32 %v7193_v6, %v5082_v4  ;;  %v5089_v20 = vmul.f32 %v7195_v35, %v5057_v28  ;;  %vm5095_vm15 = vweird.f32 %v7195_v35 }
 0xe42   :  { %vm5096_vm7 = vmor %vm5094_vm4, %vm5095_vm15 }
 0xe43   :  { %v5090_v40 = vmul.f32 %v7195_v35, %v5089_v20  ;;  %v5087_v63 = vsel %vm5086_vm14, %v7193_v6, %v5083_v36 }
 0xe44   :  { %v5100_v47 = vmul.f32 %v7226_v5, %v5087_v63 }
 0xe45   :  { %v5091_v51 = vmul.f32 0.5, %v5090_v40 }
 0xe46   :  { %5114 = vperm.xlu0 %7157, %v5100_v47  }
 0xe47   :  { %v5092_v52 = vsub.f32 1.5, %v5091_v51 }
 0xe49   :  { %v5093_v10 = vmul.f32 %v7195_v35, %v5092_v52 }
 0xe4b   :  { %v5097_v43 = vsel %vm5096_vm7, %v7195_v35, %v5093_v10 }
 0xe4c   :  { %v5101_v8 = vmul.f32 %v7227_v2, %v5097_v43 }
 0xe4e   :  { %5119 = vperm.xlu1 %7156, %v5101_v8   ;;  %v15912_v8 = vld [vmem:[#allocation30_spill] sm:$0xff] }
 0xe90   :  { %v5105_v15 = vpop.permute.xlu2 %5104 }
 0xe91   :  { %v5122_v55 = vmul.f32 %v5105_v15, %v12775_v32  ;;  %v5123_v19 = vmul.f32 %v5105_v15, %v12778_v57  ;;  %v5125_v3 = vmul.f32 %v5105_v15, %v12785_v1  ;;  %v5124_v24 = vmul.f32 %v5105_v15, %v12781_v16 }
 0xe93   :  { %v5154_v11 = vadd.f32 %v12809_v17, %v5122_v55  ;;  %v5155_v6 = vadd.f32 %v12809_v17, %v5123_v19  ;;  %v5157_v28 = vadd.f32 %v12809_v17, %v5125_v3  ;;  %v5156_v57 = vadd.f32 %v12809_v17, %v5124_v24  ;;  %v15913_v55 = vld [vmem:[#allocation31_spill] sm:$0xff] }
 0xe95   :  { %v5170_v23 = vmax.f32 %v5154_v11, 0.0  ;;  %v5171_v53 = vmax.f32 %v5155_v6, 0.0  ;;  %v12873_v44 = vmax.f32 %v5157_v28, 0.0  ;;  %v12882_v1 = vmax.f32 %v5156_v57, 0.0 }
 0xe97   :  { %15905 = vst [vmem:[#allocation75_spill] sm:$0xff] %v12873_v44  ;;  %5434 = vrot.lane.b32.xlu2 %v12873_v44, %s7239_s27  ;;  %5418 = vrot.lane.b32.xlu0 %v5171_v53, %s7239_s27  ;;  %v12878_v32 = vpack.c.bf16 %v5171_v53, %v5170_v23 }
 0xe98   :  { %5410 = vrot.lane.b32.xlu1 %v5170_v23, %s7239_s27  ;;  %15907 = vst [vmem:[#allocation124_spill] sm:$0xff] %v12882_v1 }
 0xe99   :  { %15906 = vst [vmem:[#allocation86_spill] sm:$0xff] %v12878_v32 }
 0xe9f   :  { %5650 = vrot.lane.b32.xlu2 %v12882_v1, %s7242_s30  ;;  %5642 = vrot.lane.b32.xlu0 %v5171_v53, %s7242_s30 }
 0xea0   :  { %5634 = vrot.lane.b32.xlu1 %v5170_v23, %s7242_s30 }
 0xea7   :  { %5362 = vrot.lane.b32.xlu2 %v12873_v44, %s7238_s26  ;;  %5346 = vrot.lane.b32.xlu0 %v5171_v53, %s7238_s26 }
 0xea8   :  { %5338 = vrot.lane.b32.xlu1 %v5170_v23, %s7238_s26 }
 0xeaf   :  { %5578 = vrot.lane.b32.xlu2 %v12882_v1, %s7241_s29  ;;  %5570 = vrot.lane.b32.xlu0 %v5171_v53, %s7241_s29 }
 0xeb0   :  { %5562 = vrot.lane.b32.xlu1 %v5170_v23, %s7241_s29  ;;  %v5110_v16 = vpop.permute.xlu1 %5109 }
 0xeb1   :  { %v5126_v17 = vmul.f32 %v5110_v16, %v12796_v26  ;;  %v5129_v13 = vmul.f32 %v5110_v16, %v12803_v46  ;;  %v5128_v4 = vmul.f32 %v5110_v16, %v12801_v25  ;;  %v5127_v46 = vmul.f32 %v5110_v16, %v12799_v56  ;;  %v15916_v16 = vld [vmem:[#allocation23_spill] sm:$0xff] }
 0xeb3   :  { %v5158_v29 = vadd.f32 %v12770_v0, %v5126_v17  ;;  %v5161_v58 = vadd.f32 %v12770_v0, %v5129_v13  ;;  %v5160_v36 = vadd.f32 %v12770_v0, %v5128_v4  ;;  %v5159_v20 = vadd.f32 %v12770_v0, %v5127_v46 }
 0xeb5   :  { %v12923_v35 = vmax.f32 %v5158_v29, 0.0  ;;  %v12925_v26 = vmax.f32 %v5161_v58, 0.0  ;;  %v12936_v25 = vmax.f32 %v5160_v36, 0.0  ;;  %v12938_v40 = vmax.f32 %v5159_v20, 0.0  ;;  %v15918_v20 = vld [vmem:[#allocation32_spill] sm:$0xff] }
 0xeb7   :  { %5290 = vrot.lane.b32.xlu2 %v12873_v44, %s7237_s0  ;;  %5274 = vrot.lane.b32.xlu0 %v5171_v53, %s7237_s0  ;;  %15908 = vst [vmem:[#allocation66_spill] sm:$0xff] %v12923_v35 }
 0xeb8   :  { %5266 = vrot.lane.b32.xlu1 %v5170_v23, %s7237_s0  ;;  %15909 = vst [vmem:[#allocation76_spill] sm:$0xff] %v12925_v26  ;;  %v5115_v63 = vpop.permute.xlu0 %5114 }
 0xeb9   :  { %15910 = vst [vmem:[#allocation91_spill] sm:$0xff] %v12936_v25 }
 0xeba   :  { %15911 = vst [vmem:[#allocation125_spill] sm:$0xff] %v12938_v40 }
 0xebf   :  { %5506 = vrot.lane.b32.xlu2 %v12882_v1, %s7240_s28  ;;  %5498 = vrot.lane.b32.xlu0 %v5171_v53, %s7240_s28 }
 0xec0   :  { %5490 = vrot.lane.b32.xlu1 %v5170_v23, %s7240_s28  ;;  %v12970_v47 = vpop.permute.xlu1 %5119 }
 0xec7   :  { %5722 = vrot.lane.b32.xlu2 %v12882_v1, %s7243_s13  ;;  %5714 = vrot.lane.b32.xlu0 %v5171_v53, %s7243_s13 }
 0xec8   :  { %5706 = vrot.lane.b32.xlu1 %v5170_v23, %s7243_s13 }
 0xecf   :  { %5218 = vrot.lane.b32.xlu2 %v12873_v44, %s7236_s25  ;;  %5202 = vrot.lane.b32.xlu0 %v5171_v53, %s7236_s25 }
 0xed0   :  { %5194 = vrot.lane.b32.xlu1 %v5170_v23, %s7236_s25  ;;  %v15915_v23 = vld [vmem:[#allocation17_spill] sm:$0xff] }
 0xed7   :  { %5426 = vrot.lane.b32.xlu2 %v12882_v1, %s7239_s27  ;;  %5586 = vrot.lane.b32.xlu0 %v12873_v44, %s7241_s29 }
 0xed8   :  { %5658 = vrot.lane.b32.xlu1 %v12873_v44, %s7242_s30 }
 0xedf   :  { %5412 = vrot.lane.b32.xlu2 %v12923_v35, %s7239_s27  ;;  %5436 = vrot.lane.b32.xlu0 %v12925_v26, %s7239_s27 }
 0xee0   :  { %5354 = vrot.lane.b32.xlu1 %v12882_v1, %s7238_s26 }
 0xee7   :  { %5636 = vrot.lane.b32.xlu2 %v12923_v35, %s7242_s30  ;;  %5652 = vrot.lane.b32.xlu0 %v12936_v25, %s7242_s30 }
 0xee8   :  { %5420 = vrot.lane.b32.xlu1 %v12938_v40, %s7239_s27 }
 0xeef   :  { %5340 = vrot.lane.b32.xlu2 %v12923_v35, %s7238_s26  ;;  %5364 = vrot.lane.b32.xlu0 %v12925_v26, %s7238_s26 }
 0xef0   :  { %5644 = vrot.lane.b32.xlu1 %v12938_v40, %s7242_s30 }
 0xef1   :  { %v12952_v0 = vpop.permute.xlu2 %5434 }
 0xef7   :  { %5564 = vrot.lane.b32.xlu2 %v12923_v35, %s7241_s29  ;;  %5580 = vrot.lane.b32.xlu0 %v12936_v25, %s7241_s29 }
 0xef8   :  { %5348 = vrot.lane.b32.xlu1 %v12938_v40, %s7238_s26 }
 0xef9   :  { %v12960_v56 = vpop.permute.xlu2 %5650 }
 0xeff   :  { %5268 = vrot.lane.b32.xlu2 %v12923_v35, %s7237_s0  ;;  %5292 = vrot.lane.b32.xlu0 %v12925_v26, %s7237_s0 }
 0xf00   :  { %5572 = vrot.lane.b32.xlu1 %v12938_v40, %s7241_s29 }
 0xf01   :  { %v12968_v5 = vpop.permute.xlu2 %5362 }
 0xf07   :  { %5492 = vrot.lane.b32.xlu2 %v12923_v35, %s7240_s28  ;;  %5508 = vrot.lane.b32.xlu0 %v12936_v25, %s7240_s28 }
 0xf08   :  { %5276 = vrot.lane.b32.xlu1 %v12938_v40, %s7237_s0 }
 0xf09   :  { %v12978_v51 = vpop.permute.xlu2 %5578  ;;  %v12980_v52 = vpop.permute.xlu0 %5418 }
 0xf0a   :  { %v5411_v10 = vpop.permute.xlu1 %5410 }
 0xf0b   :  { %v5450_v43 = vsel %vm203_vm3, %v5411_v10, %v12980_v52  ;;  %v5454_v2 = vsel %vm203_vm3, %v12952_v0, %v5411_v10 }
 0xf0c   :  { %v5458_v15 = vmul.f32 %v5454_v2, %v15912_v8  ;;  %v5459_v19 = vmul.f32 %v5450_v43, %v15913_v55  ;;  %v15919_v43 = vld [vmem:[#allocation33_spill] sm:$0xff] }
 0xf0e   :  { %v12990_v3 = vpack.c.bf16 %v5459_v19, %v5458_v15  ;;  %v5131_v15 = vmul.f32 %v5115_v63, %v12819_v54 }
 0xf0f   :  { %5708 = vrot.lane.b32.xlu2 %v12923_v35, %s7243_s13  ;;  %5724 = vrot.lane.b32.xlu0 %v12936_v25, %s7243_s13 }
 0xf10   :  { %5500 = vrot.lane.b32.xlu1 %v12938_v40, %s7240_s28 }
 0xf11   :  { %v12998_v11 = vpop.permute.xlu2 %5290  ;;  %v5643_v6 = vpop.permute.xlu0 %5642 }
 0xf12   :  { %15914 = vst [vmem:[#allocation87_spill] sm:$0xff] %v12998_v11  ;;  %v5670_v28 = vsel %vm333_vm10, %v5643_v6, %v12960_v56  ;;  %v13003_v24 = vpop.permute.xlu1 %5634 }
 0xf13   :  { %v5683_v53 = vmul.f32 %v5670_v28, %v15915_v23  ;;  %v5674_v57 = vsel %vm333_vm10, %v13003_v24, %v5643_v6  ;;  %v5163_v6 = vadd.f32 %v12783_v38, %v5131_v15  ;;  %v5130_v15 = vmul.f32 %v5115_v63, %v12816_v31 }
 0xf14   :  { %v5682_v17 = vmul.f32 %v5674_v57, %v15916_v16 }
 0xf15   :  { %v13050_v14 = vmax.f32 %v5163_v6, 0.0  ;;  %v5162_v6 = vadd.f32 %v12783_v38, %v5130_v15 }
 0xf16   :  { %v13010_v13 = vpack.c.bf16 %v5683_v53, %v5682_v17  ;;  %v15921_v17 = vld [vmem:[#allocation27_spill] sm:$0xff] }
 0xf17   :  { %5196 = vrot.lane.b32.xlu2 %v12923_v35, %s7236_s25  ;;  %5220 = vrot.lane.b32.xlu0 %v12925_v26, %s7236_s25  ;;  %15923 = vst [vmem:[#allocation64_spill] sm:$0xff] %v13050_v14 }
 0xf18   :  { %5716 = vrot.lane.b32.xlu1 %v12938_v40, %s7243_s13 }
 0xf19   :  { %v13018_v29 = vpop.permute.xlu2 %5506  ;;  %v13020_v58 = vpop.permute.xlu0 %5346 }
 0xf1a   :  { %15917 = vst [vmem:[#allocation105_spill] sm:$0xff] %v13018_v29  ;;  %v5339_v4 = vpop.permute.xlu1 %5338 }
 0xf1b   :  { %v5378_v46 = vsel %vm164_vm2, %v5339_v4, %v13020_v58  ;;  %v5382_v36 = vsel %vm164_vm2, %v12968_v5, %v5339_v4 }
 0xf1c   :  { %v5386_v10 = vmul.f32 %v5382_v36, %v15918_v20  ;;  %v5387_v2 = vmul.f32 %v5378_v46, %v15919_v43  ;;  %v15922_v36 = vld [vmem:[#allocation26_spill] sm:$0xff] }
 0xf1e   :  { %v13031_v19 = vpack.c.bf16 %v5387_v2, %v5386_v10  ;;  %v5133_v2 = vmul.f32 %v5115_v63, %v12823_v39 }
 0xf1f   :  { %5660 = vrot.lane.b32.xlu2 %v12925_v26, %s7242_s30  ;;  %5428 = vrot.lane.b32.xlu0 %v12936_v25, %s7239_s27 }
 0xf20   :  { %5204 = vrot.lane.b32.xlu1 %v12938_v40, %s7236_s25 }
 0xf21   :  { %v13040_v28 = vpop.permute.xlu2 %5722  ;;  %v5571_v53 = vpop.permute.xlu0 %5570 }
 0xf22   :  { %15920 = vst [vmem:[#allocation109_spill] sm:$0xff] %v13040_v28  ;;  %v5598_v54 = vsel %vm294_vm8, %v5571_v53, %v12978_v51  ;;  %v5563_v57 = vpop.permute.xlu1 %5562 }
 0xf23   :  { %v5611_v4 = vmul.f32 %v5598_v54, %v15921_v17  ;;  %v5602_v46 = vsel %vm294_vm8, %v5563_v57, %v5571_v53  ;;  %v5165_v53 = vadd.f32 %v12783_v38, %v5133_v2 }
 0xf24   :  { %v5610_v10 = vmul.f32 %v5602_v46, %v15922_v36 }
 0xf25   :  { %v13070_v46 = vmax.f32 %v5165_v53, 0.0 }
 0xf26   :  { %v13053_v60 = vpack.c.bf16 %v5611_v4, %v5610_v10  ;;  %v5132_v4 = vmul.f32 %v5115_v63, %v12821_v62  ;;  %v13072_v10 = vmax.f32 %v5162_v6, 0.0 }
 0xf27   :  { %5356 = vrot.lane.b32.xlu2 %v12936_v25, %s7238_s26  ;;  %5422 = vrot.lane.b32.xlu0 %v13050_v14, %s7239_s27  ;;  %15926 = vst [vmem:[#allocation9_spill] sm:$0xff] %v13070_v46 }
 0xf28   :  { %5588 = vrot.lane.b32.xlu1 %v12925_v26, %s7241_s29  ;;  %15927 = vst [vmem:[#allocation67_spill] sm:$0xff] %v13072_v10  ;;  %v5164_v2 = vadd.f32 %v12783_v38, %v5132_v4  ;;  %v15933_v26 = vld [vmem:[#allocation24_spill] sm:$0xff] }
 0xf29   :  { %v13062_v54 = vpop.permute.xlu2 %5218  ;;  %v13064_v39 = vpop.permute.xlu0 %5274 }
 0xf2a   :  { %15924 = vst [vmem:[#allocation68_spill] sm:$0xff] %v13062_v54  ;;  %v13067_v31 = vpop.permute.xlu1 %5266  ;;  %v13093_v61 = vmax.f32 %v5164_v2, 0.0 }
 0xf2b   :  { %15925 = vst [vmem:[#allocation8_spill] sm:$0xff] %v13064_v39 }
 0xf2c   :  { %15929 = vst [vmem:[#allocation85_spill] sm:$0xff] %v13093_v61 }
 0xf2f   :  { %5438 = vrot.lane.b32.xlu2 %v13070_v46, %s7239_s27  ;;  %5646 = vrot.lane.b32.xlu0 %v13050_v14, %s7242_s30 }
 0xf30   :  { %5414 = vrot.lane.b32.xlu1 %v13072_v10, %s7239_s27 }
 0xf31   :  { %v5427_v15 = vpop.permute.xlu2 %5426  ;;  %v13081_v30 = vpop.permute.xlu0 %5498 }
 0xf32   :  { %v5442_v62 = vsel %vm203_vm3, %v5427_v15, %v12952_v0  ;;  %v5446_v63 = vsel %vm203_vm3, %v12980_v52, %v5427_v15  ;;  %v13089_v53 = vpop.permute.xlu1 %5490 }
 0xf33   :  { %15928 = vst [vmem:[#allocation65_spill] sm:$0xff] %v13089_v53  ;;  %v5460_v6 = vmul.f32 %v5446_v63, %v15792_v50  ;;  %v5461_v45 = vmul.f32 %v5442_v62, %v15793_v12 }
 0xf35   :  { %v13095_v38 = vpack.c.bf16 %v5461_v45, %v5460_v6 }
 0xf37   :  { %5654 = vrot.lane.b32.xlu2 %v13093_v61, %s7242_s30  ;;  %5350 = vrot.lane.b32.xlu0 %v13050_v14, %s7238_s26 }
 0xf38   :  { %5638 = vrot.lane.b32.xlu1 %v13072_v10, %s7242_s30 }
 0xf39   :  { %v5413_v0 = vpop.permute.xlu2 %5412  ;;  %v13103_v52 = vpop.permute.xlu0 %5714 }
 0xf3a   :  { %v13105_v4 = vpop.permute.xlu1 %5706 }
 0xf3b   :  { %15930 = vst [vmem:[#allocation147_spill] sm:$0xff] %v13105_v4 }
 0xf3f   :  { %5366 = vrot.lane.b32.xlu2 %v13070_v46, %s7238_s26  ;;  %5574 = vrot.lane.b32.xlu0 %v13050_v14, %s7241_s29 }
 0xf40   :  { %5342 = vrot.lane.b32.xlu1 %v13072_v10, %s7238_s26 }
 0xf41   :  { %v13113_v45 = vpop.permute.xlu2 %5636  ;;  %v13115_v2 = vpop.permute.xlu0 %5202 }
 0xf42   :  { %15931 = vst [vmem:[#allocation128_spill] sm:$0xff] %v13115_v2  ;;  %v13117_v15 = vpop.permute.xlu1 %5194 }
 0xf47   :  { %5582 = vrot.lane.b32.xlu2 %v13093_v61, %s7241_s29  ;;  %5278 = vrot.lane.b32.xlu0 %v13050_v14, %s7237_s0 }
 0xf48   :  { %5566 = vrot.lane.b32.xlu1 %v13072_v10, %s7241_s29 }
 0xf49   :  { %v13125_v62 = vpop.permute.xlu2 %5340  ;;  %v5587_v63 = vpop.permute.xlu0 %5586 }
 0xf4a   :  { %v5594_v6 = vsel %vm294_vm8, %v12978_v51, %v5587_v63  ;;  %v5606_v32 = vsel %vm294_vm8, %v5587_v63, %v5563_v57  ;;  %v5659_v40 = vpop.permute.xlu1 %5658 }
 0xf4b   :  { %v5612_v35 = vmul.f32 %v5594_v6, %v15729_v37  ;;  %v5613_v41 = vmul.f32 %v5606_v32, %v15732_v42  ;;  %v5666_v22 = vsel %vm333_vm10, %v12960_v56, %v5659_v40  ;;  %v5678_v49 = vsel %vm333_vm10, %v5659_v40, %v13003_v24 }
 0xf4c   :  { %v5684_v25 = vmul.f32 %v5666_v22, %v15932_v18  ;;  %v5685_v51 = vmul.f32 %v5678_v49, %v15933_v26 }
 0xf4d   :  { %v13142_v44 = vpack.c.bf16 %v5613_v41, %v5612_v35 }
 0xf4e   :  { %v13144_v57 = vpack.c.bf16 %v5685_v51, %v5684_v25 }
 0xf4f   :  { %15934 = vst [vmem:[#allocation116_spill] sm:$0xff] %v13142_v44  ;;  %5294 = vrot.lane.b32.xlu2 %v13070_v46, %s7237_s0  ;;  %5502 = vrot.lane.b32.xlu0 %v13050_v14, %s7240_s28 }
 0xf50   :  { %5270 = vrot.lane.b32.xlu1 %v13072_v10, %s7237_s0 }
 0xf51   :  { %v13152_v32 = vpop.permute.xlu2 %5564  ;;  %v13154_v40 = vpop.permute.xlu0 %5436 }
 0xf52   :  { %v5455_v22 = vsel %vm203_vm3, %v13154_v40, %v5413_v0  ;;  %v5355_v41 = vpop.permute.xlu1 %5354 }
 0xf53   :  { %v5370_v49 = vsel %vm164_vm2, %v5355_v41, %v12968_v5  ;;  %v5374_v35 = vsel %vm164_vm2, %v13020_v58, %v5355_v41  ;;  %v5462_v51 = vmul.f32 %v5455_v22, %v15912_v8 }
 0xf54   :  { %v5388_v25 = vmul.f32 %v5374_v35, %v15796_v59  ;;  %v5389_v56 = vmul.f32 %v5370_v49, %v15797_v21  ;;  %v5906_v35 = vunpack.c.l.b16 %v12990_v3 }
 0xf56   :  { %v13167_v24 = vpack.c.bf16 %v5389_v56, %v5388_v25  ;;  %v5907_v56 = vunpack.c.h.b16 %v12990_v3 }
 0xf57   :  { %5510 = vrot.lane.b32.xlu2 %v13093_v61, %s7240_s28  ;;  %5718 = vrot.lane.b32.xlu0 %v13050_v14, %s7243_s13 }
 0xf58   :  { %5494 = vrot.lane.b32.xlu1 %v13072_v10, %s7240_s28 }
 0xf59   :  { %v13175_v5 = vpop.permute.xlu2 %5268  ;;  %v13177_v63 = vpop.permute.xlu0 %5652 }
 0xf5a   :  { %v13179_v58 = vpop.permute.xlu1 %5420 }
 0xf5b   :  { %v5451_v6 = vsel %vm203_vm3, %v5413_v0, %v13179_v58 }
 0xf5c   :  { %v5463_v41 = vmul.f32 %v5451_v6, %v15913_v55 }
 0xf5e   :  { %v5476_v49 = vpack.c.bf16 %v5463_v41, %v5462_v51 }
 0xf5f   :  { %5726 = vrot.lane.b32.xlu2 %v13093_v61, %s7243_s13  ;;  %5206 = vrot.lane.b32.xlu0 %v13050_v14, %s7236_s25 }
 0xf60   :  { %5710 = vrot.lane.b32.xlu1 %v13072_v10, %s7243_s13  ;;  %v5910_v25 = vunpack.c.l.b16 %v5476_v49  ;;  %v5911_v0 = vunpack.c.h.b16 %v5476_v49 }
 0xf61   :  { %v13194_v1 = vpop.permute.xlu2 %5492  ;;  %v13196_v22 = vpop.permute.xlu0 %5364 }
 0xf62   :  { %15935 = vst [vmem:[#allocation69_spill] sm:$0xff] %v13194_v1  ;;  %v5383_v6 = vsel %vm164_vm2, %v13196_v22, %v13125_v62  ;;  %v5645_v51 = vpop.permute.xlu1 %5644  ;;  %v13202_v41 = vpack.c.b16 %v5910_v25, %v5906_v35  ;;  %v13204_v14 = vpack.c.b16 %v5911_v0, %v5907_v56  ;;  %v6066_v35 = vunpack.c.l.b16 %v13010_v13 }
 0xf63   :  { %v5671_v55 = vsel %vm333_vm10, %v5645_v51, %v13177_v63  ;;  %v5675_v3 = vsel %vm333_vm10, %v13113_v45, %v5645_v51  ;;  %v6067_v56 = vunpack.c.h.b16 %v13010_v13 }
 0xf64   :  { %15936 = vst [vmem:[#allocation119_spill] sm:$0xff] %v13202_v41  ;;  %v5686_v49 = vmul.f32 %v5675_v3, %v15916_v16  ;;  %v5687_v8 = vmul.f32 %v5671_v55, %v15915_v23 }
 0xf65   :  { %15937 = vst [vmem:[#allocation103_spill] sm:$0xff] %v13204_v14  ;;  %v5390_v14 = vmul.f32 %v5383_v6, %v15918_v20  ;;  %v5867_v6 = vunpack.c.h.b16 %v13031_v19 }
 0xf66   :  { %v5700_v44 = vpack.c.bf16 %v5687_v8, %v5686_v49 }
 0xf67   :  { %5222 = vrot.lane.b32.xlu2 %v13070_v46, %s7236_s25  ;;  %5662 = vrot.lane.b32.xlu0 %v13070_v46, %s7242_s30 }
 0xf68   :  { %5198 = vrot.lane.b32.xlu1 %v13072_v10, %s7236_s25  ;;  %v6070_v25 = vunpack.c.l.b16 %v5700_v44  ;;  %v6071_v0 = vunpack.c.h.b16 %v5700_v44  ;;  %v5137_v44 = vmul.f32 %v12970_v47, %v12840_v7  ;;  %v5306_v7 = vsel %vm125_vm0, %v13067_v31, %v13064_v39 }
 0xf69   :  { %v13222_v51 = vpop.permute.xlu2 %5708  ;;  %v13224_v3 = vpop.permute.xlu0 %5580 }
 0xf6a   :  { %15938 = vst [vmem:[#allocation52_spill] sm:$0xff] %v13222_v51  ;;  %v13226_v8 = vpop.permute.xlu1 %5348  ;;  %v13228_v55 = vpack.c.b16 %v6070_v25, %v6066_v35  ;;  %v13230_v49 = vpack.c.b16 %v6071_v0, %v6067_v56  ;;  %v5866_v35 = vunpack.c.l.b16 %v13031_v19  ;;  %v5310_v0 = vsel %vm125_vm0, %v12998_v11, %v13067_v31  ;;  %v15946_v11 = vld [vmem:[#allocation16_spill] sm:$0xff] }
 0xf6b   :  { %v5379_v10 = vsel %vm164_vm2, %v13125_v62, %v13226_v8 }
 0xf6c   :  { %15939 = vst [vmem:[#allocation149_spill] sm:$0xff] %v13228_v55  ;;  %v5391_v13 = vmul.f32 %v5379_v10, %v15919_v43  ;;  %v5169_v10 = vadd.f32 %v12772_v9, %v5137_v44  ;;  %v5135_v55 = vmul.f32 %v12970_v47, %v12836_v33  ;;  %v6026_v33 = vunpack.c.l.b16 %v13053_v60 }
 0xf6d   :  { %15940 = vst [vmem:[#allocation114_spill] sm:$0xff] %v13230_v49 }
 0xf6e   :  { %v5404_v41 = vpack.c.bf16 %v5391_v13, %v5390_v14 }
 0xf6f   :  { %5590 = vrot.lane.b32.xlu2 %v13070_v46, %s7241_s29  ;;  %5358 = vrot.lane.b32.xlu0 %v13093_v61, %s7238_s26 }
 0xf70   :  { %5430 = vrot.lane.b32.xlu1 %v13093_v61, %s7239_s27  ;;  %v5870_v62 = vunpack.c.l.b16 %v5404_v41  ;;  %v5871_v25 = vunpack.c.h.b16 %v5404_v41  ;;  %v5134_v41 = vmul.f32 %v12970_v47, %v12834_v34  ;;  %v15945_v34 = vld [vmem:[#allocation13_spill] sm:$0xff] }
 0xf71   :  { %v13249_v56 = vpop.permute.xlu2 %5196  ;;  %v13251_v14 = vpop.permute.xlu0 %5292 }
 0xf72   :  { %15941 = vst [vmem:[#allocation111_spill] sm:$0xff] %v13251_v14  ;;  %v5573_v13 = vpop.permute.xlu1 %5572  ;;  %v13261_v49 = vpack.c.b16 %v5870_v62, %v5866_v35  ;;  %v13263_v19 = vpack.c.b16 %v5871_v25, %v5867_v6  ;;  %v5136_v62 = vmul.f32 %v12970_v47, %v12838_v27  ;;  %v13279_v6 = vmax.f32 %v5169_v10, 0.0 }
 0xf73   :  { %v5599_v44 = vsel %vm294_vm8, %v5573_v13, %v13224_v3  ;;  %v5603_v39 = vsel %vm294_vm8, %v13152_v32, %v5573_v13  ;;  %v5314_v25 = vmul.f32 %v5310_v0, %v15945_v34  ;;  %v5166_v43 = vadd.f32 %v12772_v9, %v5134_v41 }
 0xf74   :  { %15942 = vst [vmem:[#allocation134_spill] sm:$0xff] %v13261_v49  ;;  %v5614_v31 = vmul.f32 %v5603_v39, %v15922_v36  ;;  %v5615_v35 = vmul.f32 %v5599_v44, %v15921_v17  ;;  %v6027_v47 = vunpack.c.h.b16 %v13053_v60  ;;  %v5167_v10 = vadd.f32 %v12772_v9, %v5135_v55 }
 0xf75   :  { %15943 = vst [vmem:[#allocation56_spill] sm:$0xff] %v13263_v19  ;;  %v5315_v19 = vmul.f32 %v5306_v7, %v15946_v11  ;;  %v5168_v7 = vadd.f32 %v12772_v9, %v5136_v62  ;;  %v5311_v13 = vsel %vm125_vm0, %v13251_v14, %v13175_v5 }
 0xf76   :  { %15944 = vst [vmem:[#allocation70_spill] sm:$0xff] %v13279_v6  ;;  %v5628_v49 = vpack.c.bf16 %v5615_v35, %v5614_v31 }
 0xf77   :  { %5286 = vrot.lane.b32.xlu2 %v13093_v61, %s7237_s0  ;;  %5440 = vrot.lane.b32.xlu0 %v13279_v6, %s7239_s27  ;;  %v5330_v0 = vpack.c.bf16 %v5315_v19, %v5314_v25  ;;  %v5318_v25 = vmul.f32 %v5311_v13, %v15945_v34 }
 0xf78   :  { %5518 = vrot.lane.b32.xlu1 %v13070_v46, %s7240_s28  ;;  %v6030_v27 = vunpack.c.l.b16 %v5628_v49  ;;  %v6031_v39 = vunpack.c.h.b16 %v5628_v49 }
 0xf79   :  { %v5661_v41 = vpop.permute.xlu2 %5660  ;;  %v13298_v44 = vpop.permute.xlu0 %5508  ;;  %v5827_v13 = vunpack.c.h.b16 %v5330_v0 }
 0xf7a   :  { %15947 = vst [vmem:[#allocation57_spill] sm:$0xff] %v13298_v44  ;;  %v5667_v31 = vsel %vm333_vm10, %v13177_v63, %v5661_v41  ;;  %v5679_v60 = vsel %vm333_vm10, %v5661_v41, %v13113_v45  ;;  %v13306_v55 = vpop.permute.xlu1 %5276  ;;  %v13308_v9 = vpack.c.b16 %v6030_v27, %v6026_v33  ;;  %v13310_v49 = vpack.c.b16 %v6031_v39, %v6027_v47 }
 0xf7b   :  { %15948 = vst [vmem:[#allocation141_spill] sm:$0xff] %v13306_v55  ;;  %v5688_v19 = vmul.f32 %v5667_v31, %v15932_v18  ;;  %v5689_v35 = vmul.f32 %v5679_v60, %v15933_v26  ;;  %v5307_v62 = vsel %vm125_vm0, %v13175_v5, %v13306_v55  ;;  %v13318_v63 = vmax.f32 %v5166_v43, 0.0 }
 0xf7c   :  { %15949 = vst [vmem:[#allocation142_spill] sm:$0xff] %v13310_v49  ;;  %v5319_v45 = vmul.f32 %v5307_v62, %v15946_v11  ;;  %v13322_v41 = vmax.f32 %v5168_v7, 0.0  ;;  %v5526_v33 = vsel %vm255_vm5, %v13081_v30, %v13018_v29  ;;  %v5530_v27 = vsel %vm255_vm5, %v13089_v53, %v13081_v30  ;;  %v15951_v49 = vld [vmem:[#allocation15_spill] sm:$0xff] }
 0xf7d   :  { %v5701_v47 = vpack.c.bf16 %v5689_v35, %v5688_v19  ;;  %v13332_v5 = vmax.f32 %v5167_v10, 0.0  ;;  %v5826_v39 = vunpack.c.l.b16 %v5330_v0  ;;  %v6068_v7 = vunpack.c.l.b16 %v13144_v57  ;;  %v15952_v19 = vld [vmem:[#allocation14_spill] sm:$0xff] }
 0xf7e   :  { %15950 = vst [vmem:[#allocation140_spill] sm:$0xff] %v13322_v41  ;;  %v5332_v43 = vpack.c.bf16 %v5319_v45, %v5318_v25  ;;  %v6069_v60 = vunpack.c.h.b16 %v13144_v57  ;;  %v5539_v30 = vmul.f32 %v5526_v33, %v15951_v49  ;;  %v5538_v10 = vmul.f32 %v5530_v27, %v15952_v19 }
 0xf7f   :  { %5416 = vrot.lane.b32.xlu2 %v13318_v63, %s7239_s27  ;;  %5656 = vrot.lane.b32.xlu0 %v13322_v41, %s7242_s30  ;;  %v6072_v31 = vunpack.c.l.b16 %v5701_v47  ;;  %v6073_v62 = vunpack.c.h.b16 %v5701_v47  ;;  %v5742_v25 = vsel %vm372_vm9, %v13103_v52, %v13040_v28  ;;  %v5746_v57 = vsel %vm372_vm9, %v13105_v4, %v13103_v52 }
 0xf80   :  { %5424 = vrot.lane.b32.xlu1 %v13332_v5, %s7239_s27  ;;  %v5830_v0 = vunpack.c.l.b16 %v5332_v43  ;;  %v5831_v35 = vunpack.c.h.b16 %v5332_v43 }
 0xf81   :  { %v5357_v45 = vpop.permute.xlu2 %5356  ;;  %v13352_v47 = vpop.permute.xlu0 %5724  ;;  %v13354_v33 = vpack.c.b16 %v6072_v31, %v6068_v7  ;;  %v13356_v27 = vpack.c.b16 %v6073_v62, %v6069_v60  ;;  %v5554_v60 = vpack.c.bf16 %v5539_v30, %v5538_v10  ;;  %v5869_v30 = vunpack.c.h.b16 %v13167_v24 }
 0xf82   :  { %15953 = vst [vmem:[#allocation144_spill] sm:$0xff] %v13352_v47  ;;  %v5371_v43 = vsel %vm164_vm2, %v5357_v45, %v13196_v22  ;;  %v5375_v28 = vsel %vm164_vm2, %v13226_v8, %v5357_v45  ;;  %v5501_v55 = vpop.permute.xlu1 %5500  ;;  %v13364_v14 = vpack.c.b16 %v5830_v0, %v5826_v39  ;;  %v13366_v53 = vpack.c.b16 %v5831_v35, %v5827_v13  ;;  %v15956_v13 = vld [vmem:[#allocation29_spill] sm:$0xff]  ;;  %v15957_v35 = vld [vmem:[#allocation28_spill] sm:$0xff] }
 0xf83   :  { %15954 = vst [vmem:[#allocation138_spill] sm:$0xff] %v13354_v33  ;;  %v5392_v52 = vmul.f32 %v5375_v28, %v15796_v59  ;;  %v5393_v7 = vmul.f32 %v5371_v43, %v15797_v21  ;;  %v5527_v31 = vsel %vm255_vm5, %v5501_v55, %v13298_v44  ;;  %v5531_v22 = vsel %vm255_vm5, %v13194_v1, %v5501_v55 }
 0xf84   :  { %15955 = vst [vmem:[#allocation60_spill] sm:$0xff] %v13356_v27  ;;  %v5542_v8 = vmul.f32 %v5531_v22, %v15952_v19  ;;  %v5543_v39 = vmul.f32 %v5527_v31, %v15951_v49  ;;  %v5755_v0 = vmul.f32 %v5742_v25, %v15956_v13  ;;  %v5754_v28 = vmul.f32 %v5746_v57, %v15957_v35 }
 0xf85   :  { %v5405_v62 = vpack.c.bf16 %v5393_v7, %v5392_v52  ;;  %v5868_v43 = vunpack.c.l.b16 %v13167_v24  ;;  %v5986_v52 = vunpack.c.l.b16 %v5554_v60  ;;  %v5987_v7 = vunpack.c.h.b16 %v5554_v60 }
 0xf86   :  { %v5556_v45 = vpack.c.bf16 %v5543_v39, %v5542_v8 }
 0xf87   :  { %5640 = vrot.lane.b32.xlu2 %v13318_v63, %s7242_s30  ;;  %5368 = vrot.lane.b32.xlu0 %v13279_v6, %s7238_s26  ;;  %v5872_v55 = vunpack.c.l.b16 %v5405_v62  ;;  %v5873_v10 = vunpack.c.h.b16 %v5405_v62  ;;  %v5770_v62 = vpack.c.bf16 %v5755_v0, %v5754_v28  ;;  %v5238_v0 = vsel %vm86_vm1, %v13062_v54, %v13117_v15 }
 0xf88   :  { %5648 = vrot.lane.b32.xlu1 %v13332_v5, %s7242_s30  ;;  %v5990_v25 = vunpack.c.l.b16 %v5556_v45  ;;  %v5991_v57 = vunpack.c.h.b16 %v5556_v45 }
 0xf89   :  { %v13388_v31 = vpop.permute.xlu2 %5438  ;;  %v13390_v22 = vpop.permute.xlu0 %5220  ;;  %v13392_v8 = vpack.c.b16 %v5872_v55, %v5868_v43  ;;  %v13394_v39 = vpack.c.b16 %v5873_v10, %v5869_v30  ;;  %v5234_v55 = vsel %vm86_vm1, %v13117_v15, %v13115_v2  ;;  %v6107_v30 = vunpack.c.h.b16 %v5770_v62 }
 0xf8a   :  { %15958 = vst [vmem:[#allocation148_spill] sm:$0xff] %v13390_v22  ;;  %v5717_v27 = vpop.permute.xlu1 %5716  ;;  %v13396_v4 = vpack.c.b16 %v5990_v25, %v5986_v52  ;;  %v13398_v24 = vpack.c.b16 %v5991_v57, %v5987_v7  ;;  %v15964_v52 = vld [vmem:[#allocation22_spill] sm:$0xff]  ;;  %v5239_v15 = vsel %vm86_vm1, %v13390_v22, %v13249_v56 }
 0xf8b   :  { %15959 = vst [vmem:[#allocation121_spill] sm:$0xff] %v13392_v8  ;;  %v5743_v1 = vsel %vm372_vm9, %v5717_v27, %v13352_v47  ;;  %v5747_v60 = vsel %vm372_vm9, %v13222_v51, %v5717_v27  ;;  %v6106_v27 = vunpack.c.l.b16 %v5770_v62  ;;  %v5243_v25 = vmul.f32 %v5234_v55, %v15964_v52 }
 0xf8c   :  { %15960 = vst [vmem:[#allocation90_spill] sm:$0xff] %v13394_v39  ;;  %v5758_v45 = vmul.f32 %v5747_v60, %v15957_v35  ;;  %v5759_v43 = vmul.f32 %v5743_v1, %v15956_v13  ;;  %v15963_v1 = vld [vmem:[#allocation21_spill] sm:$0xff]  ;;  %v15976_v39 = vld [vmem:[#allocation124_spill] sm:$0xff] }
 0xf8d   :  { %15961 = vst [vmem:[#allocation51_spill] sm:$0xff] %v13396_v4  ;;  %v5242_v10 = vmul.f32 %v5238_v0, %v15963_v1 }
 0xf8e   :  { %15962 = vst [vmem:[#allocation145_spill] sm:$0xff] %v13398_v24  ;;  %v5772_v28 = vpack.c.bf16 %v5759_v43, %v5758_v45  ;;  %v5246_v24 = vmul.f32 %v5239_v15, %v15963_v1 }
 0xf8f   :  { %5344 = vrot.lane.b32.xlu2 %v13318_v63, %s7238_s26  ;;  %5584 = vrot.lane.b32.xlu0 %v13322_v41, %s7241_s29 }
 0xf90   :  { %5352 = vrot.lane.b32.xlu1 %v13332_v5, %s7238_s26  ;;  %v6110_v7 = vunpack.c.l.b16 %v5772_v28  ;;  %v6111_v57 = vunpack.c.h.b16 %v5772_v28 }
 0xf91   :  { %v13428_v60 = vpop.permute.xlu2 %5654  ;;  %v5429_v45 = vpop.permute.xlu0 %5428 }
 0xf92   :  { %v5443_v62 = vsel %vm203_vm3, %v5429_v45, %v13154_v40  ;;  %v5447_v43 = vsel %vm203_vm3, %v13179_v58, %v5429_v45  ;;  %v13436_v55 = vpop.permute.xlu1 %5204  ;;  %v13438_v0 = vpack.c.b16 %v6110_v7, %v6106_v27  ;;  %v13440_v28 = vpack.c.b16 %v6111_v57, %v6107_v30 }
 0xf93   :  { %15965 = vst [vmem:[#allocation136_spill] sm:$0xff] %v13436_v55  ;;  %v5464_v51 = vmul.f32 %v5447_v43, %v15792_v50  ;;  %v5465_v47 = vmul.f32 %v5443_v62, %v15793_v12  ;;  %v5235_v22 = vsel %vm86_vm1, %v13249_v56, %v13436_v55  ;;  %v5258_v40 = vpack.c.bf16 %v5243_v25, %v5242_v10 }
 0xf94   :  { %15966 = vst [vmem:[#allocation74_spill] sm:$0xff] %v13438_v0  ;;  %v5247_v58 = vmul.f32 %v5235_v22, %v15964_v52  ;;  %v5908_v27 = vunpack.c.l.b16 %v13095_v38  ;;  %v5909_v7 = vunpack.c.h.b16 %v13095_v38 }
 0xf95   :  { %15967 = vst [vmem:[#allocation71_spill] sm:$0xff] %v13440_v28  ;;  %v5477_v45 = vpack.c.bf16 %v5465_v47, %v5464_v51  ;;  %v5786_v56 = vunpack.c.l.b16 %v5258_v40  ;;  %v5787_v22 = vunpack.c.h.b16 %v5258_v40 }
 0xf96   :  { %v5260_v2 = vpack.c.bf16 %v5247_v58, %v5246_v24 }
 0xf97   :  { %5568 = vrot.lane.b32.xlu2 %v13318_v63, %s7241_s29  ;;  %5296 = vrot.lane.b32.xlu0 %v13279_v6, %s7237_s0  ;;  %v5912_v30 = vunpack.c.l.b16 %v5477_v45  ;;  %v5913_v57 = vunpack.c.h.b16 %v5477_v45 }
 0xf98   :  { %5576 = vrot.lane.b32.xlu1 %v13332_v5, %s7241_s29  ;;  %v5790_v10 = vunpack.c.l.b16 %v5260_v2  ;;  %v5791_v51 = vunpack.c.h.b16 %v5260_v2 }
 0xf99   :  { %v13458_v47 = vpop.permute.xlu2 %5366  ;;  %v13460_v24 = vpop.permute.xlu0 %5422  ;;  %v13462_v25 = vpack.c.b16 %v5912_v30, %v5908_v27  ;;  %v13464_v15 = vpack.c.b16 %v5913_v57, %v5909_v7  ;;  %v15972_v30 = vld [vmem:[#allocation116_spill] sm:$0xff] }
 0xf9a   :  { %v5589_v62 = vpop.permute.xlu1 %5588  ;;  %v13466_v43 = vpack.c.b16 %v5790_v10, %v5786_v56  ;;  %v13468_v38 = vpack.c.b16 %v5791_v51, %v5787_v22  ;;  %v6029_v57 = vunpack.c.h.b16 %v15972_v30 }
 0xf9b   :  { %15968 = vst [vmem:[#allocation63_spill] sm:$0xff] %v13462_v25  ;;  %v5595_v58 = vsel %vm294_vm8, %v13224_v3, %v5589_v62  ;;  %v5607_v2 = vsel %vm294_vm8, %v5589_v62, %v13152_v32  ;;  %v6028_v3 = vunpack.c.l.b16 %v15972_v30 }
 0xf9c   :  { %15969 = vst [vmem:[#allocation62_spill] sm:$0xff] %v13464_v15  ;;  %v5616_v40 = vmul.f32 %v5595_v58, %v15729_v37  ;;  %v5617_v45 = vmul.f32 %v5607_v2, %v15732_v42 }
 0xf9d   :  { %15970 = vst [vmem:[#allocation126_spill] sm:$0xff] %v13466_v43  ;;  %v15977_v43 = vld [vmem:[#allocation75_spill] sm:$0xff] }
 0xf9e   :  { %15971 = vst [vmem:[#allocation120_spill] sm:$0xff] %v13468_v38  ;;  %v5629_v27 = vpack.c.bf16 %v5617_v45, %v5616_v40 }
 0xf9f   :  { %5272 = vrot.lane.b32.xlu2 %v13318_v63, %s7237_s0  ;;  %5512 = vrot.lane.b32.xlu0 %v13322_v41, %s7240_s28 }
 0xfa0   :  { %5280 = vrot.lane.b32.xlu1 %v13332_v5, %s7237_s0  ;;  %v6032_v7 = vunpack.c.l.b16 %v5629_v27  ;;  %v6033_v32 = vunpack.c.h.b16 %v5629_v27 }
 0xfa1   :  { %v5583_v56 = vpop.permute.xlu2 %5582  ;;  %v5647_v10 = vpop.permute.xlu0 %5646 }
 0xfa2   :  { %v13486_v22 = vpop.permute.xlu1 %5414  ;;  %v13488_v51 = vpack.c.b16 %v6032_v7, %v6028_v3  ;;  %v13490_v62 = vpack.c.b16 %v6033_v32, %v6029_v57  ;;  %v5672_v58 = vsel %vm333_vm10, %v5647_v10, %v13428_v60 }
 0xfa3   :  { %v5691_v30 = vmul.f32 %v5672_v58, %v15915_v23 }
 0xfa4   :  { %15973 = vst [vmem:[#allocation92_spill] sm:$0xff] %v13488_v51 }
 0xfa5   :  { %15974 = vst [vmem:[#allocation122_spill] sm:$0xff] %v13490_v62  ;;  %v15975_v62 = vld [vmem:[#allocation33_spill] sm:$0xff] }
 0xfa7   :  { %5496 = vrot.lane.b32.xlu2 %v13318_v63, %s7240_s28  ;;  %5728 = vrot.lane.b32.xlu0 %v13322_v41, %s7243_s13 }
 0xfa8   :  { %5504 = vrot.lane.b32.xlu1 %v13332_v5, %s7240_s28 }
 0xfa9   :  { %v5295_v2 = vpop.permute.xlu2 %5294  ;;  %v13501_v40 = vpop.permute.xlu0 %5350 }
 0xfaa   :  { %v13503_v45 = vpop.permute.xlu1 %5638 }
 0xfab   :  { %v5676_v27 = vsel %vm333_vm10, %v13503_v45, %v5647_v10 }
 0xfac   :  { %v5690_v3 = vmul.f32 %v5676_v27, %v15916_v16 }
 0xfae   :  { %v13510_v7 = vpack.c.bf16 %v5691_v30, %v5690_v3 }
 0xfaf   :  { %5712 = vrot.lane.b32.xlu2 %v13318_v63, %s7243_s13  ;;  %5224 = vrot.lane.b32.xlu0 %v13279_v6, %s7236_s25 }
 0xfb0   :  { %5720 = vrot.lane.b32.xlu1 %v13332_v5, %s7243_s13 }
 0xfb1   :  { %v13518_v57 = vpop.permute.xlu2 %5510  ;;  %v5575_v32 = vpop.permute.xlu0 %5574 }
 0xfb2   :  { %v5600_v10 = vsel %vm294_vm8, %v5575_v32, %v5583_v56  ;;  %v5343_v58 = vpop.permute.xlu1 %5342 }
 0xfb3   :  { %v5380_v27 = vsel %vm164_vm2, %v5343_v58, %v13501_v40  ;;  %v5384_v30 = vsel %vm164_vm2, %v13458_v47, %v5343_v58 }
 0xfb4   :  { %v5394_v3 = vmul.f32 %v5384_v30, %v15918_v20  ;;  %v5395_v55 = vmul.f32 %v5380_v27, %v15975_v62  ;;  %v5619_v27 = vmul.f32 %v5600_v10, %v15921_v17 }
 0xfb6   :  { %v13530_v54 = vpack.c.bf16 %v5395_v55, %v5394_v3 }
 0xfb7   :  { %5200 = vrot.lane.b32.xlu2 %v13318_v63, %s7236_s25  ;;  %5282 = vrot.lane.b32.xlu0 %v15976_v39, %s7237_s0 }
 0xfb8   :  { %5208 = vrot.lane.b32.xlu1 %v13332_v5, %s7236_s25 }
 0xfb9   :  { %v13538_v51 = vpop.permute.xlu2 %5726  ;;  %v5279_v8 = vpop.permute.xlu0 %5278 }
 0xfba   :  { %v5567_v44 = vpop.permute.xlu1 %5566 }
 0xfbb   :  { %v5604_v58 = vsel %vm294_vm8, %v5567_v44, %v5575_v32 }
 0xfbc   :  { %v5618_v55 = vmul.f32 %v5604_v58, %v15922_v36 }
 0xfbe   :  { %v13544_v30 = vpack.c.bf16 %v5619_v27, %v5618_v55 }
 0xfbf   :  { %5432 = vrot.lane.b32.xlu2 %v13322_v41, %s7239_s27  ;;  %5592 = vrot.lane.b32.xlu0 %v13279_v6, %s7241_s29 }
 0xfc0   :  { %5664 = vrot.lane.b32.xlu1 %v13279_v6, %s7242_s30 }
 0xfc1   :  { %v13552_v3 = vpop.permute.xlu2 %5222  ;;  %v5503_v33 = vpop.permute.xlu0 %5502 }
 0xfc2   :  { %v5528_v32 = vsel %vm255_vm5, %v5503_v33, %v13518_v57  ;;  %v5271_v10 = vpop.permute.xlu1 %5270 }
 0xfc3   :  { %v5308_v58 = vsel %vm125_vm0, %v5271_v10, %v5279_v8  ;;  %v5312_v27 = vsel %vm125_vm0, %v5295_v2, %v5271_v10  ;;  %v5547_v0 = vmul.f32 %v5528_v32, %v15951_v49 }
 0xfc4   :  { %v5322_v55 = vmul.f32 %v5312_v27, %v15945_v34  ;;  %v5323_v15 = vmul.f32 %v5308_v58, %v15946_v11 }
 0xfc6   :  { %v13563_v38 = vpack.c.bf16 %v5323_v15, %v5322_v55 }
 0xfc7   :  { %5514 = vrot.lane.b32.xlu2 %v15977_v43, %s7240_s28  ;;  %5288 = vrot.lane.b32.xlu0 %v13322_v41, %s7237_s0 }
 0xfc8   :  { %5360 = vrot.lane.b32.xlu1 %v13322_v41, %s7238_s26 }
 0xfc9   :  { %v5591_v29 = vpop.permute.xlu2 %5590  ;;  %v13571_v25 = vpop.permute.xlu0 %5718 }
 0xfca   :  { %v5596_v10 = vsel %vm294_vm8, %v5583_v56, %v5591_v29  ;;  %v5608_v58 = vsel %vm294_vm8, %v5591_v29, %v5567_v44  ;;  %v5495_v15 = vpop.permute.xlu1 %5494  ;;  %v15979_v29 = vld [vmem:[#allocation76_spill] sm:$0xff]  ;;  %v15980_v44 = vld [vmem:[#allocation91_spill] sm:$0xff] }
 0xfcb   :  { %v5620_v27 = vmul.f32 %v5596_v10, %v15729_v37  ;;  %v5621_v55 = vmul.f32 %v5608_v58, %v15732_v42  ;;  %v5532_v28 = vsel %vm255_vm5, %v5495_v15, %v5503_v33  ;;  %v15982_v58 = vld [vmem:[#allocation2_spill] sm:$0xff] }
 0xfcc   :  { %v5546_v52 = vmul.f32 %v5532_v28, %v15952_v19 }
 0xfcd   :  { %v13583_v1 = vpack.c.bf16 %v5621_v55, %v5620_v27 }
 0xfce   :  { %v13585_v4 = vpack.c.bf16 %v5547_v0, %v5546_v52  ;;  %v15981_v0 = vld [vmem:[#allocation3_spill] sm:$0xff] }
 0xfcf   :  { %15978 = vst [vmem:[#allocation101_spill] sm:$0xff] %v13583_v1  ;;  %5520 = vrot.lane.b32.xlu2 %v13279_v6, %s7240_s28  ;;  %5516 = vrot.lane.b32.xlu0 %v15979_v29, %s7240_s28 }
 0xfd0   :  { %5284 = vrot.lane.b32.xlu1 %v15980_v44, %s7237_s0 }
 0xfd1   :  { %v5287_v56 = vpop.permute.xlu2 %5286  ;;  %v13593_v10 = vpop.permute.xlu0 %5206 }
 0xfd2   :  { %v5300_v33 = vsel %vm125_vm0, %v5287_v56, %v5295_v2  ;;  %v5304_v28 = vsel %vm125_vm0, %v5279_v8, %v5287_v56  ;;  %v13599_v52 = vpop.permute.xlu1 %5710 }
 0xfd3   :  { %v5324_v32 = vmul.f32 %v5304_v28, %v15981_v0  ;;  %v5325_v27 = vmul.f32 %v5300_v33, %v15982_v58  ;;  %v5452_v58 = vsel %vm203_vm3, %v13486_v22, %v13460_v24  ;;  %v5456_v0 = vsel %vm203_vm3, %v13388_v31, %v13486_v22 }
 0xfd5   :  { %v13603_v55 = vpack.c.bf16 %v5325_v27, %v5324_v32 }
 0xfd7   :  { %15983 = vst [vmem:[#allocation81_spill] sm:$0xff] %v13603_v55  ;;  %5216 = vrot.lane.b32.xlu2 %v13322_v41, %s7236_s25  ;;  %5210 = vrot.lane.b32.xlu0 %v15976_v39, %s7236_s25 }
 0xfd8   :  { %5214 = vrot.lane.b32.xlu1 %v13093_v61, %s7236_s25 }
 0xfd9   :  { %v5417_v2 = vpop.permute.xlu2 %5416  ;;  %v5663_v42 = vpop.permute.xlu0 %5662 }
 0xfda   :  { %v5668_v8 = vsel %vm333_vm10, %v13428_v60, %v5663_v42  ;;  %v5680_v56 = vsel %vm333_vm10, %v5663_v42, %v13503_v45  ;;  %v13617_v33 = vpop.permute.xlu1 %5198 }
 0xfdb   :  { %v5692_v28 = vmul.f32 %v5668_v8, %v15932_v18  ;;  %v5693_v32 = vmul.f32 %v5680_v56, %v15933_v26 }
 0xfdd   :  { %v13621_v27 = vpack.c.bf16 %v5693_v32, %v5692_v28 }
 0xfdf   :  { %15984 = vst [vmem:[#allocation108_spill] sm:$0xff] %v13621_v27  ;;  %5734 = vrot.lane.b32.xlu2 %v13070_v46, %s7243_s13  ;;  %5736 = vrot.lane.b32.xlu0 %v13279_v6, %s7243_s13 }
 0xfe0   :  { %5212 = vrot.lane.b32.xlu1 %v15980_v44, %s7236_s25 }
 0xfe1   :  { %v13629_v60 = vpop.permute.xlu2 %5640  ;;  %v5359_v42 = vpop.permute.xlu0 %5358 }
 0xfe2   :  { %v5372_v45 = vsel %vm164_vm2, %v5359_v42, %v13458_v47  ;;  %v5376_v8 = vsel %vm164_vm2, %v13501_v40, %v5359_v42  ;;  %v13637_v56 = vpop.permute.xlu1 %5430 }
 0xfe3   :  { %v5396_v28 = vmul.f32 %v5376_v8, %v15796_v59  ;;  %v5397_v32 = vmul.f32 %v5372_v45, %v15797_v21  ;;  %v15986_v45 = vld [vmem:[#allocation10_spill] sm:$0xff] }
 0xfe5   :  { %v13641_v55 = vpack.c.bf16 %v5397_v32, %v5396_v28  ;;  %v15987_v28 = vld [vmem:[#allocation11_spill] sm:$0xff] }
 0xfe7   :  { %15985 = vst [vmem:[#allocation84_spill] sm:$0xff] %v13641_v55  ;;  %5732 = vrot.lane.b32.xlu2 %v15979_v29, %s7243_s13  ;;  %v15990_v55 = vld [vmem:[#allocation31_spill] sm:$0xff] }
 0xfe8   :  { %5730 = vrot.lane.b32.xlu1 %v15977_v43, %s7243_s13 }
 0xfe9   :  { %v5345_v6 = vpop.permute.xlu2 %5344  ;;  %v13647_v47 = vpop.permute.xlu0 %5440 }
 0xfea   :  { %v5519_v41 = vpop.permute.xlu1 %5518 }
 0xfeb   :  { %v5524_v40 = vsel %vm255_vm5, %v13518_v57, %v5519_v41  ;;  %v5536_v42 = vsel %vm255_vm5, %v5519_v41, %v5495_v15  ;;  %v15989_v57 = vld [vmem:[#allocation30_spill] sm:$0xff]  ;;  %v5467_v41 = vmul.f32 %v5452_v58, %v15990_v55  ;;  %v5457_v15 = vsel %vm203_vm3, %v13647_v47, %v5417_v2 }
 0xfec   :  { %v5548_v8 = vmul.f32 %v5524_v40, %v15986_v45  ;;  %v5549_v32 = vmul.f32 %v5536_v42, %v15987_v28  ;;  %v5466_v59 = vmul.f32 %v5456_v0, %v15989_v57 }
 0xfee   :  { %v13664_v21 = vpack.c.bf16 %v5549_v32, %v5548_v8  ;;  %v5478_v8 = vpack.c.bf16 %v5467_v41, %v5466_v59  ;;  %v5470_v32 = vmul.f32 %v5457_v15, %v15989_v57  ;;  %v6074_v15 = vunpack.c.l.b16 %v13510_v7 }
 0xff0   :  { %15988 = vst [vmem:[#allocation78_spill] sm:$0xff] %v13664_v21  ;;  %v5914_v21 = vunpack.c.l.b16 %v5478_v8  ;;  %v5915_v45 = vunpack.c.h.b16 %v5478_v8 }
 0xff1   :  { %v13671_v40 = vpop.permute.xlu2 %5568  ;;  %v13673_v42 = vpop.permute.xlu0 %5656 }
 0xff2   :  { %v13675_v28 = vpop.permute.xlu1 %5424 }
 0xff3   :  { %v5453_v22 = vsel %vm203_vm3, %v5417_v2, %v13675_v28 }
 0xff4   :  { %v5471_v0 = vmul.f32 %v5453_v22, %v15990_v55 }
 0xff6   :  { %v5480_v58 = vpack.c.bf16 %v5471_v0, %v5470_v32  ;;  %v15993_v0 = vld [vmem:[#allocation149_spill] sm:$0xff] }
 0xff8   :  { %v5918_v27 = vunpack.c.l.b16 %v5480_v58  ;;  %v5919_v37 = vunpack.c.h.b16 %v5480_v58  ;;  %v5874_v58 = vunpack.c.l.b16 %v13530_v54 }
 0xff9   :  { %v5273_v1 = vpop.permute.xlu2 %5272  ;;  %v13682_v26 = vpop.permute.xlu0 %5368 }
 0xffa   :  { %v5649_v18 = vpop.permute.xlu1 %5648  ;;  %v5926_v46 = vpack.c.b16 %v5918_v27, %v5914_v21  ;;  %v5927_v61 = vpack.c.b16 %v5919_v37, %v5915_v45  ;;  %v15991_v21 = vld [vmem:[#allocation119_spill] sm:$0xff] }
 0xffb   :  { %v5673_v2 = vsel %vm333_vm10, %v5649_v18, %v13673_v42  ;;  %v5677_v59 = vsel %vm333_vm10, %v13629_v60, %v5649_v18  ;;  %v15992_v27 = vld [vmem:[#allocation103_spill] sm:$0xff]  ;;  %v5385_v18 = vsel %vm164_vm2, %v13682_v26, %v5345_v6 }
 0xffc   :  { %v5694_v55 = vmul.f32 %v5677_v59, %v15916_v16  ;;  %v5695_v57 = vmul.f32 %v5673_v2, %v15915_v23  ;;  %6174 = vmatpush.bf16.msra.mxu0 %v5926_v46  ;;  %6231 = vmatpush.bf16.msra.mxu3 %v5927_v61  ;;  %v5398_v22 = vmul.f32 %v5385_v18, %v15918_v20  ;;  %v5875_v59 = vunpack.c.h.b16 %v13530_v54 }
 0xffe   :  { %v13692_v41 = vpack.c.bf16 %v5695_v57, %v5694_v55 }
0x1000   :  { %v6078_v37 = vunpack.c.l.b16 %v13692_v41  ;;  %6175 = vmatpush.bf16.msra.mxu0 %v15991_v21  ;;  %6232 = vmatpush.bf16.msra.mxu3 %v15992_v27 }
0x1001   :  { %v13701_v45 = vpop.permute.xlu2 %5496  ;;  %v13703_v16 = vpop.permute.xlu0 %5584 }
0x1002   :  { %v13705_v23 = vpop.permute.xlu1 %5352  ;;  %v6086_v61 = vpack.c.b16 %v6078_v37, %v6074_v15 }
0x1003   :  { %v5381_v46 = vsel %vm164_vm2, %v5345_v6, %v13705_v23 }
0x1004   :  { %v5399_v8 = vmul.f32 %v5381_v46, %v15975_v62  ;;  %6193 = vmatpush.bf16.msra.mxu1 %v6086_v61  ;;  %v15994_v61 = vld [vmem:[#allocation134_spill] sm:$0xff]  ;;  %v15995_v46 = vld [vmem:[#allocation56_spill] sm:$0xff] }
0x1006   :  { %v5408_v32 = vpack.c.bf16 %v5399_v8, %v5398_v22  ;;  %v6034_v22 = vunpack.c.l.b16 %v13544_v30 }
0x1008   :  { %6194 = vmatpush.bf16.msra.mxu1 %v15993_v0  ;;  %v5878_v2 = vunpack.c.l.b16 %v5408_v32  ;;  %v5879_v55 = vunpack.c.h.b16 %v5408_v32 }
0x1009   :  { %v13715_v57 = vpop.permute.xlu2 %5712  ;;  %v13717_v15 = vpop.permute.xlu0 %5296 }
0x100a   :  { %v5577_v37 = vpop.permute.xlu1 %5576  ;;  %v5886_v6 = vpack.c.b16 %v5878_v2, %v5874_v58  ;;  %v5887_v21 = vpack.c.b16 %v5879_v55, %v5875_v59  ;;  %v5313_v32 = vsel %vm125_vm0, %v13717_v15, %v5273_v1  ;;  %v5448_v58 = vsel %vm203_vm3, %v13460_v24, %v13637_v56 }
0x100b   :  { %v5601_v20 = vsel %vm294_vm8, %v5577_v37, %v13703_v16  ;;  %v5605_v62 = vsel %vm294_vm8, %v13671_v40, %v5577_v37  ;;  %v5326_v37 = vmul.f32 %v5313_v32, %v15945_v34  ;;  %v5834_v24 = vunpack.c.l.b16 %v13563_v38 }
0x100c   :  { %v5622_v27 = vmul.f32 %v5605_v62, %v15922_v36  ;;  %v5623_v54 = vmul.f32 %v5601_v20, %v15921_v17  ;;  %6176 = vmatpush.bf16.msra.mxu0 %v5886_v6  ;;  %6233 = vmatpush.bf16.msra.mxu3 %v5887_v21  ;;  %v5444_v17 = vsel %vm203_vm3, %v13637_v56, %v13388_v31  ;;  %v5835_v62 = vunpack.c.h.b16 %v13563_v38 }
0x100d   :  { %v5468_v21 = vmul.f32 %v5448_v58, %v15792_v50  ;;  %v5469_v31 = vmul.f32 %v5444_v17, %v15793_v12 }
0x100e   :  { %v13727_v18 = vpack.c.bf16 %v5623_v54, %v5622_v27 }
0x100f   :  { %v5479_v54 = vpack.c.bf16 %v5469_v31, %v5468_v21  ;;  %v5744_v21 = vsel %vm372_vm9, %v13571_v25, %v13538_v51 }
0x1010   :  { %6177 = vmatpush.bf16.msra.mxu0 %v15994_v61  ;;  %6234 = vmatpush.bf16.msra.mxu3 %v15995_v46  ;;  %v6038_v8 = vunpack.c.l.b16 %v13727_v18 }
0x1011   :  { %v13736_v0 = vpop.permute.xlu2 %5200  ;;  %v13738_v36 = vpop.permute.xlu0 %5512 }
0x1012   :  { %v13748_v2 = vpop.permute.xlu1 %5280  ;;  %v6046_v59 = vpack.c.b16 %v6038_v8, %v6034_v22 }
0x1013   :  { %v5309_v55 = vsel %vm125_vm0, %v5273_v1, %v13748_v2 }
0x1014   :  { %v5327_v6 = vmul.f32 %v5309_v55, %v15946_v11  ;;  %6195 = vmatpush.bf16.msra.mxu1 %v6046_v59  ;;  %v5916_v59 = vunpack.c.l.b16 %v5479_v54  ;;  %v5917_v55 = vunpack.c.h.b16 %v5479_v54  ;;  %v15996_v54 = vld [vmem:[#allocation67_spill] sm:$0xff] }
0x1016   :  { %v5336_v20 = vpack.c.bf16 %v5327_v6, %v5326_v37 }
0x1018   :  { %6196 = vmatpush.bf16.msra.mxu1 %v13308_v9  ;;  %v5838_v56 = vunpack.c.l.b16 %v5336_v20  ;;  %v5839_v27 = vunpack.c.h.b16 %v5336_v20  ;;  %v13796_v20 = vpack.c.bf16 %v13332_v5, %v13318_v63 }
0x1019   :  { %v5433_v1 = vpop.permute.xlu2 %5432  ;;  %v13760_v61 = vpop.permute.xlu0 %5728 }
0x101a   :  { %v5445_v11 = vsel %vm203_vm3, %v5433_v1, %v13647_v47  ;;  %v5449_v34 = vsel %vm203_vm3, %v13675_v28, %v5433_v1  ;;  %v5505_v46 = vpop.permute.xlu1 %5504  ;;  %v5846_v9 = vpack.c.b16 %v5838_v56, %v5834_v24  ;;  %v5847_v22 = vpack.c.b16 %v5839_v27, %v5835_v62 }
0x101b   :  { %v5472_v8 = vmul.f32 %v5449_v34, %v15792_v50  ;;  %v5473_v38 = vmul.f32 %v5445_v11, %v15793_v12  ;;  %v5529_v32 = vsel %vm255_vm5, %v5505_v46, %v13738_v36  ;;  %v5533_v17 = vsel %vm255_vm5, %v13701_v45, %v5505_v46 }
0x101c   :  { %v5550_v47 = vmul.f32 %v5533_v17, %v15952_v19  ;;  %v5551_v58 = vmul.f32 %v5529_v32, %v15951_v49  ;;  %6178 = vmatpush.bf16.msra.mxu0 %v5846_v9  ;;  %6235 = vmatpush.bf16.msra.mxu3 %v5847_v22  ;;  %v5748_v12 = vsel %vm372_vm9, %v13599_v52, %v13571_v25  ;;  %v5994_v49 = vunpack.c.l.b16 %v13585_v4  ;;  %v15997_v25 = vld [vmem:[#allocation64_spill] sm:$0xff]  ;;  %v15998_v9 = vld [vmem:[#allocation66_spill] sm:$0xff]  ;;  %v15999_v22 = vld [vmem:[#allocation125_spill] sm:$0xff] }
0x101d   :  { %v5481_v28 = vpack.c.bf16 %v5473_v38, %v5472_v8  ;;  %v13808_v1 = vpack.c.bf16 %v15997_v25, %v15996_v54  ;;  %v5763_v11 = vmul.f32 %v5744_v21, %v15956_v13  ;;  %v5958_v46 = vunpack.c.l.b16 %v13796_v20  ;;  %v16003_v54 = vld [vmem:[#allocation86_spill] sm:$0xff] }
0x101e   :  { %v13782_v50 = vpack.c.bf16 %v5551_v58, %v5550_v47  ;;  %v13819_v8 = vpack.c.bf16 %v15999_v22, %v15998_v9  ;;  %v5236_v17 = vsel %vm86_vm1, %v13617_v33, %v13593_v10  ;;  %v16000_v58 = vld [vmem:[#allocation51_spill] sm:$0xff]  ;;  %v5946_v25 = vunpack.c.l.b16 %v16003_v54 }
0x101f   :  { %v5920_v37 = vunpack.c.l.b16 %v5481_v28  ;;  %v5921_v6 = vunpack.c.h.b16 %v5481_v28  ;;  %v5954_v47 = vunpack.c.l.b16 %v13808_v1  ;;  %v13859_v22 = vpack.c.bf16 %v15979_v29, %v15980_v44 }
0x1020   :  { %6179 = vmatpush.bf16.msra.mxu0 %v13364_v14  ;;  %6236 = vmatpush.bf16.msra.mxu3 %v13366_v53  ;;  %v5998_v19 = vunpack.c.l.b16 %v13782_v50  ;;  %v5762_v53 = vmul.f32 %v5748_v12, %v15957_v35 }
0x1021   :  { %v13792_v31 = vpop.permute.xlu0 %5224  ;;  %v13798_v24 = vpack.c.b16 %v5920_v37, %v5916_v59  ;;  %v13800_v14 = vpack.c.b16 %v5921_v6, %v5917_v55  ;;  %v13821_v32 = vpop.permute.xlu2 %5514  ;;  %v5966_v59 = vpack.c.b16 %v5958_v46, %v5954_v47  ;;  %v5950_v55 = vunpack.c.l.b16 %v13819_v8  ;;  %v16001_v6 = vld [vmem:[#allocation21_spill] sm:$0xff]  ;;  %v7056_v46 = vld [vmem:[%s14419_s6 + $0xc] sm:$0xf0]  ;;  %v7062_v47 = vld [vmem:[%s14419_s6 + $0x8] sm:$0xf] }
0x1022   :  { %v5721_v56 = vpop.permute.xlu1 %5720  ;;  %v6006_v62 = vpack.c.b16 %v5998_v19, %v5994_v49  ;;  %v5774_v38 = vpack.c.bf16 %v5763_v11, %v5762_v53  ;;  %v16002_v19 = vld [vmem:[#allocation22_spill] sm:$0xff] }
0x1023   :  { %v5745_v27 = vsel %vm372_vm9, %v5721_v56, %v13760_v61  ;;  %v5749_v63 = vsel %vm372_vm9, %v13715_v57, %v5721_v56  ;;  %v5251_v21 = vmul.f32 %v5236_v17, %v16002_v19 }
0x1024   :  { %v5767_v5 = vmul.f32 %v5745_v27, %v15956_v13  ;;  %6197 = vmatpush.bf16.msra.mxu1 %v6006_v62  ;;  %v5766_v34 = vmul.f32 %v5749_v63, %v15957_v35  ;;  %v5240_v13 = vsel %vm86_vm1, %v13552_v3, %v13617_v33  ;;  %v6114_v37 = vunpack.c.l.b16 %v5774_v38 }
0x1025   :  { %v5250_v49 = vmul.f32 %v5240_v13, %v16001_v6  ;;  %v5241_v33 = vsel %vm86_vm1, %v13792_v31, %v13736_v0  ;;  %v6115_v11 = vunpack.c.h.b16 %v5774_v38 }
0x1026   :  { %v5776_v35 = vpack.c.bf16 %v5767_v5, %v5766_v34  ;;  %v5254_v63 = vmul.f32 %v5241_v33, %v16001_v6  ;;  %v7124_v34 = vld [vmem:[%s14419_s6 + $0x4] sm:$0xf]  ;;  %v16004_v6 = vld [vmem:[#allocation74_spill] sm:$0xff] }
0x1027   :  { %v5262_v9 = vpack.c.bf16 %v5251_v21, %v5250_v49  ;;  %v16005_v33 = vld [vmem:[#allocation85_spill] sm:$0xff] }
0x1028   :  { %6198 = vmatpush.bf16.msra.mxu1 %v16000_v58  ;;  %v6118_v28 = vunpack.c.l.b16 %v5776_v35  ;;  %v6119_v56 = vunpack.c.h.b16 %v5776_v35  ;;  %v13861_v35 = vor.u32 %v7124_v34, %v7056_v46  ;;  %v7126_v58 = vld [vmem:[%s14419_s6 + $0x10] sm:$0xf0]  ;;  %v6075_v34 = vunpack.c.h.b16 %v13510_v7  ;;  %v7125_v7 = vld [vmem:[%s14419_s6 + $0x8] sm:$0xf0] }
0x1029   :  { %v13833_v12 = vpop.permute.xlu0 %5282  ;;  %v5521_v13 = vpop.permute.xlu2 %5520  ;;  %v5795_v21 = vunpack.c.h.b16 %v5262_v9  ;;  %v16007_v46 = vld [vmem:[#allocation19_spill] sm:$0xff] }
0x102a   :  { %v13842_v53 = vpop.permute.xlu1 %5208  ;;  %v6126_v27 = vpack.c.b16 %v6118_v28, %v6114_v37  ;;  %v6127_v17 = vpack.c.b16 %v6119_v56, %v6115_v11  ;;  %v13871_v28 = vpack.c.bf16 %v15977_v43, %v15976_v39  ;;  %v16006_v56 = vld [vmem:[#allocation9_spill] sm:$0xff]  ;;  %v5955_v11 = vunpack.c.h.b16 %v13808_v1  ;;  %v16029_v39 = vld [vmem:[#allocation114_spill] sm:$0xff] }
0x102b   :  { %v5237_v62 = vsel %vm86_vm1, %v13736_v0, %v13842_v53  ;;  %v5962_v0 = vpack.c.b16 %v5950_v55, %v5946_v25  ;;  %v5947_v55 = vunpack.c.h.b16 %v16003_v54  ;;  %v13888_v25 = vor.u32 %v7126_v58, %v7062_v47  ;;  %v16010_v58 = vld [vmem:[#allocation101_spill] sm:$0xff] }
0x102c   :  { %6199 = vmatpush.bf16.msra.mxu1 %v5966_v59  ;;  %v5255_v5 = vmul.f32 %v5237_v62, %v16002_v19  ;;  %6218 = vmatpush.bf16.msra.mxu2 %v6126_v27  ;;  %v5794_v19 = vunpack.c.l.b16 %v5262_v9  ;;  %v13878_v62 = vpack.c.bf16 %v16006_v56, %v16005_v33  ;;  %v6039_v47 = vunpack.c.h.b16 %v13727_v18  ;;  %v16014_v33 = vld [vmem:[#allocation108_spill] sm:$0xff] }
0x102d   :  { %v6076_v56 = vunpack.c.l.b16 %v16014_v33  ;;  %v16015_v18 = vld [vmem:[#allocation84_spill] sm:$0xff] }
0x102e   :  { %v5264_v38 = vpack.c.bf16 %v5255_v5, %v5254_v63 }
0x1030   :  { %6200 = vmatpush.bf16.msra.mxu1 %v5962_v0  ;;  %v5798_v44 = vunpack.c.l.b16 %v5264_v38  ;;  %v5799_v59 = vunpack.c.h.b16 %v5264_v38  ;;  %6219 = vmatpush.bf16.msra.mxu2 %v16004_v6  ;;  %v16008_v0 = vld [vmem:[#allocation24_spill] sm:$0xff] }
0x1031   :  { %v5593_v29 = vpop.permute.xlu0 %5592  ;;  %v16012_v6 = vld [vmem:[#allocation20_spill] sm:$0xff] }
0x1032   :  { %v5665_v49 = vpop.permute.xlu1 %5664  ;;  %v5597_v43 = vsel %vm294_vm8, %v13703_v16, %v5593_v29  ;;  %v5609_v27 = vsel %vm294_vm8, %v5593_v29, %v13671_v40  ;;  %v5806_v5 = vpack.c.b16 %v5798_v44, %v5794_v19  ;;  %v5807_v16 = vpack.c.b16 %v5799_v59, %v5795_v21  ;;  %v16011_v44 = vld [vmem:[#allocation12_spill] sm:$0xff]  ;;  %v16013_v19 = vld [vmem:[#allocation63_spill] sm:$0xff] }
0x1033   :  { %v5669_v63 = vsel %vm333_vm10, %v13673_v42, %v5665_v49  ;;  %6201 = vmatmul.bf16.vlgmr.msra.gmra.mxu1 %v13861_v35  ;;  %v6079_v40 = vunpack.c.h.b16 %v13692_v41  ;;  %v5525_v42 = vsel %vm255_vm5, %v13738_v36, %v5521_v13  ;;  %v6035_v41 = vunpack.c.h.b16 %v13544_v30  ;;  %7076 = vmatmul.msk.bf16.vlgmr.msra.gmra.mxu2 %vm1883_vm6, %v13888_v25 }
0x1034   :  { %6275 = vmatpush.bf16.msrb.mxu1 %v6127_v17  ;;  %6288 = vmatpush.bf16.msrb.mxu2 %v13798_v24  ;;  %v5681_v24 = vsel %vm333_vm10, %v5665_v49, %v13629_v60  ;;  %v5696_v9 = vmul.f32 %v5669_v63, %v16007_v46  ;;  %v16009_v17 = vld [vmem:[#allocation71_spill] sm:$0xff]  ;;  %v7054_v60 = vld [vmem:[%s14419_s6] sm:$0xf]  ;;  %v6036_v29 = vunpack.c.l.b16 %v16010_v58  ;;  %v5624_v59 = vmul.f32 %v5597_v43, %v16011_v44  ;;  %v16019_v44 = vld [vmem:[#allocation120_spill] sm:$0xff] }
0x1035   :  { %v5697_v38 = vmul.f32 %v5681_v24, %v16008_v0  ;;  %6180 = vmatpush.bf16.msra.mxu0 %v5806_v5  ;;  %6237 = vmatpush.bf16.msra.mxu3 %v5807_v16  ;;  %v5625_v36 = vmul.f32 %v5609_v27, %v16012_v6  ;;  %v5995_v21 = vunpack.c.h.b16 %v13585_v4  ;;  %v6077_v63 = vunpack.c.h.b16 %v16014_v33  ;;  %v16016_v46 = vld [vmem:[#allocation105_spill] sm:$0xff]  ;;  %v16017_v0 = vld [vmem:[#allocation10_spill] sm:$0xff] }
0x1036   :  { %v5537_v30 = vsel %vm255_vm5, %v5521_v13, %v13701_v45  ;;  %v5876_v43 = vunpack.c.l.b16 %v16015_v18  ;;  %v6087_v24 = vpack.c.b16 %v6079_v40, %v6075_v34  ;;  %v13928_v16 = vor.u32 %v7125_v7, %v7054_v60  ;;  %v5217_v45 = vpop.permute.xlu2 %5216  ;;  %v16020_v40 = vld [vmem:[#allocation11_spill] sm:$0xff] }
0x1037   :  { %v5705_v49 = vpack.c.bf16 %v5697_v38, %v5696_v9  ;;  %v5522_v9 = vsel %vm255_vm5, %v16016_v46, %v13821_v32  ;;  %v5552_v38 = vmul.f32 %v5525_v42, %v16017_v0  ;;  %v6047_v34 = vpack.c.b16 %v6039_v47, %v6035_v41 }
0x1038   :  { %6276 = vmatpush.bf16.msrb.mxu1 %v16009_v17  ;;  %6289 = vmatpush.bf16.msrb.mxu2 %v16013_v19  ;;  %v16018_v17 = vld [vmem:[#allocation126_spill] sm:$0xff]  ;;  %v5553_v60 = vmul.f32 %v5537_v30, %v16020_v40  ;;  %v13939_v7 = vpack.c.bf16 %v5625_v36, %v5624_v59  ;;  %v16023_v36 = vld [vmem:[#allocation8_spill] sm:$0xff]  ;;  %v16024_v30 = vld [vmem:[#allocation7_spill] sm:$0xff]  ;;  %v5999_v46 = vunpack.c.h.b16 %v13782_v50 }
0x1039   :  { %v6080_v27 = vunpack.c.l.b16 %v5705_v49  ;;  %v5289_v5 = vpop.permute.xlu0 %5288  ;;  %v6081_v13 = vunpack.c.h.b16 %v5705_v49  ;;  %6181 = vmatpush.bf16.msra.mxu0 %v16018_v17  ;;  %6238 = vmatpush.bf16.msra.mxu3 %v16019_v44  ;;  %v16021_v49 = vld [vmem:[#allocation65_spill] sm:$0xff]  ;;  %v16022_v59 = vld [vmem:[#allocation62_spill] sm:$0xff]  ;;  %v16026_v17 = vld [vmem:[#allocation87_spill] sm:$0xff] }
0x103a   :  { %v5361_v6 = vpop.permute.xlu1 %5360  ;;  %v5301_v19 = vsel %vm125_vm0, %v5289_v5, %v13717_v15  ;;  %v5305_v42 = vsel %vm125_vm0, %v13748_v2, %v5289_v5  ;;  %v5534_v33 = vsel %vm255_vm5, %v13821_v32, %v16021_v49  ;;  %v7127_v2 = vld [vmem:[%s14419_s6 + $0x1c] sm:$0xf]  ;;  %v5302_v32 = vsel %vm125_vm0, %v16023_v36, %v13833_v12  ;;  %v16025_v5 = vld [vmem:[#allocation6_spill] sm:$0xff] }
0x103b   :  { %v5373_v41 = vsel %vm164_vm2, %v5361_v6, %v13682_v26  ;;  %v5377_v47 = vsel %vm164_vm2, %v13705_v23, %v5361_v6  ;;  %v6088_v15 = vpack.c.b16 %v6080_v27, %v6076_v56  ;;  %v7068_v23 = vld [vmem:[%s14419_s6 + $0x24] sm:$0xf0]  ;;  %v7074_v56 = vld [vmem:[%s14419_s6 + $0x20] sm:$0xf]  ;;  %v7129_v27 = vld [vmem:[%s14419_s6 + $0x28] sm:$0xf0]  ;;  %v5298_v44 = vsel %vm125_vm0, %v13833_v12, %v16026_v17 }
0x103c   :  { %6345 = vmatpush.bf16.msra.mxu1 %v13800_v14  ;;  %v5877_v14 = vunpack.c.h.b16 %v16015_v18  ;;  %v5401_v26 = vmul.f32 %v5373_v41, %v16025_v5  ;;  %6182 = vmatmul.bf16.vlgmr.msra.gmra.mxu0 %v13928_v16  ;;  %v16027_v6 = vld [vmem:[#allocation3_spill] sm:$0xff]  ;;  %v16028_v41 = vld [vmem:[#allocation2_spill] sm:$0xff]  ;;  %v5540_v36 = vmul.f32 %v5522_v9, %v16017_v0  ;;  %v6040_v50 = vunpack.c.l.b16 %v13939_v7 }
0x103d   :  { %6250 = vmatpush.bf16.msrb.mxu0 %v6087_v24  ;;  %v5400_v24 = vmul.f32 %v5377_v47, %v16024_v30  ;;  %6239 = vmatmul.bf16.vlgmr.msra.gmra.mxu3 %v13928_v16  ;;  %v5328_v49 = vmul.f32 %v5305_v42, %v16027_v6  ;;  %v5329_v47 = vmul.f32 %v5301_v19, %v16028_v41 }
0x103e   :  { %6307 = vmatpush.bf16.msrb.mxu3 %v6088_v15  ;;  %v13988_v30 = vpack.c.bf16 %v5553_v60, %v5552_v38  ;;  %v5541_v37 = vmul.f32 %v5534_v33, %v16020_v40  ;;  %v5316_v12 = vmul.f32 %v5302_v32, %v16027_v6  ;;  %v13994_v17 = vor.u32 %v7127_v2, %v7068_v23  ;;  %v16030_v33 = vld [vmem:[#allocation138_spill] sm:$0xff]  ;;  %v16031_v15 = vld [vmem:[#allocation57_spill] sm:$0xff] }
0x103f   :  { %v5409_v5 = vpack.c.bf16 %v5401_v26, %v5400_v24  ;;  %v13996_v42 = vor.u32 %v7129_v27, %v7074_v56  ;;  %v5229_v9 = vsel %vm86_vm1, %v5217_v45, %v13792_v31  ;;  %v14005_v19 = vpack.c.bf16 %v5329_v47, %v5328_v49  ;;  %v16032_v32 = vld [vmem:[#allocation69_spill] sm:$0xff]  ;;  %v5735_v56 = vpop.permute.xlu2 %5734  ;;  %v16033_v27 = vld [vmem:[#allocation111_spill] sm:$0xff] }
0x1040   :  { %6346 = vmatpush.bf16.msra.mxu1 %v16022_v59  ;;  %v13985_v59 = vpack.c.b16 %v6081_v13, %v6077_v63  ;;  %v5317_v63 = vmul.f32 %v5298_v44, %v16028_v41  ;;  %v16034_v49 = vld [vmem:[#allocation141_spill] sm:$0xff] }
0x1041   :  { %6251 = vmatpush.bf16.msrb.mxu0 %v16029_v39  ;;  %v5517_v38 = vpop.permute.xlu0 %5516  ;;  %v5880_v13 = vunpack.c.l.b16 %v5409_v5  ;;  %v5881_v60 = vunpack.c.h.b16 %v5409_v5  ;;  %v5233_v39 = vsel %vm86_vm1, %v13842_v53, %v5217_v45  ;;  %v6048_v53 = vpack.c.b16 %v6040_v50, %v6036_v29  ;;  %v16035_v29 = vld [vmem:[#allocation4_spill] sm:$0xff]  ;;  %v16036_v5 = vld [vmem:[#allocation5_spill] sm:$0xff] }
0x1042   :  { %6308 = vmatpush.bf16.msrb.mxu3 %v16030_v33  ;;  %v5523_v2 = vsel %vm255_vm5, %v16031_v15, %v5517_v38  ;;  %v5535_v24 = vsel %vm255_vm5, %v5517_v38, %v16032_v32  ;;  %v5285_v31 = vpop.permute.xlu1 %5284  ;;  %v6000_v45 = vunpack.c.l.b16 %v13988_v30  ;;  %v5257_v50 = vmul.f32 %v5229_v9, %v16036_v5  ;;  %v7066_v15 = vld [vmem:[%s14419_s6 + $0x18] sm:$0xf]  ;;  %v16038_v9 = vld [vmem:[#allocation70_spill] sm:$0xff]  ;;  %v16040_v32 = vld [vmem:[#allocation81_spill] sm:$0xff] }
0x1043   :  { %v5544_v26 = vmul.f32 %v5523_v2, %v16017_v0  ;;  %v5545_v23 = vmul.f32 %v5535_v24, %v16020_v40  ;;  %v5299_v44 = vsel %vm125_vm0, %v5285_v31, %v16033_v27  ;;  %v5303_v47 = vsel %vm125_vm0, %v16034_v49, %v5285_v31  ;;  %6206 = vmatmul.bf16.gmra.mxu1 %v13994_v17  ;;  %v7128_v2 = vld [vmem:[%s14419_s6 + $0x20] sm:$0xf0]  ;;  %v16041_v31 = vld [vmem:[#allocation78_spill] sm:$0xff] }
0x1044   :  { %v5888_v0 = vpack.c.b16 %v5880_v13, %v5876_v43  ;;  %v5256_v40 = vmul.f32 %v5233_v39, %v16035_v29  ;;  %v5320_v38 = vmul.f32 %v5303_v47, %v16027_v6  ;;  %v5321_v33 = vmul.f32 %v5299_v44, %v16028_v41  ;;  %7077 = vmatmul.msk.bf16.gmra.mxu2 %vm1883_vm6, %v13996_v42 }
0x1045   :  { %6252 = vmatpush.bf16.msrb.mxu0 %v6047_v34  ;;  %v5889_v34 = vpack.c.b16 %v5881_v60, %v5877_v14  ;;  %v5840_v18 = vunpack.c.l.b16 %v14005_v19  ;;  %v5959_v43 = vunpack.c.h.b16 %v13796_v20  ;;  %v16037_v14 = vld [vmem:[#allocation140_spill] sm:$0xff]  ;;  %v5956_v6 = vunpack.c.l.b16 %v13878_v62  ;;  %v16039_v60 = vld [vmem:[#allocation142_spill] sm:$0xff] }
0x1046   :  { %6290 = vmatpush.bf16.msrb.mxu2 %v5888_v0  ;;  %6309 = vmatpush.bf16.msrb.mxu3 %v6048_v53  ;;  %v14044_v13 = vpack.c.bf16 %v16038_v9, %v16037_v14  ;;  %v5740_v41 = vsel %vm372_vm9, %v13538_v51, %v5735_v56  ;;  %v6007_v39 = vpack.c.b16 %v5999_v46, %v5995_v21  ;;  %v5836_v24 = vunpack.c.l.b16 %v16040_v32  ;;  %v16042_v46 = vld [vmem:[#allocation18_spill] sm:$0xff]  ;;  %v16048_v14 = vld [vmem:[#allocation25_spill] sm:$0xff] }
0x1047   :  { %6347 = vmatpush.bf16.msra.mxu1 %v5889_v34  ;;  %v5996_v20 = vunpack.c.l.b16 %v16041_v31  ;;  %v14055_v53 = vpack.c.bf16 %v5541_v37, %v5540_v36  ;;  %v14057_v27 = vpack.c.bf16 %v5545_v23, %v5544_v26  ;;  %v5333_v44 = vpack.c.bf16 %v5321_v33, %v5320_v38  ;;  %v16043_v26 = vld [vmem:[#allocation121_spill] sm:$0xff]  ;;  %v16044_v23 = vld [vmem:[#allocation92_spill] sm:$0xff] }
0x1048   :  { %v14061_v49 = vor.u32 %v7128_v2, %v7066_v15  ;;  %v5331_v51 = vpack.c.bf16 %v5317_v63, %v5316_v12  ;;  %v14063_v47 = vpack.c.bf16 %v5257_v50, %v5256_v40  ;;  %v5841_v21 = vunpack.c.h.b16 %v14005_v19  ;;  %v16045_v63 = vld [vmem:[#allocation90_spill] sm:$0xff]  ;;  %v16047_v40 = vld [vmem:[#allocation128_spill] sm:$0xff] }
0x1049   :  { %6253 = vmatpush.bf16.msrb.mxu0 %v16039_v60  ;;  %v5211_v0 = vpop.permute.xlu0 %5210  ;;  %v6008_v4 = vpack.c.b16 %v6000_v45, %v5996_v20  ;;  %v5752_v37 = vsel %vm372_vm9, %v5735_v56, %v13599_v52  ;;  %v5764_v36 = vmul.f32 %v5740_v41, %v16042_v46  ;;  %v5848_v38 = vpack.c.b16 %v5840_v18, %v5836_v24  ;;  %v16046_v45 = vld [vmem:[#allocation68_spill] sm:$0xff] }
0x104a   :  { %6291 = vmatpush.bf16.msrb.mxu2 %v16043_v26  ;;  %6310 = vmatpush.bf16.msrb.mxu3 %v16044_v23  ;;  %v5215_v34 = vpop.permute.xlu1 %5214  ;;  %v5960_v12 = vunpack.c.l.b16 %v14044_v13  ;;  %v5226_v19 = vsel %vm86_vm1, %v5211_v0, %v16046_v45  ;;  %v5230_v52 = vsel %vm86_vm1, %v16047_v40, %v5211_v0  ;;  %v5837_v50 = vunpack.c.h.b16 %v16040_v32  ;;  %v16049_v0 = vld [vmem:[#allocation145_spill] sm:$0xff] }
0x104b   :  { %6348 = vmatpush.bf16.msra.mxu1 %v16045_v63  ;;  %v5228_v56 = vsel %vm86_vm1, %v5215_v34, %v13552_v3  ;;  %v5232_v33 = vsel %vm86_vm1, %v13593_v10, %v5215_v34  ;;  %v5832_v2 = vunpack.c.l.b16 %v5333_v44  ;;  %v5992_v18 = vunpack.c.l.b16 %v14057_v27 }
0x104c   :  { %v5253_v15 = vmul.f32 %v5228_v56, %v16036_v5  ;;  %v5765_v9 = vmul.f32 %v5752_v37, %v16048_v14  ;;  %v5252_v41 = vmul.f32 %v5232_v33, %v16035_v29  ;;  %6187 = vmatmul.bf16.gmra.mxu0 %v14061_v49  ;;  %v5849_v3 = vpack.c.b16 %v5841_v21, %v5837_v50  ;;  %v5733_v56 = vpop.permute.xlu2 %5732 }
0x104d   :  { %6254 = vmatpush.bf16.msrb.mxu0 %v6007_v39  ;;  %6244 = vmatmul.bf16.gmra.mxu3 %v14061_v49  ;;  %v5833_v60 = vunpack.c.h.b16 %v5333_v44  ;;  %v5244_v39 = vmul.f32 %v5230_v52, %v16035_v29  ;;  %v5245_v32 = vmul.f32 %v5226_v19, %v16036_v5  ;;  %v5828_v10 = vunpack.c.l.b16 %v5331_v51 }
0x104e   :  { %6292 = vmatpush.bf16.msrb.mxu2 %v5848_v38  ;;  %6311 = vmatpush.bf16.msrb.mxu3 %v6008_v4  ;;  %v5988_v24 = vunpack.c.l.b16 %v14055_v53  ;;  %v5263_v20 = vpack.c.bf16 %v5253_v15, %v5252_v41  ;;  %v5829_v37 = vunpack.c.h.b16 %v5331_v51  ;;  %v5967_v26 = vpack.c.b16 %v5959_v43, %v5955_v11  ;;  %v16053_v15 = vld [vmem:[#allocation144_spill] sm:$0xff] }
0x104f   :  { %6349 = vmatpush.bf16.msra.mxu1 %v5849_v3  ;;  %v16050_v44 = vunpack.c.h.b16 %v13819_v8  ;;  %v5844_v23 = vpack.c.b16 %v5832_v2, %v5828_v10  ;;  %v5800_v4 = vunpack.c.l.b16 %v14063_v47  ;;  %v5968_v38 = vpack.c.b16 %v5960_v12, %v5956_v6  ;;  %v16051_v6 = vld [vmem:[#allocation148_spill] sm:$0xff] }
0x1050   :  { %v6004_v34 = vpack.c.b16 %v5992_v18, %v5988_v24  ;;  %v5775_v63 = vpack.c.bf16 %v5765_v9, %v5764_v36  ;;  %v5845_v45 = vpack.c.b16 %v5833_v60, %v5829_v37  ;;  %v5796_v40 = vunpack.c.l.b16 %v5263_v20  ;;  %v16054_v18 = vld [vmem:[#allocation52_spill] sm:$0xff] }
0x1051   :  { %6255 = vmatpush.bf16.msrb.mxu0 %v16049_v0  ;;  %v5963_v21 = vpack.c.b16 %v16050_v44, %v5947_v55  ;;  %v5737_v19 = vpop.permute.xlu0 %5736  ;;  %v5797_v52 = vunpack.c.h.b16 %v5263_v20  ;;  %v5259_v51 = vpack.c.bf16 %v5245_v32, %v5244_v39  ;;  %v5801_v55 = vunpack.c.h.b16 %v14063_v47 }
0x1052   :  { %6293 = vmatpush.bf16.msrb.mxu2 %v5844_v23  ;;  %6312 = vmatpush.bf16.msrb.mxu3 %v6004_v34  ;;  %v5741_v1 = vsel %vm372_vm9, %v13760_v61, %v5737_v19  ;;  %v5753_v8 = vsel %vm372_vm9, %v5737_v19, %v13715_v57  ;;  %v5213_v54 = vpop.permute.xlu1 %5212  ;;  %v5948_v12 = vunpack.c.l.b16 %v13871_v28  ;;  %v16052_v61 = vld [vmem:[#allocation136_spill] sm:$0xff]  ;;  %v5808_v47 = vpack.c.b16 %v5800_v4, %v5796_v40  ;;  %v16057_v19 = vld [vmem:[#allocation147_spill] sm:$0xff] }
0x1053   :  { %6350 = vmatpush.bf16.msra.mxu1 %v5845_v45  ;;  %v5768_v11 = vmul.f32 %v5741_v1, %v16042_v46  ;;  %v5769_v43 = vmul.f32 %v5753_v8, %v16048_v14  ;;  %v5227_v36 = vsel %vm86_vm1, %v5213_v54, %v16051_v6  ;;  %v5231_v50 = vsel %vm86_vm1, %v16052_v61, %v5213_v54  ;;  %v16056_v45 = vld [vmem:[#allocation109_spill] sm:$0xff]  ;;  %v16058_v6 = vld [vmem:[#allocation60_spill] sm:$0xff]  ;;  %v16059_v61 = vld [vmem:[#allocation122_spill] sm:$0xff] }
0x1054   :  { %v5249_v57 = vmul.f32 %v5227_v36, %v16036_v5  ;;  %7078 = vmatmul.msk.bf16.vlgmr.msrb.gmra.mxu1 %vm1883_vm6, %v13888_v25  ;;  %v5809_v33 = vpack.c.b16 %v5801_v55, %v5797_v52  ;;  %v5739_v2 = vsel %vm372_vm9, %v16053_v15, %v5733_v56  ;;  %v5751_v9 = vsel %vm372_vm9, %v5733_v56, %v16054_v18 }
0x1055   :  { %6256 = vmatpush.bf16.msrb.mxu0 %v5967_v26  ;;  %v5777_v41 = vpack.c.bf16 %v5769_v43, %v5768_v11  ;;  %v5248_v3 = vmul.f32 %v5231_v50, %v16035_v29  ;;  %v6116_v60 = vunpack.c.l.b16 %v5775_v63  ;;  %v16055_v5 = vunpack.c.l.b16 %v13859_v22 }
0x1056   :  { %6294 = vmatpush.bf16.msrb.mxu2 %v5808_v47  ;;  %6313 = vmatpush.bf16.msrb.mxu3 %v5968_v38  ;;  %v6117_v32 = vunpack.c.h.b16 %v5775_v63  ;;  %v5760_v0 = vmul.f32 %v5739_v2, %v16042_v46  ;;  %v5761_v37 = vmul.f32 %v5751_v9, %v16048_v14  ;;  %v5788_v26 = vunpack.c.l.b16 %v5259_v51 }
0x1057   :  { %v5964_v39 = vpack.c.b16 %v16055_v5, %v5948_v12  ;;  %v6120_v10 = vunpack.c.l.b16 %v5777_v41  ;;  %v6121_v24 = vunpack.c.h.b16 %v5777_v41  ;;  %v5261_v20 = vpack.c.bf16 %v5249_v57, %v5248_v3  ;;  %6351 = vmatpush.bf16.msra.mxu1 %v5809_v33 }
0x1058   :  { %v5789_v44 = vunpack.c.h.b16 %v5259_v51  ;;  %v5773_v56 = vpack.c.bf16 %v5761_v37, %v5760_v0  ;;  %v6037_v36 = vunpack.c.h.b16 %v16010_v58  ;;  %v6001_v12 = vunpack.c.h.b16 %v13988_v30 }
0x1059   :  { %6257 = vmatpush.bf16.msrb.mxu0 %v5963_v21  ;;  %v5792_v23 = vunpack.c.l.b16 %v5261_v20  ;;  %v6128_v29 = vpack.c.b16 %v6120_v10, %v6116_v60  ;;  %v5793_v34 = vunpack.c.h.b16 %v5261_v20  ;;  %v6129_v4 = vpack.c.b16 %v6121_v24, %v6117_v32 }
0x105a   :  { %6314 = vmatpush.bf16.msrb.mxu3 %v5964_v39  ;;  %v5731_v38 = vpop.permute.xlu1 %5730  ;;  %v6112_v54 = vunpack.c.l.b16 %v5773_v56  ;;  %v6113_v11 = vunpack.c.h.b16 %v5773_v56  ;;  %v5997_v50 = vunpack.c.h.b16 %v16041_v31  ;;  %v5993_v58 = vunpack.c.h.b16 %v14057_v27  ;;  %v16065_v56 = vld [vmem:[#allocation94_spill] sm:$0xff] }
0x105b   :  { %v5738_v63 = vsel %vm372_vm9, %v16056_v45, %v5731_v38  ;;  %v5750_v21 = vsel %vm372_vm9, %v5731_v38, %v16057_v19  ;;  %v5804_v40 = vpack.c.b16 %v5792_v23, %v5788_v26  ;;  %v5805_v52 = vpack.c.b16 %v5793_v34, %v5789_v44  ;;  %v16060_v44 = vld [vmem:[#allocation83_spill] sm:$0xff] }
0x105c   :  { %v5756_v51 = vmul.f32 %v5738_v63, %v16042_v46  ;;  %v5757_v1 = vmul.f32 %v5750_v21, %v16048_v14  ;;  %6258 = vmatmul.bf16.vlgmr.msrb.gmra.mxu0 %v13861_v35  ;;  %v6041_v46 = vunpack.c.h.b16 %v13939_v7  ;;  %v6009_v7 = vpack.c.b16 %v6001_v12, %v5997_v50  ;;  %v16062_v38 = vld [vmem:[#allocation79_spill] sm:$0xff]  ;;  %v16063_v63 = vld [vmem:[#allocation58_spill] sm:$0xff]  ;;  %v16064_v21 = vld [vmem:[#allocation73_spill] sm:$0xff] }
0x105d   :  { %6332 = vmatpush.bf16.msra.mxu0 %v6128_v29  ;;  %6315 = vmatmul.bf16.vlgmr.msrb.gmra.mxu3 %v13861_v35  ;;  %v5989_v57 = vunpack.c.h.b16 %v14055_v53  ;;  %v5961_v33 = vunpack.c.h.b16 %v14044_v13  ;;  %v5957_v30 = vunpack.c.h.b16 %v13878_v62  ;;  %v5953_v15 = vunpack.c.h.b16 %v13859_v22  ;;  %v16061_v29 = vld [vmem:[#allocation59_spill] sm:$0xff] }
0x105e   :  { %6389 = vmatpush.bf16.msra.mxu3 %v6129_v4  ;;  %v5771_v8 = vpack.c.bf16 %v5757_v1, %v5756_v51  ;;  %6295 = vmatpush.bf16.msrb.mxu2 %v5804_v40  ;;  %v5949_v2 = vunpack.c.h.b16 %v13871_v28  ;;  %v16066_v1 = vld [vmem:[#allocation110_spill] sm:$0xff]  ;;  %vm6560_vm0 = vcmask 785408  }
0x105f   :  { %6352 = vmatpush.bf16.msra.mxu1 %v5805_v52  ;;  %v6005_v47 = vpack.c.b16 %v5993_v58, %v5989_v57  ;;  %v5969_v31 = vpack.c.b16 %v5961_v33, %v5957_v30 }
0x1060   :  { %v6108_v48 = vunpack.c.l.b16 %v5771_v8  ;;  %v6109_v55 = vunpack.c.h.b16 %v5771_v8  ;;  %v5965_v27 = vpack.c.b16 %v5953_v15, %v5949_v2 }
0x1061   :  { %6296 = vmatmul.bf16.vlgmr.msrb.gmra.mxu2 %v13928_v16 }
0x1062   :  { %6364 = vmatpush.bf16.msra.mxu2 %v13985_v59  ;;  %v6124_v43 = vpack.c.b16 %v6112_v54, %v6108_v48  ;;  %v6125_v14 = vpack.c.b16 %v6113_v11, %v6109_v55  ;;  %v6049_v59 = vpack.c.b16 %v6041_v46, %v6037_v36 }
0x1064   :  { %7079 = vmatmul.msk.bf16.gmra.mxu1 %vm1883_vm6, %v13996_v42  ;;  %6333 = vmatpush.bf16.msra.mxu0 %v6124_v43 }
0x1065   :  { %6390 = vmatpush.bf16.msra.mxu3 %v6125_v14 }
0x1066   :  { %6365 = vmatpush.bf16.msra.mxu2 %v16058_v6  ;;  %v16067_v6 = vld [vmem:[#allocation113_spill] sm:$0xff] }
0x106a   :  { %6366 = vmatpush.bf16.msra.mxu2 %v6049_v59 }
0x106c   :  { %6263 = vmatmul.bf16.gmra.mxu0 %v13994_v17 }
0x106d   :  { %6320 = vmatmul.bf16.gmra.mxu3 %v13994_v17 }
0x106e   :  { %6367 = vmatpush.bf16.msra.mxu2 %v16059_v61 }
0x1071   :  { %6301 = vmatmul.bf16.gmra.mxu2 %v14061_v49 }
0x1072   :  { %6368 = vmatpush.bf16.msra.mxu2 %v6009_v7 }
0x1074   :  { %6353 = vmatmul.bf16.vlgmr.msra.gmra.mxu1 %v13928_v16 }
0x1076   :  { %6369 = vmatpush.bf16.msra.mxu2 %v6005_v47 }
0x107a   :  { %6370 = vmatpush.bf16.msra.mxu2 %v5969_v31 }
0x107c   :  { %7080 = vmatmul.msk.bf16.vlgmr.msra.gmra.mxu0 %vm1883_vm6, %v13888_v25 }
0x107d   :  { %7082 = vmatmul.msk.bf16.vlgmr.msra.gmra.mxu3 %vm1883_vm6, %v13888_v25 }
0x107e   :  { %6371 = vmatpush.bf16.msra.mxu2 %v5965_v27 }
0x1081   :  { %6372 = vmatmul.bf16.vlgmr.msra.gmra.mxu2 %v13861_v35 }
0x1084   :  { %6358 = vmatmul.bf16.gmra.mxu1 %v14061_v49 }
0x108c   :  { %7081 = vmatmul.msk.bf16.gmra.mxu0 %vm1883_vm6, %v13996_v42 }
0x108d   :  { %7083 = vmatmul.msk.bf16.gmra.mxu3 %vm1883_vm6, %v13996_v42 }
0x1091   :  { %6377 = vmatmul.bf16.gmra.mxu2 %v13994_v17 }
0x10b0   :  { %v6202_v22 = vpop.f32.mrf.mxu1 }
0x10b6   :  { %v6221_v16 = vpop.f32.mrf.mxu2 }
0x10b8   :  { %v6204_v28 = vpop.f32.mrf.mxu1 }
0x10b9   :  { %v6183_v62 = vpop.f32.mrf.mxu0 }
0x10ba   :  { %v6184_v51 = vadd.f32 %v6183_v62, %v16065_v56 }
0x10bc   :  { %v6203_v12 = vadd.f32 %v6202_v22, %v6184_v51  ;;  %v16071_v51 = vld [vmem:[#allocation48_spill] sm:$0xff] }
0x10be   :  { %v6223_v25 = vpop.f32.mrf.mxu2  ;;  %v6222_v2 = vadd.f32 %v6221_v16, %v6203_v12 }
0x10c0   :  { %v6240_v13 = vpop.f32.mrf.mxu3  ;;  %v6207_v53 = vpop.f32.mrf.mxu1 }
0x10c1   :  { %v6185_v18 = vpop.f32.mrf.mxu0  ;;  %v6241_v8 = vadd.f32 %v6240_v13, %v16066_v1 }
0x10c2   :  { %v6186_v45 = vadd.f32 %v6185_v18, %v16062_v38 }
0x10c4   :  { %v6205_v43 = vadd.f32 %v6204_v28, %v6186_v45 }
0x10c6   :  { %v6224_v33 = vadd.f32 %v6223_v25, %v6205_v43 }
0x10c7   :  { %v6226_v3 = vpop.f32.mrf.mxu2 }
0x10c8   :  { %v6242_v9 = vpop.f32.mrf.mxu3  ;;  %v6209_v35 = vpop.f32.mrf.mxu1 }
0x10c9   :  { %v6188_v41 = vpop.f32.mrf.mxu0  ;;  %v6243_v19 = vadd.f32 %v6242_v9, %v16063_v63 }
0x10ca   :  { %v6189_v23 = vadd.f32 %v6188_v41, %v16060_v44  ;;  %v6416_v41 = vpack.c.bf16 %v16067_v6, %v16064_v21 }
0x10cc   :  { %v6208_v48 = vadd.f32 %v6207_v53, %v6189_v23  ;;  %v6487_v23 = vunpack.c.h.b16 %v6416_v41 }
0x10ce   :  { %v6227_v50 = vadd.f32 %v6226_v3, %v6208_v48 }
0x10cf   :  { %v6228_v42 = vpop.f32.mrf.mxu2 }
0x10d0   :  { %v6245_v49 = vpop.f32.mrf.mxu3 }
0x10d1   :  { %v6190_v60 = vpop.f32.mrf.mxu0  ;;  %v6278_v5 = vpop.f32.mrf.mxu1  ;;  %v6246_v34 = vadd.f32 %v6245_v49, %v16061_v29 }
0x10d2   :  { %v6191_v40 = vadd.f32 %v6190_v60, %v16064_v21  ;;  %v6410_v21 = vpack.c.bf16 %v16066_v1, %v16065_v56  ;;  %v16073_v56 = vld [vmem:[#allocation41_spill] sm:$0xff] }
0x10d4   :  { %v6210_v14 = vadd.f32 %v6209_v35, %v6191_v40  ;;  %v16068_v40 = vld [vmem:[#allocation44_spill] sm:$0xff]  ;;  %v6474_v43 = vunpack.c.l.b16 %v6410_v21 }
0x10d6   :  { %v6229_v30 = vadd.f32 %v6228_v42, %v6210_v14  ;;  %v6475_v14 = vunpack.c.h.b16 %v6410_v21 }
0x10d8   :  { %v6247_v39 = vpop.f32.mrf.mxu3 }
0x10d9   :  { %v6259_v32 = vpop.f32.mrf.mxu0  ;;  %v6280_v10 = vpop.f32.mrf.mxu1  ;;  %v6248_v36 = vadd.f32 %v6247_v39, %v16067_v6 }
0x10da   :  { %v6260_v55 = vadd.f32 %v6259_v32, %v6241_v8  ;;  %v6414_v32 = vpack.c.bf16 %v16061_v29, %v16060_v44  ;;  %v16069_v44 = vld [vmem:[#allocation45_spill] sm:$0xff] }
0x10db   :  { %v6406_v29 = vpack.c.bf16 %v16069_v44, %v16068_v40  ;;  %v16081_v40 = vld [vmem:[#allocation77_spill] sm:$0xff] }
0x10dc   :  { %v6279_v57 = vadd.f32 %v6278_v5, %v6260_v55  ;;  %v6482_v45 = vunpack.c.l.b16 %v6414_v32 }
0x10dd   :  { %v6442_v6 = vunpack.c.l.b16 %v6406_v29 }
0x10de   :  { %v6418_v28 = vpack.c.bf16 %v6279_v57, %v6222_v2  ;;  %v16074_v57 = vld [vmem:[#allocation36_spill] sm:$0xff] }
0x10e0   :  { %v14175_v17 = vpop.f32.mrf.mxu3  ;;  %v6514_v16 = vunpack.c.l.b16 %v6418_v28  ;;  %v6515_v39 = vunpack.c.h.b16 %v6418_v28 }
0x10e1   :  { %v6261_v24 = vpop.f32.mrf.mxu0  ;;  %v6283_v0 = vpop.f32.mrf.mxu1 }
0x10e2   :  { %v6262_v54 = vadd.f32 %v6261_v24, %v6243_v19  ;;  %v6483_v19 = vunpack.c.h.b16 %v6414_v32 }
0x10e4   :  { %v14177_v20 = vpop.f32.mrf.mxu2  ;;  %v6281_v7 = vadd.f32 %v6280_v10, %v6262_v54  ;;  %v6412_v10 = vpack.c.bf16 %v16063_v63, %v16062_v38  ;;  %v6495_v63 = vpack.c.b16 %v6487_v23, %v6483_v19 }
0x10e6   :  { %v6420_v27 = vpack.c.bf16 %v6281_v7, %v6224_v33  ;;  %v6478_v48 = vunpack.c.l.b16 %v6412_v10  ;;  %v6479_v54 = vunpack.c.h.b16 %v6412_v10  ;;  %v16075_v33 = vld [vmem:[#allocation37_spill] sm:$0xff] }
0x10e7   :  { %v16078_v10 = vld [vmem:[#allocation117_spill] sm:$0xff] }
0x10e8   :  { %v14179_v37 = vpop.f32.mrf.mxu3  ;;  %v6518_v3 = vunpack.c.l.b16 %v6420_v27  ;;  %v6519_v60 = vunpack.c.h.b16 %v6420_v27  ;;  %v6490_v12 = vpack.c.b16 %v6478_v48, %v6474_v43 }
0x10e9   :  { %v6264_v26 = vpop.f32.mrf.mxu0  ;;  %v6285_v11 = vpop.f32.mrf.mxu1 }
0x10ea   :  { %v6265_v52 = vadd.f32 %v6264_v26, %v6246_v34  ;;  %v6530_v24 = vpack.c.b16 %v6518_v3, %v6514_v16  ;;  %v6486_v26 = vunpack.c.l.b16 %v6416_v41 }
0x10ec   :  { %v14183_v4 = vpop.f32.mrf.mxu2  ;;  %v6284_v59 = vadd.f32 %v6283_v0, %v6265_v52  ;;  %v6531_v0 = vpack.c.b16 %v6519_v60, %v6515_v39  ;;  %v16070_v52 = vld [vmem:[#allocation47_spill] sm:$0xff]  ;;  %v6494_v38 = vpack.c.b16 %v6486_v26, %v6482_v45  ;;  %v16076_v60 = vld [vmem:[#allocation133_spill] sm:$0xff]  ;;  %v16079_v26 = vld [vmem:[#allocation100_spill] sm:$0xff] }
0x10ed   :  { %v6408_v8 = vpack.c.bf16 %v16071_v51, %v16070_v52  ;;  %v16077_v39 = vld [vmem:[#allocation127_spill] sm:$0xff]  ;;  %v6300_v23 = vadd.f32 %v14183_v4, %v16079_v26  ;;  %v16080_v45 = vld [vmem:[#allocation72_spill] sm:$0xff] }
0x10ee   :  { %v6422_v31 = vpack.c.bf16 %v6284_v59, %v6227_v50  ;;  %v16072_v59 = vld [vmem:[#allocation40_spill] sm:$0xff]  ;;  %v6443_v50 = vunpack.c.h.b16 %v6406_v29  ;;  %v16083_v4 = vld [vmem:[#allocation99_spill] sm:$0xff] }
0x10ef   :  { %v6404_v1 = vpack.c.bf16 %v16073_v56, %v16072_v59  ;;  %v6447_v7 = vunpack.c.h.b16 %v6408_v8  ;;  %v16082_v52 = vld [vmem:[#allocation132_spill] sm:$0xff] }
0x10f0   :  { %v14190_v46 = vpop.f32.mrf.mxu3  ;;  %v6522_v53 = vunpack.c.l.b16 %v6422_v31  ;;  %v6523_v18 = vunpack.c.h.b16 %v6422_v31  ;;  %v6298_v51 = vadd.f32 %v14177_v20, %v16082_v52 }
0x10f1   :  { %v6266_v61 = vpop.f32.mrf.mxu0  ;;  %v14197_v35 = vpop.f32.mrf.mxu1  ;;  %v6455_v2 = vpack.c.b16 %v6447_v7, %v6443_v50  ;;  %v6438_v27 = vunpack.c.l.b16 %v6404_v1 }
0x10f2   :  { %v6267_v58 = vadd.f32 %v6266_v61, %v6248_v36  ;;  %v6446_v36 = vunpack.c.l.b16 %v6408_v8  ;;  %v6491_v61 = vpack.c.b16 %v6479_v54, %v6475_v14  ;;  %v6355_v19 = vadd.f32 %v14197_v35, %v16080_v45 }
0x10f3   :  { %v6319_v35 = vadd.f32 %v14179_v37, %v6300_v23 }
0x10f4   :  { %v14193_v47 = vpop.f32.mrf.mxu2  ;;  %v6286_v15 = vadd.f32 %v6285_v11, %v6267_v58 }
0x10f5   :  { %v6303_v32 = vadd.f32 %v14193_v47, %v16077_v39  ;;  %v14236_v47 = vld [vmem:[%s14420_s7] sm:$0xff] }
0x10f6   :  { %v6424_v62 = vpack.c.bf16 %v6286_v15, %v6229_v30  ;;  %v6402_v30 = vpack.c.bf16 %v16075_v33, %v16074_v57  ;;  %v6454_v15 = vpack.c.b16 %v6446_v36, %v6442_v6 }
0x10f8   :  { %v14195_v13 = vpop.f32.mrf.mxu3  ;;  %v6526_v22 = vunpack.c.l.b16 %v6424_v62  ;;  %v6527_v9 = vunpack.c.h.b16 %v6424_v62  ;;  %v6439_v62 = vunpack.c.h.b16 %v6404_v1 }
0x10f9   :  { %v14205_v42 = vpop.f32.mrf.mxu0  ;;  %v6356_v55 = vpop.f32.mrf.mxu1 }
0x10fa   :  { %v6534_v49 = vpack.c.b16 %v6526_v22, %v6522_v53  ;;  %v6535_v25 = vpack.c.b16 %v6527_v9, %v6523_v18  ;;  %v6434_v53 = vunpack.c.l.b16 %v6402_v30  ;;  %v6435_v18 = vunpack.c.h.b16 %v6402_v30 }
0x10fc   :  { %v14201_v5 = vpop.f32.mrf.mxu2  ;;  %6569 = vmatpush.bf16.msrb.mxu0 %v6534_v49  ;;  %6588 = vmatpush.bf16.msrb.mxu1 %v6535_v25  ;;  %v6450_v9 = vpack.c.b16 %v6438_v27, %v6434_v53  ;;  %v6451_v41 = vpack.c.b16 %v6439_v62, %v6435_v18  ;;  %v6413_v27 = vpack.c.bf16 %v16078_v10, %v16079_v26  ;;  %v7131_v62 = vld [vmem:[%s14420_s7 + $0x8] sm:$0xff] }
0x10fd   :  { %v6305_v44 = vadd.f32 %v14201_v5, %v16081_v40 }
0x10fe   :  { %v6481_v26 = vunpack.c.h.b16 %v6413_v27 }
0x1100   :  { %v14209_v34 = vpop.f32.mrf.mxu3  ;;  %6570 = vmatpush.bf16.msrb.mxu0 %v6530_v24  ;;  %6589 = vmatpush.bf16.msrb.mxu1 %v6531_v0  ;;  %v6357_v24 = vadd.f32 %v6356_v55, %v16078_v10 }
0x1101   :  { %v6337_v58 = vpop.f32.mrf.mxu0  ;;  %v6359_v22 = vpop.f32.mrf.mxu1 }
0x1102   :  { %v6360_v16 = vadd.f32 %v6359_v22, %v16076_v60  ;;  %v6338_v36 = vadd.f32 %v6337_v58, %v6319_v35 }
0x1104   :  { %v6373_v11 = vpop.f32.mrf.mxu2  ;;  %6571 = vmatpush.bf16.msrb.mxu0 %v6494_v38  ;;  %6590 = vmatpush.bf16.msrb.mxu1 %v6495_v63  ;;  %v6322_v38 = vadd.f32 %v14190_v46, %v6303_v32  ;;  %v6317_v46 = vadd.f32 %v14175_v17, %v6298_v51 }
0x1105   :  { %v6374_v8 = vadd.f32 %v6373_v11, %v6355_v19  ;;  %v6324_v11 = vadd.f32 %v14195_v13, %v6305_v44  ;;  %v6417_v13 = vpack.c.bf16 %v16083_v4, %v16081_v40  ;;  %v16088_v40 = vld [vmem:[#allocation38_spill] sm:$0xff]  ;;  %v16089_v44 = vld [vmem:[#allocation39_spill] sm:$0xff] }
0x1106   :  { %v6336_v1 = vadd.f32 %v14205_v42, %v6317_v46  ;;  %v6415_v42 = vpack.c.bf16 %v16076_v60, %v16077_v39  ;;  %v16087_v39 = vld [vmem:[#allocation49_spill] sm:$0xff] }
0x1107   :  { %v6393_v14 = vadd.f32 %v14209_v34, %v6374_v8  ;;  %v6488_v18 = vunpack.c.l.b16 %v6417_v13  ;;  %v6489_v22 = vunpack.c.h.b16 %v6417_v13 }
0x1108   :  { %6572 = vmatpush.bf16.msrb.mxu0 %v6490_v12  ;;  %6591 = vmatpush.bf16.msrb.mxu1 %v6491_v61  ;;  %v6394_v31 = vpop.f32.mrf.mxu3 }
0x1109   :  { %v6340_v49 = vpop.f32.mrf.mxu0  ;;  %v6361_v21 = vpop.f32.mrf.mxu1  ;;  %v6419_v50 = vpack.c.bf16 %v6393_v14, %v6336_v1 }
0x110a   :  { %v6362_v63 = vadd.f32 %v6361_v21, %v16083_v4  ;;  %v6341_v20 = vadd.f32 %v6340_v49, %v6322_v38  ;;  %v6411_v49 = vpack.c.bf16 %v16080_v45, %v16082_v52  ;;  %v16090_v4 = vld [vmem:[#allocation34_spill] sm:$0xff] }
0x110b   :  { %v6516_v58 = vunpack.c.l.b16 %v6419_v50 }
0x110c   :  { %v6375_v28 = vpop.f32.mrf.mxu2  ;;  %6573 = vmatpush.bf16.msrb.mxu0 %v6454_v15  ;;  %6592 = vmatpush.bf16.msrb.mxu1 %v6455_v2  ;;  %v6517_v2 = vunpack.c.h.b16 %v6419_v50  ;;  %v6476_v23 = vunpack.c.l.b16 %v6411_v49  ;;  %v6477_v19 = vunpack.c.h.b16 %v6411_v49 }
0x110d   :  { %v6376_v29 = vadd.f32 %v6375_v28, %v6357_v24 }
0x110e   :  { %v6493_v51 = vpack.c.b16 %v6481_v26, %v6477_v19 }
0x110f   :  { %v6395_v55 = vadd.f32 %v6394_v31, %v6376_v29  ;;  %v6405_v29 = vpack.c.bf16 %v16089_v44, %v16088_v40 }
0x1110   :  { %6574 = vmatpush.bf16.msrb.mxu0 %v6450_v9  ;;  %6593 = vmatpush.bf16.msrb.mxu1 %v6451_v41  ;;  %v6397_v25 = vpop.f32.mrf.mxu3  ;;  %v6484_v9 = vunpack.c.l.b16 %v6415_v42  ;;  %v6485_v41 = vunpack.c.h.b16 %v6415_v42 }
0x1111   :  { %v6342_v54 = vpop.f32.mrf.mxu0  ;;  %v6421_v12 = vpack.c.bf16 %v6395_v55, %v6338_v36 }
0x1112   :  { %v6343_v37 = vadd.f32 %v6342_v54, %v6324_v11  ;;  %v6496_v10 = vpack.c.b16 %v6488_v18, %v6484_v9  ;;  %v6497_v24 = vpack.c.b16 %v6489_v22, %v6485_v41  ;;  %v16092_v9 = vld [vmem:[#allocation50_spill] sm:$0xff] }
0x1113   :  { %7092 = vmatmul.msk.bf16.vlgmr.msrb.gmra.mxu0 %vm6560_vm0, %v14236_v47  ;;  %7094 = vmatmul.msk.bf16.vlgmr.msrb.gmra.mxu1 %vm6560_vm0, %v14236_v47  ;;  %v6520_v34 = vunpack.c.l.b16 %v6421_v12  ;;  %v6521_v15 = vunpack.c.h.b16 %v6421_v12 }
0x1114   :  { %v6378_v3 = vpop.f32.mrf.mxu2 }
0x1115   :  { %v6379_v0 = vadd.f32 %v6378_v3, %v6360_v16  ;;  %v6532_v28 = vpack.c.b16 %v6520_v34, %v6516_v58  ;;  %v6533_v53 = vpack.c.b16 %v6521_v15, %v6517_v2  ;;  %v16085_v3 = vld [vmem:[#allocation43_spill] sm:$0xff]  ;;  %v16086_v16 = vld [vmem:[#allocation46_spill] sm:$0xff] }
0x1116   :  { %v6409_v32 = vpack.c.bf16 %v16087_v39, %v16086_v16 }
0x1117   :  { %v6398_v48 = vadd.f32 %v6397_v25, %v6379_v0  ;;  %v16084_v25 = vld [vmem:[#allocation42_spill] sm:$0xff]  ;;  %v6480_v0 = vunpack.c.l.b16 %v6413_v27 }
0x1118   :  { %v6399_v6 = vpop.f32.mrf.mxu3  ;;  %v6407_v60 = vpack.c.bf16 %v16085_v3, %v16084_v25  ;;  %v6448_v8 = vunpack.c.l.b16 %v6409_v32  ;;  %v6449_v38 = vunpack.c.h.b16 %v6409_v32 }
0x1119   :  { %v6423_v59 = vpack.c.bf16 %v6398_v48, %v6341_v20  ;;  %v6492_v52 = vpack.c.b16 %v6480_v0, %v6476_v23  ;;  %v6441_v20 = vunpack.c.h.b16 %v6405_v29 }
0x111a   :  { %v6444_v21 = vunpack.c.l.b16 %v6407_v60  ;;  %v6445_v45 = vunpack.c.h.b16 %v6407_v60 }
0x111b   :  { %v6524_v7 = vunpack.c.l.b16 %v6423_v59  ;;  %v6525_v57 = vunpack.c.h.b16 %v6423_v59 }
0x111c   :  { %v6380_v5 = vpop.f32.mrf.mxu2  ;;  %v6456_v35 = vpack.c.b16 %v6448_v8, %v6444_v21  ;;  %v6457_v54 = vpack.c.b16 %v6449_v38, %v6445_v45 }
0x111d   :  { %v6381_v43 = vadd.f32 %v6380_v5, %v6362_v63  ;;  %v16091_v63 = vld [vmem:[#allocation35_spill] sm:$0xff]  ;;  %v6440_v5 = vunpack.c.l.b16 %v6405_v29 }
0x111e   :  { %v6403_v48 = vpack.c.bf16 %v16091_v63, %v16090_v4 }
0x111f   :  { %v6400_v56 = vadd.f32 %v6399_v6, %v6381_v43 }
0x1120   :  { %v6436_v55 = vunpack.c.l.b16 %v6403_v48  ;;  %v6437_v11 = vunpack.c.h.b16 %v6403_v48 }
0x1121   :  { %v6425_v61 = vpack.c.bf16 %v6400_v56, %v6343_v37 }
0x1122   :  { %v6452_v43 = vpack.c.b16 %v6440_v5, %v6436_v55  ;;  %v6453_v46 = vpack.c.b16 %v6441_v20, %v6437_v11 }
0x1123   :  { %v6528_v33 = vunpack.c.l.b16 %v6425_v61  ;;  %v6529_v30 = vunpack.c.h.b16 %v6425_v61  ;;  %7093 = vmatmul.msk.bf16.gmra.mxu0 %vm6560_vm0, %v7131_v62  ;;  %7095 = vmatmul.msk.bf16.gmra.mxu1 %vm6560_vm0, %v7131_v62 }
0x1125   :  { %v6536_v17 = vpack.c.b16 %v6528_v33, %v6524_v7  ;;  %v6537_v31 = vpack.c.b16 %v6529_v30, %v6525_v57 }
0x1127   :  { %6607 = vmatpush.bf16.msrb.mxu2 %v6536_v17  ;;  %6626 = vmatpush.bf16.msrb.mxu3 %v6537_v31 }
0x112b   :  { %6608 = vmatpush.bf16.msrb.mxu2 %v6532_v28  ;;  %6627 = vmatpush.bf16.msrb.mxu3 %v6533_v53 }
0x112f   :  { %6609 = vmatpush.bf16.msrb.mxu2 %v6496_v10  ;;  %6628 = vmatpush.bf16.msrb.mxu3 %v6497_v24 }
0x1133   :  { %6610 = vmatpush.bf16.msrb.mxu2 %v6492_v52  ;;  %6629 = vmatpush.bf16.msrb.mxu3 %v6493_v51 }
0x1137   :  { %6611 = vmatpush.bf16.msrb.mxu2 %v6456_v35  ;;  %6630 = vmatpush.bf16.msrb.mxu3 %v6457_v54 }
0x113b   :  { %6612 = vmatpush.bf16.msrb.mxu2 %v6452_v43  ;;  %6631 = vmatpush.bf16.msrb.mxu3 %v6453_v46 }
0x113e   :  { %7096 = vmatmul.msk.bf16.vlgmr.msrb.gmra.mxu2 %vm6560_vm0, %v14236_v47  ;;  %7098 = vmatmul.msk.bf16.vlgmr.msrb.gmra.mxu3 %vm6560_vm0, %v14236_v47 }
0x114e   :  { %7097 = vmatmul.msk.bf16.gmra.mxu2 %vm6560_vm0, %v7131_v62  ;;  %7099 = vmatmul.msk.bf16.gmra.mxu3 %vm6560_vm0, %v7131_v62 }
0x1190   :  { %v6576_v14 = vpop.f32.mrf.mxu0  ;;  %v6595_v6 = vpop.f32.mrf.mxu1 }
0x1191   :  { %v6643_v36 = vadd.f32 %v6595_v6, %v6576_v14 }
0x1198   :  { %v6578_v37 = vpop.f32.mrf.mxu0  ;;  %v6597_v59 = vpop.f32.mrf.mxu1 }
0x1199   :  { %v6648_v58 = vadd.f32 %v6597_v59, %v6578_v37 }
0x11a0   :  { %v6581_v57 = vpop.f32.mrf.mxu0  ;;  %v6600_v33 = vpop.f32.mrf.mxu1 }
0x11a1   :  { %v6653_v30 = vadd.f32 %v6600_v33, %v6581_v57 }
0x11a8   :  { %v6583_v34 = vpop.f32.mrf.mxu0  ;;  %v6602_v15 = vpop.f32.mrf.mxu1 }
0x11a9   :  { %v6658_v42 = vadd.f32 %v6602_v15, %v6583_v34 }
0x11c1   :  { %v6614_v56 = vpop.f32.mrf.mxu2  ;;  %v6633_v1 = vpop.f32.mrf.mxu3 }
0x11c2   :  { %v6644_v12 = vadd.f32 %v6643_v36, %v6614_v56 }
0x11c4   :  { %v6645_v61 = vadd.f32 %v6644_v12, %v6633_v1 }
0x11c6   :  { %6646 = vadd.xlane.f32.xlu2 %v6645_v61 }
0x11c9   :  { %v6616_v50 = vpop.f32.mrf.mxu2  ;;  %v6635_v7 = vpop.f32.mrf.mxu3 }
0x11ca   :  { %v6649_v2 = vadd.f32 %v6648_v58, %v6616_v50 }
0x11cc   :  { %v6650_v53 = vadd.f32 %v6649_v2, %v6635_v7 }
0x11d1   :  { %v6619_v47 = vpop.f32.mrf.mxu2  ;;  %v6638_v13 = vpop.f32.mrf.mxu3 }
0x11d2   :  { %v6654_v17 = vadd.f32 %v6653_v30, %v6619_v47 }
0x11d4   :  { %v6655_v31 = vadd.f32 %v6654_v17, %v6638_v13 }
0x11d6   :  { %6656 = vadd.xlane.f32.xlu0 %v6655_v31  ;;  %v7249_v31 = vmov 4  }
0x11d7   :  { %7160 = vset.pattern.permute.xlu2 %v7249_v31  ;;  %7158 = vset.pattern.permute.xlu1 %v7249_v31 }
0x11d8   :  { %7159 = vset.pattern.permute.xlu0 %v7249_v31  ;;  %v7233_v31 = vld [vmem:[%s14414_s11 + $0x18] sm:$0xff] }
0x11d9   :  { %v6621_v27 = vpop.f32.mrf.mxu2  ;;  %v6640_v28 = vpop.f32.mrf.mxu3 }
0x11da   :  { %v6659_v62 = vadd.f32 %v6658_v42, %v6621_v27 }
0x11dc   :  { %v6660_v18 = vadd.f32 %v6659_v62, %v6640_v28 }
0x11de   :  { %6651 = vadd.xlane.f32.xlu0 %v6650_v53  ;;  %6661 = vadd.xlane.f32.xlu1 %v6660_v18 }
0x1239   :  { %v6647_v22 = vpop.xlane.xlu2 %6646 }
0x123a   :  { %v6663_v41 = vmul.f32 %v6647_v22, %v16092_v9 }
0x123c   :  { %v14277_v49 = vsub.f32 %v6576_v14, %v6663_v41  ;;  %v14279_v25 = vsub.f32 %v6595_v6, %v6663_v41  ;;  %v14281_v3 = vsub.f32 %v6614_v56, %v6663_v41  ;;  %v14283_v60 = vsub.f32 %v6633_v1, %v6663_v41 }
0x123e   :  { %v6683_v16 = vmul.f32 %v14277_v49, %v14277_v49  ;;  %v6684_v39 = vmul.f32 %v14279_v25, %v14279_v25  ;;  %v6685_v32 = vmul.f32 %v14281_v3, %v14281_v3  ;;  %v6686_v24 = vmul.f32 %v14283_v60, %v14283_v60 }
0x1240   :  { %v6699_v10 = vadd.f32 %v6684_v39, %v6683_v16 }
0x1242   :  { %v6700_v0 = vadd.f32 %v6699_v10, %v6685_v32  ;;  %v7229_v32 = vld [vmem:[%s14415_s10] sm:$0xff] }
0x1244   :  { %v6701_v26 = vadd.f32 %v6700_v0, %v6686_v24 }
0x1246   :  { %6702 = vadd.xlane.f32.xlu0 %v6701_v26 }
0x1249   :  { %v6657_v23 = vpop.xlane.xlu0 %6656 }
0x124a   :  { %v6665_v19 = vmul.f32 %v6657_v23, %v16092_v9 }
0x124c   :  { %v14294_v21 = vsub.f32 %v6581_v57, %v6665_v19  ;;  %v14296_v45 = vsub.f32 %v6600_v33, %v6665_v19  ;;  %v14298_v40 = vsub.f32 %v6619_v47, %v6665_v19  ;;  %v14304_v52 = vsub.f32 %v6638_v13, %v6665_v19 }
0x124e   :  { %v6691_v44 = vmul.f32 %v14294_v21, %v14294_v21  ;;  %v6692_v29 = vmul.f32 %v14296_v45, %v14296_v45  ;;  %v6693_v51 = vmul.f32 %v14298_v40, %v14298_v40  ;;  %v6694_v54 = vmul.f32 %v14304_v52, %v14304_v52 }
0x1250   :  { %v6709_v8 = vadd.f32 %v6692_v29, %v6691_v44 }
0x1251   :  { %v6652_v38 = vpop.xlane.xlu0 %6651  ;;  %v6662_v4 = vpop.xlane.xlu1 %6661 }
0x1252   :  { %v6664_v63 = vmul.f32 %v6652_v38, %v16092_v9  ;;  %v6666_v48 = vmul.f32 %v6662_v4, %v16092_v9  ;;  %v6710_v35 = vadd.f32 %v6709_v8, %v6693_v51  ;;  %v7230_v4 = vld [vmem:[%s14414_s11] sm:$0xff] }
0x1254   :  { %v14312_v5 = vsub.f32 %v6578_v37, %v6664_v63  ;;  %v14314_v20 = vsub.f32 %v6597_v59, %v6664_v63  ;;  %v14316_v55 = vsub.f32 %v6616_v50, %v6664_v63  ;;  %v14318_v11 = vsub.f32 %v6583_v34, %v6666_v48  ;;  %v7228_v34 = vld [vmem:[%s14414_s11 + $0x10] sm:$0xff] }
0x1255   :  { %v14320_v43 = vsub.f32 %v6602_v15, %v6666_v48  ;;  %v14322_v46 = vsub.f32 %v6621_v27, %v6666_v48  ;;  %v6711_v14 = vadd.f32 %v6710_v35, %v6694_v54  ;;  %v14324_v6 = vsub.f32 %v6635_v7, %v6664_v63 }
0x1256   :  { %v6687_v36 = vmul.f32 %v14312_v5, %v14312_v5  ;;  %v6688_v37 = vmul.f32 %v14314_v20, %v14314_v20  ;;  %v14330_v59 = vsub.f32 %v6640_v28, %v6666_v48  ;;  %v6695_v56 = vmul.f32 %v14318_v11, %v14318_v11 }
0x1257   :  { %6712 = vadd.xlane.f32.xlu2 %v6711_v14  ;;  %v6696_v1 = vmul.f32 %v14320_v43, %v14320_v43  ;;  %v6689_v12 = vmul.f32 %v14316_v55, %v14316_v55  ;;  %v6697_v50 = vmul.f32 %v14322_v46, %v14322_v46  ;;  %v6690_v57 = vmul.f32 %v14324_v6, %v14324_v6 }
0x1258   :  { %v6704_v61 = vadd.f32 %v6688_v37, %v6687_v36  ;;  %v6698_v30 = vmul.f32 %v14330_v59, %v14330_v59 }
0x1259   :  { %v6714_v7 = vadd.f32 %v6696_v1, %v6695_v56  ;;  %v7231_v1 = vld [vmem:[%s14415_s10 + $0x10] sm:$0xff] }
0x125a   :  { %v6705_v33 = vadd.f32 %v6704_v61, %v6689_v12 }
0x125b   :  { %v6715_v47 = vadd.f32 %v6714_v7, %v6697_v50 }
0x125c   :  { %v6706_v13 = vadd.f32 %v6705_v33, %v6690_v57 }
0x125d   :  { %v6716_v17 = vadd.f32 %v6715_v47, %v6698_v30 }
0x125f   :  { %6707 = vadd.xlane.f32.xlu2 %v6706_v13  ;;  %6717 = vadd.xlane.f32.xlu1 %v6716_v17  ;;  %v7232_v13 = vld [vmem:[%s14415_s10 + $0x18] sm:$0xff] }
0x1277   :  { %6816 = vperm.xlu2 %7160, %v7228_v34  }
0x12b9   :  { %v6703_v15 = vpop.xlane.xlu0 %6702 }
0x12ba   :  { %v6719_v58 = vmul.f32 %v6703_v15, %v16092_v9  ;;  %v7234_v15 = vld [vmem:[%s14415_s10 + $0x8] sm:$0xff] }
0x12bc   :  { %v6723_v2 = vadd.f32 1e-05, %v6719_v58 }
0x12be   :  { %7196 = vrsqrt.f32 %v6723_v2  ;;  %vm6733_vm2 = vweird.f32 %v6723_v2 }
0x12c4   :  { %v7197_v42 = vpop.eup %7196 }
0x12c5   :  { %v6728_v27 = vmul.f32 %v7197_v42, %v6723_v2  ;;  %vm6734_vm1 = vweird.f32 %v7197_v42  ;;  %v16093_v2 = vmov 0  }
0x12c6   :  { %vm6735_vm3 = vmor %vm6733_vm2, %vm6734_vm1 }
0x12c7   :  { %v6729_v62 = vmul.f32 %v7197_v42, %v6728_v27 }
0x12c9   :  { %v6730_v28 = vmul.f32 0.5, %v6729_v62 }
0x12ca   :  { %v6713_v53 = vpop.xlane.xlu2 %6712 }
0x12cb   :  { %v6731_v18 = vsub.f32 1.5, %v6730_v28  ;;  %v6721_v22 = vmul.f32 %v6713_v53, %v16092_v9  ;;  %v6864_v28 = vld [vmem:[%s14421_s9] sm:$0xff] }
0x12cd   :  { %v6732_v41 = vmul.f32 %v7197_v42, %v6731_v18  ;;  %v6725_v16 = vadd.f32 1e-05, %v6721_v22 }
0x12cf   :  { %7198 = vrsqrt.f32 %v6725_v16  ;;  %v6736_v39 = vsel %vm6735_vm3, %v7197_v42, %v6732_v41  ;;  %vm6753_vm8 = vweird.f32 %v6725_v16  ;;  %v7235_v42 = vld [vmem:[%s14414_s11 + $0x8] sm:$0xff] }
0x12d0   :  { %v6767_v10 = vmul.f32 %v7229_v32, %v6736_v39 }
0x12d2   :  { %v6708_v24 = vpop.xlane.xlu2 %6707  ;;  %v6718_v0 = vpop.xlane.xlu1 %6717  ;;  %6773 = vperm.xlu2 %7160, %v6767_v10  }
0x12d3   :  { %v6720_v26 = vmul.f32 %v6708_v24, %v16092_v9  ;;  %v6722_v23 = vmul.f32 %v6718_v0, %v16092_v9 }
0x12d5   :  { %v7199_v19 = vpop.eup %7198  ;;  %v6724_v44 = vadd.f32 1e-05, %v6720_v26  ;;  %v6726_v29 = vadd.f32 1e-05, %v6722_v23 }
0x12d6   :  { %v6748_v51 = vmul.f32 %v7199_v19, %v6725_v16  ;;  %vm6754_vm5 = vweird.f32 %v7199_v19 }
0x12d7   :  { %7200 = vrsqrt.f32 %v6724_v44  ;;  %vm6755_vm9 = vmor %vm6753_vm8, %vm6754_vm5  ;;  %vm6763_vm11 = vweird.f32 %v6726_v29  ;;  %vm6743_vm14 = vweird.f32 %v6724_v44 }
0x12d8   :  { %v6749_v8 = vmul.f32 %v7199_v19, %v6748_v51  ;;  %7202 = vrsqrt.f32 %v6726_v29 }
0x12da   :  { %v6750_v38 = vmul.f32 0.5, %v6749_v8  ;;  %6808 = vperm.xlu2 %7160, %v7230_v4   ;;  %v6817_v27 = vpop.permute.xlu2 %6816 }
0x12dc   :  { %v6751_v63 = vsub.f32 1.5, %v6750_v38 }
0x12dd   :  { %v7201_v48 = vpop.eup %7200 }
0x12de   :  { %v7203_v35 = vpop.eup %7202  ;;  %v6752_v54 = vmul.f32 %v7199_v19, %v6751_v63  ;;  %v6738_v9 = vmul.f32 %v7201_v48, %v6724_v44  ;;  %vm6744_vm13 = vweird.f32 %v7201_v48 }
0x12df   :  { %v6758_v14 = vmul.f32 %v7203_v35, %v6726_v29  ;;  %vm6764_vm10 = vweird.f32 %v7203_v35  ;;  %vm6745_vm15 = vmor %vm6743_vm14, %vm6744_vm13 }
0x12e0   :  { %v6739_v36 = vmul.f32 %v7201_v48, %v6738_v9  ;;  %v6756_v37 = vsel %vm6755_vm9, %v7199_v19, %v6752_v54  ;;  %vm6765_vm12 = vmor %vm6763_vm11, %vm6764_vm10 }
0x12e1   :  { %v6759_v56 = vmul.f32 %v7203_v35, %v6758_v14  ;;  %v6769_v12 = vmul.f32 %v7231_v1, %v6756_v37 }
0x12e2   :  { %v6740_v61 = vmul.f32 0.5, %v6739_v36 }
0x12e3   :  { %v6760_v50 = vmul.f32 0.5, %v6759_v56  ;;  %6783 = vperm.xlu1 %7158, %v6769_v12  }
0x12e4   :  { %v6741_v57 = vsub.f32 1.5, %v6740_v61 }
0x12e5   :  { %v6761_v7 = vsub.f32 1.5, %v6760_v50 }
0x12e6   :  { %v6742_v47 = vmul.f32 %v7201_v48, %v6741_v57 }
0x12e7   :  { %v6762_v33 = vmul.f32 %v7203_v35, %v6761_v7 }
0x12e8   :  { %v6746_v34 = vsel %vm6745_vm15, %v7201_v48, %v6742_v47 }
0x12e9   :  { %v6766_v30 = vsel %vm6765_vm12, %v7203_v35, %v6762_v33  ;;  %v6768_v58 = vmul.f32 %v7234_v15, %v6746_v34 }
0x12ea   :  { %v6770_v17 = vmul.f32 %v7232_v13, %v6766_v30 }
0x12eb   :  { %6820 = vperm.xlu1 %7158, %v7233_v31  }
0x12ec   :  { %6788 = vperm.xlu0 %7159, %v6770_v17  }
0x12f3   :  { %6778 = vperm.xlu1 %7158, %v6768_v58  }
0x12f4   :  { %7161 = vset.pattern.permute.xlu0 %v16093_v2 }
0x12f5   :  { %6867 = vperm.xlu0 %7161, %v6864_v28  }
0x12fb   :  { %6812 = vperm.xlu1 %7158, %v7235_v42  }
0x132c   :  { %v6774_v39 = vpop.permute.xlu2 %6773 }
0x132d   :  { %v6792_v37 = vmul.f32 %v6774_v39, %v14279_v25  ;;  %v6793_v56 = vmul.f32 %v6774_v39, %v14281_v3  ;;  %v6794_v1 = vmul.f32 %v6774_v39, %v14283_v60 }
0x1355   :  { %v6784_v62 = vpop.permute.xlu1 %6783 }
0x1356   :  { %v6799_v53 = vmul.f32 %v6784_v62, %v14294_v21  ;;  %v6800_v18 = vmul.f32 %v6784_v62, %v14296_v45  ;;  %v6801_v22 = vmul.f32 %v6784_v62, %v14298_v40  ;;  %v6802_v41 = vmul.f32 %v6784_v62, %v14304_v52 }
0x1358   :  { %v6831_v32 = vadd.f32 %v6817_v27, %v6799_v53  ;;  %v6832_v10 = vadd.f32 %v6817_v27, %v6800_v18  ;;  %v6833_v24 = vadd.f32 %v6817_v27, %v6801_v22  ;;  %v6834_v0 = vadd.f32 %v6817_v27, %v6802_v41 }
0x135a   :  { %v6847_v52 = vmax.f32 %v6831_v32, 0.0  ;;  %v6848_v8 = vmax.f32 %v6832_v10, 0.0  ;;  %v6849_v38 = vmax.f32 %v6833_v24, 0.0  ;;  %v6850_v4 = vmax.f32 %v6834_v0, 0.0 }
0x135d   :  { %v6821_v16 = vpop.permute.xlu1 %6820 }
0x135e   :  { %v6789_v26 = vpop.permute.xlu0 %6788 }
0x135f   :  { %v6803_v23 = vmul.f32 %v6789_v26, %v14318_v11  ;;  %v6804_v19 = vmul.f32 %v6789_v26, %v14320_v43  ;;  %v6805_v44 = vmul.f32 %v6789_v26, %v14322_v46  ;;  %v6806_v21 = vmul.f32 %v6789_v26, %v14330_v59  ;;  %v6809_v46 = vpop.permute.xlu2 %6808 }
0x1360   :  { %v6791_v59 = vmul.f32 %v6774_v39, %v14277_v49  ;;  %v6824_v61 = vadd.f32 %v6809_v46, %v6792_v37  ;;  %v6825_v50 = vadd.f32 %v6809_v46, %v6793_v56  ;;  %v6826_v7 = vadd.f32 %v6809_v46, %v6794_v1 }
0x1361   :  { %v6835_v45 = vadd.f32 %v6821_v16, %v6803_v23  ;;  %v6836_v29 = vadd.f32 %v6821_v16, %v6804_v19  ;;  %v6837_v40 = vadd.f32 %v6821_v16, %v6805_v44  ;;  %v6838_v51 = vadd.f32 %v6821_v16, %v6806_v21 }
0x1362   :  { %v6823_v12 = vadd.f32 %v6809_v46, %v6791_v59  ;;  %v6840_v34 = vmax.f32 %v6824_v61, 0.0  ;;  %v6841_v60 = vmax.f32 %v6825_v50, 0.0  ;;  %v6842_v15 = vmax.f32 %v6826_v7, 0.0 }
0x1363   :  { %v6851_v63 = vmax.f32 %v6835_v45, 0.0  ;;  %v6852_v48 = vmax.f32 %v6836_v29, 0.0  ;;  %v6853_v35 = vmax.f32 %v6837_v40, 0.0  ;;  %v6854_v54 = vmax.f32 %v6838_v51, 0.0 }
0x1364   :  { %v6839_v3 = vmax.f32 %v6823_v12, 0.0 }
0x1365   :  { %v6779_v9 = vpop.permute.xlu1 %6778  ;;  %v6860_v11 = vpack.c.bf16 %v6851_v63, %v6847_v52  ;;  %v6861_v14 = vpack.c.bf16 %v6852_v48, %v6848_v8  ;;  %v6862_v43 = vpack.c.bf16 %v6853_v35, %v6849_v38  ;;  %v6863_v36 = vpack.c.bf16 %v6854_v54, %v6850_v4 }
0x1366   :  { %v6795_v57 = vmul.f32 %v6779_v9, %v14312_v5  ;;  %v6796_v33 = vmul.f32 %v6779_v9, %v14314_v20  ;;  %v6797_v30 = vmul.f32 %v6779_v9, %v14316_v55  ;;  %v6798_v47 = vmul.f32 %v6779_v9, %v14324_v6  ;;  %v6855_v55 = vld [vmem:[%s14422_s8] sm:$0xf] }
0x1367   :  { %6879 = vmatpush.bf16.msra.mxu0 %v6860_v11  ;;  %6892 = vmatpush.bf16.msra.mxu1 %v6861_v14  ;;  %v6868_v6 = vpop.permute.xlu0 %6867 }
0x1368   :  { %6905 = vmatpush.bf16.msra.mxu2 %v6862_v43  ;;  %6918 = vmatpush.bf16.msra.mxu3 %v6863_v36 }
0x136d   :  { %v6813_v13 = vpop.permute.xlu1 %6812 }
0x136e   :  { %v6827_v49 = vadd.f32 %v6813_v13, %v6795_v57  ;;  %v6828_v17 = vadd.f32 %v6813_v13, %v6796_v33  ;;  %v6829_v25 = vadd.f32 %v6813_v13, %v6797_v30  ;;  %v6830_v31 = vadd.f32 %v6813_v13, %v6798_v47 }
0x1370   :  { %v6843_v58 = vmax.f32 %v6827_v49, 0.0  ;;  %v6844_v2 = vmax.f32 %v6828_v17, 0.0  ;;  %v6845_v42 = vmax.f32 %v6829_v25, 0.0  ;;  %v6846_v27 = vmax.f32 %v6830_v31, 0.0 }
0x1372   :  { %v6856_v5 = vpack.c.bf16 %v6843_v58, %v6839_v3  ;;  %v6857_v62 = vpack.c.bf16 %v6844_v2, %v6840_v34  ;;  %v6858_v20 = vpack.c.bf16 %v6845_v42, %v6841_v60  ;;  %v6859_v28 = vpack.c.bf16 %v6846_v27, %v6842_v15 }
0x1374   :  { %6880 = vmatpush.bf16.msra.mxu0 %v6856_v5  ;;  %6893 = vmatpush.bf16.msra.mxu1 %v6857_v62 }
0x1375   :  { %6906 = vmatpush.bf16.msra.mxu2 %v6858_v20  ;;  %6919 = vmatpush.bf16.msra.mxu3 %v6859_v28 }
0x1377   :  { %7100 = vmatmul.msk.bf16.vlgmr.msra.gmra.mxu0 %vm1883_vm6, %v6855_v55  ;;  %7101 = vmatmul.msk.bf16.vlgmr.msra.gmra.mxu1 %vm1883_vm6, %v6855_v55 }
0x1378   :  { %7102 = vmatmul.msk.bf16.vlgmr.msra.gmra.mxu2 %vm1883_vm6, %v6855_v55  ;;  %7103 = vmatmul.msk.bf16.vlgmr.msra.gmra.mxu3 %vm1883_vm6, %v6855_v55 }
0x13f4   :  { %v6882_v53 = vpop.f32.mrf.mxu0  ;;  %v6895_v18 = vpop.f32.mrf.mxu1 }
0x13f5   :  { %v6883_v22 = vadd.f32 %v6882_v53, %v6868_v6  ;;  %v6896_v41 = vadd.f32 %v6895_v18, %v6868_v6 }
0x13f7   :  { %6925 = vst [vmem:[%s14423_s12] sm:$0xff] %v6883_v22 }
0x13f8   :  { %6926 = vst [vmem:[%s14423_s12 + $0x8] sm:$0xff] %v6896_v41 }
0x13fb   :  { %v6908_v16 = vpop.f32.mrf.mxu2  ;;  %v6921_v39 = vpop.f32.mrf.mxu3 }
0x13fc   :  { %v6909_v32 = vadd.f32 %v6908_v16, %v6868_v6  ;;  %v6922_v10 = vadd.f32 %v6921_v39, %v6868_v6  ;;  %v6884_v24 = vpop.f32.mrf.mxu0  ;;  %v6897_v0 = vpop.f32.mrf.mxu1 }
0x13fe   :  { %6927 = vst [vmem:[%s14423_s12 + $0x10] sm:$0xff] %v6909_v32 }
0x13ff   :  { %6928 = vst [vmem:[%s14423_s12 + $0x18] sm:$0xff] %v6922_v10 }
0x1403   :  { %v6910_v26 = vpop.f32.mrf.mxu2  ;;  %v6923_v23 = vpop.f32.mrf.mxu3 }

</bundles_post_ra>
